<compile_context>
chip_gen: v5e
topology: v5e:2x2
jax: 0.10.0
libtpu: 0.0.40
codegen_flags: <defaults>
</compile_context>

<pallas_src>
import functools
import math

import jax
import jax.numpy as jnp
from jax.experimental import pallas as pl
from jax.experimental.pallas import tpu as pltpu

LANE = 128      # lane width  (last dim alignment)
SUBLANE = 8     # sublane width (second-to-last dim alignment)
T_CHUNK = 8     # time steps processed per grid iteration


def _round_up(x, m):
    return (x + m - 1) // m * m


def _pad_to(x, shape):
    return jnp.pad(x, [(0, t - s) for s, t in zip(x.shape, shape)])


def _pad_axis(x, axis, target):
    pad = [(0, 0)] * x.ndim
    pad[axis] = (0, target - x.shape[axis])
    return jnp.pad(x, pad)


# --------------------------------------------------------------------------
# LSTM recurrence kernel: gates_x (precomputed) + h_prev @ W_hh, masked by
# per-sequence lengths (packed-sequence semantics). Time chunked, state in
# VMEM scratch, final state written only on the last chunk.
# --------------------------------------------------------------------------
def _lstm_rec_kernel(len_ref, gx_ref, whh_ref,
                     out_ref, hfin_ref, cfin_ref,
                     h_scr, c_scr, *, t_chunk, hp):
    chunk = pl.program_id(0)

    @pl.when(chunk == 0)
    def _():
        h_scr[...] = jnp.zeros_like(h_scr)
        c_scr[...] = jnp.zeros_like(c_scr)

    whh = whh_ref[...]            # (Hp, 4Hp), hoisted out of the loop
    lengths = len_ref[...]        # (Bp, 1) int32
    t_base = chunk * t_chunk

    def step(i, carry):
        h_prev, c_prev = carry
        gates = gx_ref[i] + jnp.dot(h_prev, whh,
                                    preferred_element_type=jnp.float32)
        # PyTorch gate order i, f, g, o; slices land on 128-lane boundaries.
        i_g = jax.nn.sigmoid(gates[:, 0 * hp:1 * hp])
        f_g = jax.nn.sigmoid(gates[:, 1 * hp:2 * hp])
        g_g = jnp.tanh(gates[:, 2 * hp:3 * hp])
        o_g = jax.nn.sigmoid(gates[:, 3 * hp:4 * hp])
        c_new = f_g * c_prev + i_g * g_g
        h_new = o_g * jnp.tanh(c_new)

        valid = (t_base + i) < lengths            # (Bp, 1) bool
        h_nxt = jnp.where(valid, h_new, h_prev)   # freeze state past length
        c_nxt = jnp.where(valid, c_new, c_prev)
        out_ref[i] = jnp.where(valid, h_new, jnp.zeros_like(h_new))
        return h_nxt, c_nxt

    h_fin, c_fin = jax.lax.fori_loop(
        0, t_chunk, step, (h_scr[...], c_scr[...]), unroll=True)

    h_scr[...] = h_fin
    c_scr[...] = c_fin

    @pl.when(chunk == pl.num_programs(0) - 1)
    def _():
        hfin_ref[...] = h_fin
        cfin_ref[...] = c_fin


def lstm_recurrence(gx, lengths_2d, whh_t):
    """gx: (Tp, Bp, 4*Hp) precomputed x@W_ih + bias (decoder: + hidden@W_hid).
    lengths_2d: (Bp, 1) int32.  whh_t: (Hp, 4*Hp).
    Returns (out (Tp,Bp,Hp), h_final (Bp,Hp), c_final (Bp,Hp))."""
    Tp, Bp, four_hp = gx.shape
    Hp = four_hp // 4
    n_chunks = Tp // T_CHUNK

    kernel = functools.partial(_lstm_rec_kernel, t_chunk=T_CHUNK, hp=Hp)
    grid_spec = pltpu.PrefetchScalarGridSpec(
        num_scalar_prefetch=0,
        grid=(n_chunks,),
        in_specs=[
            pl.BlockSpec((Bp, 1), lambda c: (0, 0)),                 # lengths
            pl.BlockSpec((T_CHUNK, Bp, four_hp), lambda c: (c, 0, 0)),
            pl.BlockSpec((Hp, four_hp), lambda c: (0, 0)),           # W_hh
        ],
        out_specs=[
            pl.BlockSpec((T_CHUNK, Bp, Hp), lambda c: (c, 0, 0)),
            pl.BlockSpec((Bp, Hp), lambda c: (0, 0)),
            pl.BlockSpec((Bp, Hp), lambda c: (0, 0)),
        ],
        scratch_shapes=[pltpu.VMEM((Bp, Hp), jnp.float32),
                        pltpu.VMEM((Bp, Hp), jnp.float32)],
    )
    out_shapes = (jax.ShapeDtypeStruct((Tp, Bp, Hp), jnp.float32),
                  jax.ShapeDtypeStruct((Bp, Hp), jnp.float32),
                  jax.ShapeDtypeStruct((Bp, Hp), jnp.float32))
    return pl.pallas_call(
        kernel,
        out_shape=out_shapes,
        grid_spec=grid_spec,
        compiler_params=pltpu.CompilerParams(
            dimension_semantics=("arbitrary",)),   # recurrence: sequential
    )(lengths_2d, gx, whh_t)


# --------------------------------------------------------------------------
# Tiled Linear kernel (rows x vocab tiles, lane-dense output blocks)
# --------------------------------------------------------------------------
def _linear_kernel(x_ref, w_ref, b_ref, o_ref):
    o_ref[...] = (jnp.dot(x_ref[...], w_ref[...],
                          preferred_element_type=jnp.float32) + b_ref[...])


def linear_pallas(x, w_t, b_row):
    """x: (N, K), w_t: (K, Vp), b_row: (1, Vp) -> (N, Vp). N%8==0, Vp%128==0."""
    N, K = x.shape
    Vp = w_t.shape[1]
    tm = math.gcd(N, 256)      # multiple of 8, divides N
    tn = math.gcd(Vp, 512)     # multiple of 128, divides Vp (lane-dense)
    grid = (N // tm, Vp // tn)
    return pl.pallas_call(
        _linear_kernel,
        out_shape=jax.ShapeDtypeStruct((N, Vp), jnp.float32),
        grid_spec=pltpu.PrefetchScalarGridSpec(
            num_scalar_prefetch=0,
            grid=grid,
            in_specs=[pl.BlockSpec((tm, K), lambda i, j: (i, 0)),
                      pl.BlockSpec((K, tn), lambda i, j: (0, j)),
                      pl.BlockSpec((1, tn), lambda i, j: (0, j))],
            out_specs=pl.BlockSpec((tm, tn), lambda i, j: (i, j)),
        ),
        compiler_params=pltpu.CompilerParams(
            dimension_semantics=("parallel", "parallel")),
    )(x, w_t, b_row)


# --------------------------------------------------------------------------
# Parameter init (mirrors Seq2Seq.init_weights: uniform(-0.1, 0.1), bias=0)
# --------------------------------------------------------------------------
def init_params(key, emsize, nhidden, ntokens, nlayers):
    initrange = 0.1
    keys = iter(jax.random.split(key, 4 + 8 * nlayers + 8))

    def u(shape):
        return jax.random.uniform(next(keys), shape, jnp.float32,
                                  -initrange, initrange)

    params = {
        "embedding": u((ntokens, emsize)),
        "embedding_decoder": u((ntokens, emsize)),
        "encoder": [],
        "linear_w": u((ntokens, nhidden)),
        "linear_b": jnp.zeros((ntokens,), jnp.float32),
    }
    for layer in range(nlayers):
        in_size = emsize if layer == 0 else nhidden
        params["encoder"].append({
            "w_ih": u((4 * nhidden, in_size)),
            "w_hh": u((4 * nhidden, nhidden)),
            "b_ih": u((4 * nhidden,)),
            "b_hh": u((4 * nhidden,)),
        })
    dec_in = emsize + nhidden
    params["decoder"] = {
        "w_ih": u((4 * nhidden, dec_in)),
        "w_hh": u((4 * nhidden, nhidden)),
        "b_ih": u((4 * nhidden,)),
        "b_hh": u((4 * nhidden,)),
    }
    return params


# --------------------------------------------------------------------------
# Weight preparation: pad H->Hp, V->Vp, transpose into gate-blocked layout so
# gate g lives at lanes [g*Hp, (g+1)*Hp) (128-aligned slices in the kernel).
# --------------------------------------------------------------------------
def _prep_gate_weight(w, in_pad, hp):
    # w: (4H, I) torch layout -> (in_pad, 4*hp), zero-padded
    four_h, i_in = w.shape
    h = four_h // 4
    w = w.reshape(4, h, i_in)
    w = _pad_to(w, (4, hp, in_pad))
    return jnp.transpose(w, (2, 0, 1)).reshape(in_pad, 4 * hp)


def _prep_gate_bias(b_ih, b_hh, hp):
    h = b_ih.shape[0] // 4
    b = (b_ih + b_hh).reshape(4, h)
    return _pad_to(b, (4, hp)).reshape(1, 4 * hp)


def prepare_params(params):
    E = params["embedding"].shape[1]
    H = params["encoder"][0]["w_hh"].shape[1]
    Hp = _round_up(H, LANE)

    enc = []
    for li, lp in enumerate(params["encoder"]):
        in_size = lp["w_ih"].shape[1]
        in_pad = in_size if li == 0 else Hp     # layer>0 input is padded Hp
        enc.append({
            "wih_t": _prep_gate_weight(lp["w_ih"], in_pad, Hp),
            "whh_t": _prep_gate_weight(lp["w_hh"], Hp, Hp),
            "bias": _prep_gate_bias(lp["b_ih"], lp["b_hh"], Hp),
        })

    dp = params["decoder"]
    w_ie = dp["w_ih"][:, :E]       # embedding part of decoder input
    w_ihid = dp["w_ih"][:, E:]     # hidden   part of decoder input
    dec = {
        "wie_t": _prep_gate_weight(w_ie, E, Hp),
        "wihid_t": _prep_gate_weight(w_ihid, Hp, Hp),
        "whh_t": _prep_gate_weight(dp["w_hh"], Hp, Hp),
        "bias": _prep_gate_bias(dp["b_ih"], dp["b_hh"], Hp),
    }

    V = params["linear_w"].shape[0]
    Vp = _round_up(V, LANE)
    lin_w = _pad_to(jnp.transpose(params["linear_w"]), (Hp, Vp))   # (Hp, Vp)
    lin_b = _pad_to(params["linear_b"], (Vp,)).reshape(1, Vp)

    return {
        "embedding": params["embedding"].astype(jnp.float32),
        "embedding_decoder": params["embedding_decoder"].astype(jnp.float32),
        "encoder": enc,
        "decoder": dec,
        "linear_w_t": lin_w,
        "linear_b": lin_b,
    }


# --------------------------------------------------------------------------
# Forward pass (Seq2Seq.forward with hidden_init=False, dropout=0)
# --------------------------------------------------------------------------
def encode(prep, indices, lens_p, Bp, Tp, noise, noise_radius, noise_key):
    Hp = prep["encoder"][0]["whh_t"].shape[0]

    emb = prep["embedding"][indices].astype(jnp.float32)      # (B,T,E) gather
    x = jnp.transpose(emb, (1, 0, 2))                          # (T,B,E)
    x = _pad_axis(_pad_axis(x, 0, Tp), 1, Bp)                  # (Tp,Bp,E)

    h_last = None
    for lp in prep["encoder"]:
        # hoisted input projection: one big (Tp*Bp, I) x (I, 4Hp) matmul
        gx = (jnp.dot(x.reshape(Tp * Bp, x.shape[-1]), lp["wih_t"],
                      preferred_element_type=jnp.float32)
              + lp["bias"]).reshape(Tp, Bp, 4 * Hp)
        x, h_last, _ = lstm_recurrence(gx, lens_p, lp["whh_t"])

    # L2 normalize final hidden state (plain JAX; rsqrt + eps to avoid NaN
    # on all-zero rows, matching torch hidden / ||hidden|| otherwise).
    sq = jnp.sum(h_last * h_last, axis=1, keepdims=True)
    hidden = h_last * jax.lax.rsqrt(sq + 1e-12)

    if noise and noise_radius > 0:
        hidden = hidden + noise_radius * jax.random.normal(
            noise_key, hidden.shape, jnp.float32)
    return hidden                                              # (Bp, Hp)


def decode(prep, hidden_p, indices, lens_p, Bp, Tp, nhidden):
    B, T = indices.shape
    H = nhidden
    dp = prep["decoder"]
    Hp = dp["whh_t"].shape[0]
    V = prep["embedding"].shape[0]
    Vp = prep["linear_w_t"].shape[1]

    emb = prep["embedding_decoder"][indices].astype(jnp.float32)   # (B,T,E)
    x = jnp.transpose(emb, (1, 0, 2))
    x = _pad_axis(_pad_axis(x, 0, Tp), 1, Bp)                      # (Tp,Bp,E)

    # No broadcast/concat of `hidden`: split projection, hidden part computed
    # once (time-invariant) and added into the gate pre-activations.
    gx_emb = jnp.dot(x.reshape(Tp * Bp, x.shape[-1]), dp["wie_t"],
                     preferred_element_type=jnp.float32).reshape(Tp, Bp, 4 * Hp)
    g_hid = jnp.dot(hidden_p, dp["wihid_t"],
                    preferred_element_type=jnp.float32)            # (Bp, 4Hp)
    gx = gx_emb + g_hid[None, :, :] + dp["bias"]

    # TODO(synk): hidden_init=True branch (decoder initial state = hidden) not
    # wired; default hidden_init=False (zero init) is what the kernel does.
    out, _, _ = lstm_recurrence(gx, lens_p, dp["whh_t"])           # (Tp,Bp,Hp)

    out_bt = jnp.transpose(out, (1, 0, 2))                         # (Bp,Tp,Hp)
    decoded_p = linear_pallas(out_bt.reshape(Bp * Tp, Hp),
                              prep["linear_w_t"], prep["linear_b"])
    decoded = decoded_p.reshape(Bp, Tp, Vp)[:B, :T, :V]
    emb_nhidden = out_bt[:B, :T, :H].reshape(B * T, H)
    return decoded, emb_nhidden


@functools.partial(jax.jit, static_argnames=("nhidden", "noise", "noise_radius"))
def seq2seq_forward(prep, indices, lengths, nhidden, noise=False,
                    noise_radius=0.2, noise_key=None):
    if noise_key is None:
        noise_key = jax.random.PRNGKey(1)
    B, T = indices.shape
    Bp = _round_up(B, SUBLANE)
    Tp = _round_up(T, T_CHUNK)
    lens_p = jnp.pad(lengths.astype(jnp.int32), (0, Bp - B)).reshape(Bp, 1)

    hidden_p = encode(prep, indices, lens_p, Bp, Tp, noise, noise_radius,
                      noise_key)
    decoded, emb_nhidden = decode(prep, hidden_p, indices, lens_p, Bp, Tp,
                                  nhidden)
    return decoded, emb_nhidden


# --------------------------------------------------------------------------
if __name__ == "__main__":
    B, T = 4, 8
    emsize, nhidden, ntokens, nlayers = 32, 32, 48, 2

    key = jax.random.PRNGKey(0)
    k_params, k_idx = jax.random.split(key)
    params = init_params(k_params, emsize, nhidden, ntokens, nlayers)
    prep = prepare_params(params)

    indices = jax.random.randint(k_idx, (B, T), 0, ntokens, dtype=jnp.int32)
    # pack_padded_sequence expects lengths sorted descending, max == maxlen
    lengths = jnp.array([8, 7, 6, 5], dtype=jnp.int32)

    decoded, emb_nhidden = seq2seq_forward(prep, indices, lengths, nhidden,
                                           noise=False)
    jax.block_until_ready(decoded)
    jax.block_until_ready(emb_nhidden)

    assert decoded.shape == (B, T, ntokens)
    assert emb_nhidden.shape == (B * T, nhidden)
    print("KERNEL_OK")
</pallas_src>

<mosaic_0001>
module attributes {stable_mosaic.version = 11 : i64} {
  func.func @_lstm_rec_kernel(%arg0: i32, %arg1: memref<8x1xi32, #tpu.memory_space<vmem>>, %arg2: memref<8x8x512xf32, #tpu.memory_space<vmem>>, %arg3: memref<128x512xf32, #tpu.memory_space<vmem>>, %arg4: memref<8x8x128xf32, #tpu.memory_space<vmem>>, %arg5: memref<8x128xf32, #tpu.memory_space<vmem>>, %arg6: memref<8x128xf32, #tpu.memory_space<vmem>>, %arg7: memref<8x128xf32, #tpu.memory_space<vmem>>, %arg8: memref<8x128xf32, #tpu.memory_space<vmem>>) attributes {dimension_semantics = [#tpu.dimension_semantics<arbitrary>], iteration_bounds = array<i64: 1>, scalar_prefetch = 0 : i64, scratch_operands = 2 : i64, tpu.core_type = #tpu.core_type<tc>, window_params = [{pipeline_mode = #tpu.pipeline_mode<synchronous>, transform_indices = @transform_0, window_bounds = array<i64: 8, 1>}, {transform_indices = @transform_1, window_bounds = array<i64: 8, 8, 512>}, {pipeline_mode = #tpu.pipeline_mode<synchronous>, transform_indices = @transform_2, window_bounds = array<i64: 128, 512>}, {transform_indices = @transform_3, window_bounds = array<i64: 8, 8, 128>}, {pipeline_mode = #tpu.pipeline_mode<synchronous>, transform_indices = @transform_4, window_bounds = array<i64: 8, 128>}, {pipeline_mode = #tpu.pipeline_mode<synchronous>, transform_indices = @transform_5, window_bounds = array<i64: 8, 128>}]} {
    %c0_i32 = arith.constant 0 : i32
    %0 = arith.cmpi eq, %arg0, %c0_i32 : i32
    %1 = arith.extui %0 : i1 to i32
    %c0_i32_0 = arith.constant 0 : i32
    %2 = arith.cmpi ne, %1, %c0_i32_0 : i32
    scf.if %2 {
      %cst_87 = arith.constant 0.000000e+00 : f32
      %389 = vector.broadcast %cst_87 : f32 to vector<8x128xf32>
      %c0_88 = arith.constant 0 : index
      %c0_89 = arith.constant 0 : index
      %390 = vector.load %arg7[%c0_88, %c0_89] : memref<8x128xf32, #tpu.memory_space<vmem>>, vector<8x128xf32>
      tpu.vector_store %arg7[%c0_88, %c0_89], %389 {strides = array<i32>} : memref<8x128xf32, #tpu.memory_space<vmem>>, vector<8x128xf32>,
      %cst_90 = arith.constant 0.000000e+00 : f32
      %391 = vector.broadcast %cst_90 : f32 to vector<8x128xf32>
      %c0_91 = arith.constant 0 : index
      %c0_92 = arith.constant 0 : index
      %392 = vector.load %arg8[%c0_91, %c0_92] : memref<8x128xf32, #tpu.memory_space<vmem>>, vector<8x128xf32>
      tpu.vector_store %arg8[%c0_91, %c0_92], %391 {strides = array<i32>} : memref<8x128xf32, #tpu.memory_space<vmem>>, vector<8x128xf32>,
    } else {
    }
    %c0 = arith.constant 0 : index
    %c0_1 = arith.constant 0 : index
    %3 = vector.load %arg3[%c0, %c0_1] : memref<128x512xf32, #tpu.memory_space<vmem>>, vector<128x512xf32>
    %c0_2 = arith.constant 0 : index
    %c0_3 = arith.constant 0 : index
    %4 = vector.load %arg1[%c0_2, %c0_3] : memref<8x1xi32, #tpu.memory_space<vmem>>, vector<8x1xi32>
    %c8_i32 = arith.constant 8 : i32
    %5 = arith.muli %arg0, %c8_i32 : i32
    %c0_4 = arith.constant 0 : index
    %c0_5 = arith.constant 0 : index
    %6 = vector.load %arg7[%c0_4, %c0_5] : memref<8x128xf32, #tpu.memory_space<vmem>>, vector<8x128xf32>
    %c0_6 = arith.constant 0 : index
    %c0_7 = arith.constant 0 : index
    %7 = vector.load %arg8[%c0_6, %c0_7] : memref<8x128xf32, #tpu.memory_space<vmem>>, vector<8x128xf32>
    %c0_i32_8 = arith.constant 0 : i32
    %8 = arith.index_cast %c0_i32_8 : i32 to index
    %c0_9 = arith.constant 0 : index
    %c0_10 = arith.constant 0 : index
    %9 = vector.load %arg2[%8, %c0_9, %c0_10] : memref<8x8x512xf32, #tpu.memory_space<vmem>>, vector<1x8x512xf32>
    %10 = vector.shape_cast %9 : vector<1x8x512xf32> to vector<8x512xf32>
    %cst = arith.constant dense<0.000000e+00> : vector<8x512xf32>
    %11 = tpu.matmul %6, %3, %cst {dimension_numbers = #tpu.dot_dimension_numbers<[1], [0], [0], [1], [0, 0, 1, 1], [], []>} : vector<8x128xf32>, vector<128x512xf32>, vector<8x512xf32> -> vector<8x512xf32>
    %12 = arith.addf %10, %11 : vector<8x512xf32>
    %13 = vector.extract_strided_slice %12 {offsets = [0, 0], sizes = [8, 128], strides = [1, 1]} : vector<8x512xf32> to vector<8x128xf32>
    %14 = arith.negf %13 : vector<8x128xf32>
    %15 = math.exp %14 : vector<8x128xf32>
    %cst_11 = arith.constant 1.000000e+00 : f32
    %16 = vector.broadcast %cst_11 : f32 to vector<8x128xf32>
    %17 = arith.addf %16, %15 : vector<8x128xf32>
    %18 = arith.divf %16, %17 : vector<8x128xf32>
    %19 = vector.extract_strided_slice %12 {offsets = [0, 128], sizes = [8, 128], strides = [1, 1]} : vector<8x512xf32> to vector<8x128xf32>
    %20 = arith.negf %19 : vector<8x128xf32>
    %21 = math.exp %20 : vector<8x128xf32>
    %cst_12 = arith.constant 1.000000e+00 : f32
    %22 = vector.broadcast %cst_12 : f32 to vector<8x128xf32>
    %23 = arith.addf %22, %21 : vector<8x128xf32>
    %24 = arith.divf %22, %23 : vector<8x128xf32>
    %25 = vector.extract_strided_slice %12 {offsets = [0, 256], sizes = [8, 128], strides = [1, 1]} : vector<8x512xf32> to vector<8x128xf32>
    %26 = math.tanh %25 : vector<8x128xf32>
    %27 = vector.extract_strided_slice %12 {offsets = [0, 384], sizes = [8, 128], strides = [1, 1]} : vector<8x512xf32> to vector<8x128xf32>
    %28 = arith.negf %27 : vector<8x128xf32>
    %29 = math.exp %28 : vector<8x128xf32>
    %cst_13 = arith.constant 1.000000e+00 : f32
    %30 = vector.broadcast %cst_13 : f32 to vector<8x128xf32>
    %31 = arith.addf %30, %29 : vector<8x128xf32>
    %32 = arith.divf %30, %31 : vector<8x128xf32>
    %33 = arith.mulf %24, %7 : vector<8x128xf32>
    %34 = arith.mulf %18, %26 : vector<8x128xf32>
    %35 = arith.addf %33, %34 : vector<8x128xf32>
    %36 = math.tanh %35 : vector<8x128xf32>
    %37 = arith.mulf %32, %36 : vector<8x128xf32>
    %38 = arith.addi %5, %c0_i32_8 : i32
    %39 = vector.broadcast %38 : i32 to vector<8x1xi32>
    %40 = arith.cmpi slt, %39, %4 : vector<8x1xi32>
    %41 = vector.shape_cast %40 : vector<8x1xi1> to vector<8x1xi1>
    %42 = vector.broadcast %41 : vector<8x1xi1> to vector<8x128xi1>
    %43 = arith.select %42, %37, %6 : vector<8x128xi1>, vector<8x128xf32>
    %44 = vector.shape_cast %40 : vector<8x1xi1> to vector<8x1xi1>
    %45 = vector.broadcast %44 : vector<8x1xi1> to vector<8x128xi1>
    %46 = arith.select %45, %35, %7 : vector<8x128xi1>, vector<8x128xf32>
    %cst_14 = arith.constant 0.000000e+00 : f32
    %47 = vector.broadcast %cst_14 : f32 to vector<8x128xf32>
    %48 = vector.shape_cast %40 : vector<8x1xi1> to vector<8x1xi1>
    %49 = vector.broadcast %48 : vector<8x1xi1> to vector<8x128xi1>
    %50 = arith.select %49, %37, %47 : vector<8x128xi1>, vector<8x128xf32>
    %51 = arith.index_cast %c0_i32_8 : i32 to index
    %c0_15 = arith.constant 0 : index
    %c0_16 = arith.constant 0 : index
    %52 = vector.load %arg4[%51, %c0_15, %c0_16] : memref<8x8x128xf32, #tpu.memory_space<vmem>>, vector<1x8x128xf32>
    %53 = vector.shape_cast %52 : vector<1x8x128xf32> to vector<8x128xf32>
    %54 = vector.shape_cast %50 : vector<8x128xf32> to vector<1x8x128xf32>
    tpu.vector_store %arg4[%51, %c0_15, %c0_16], %54 {strides = array<i32>} : memref<8x8x128xf32, #tpu.memory_space<vmem>>, vector<1x8x128xf32>,
    %c1_i32 = arith.constant 1 : i32
    %55 = arith.index_cast %c1_i32 : i32 to index
    %c0_17 = arith.constant 0 : index
    %c0_18 = arith.constant 0 : index
    %56 = vector.load %arg2[%55, %c0_17, %c0_18] : memref<8x8x512xf32, #tpu.memory_space<vmem>>, vector<1x8x512xf32>
    %57 = vector.shape_cast %56 : vector<1x8x512xf32> to vector<8x512xf32>
    %cst_19 = arith.constant dense<0.000000e+00> : vector<8x512xf32>
    %58 = tpu.matmul %43, %3, %cst_19 {dimension_numbers = #tpu.dot_dimension_numbers<[1], [0], [0], [1], [0, 0, 1, 1], [], []>} : vector<8x128xf32>, vector<128x512xf32>, vector<8x512xf32> -> vector<8x512xf32>
    %59 = arith.addf %57, %58 : vector<8x512xf32>
    %60 = vector.extract_strided_slice %59 {offsets = [0, 0], sizes = [8, 128], strides = [1, 1]} : vector<8x512xf32> to vector<8x128xf32>
    %61 = arith.negf %60 : vector<8x128xf32>
    %62 = math.exp %61 : vector<8x128xf32>
    %cst_20 = arith.constant 1.000000e+00 : f32
    %63 = vector.broadcast %cst_20 : f32 to vector<8x128xf32>
    %64 = arith.addf %63, %62 : vector<8x128xf32>
    %65 = arith.divf %63, %64 : vector<8x128xf32>
    %66 = vector.extract_strided_slice %59 {offsets = [0, 128], sizes = [8, 128], strides = [1, 1]} : vector<8x512xf32> to vector<8x128xf32>
    %67 = arith.negf %66 : vector<8x128xf32>
    %68 = math.exp %67 : vector<8x128xf32>
    %cst_21 = arith.constant 1.000000e+00 : f32
    %69 = vector.broadcast %cst_21 : f32 to vector<8x128xf32>
    %70 = arith.addf %69, %68 : vector<8x128xf32>
    %71 = arith.divf %69, %70 : vector<8x128xf32>
    %72 = vector.extract_strided_slice %59 {offsets = [0, 256], sizes = [8, 128], strides = [1, 1]} : vector<8x512xf32> to vector<8x128xf32>
    %73 = math.tanh %72 : vector<8x128xf32>
    %74 = vector.extract_strided_slice %59 {offsets = [0, 384], sizes = [8, 128], strides = [1, 1]} : vector<8x512xf32> to vector<8x128xf32>
    %75 = arith.negf %74 : vector<8x128xf32>
    %76 = math.exp %75 : vector<8x128xf32>
    %cst_22 = arith.constant 1.000000e+00 : f32
    %77 = vector.broadcast %cst_22 : f32 to vector<8x128xf32>
    %78 = arith.addf %77, %76 : vector<8x128xf32>
    %79 = arith.divf %77, %78 : vector<8x128xf32>
    %80 = arith.mulf %71, %46 : vector<8x128xf32>
    %81 = arith.mulf %65, %73 : vector<8x128xf32>
    %82 = arith.addf %80, %81 : vector<8x128xf32>
    %83 = math.tanh %82 : vector<8x128xf32>
    %84 = arith.mulf %79, %83 : vector<8x128xf32>
    %85 = arith.addi %5, %c1_i32 : i32
    %86 = vector.broadcast %85 : i32 to vector<8x1xi32>
    %87 = arith.cmpi slt, %86, %4 : vector<8x1xi32>
    %88 = vector.shape_cast %87 : vector<8x1xi1> to vector<8x1xi1>
    %89 = vector.broadcast %88 : vector<8x1xi1> to vector<8x128xi1>
    %90 = arith.select %89, %84, %43 : vector<8x128xi1>, vector<8x128xf32>
    %91 = vector.shape_cast %87 : vector<8x1xi1> to vector<8x1xi1>
    %92 = vector.broadcast %91 : vector<8x1xi1> to vector<8x128xi1>
    %93 = arith.select %92, %82, %46 : vector<8x128xi1>, vector<8x128xf32>
    %cst_23 = arith.constant 0.000000e+00 : f32
    %94 = vector.broadcast %cst_23 : f32 to vector<8x128xf32>
    %95 = vector.shape_cast %87 : vector<8x1xi1> to vector<8x1xi1>
    %96 = vector.broadcast %95 : vector<8x1xi1> to vector<8x128xi1>
    %97 = arith.select %96, %84, %94 : vector<8x128xi1>, vector<8x128xf32>
    %98 = arith.index_cast %c1_i32 : i32 to index
    %c0_24 = arith.constant 0 : index
    %c0_25 = arith.constant 0 : index
    %99 = vector.load %arg4[%98, %c0_24, %c0_25] : memref<8x8x128xf32, #tpu.memory_space<vmem>>, vector<1x8x128xf32>
    %100 = vector.shape_cast %99 : vector<1x8x128xf32> to vector<8x128xf32>
    %101 = vector.shape_cast %97 : vector<8x128xf32> to vector<1x8x128xf32>
    tpu.vector_store %arg4[%98, %c0_24, %c0_25], %101 {strides = array<i32>} : memref<8x8x128xf32, #tpu.memory_space<vmem>>, vector<1x8x128xf32>,
    %c2_i32 = arith.constant 2 : i32
    %102 = arith.index_cast %c2_i32 : i32 to index
    %c0_26 = arith.constant 0 : index
    %c0_27 = arith.constant 0 : index
    %103 = vector.load %arg2[%102, %c0_26, %c0_27] : memref<8x8x512xf32, #tpu.memory_space<vmem>>, vector<1x8x512xf32>
    %104 = vector.shape_cast %103 : vector<1x8x512xf32> to vector<8x512xf32>
    %cst_28 = arith.constant dense<0.000000e+00> : vector<8x512xf32>
    %105 = tpu.matmul %90, %3, %cst_28 {dimension_numbers = #tpu.dot_dimension_numbers<[1], [0], [0], [1], [0, 0, 1, 1], [], []>} : vector<8x128xf32>, vector<128x512xf32>, vector<8x512xf32> -> vector<8x512xf32>
    %106 = arith.addf %104, %105 : vector<8x512xf32>
    %107 = vector.extract_strided_slice %106 {offsets = [0, 0], sizes = [8, 128], strides = [1, 1]} : vector<8x512xf32> to vector<8x128xf32>
    %108 = arith.negf %107 : vector<8x128xf32>
    %109 = math.exp %108 : vector<8x128xf32>
    %cst_29 = arith.constant 1.000000e+00 : f32
    %110 = vector.broadcast %cst_29 : f32 to vector<8x128xf32>
    %111 = arith.addf %110, %109 : vector<8x128xf32>
    %112 = arith.divf %110, %111 : vector<8x128xf32>
    %113 = vector.extract_strided_slice %106 {offsets = [0, 128], sizes = [8, 128], strides = [1, 1]} : vector<8x512xf32> to vector<8x128xf32>
    %114 = arith.negf %113 : vector<8x128xf32>
    %115 = math.exp %114 : vector<8x128xf32>
    %cst_30 = arith.constant 1.000000e+00 : f32
    %116 = vector.broadcast %cst_30 : f32 to vector<8x128xf32>
    %117 = arith.addf %116, %115 : vector<8x128xf32>
    %118 = arith.divf %116, %117 : vector<8x128xf32>
    %119 = vector.extract_strided_slice %106 {offsets = [0, 256], sizes = [8, 128], strides = [1, 1]} : vector<8x512xf32> to vector<8x128xf32>
    %120 = math.tanh %119 : vector<8x128xf32>
    %121 = vector.extract_strided_slice %106 {offsets = [0, 384], sizes = [8, 128], strides = [1, 1]} : vector<8x512xf32> to vector<8x128xf32>
    %122 = arith.negf %121 : vector<8x128xf32>
    %123 = math.exp %122 : vector<8x128xf32>
    %cst_31 = arith.constant 1.000000e+00 : f32
    %124 = vector.broadcast %cst_31 : f32 to vector<8x128xf32>
    %125 = arith.addf %124, %123 : vector<8x128xf32>
    %126 = arith.divf %124, %125 : vector<8x128xf32>
    %127 = arith.mulf %118, %93 : vector<8x128xf32>
    %128 = arith.mulf %112, %120 : vector<8x128xf32>
    %129 = arith.addf %127, %128 : vector<8x128xf32>
    %130 = math.tanh %129 : vector<8x128xf32>
    %131 = arith.mulf %126, %130 : vector<8x128xf32>
    %132 = arith.addi %5, %c2_i32 : i32
    %133 = vector.broadcast %132 : i32 to vector<8x1xi32>
    %134 = arith.cmpi slt, %133, %4 : vector<8x1xi32>
    %135 = vector.shape_cast %134 : vector<8x1xi1> to vector<8x1xi1>
    %136 = vector.broadcast %135 : vector<8x1xi1> to vector<8x128xi1>
    %137 = arith.select %136, %131, %90 : vector<8x128xi1>, vector<8x128xf32>
    %138 = vector.shape_cast %134 : vector<8x1xi1> to vector<8x1xi1>
    %139 = vector.broadcast %138 : vector<8x1xi1> to vector<8x128xi1>
    %140 = arith.select %139, %129, %93 : vector<8x128xi1>, vector<8x128xf32>
    %cst_32 = arith.constant 0.000000e+00 : f32
    %141 = vector.broadcast %cst_32 : f32 to vector<8x128xf32>
    %142 = vector.shape_cast %134 : vector<8x1xi1> to vector<8x1xi1>
    %143 = vector.broadcast %142 : vector<8x1xi1> to vector<8x128xi1>
    %144 = arith.select %143, %131, %141 : vector<8x128xi1>, vector<8x128xf32>
    %145 = arith.index_cast %c2_i32 : i32 to index
    %c0_33 = arith.constant 0 : index
    %c0_34 = arith.constant 0 : index
    %146 = vector.load %arg4[%145, %c0_33, %c0_34] : memref<8x8x128xf32, #tpu.memory_space<vmem>>, vector<1x8x128xf32>
    %147 = vector.shape_cast %146 : vector<1x8x128xf32> to vector<8x128xf32>
    %148 = vector.shape_cast %144 : vector<8x128xf32> to vector<1x8x128xf32>
    tpu.vector_store %arg4[%145, %c0_33, %c0_34], %148 {strides = array<i32>} : memref<8x8x128xf32, #tpu.memory_space<vmem>>, vector<1x8x128xf32>,
    %c3_i32 = arith.constant 3 : i32
    %149 = arith.index_cast %c3_i32 : i32 to index
    %c0_35 = arith.constant 0 : index
    %c0_36 = arith.constant 0 : index
    %150 = vector.load %arg2[%149, %c0_35, %c0_36] : memref<8x8x512xf32, #tpu.memory_space<vmem>>, vector<1x8x512xf32>
    %151 = vector.shape_cast %150 : vector<1x8x512xf32> to vector<8x512xf32>
    %cst_37 = arith.constant dense<0.000000e+00> : vector<8x512xf32>
    %152 = tpu.matmul %137, %3, %cst_37 {dimension_numbers = #tpu.dot_dimension_numbers<[1], [0], [0], [1], [0, 0, 1, 1], [], []>} : vector<8x128xf32>, vector<128x512xf32>, vector<8x512xf32> -> vector<8x512xf32>
    %153 = arith.addf %151, %152 : vector<8x512xf32>
    %154 = vector.extract_strided_slice %153 {offsets = [0, 0], sizes = [8, 128], strides = [1, 1]} : vector<8x512xf32> to vector<8x128xf32>
    %155 = arith.negf %154 : vector<8x128xf32>
    %156 = math.exp %155 : vector<8x128xf32>
    %cst_38 = arith.constant 1.000000e+00 : f32
    %157 = vector.broadcast %cst_38 : f32 to vector<8x128xf32>
    %158 = arith.addf %157, %156 : vector<8x128xf32>
    %159 = arith.divf %157, %158 : vector<8x128xf32>
    %160 = vector.extract_strided_slice %153 {offsets = [0, 128], sizes = [8, 128], strides = [1, 1]} : vector<8x512xf32> to vector<8x128xf32>
    %161 = arith.negf %160 : vector<8x128xf32>
    %162 = math.exp %161 : vector<8x128xf32>
    %cst_39 = arith.constant 1.000000e+00 : f32
    %163 = vector.broadcast %cst_39 : f32 to vector<8x128xf32>
    %164 = arith.addf %163, %162 : vector<8x128xf32>
    %165 = arith.divf %163, %164 : vector<8x128xf32>
    %166 = vector.extract_strided_slice %153 {offsets = [0, 256], sizes = [8, 128], strides = [1, 1]} : vector<8x512xf32> to vector<8x128xf32>
    %167 = math.tanh %166 : vector<8x128xf32>
    %168 = vector.extract_strided_slice %153 {offsets = [0, 384], sizes = [8, 128], strides = [1, 1]} : vector<8x512xf32> to vector<8x128xf32>
    %169 = arith.negf %168 : vector<8x128xf32>
    %170 = math.exp %169 : vector<8x128xf32>
    %cst_40 = arith.constant 1.000000e+00 : f32
    %171 = vector.broadcast %cst_40 : f32 to vector<8x128xf32>
    %172 = arith.addf %171, %170 : vector<8x128xf32>
    %173 = arith.divf %171, %172 : vector<8x128xf32>
    %174 = arith.mulf %165, %140 : vector<8x128xf32>
    %175 = arith.mulf %159, %167 : vector<8x128xf32>
    %176 = arith.addf %174, %175 : vector<8x128xf32>
    %177 = math.tanh %176 : vector<8x128xf32>
    %178 = arith.mulf %173, %177 : vector<8x128xf32>
    %179 = arith.addi %5, %c3_i32 : i32
    %180 = vector.broadcast %179 : i32 to vector<8x1xi32>
    %181 = arith.cmpi slt, %180, %4 : vector<8x1xi32>
    %182 = vector.shape_cast %181 : vector<8x1xi1> to vector<8x1xi1>
    %183 = vector.broadcast %182 : vector<8x1xi1> to vector<8x128xi1>
    %184 = arith.select %183, %178, %137 : vector<8x128xi1>, vector<8x128xf32>
    %185 = vector.shape_cast %181 : vector<8x1xi1> to vector<8x1xi1>
    %186 = vector.broadcast %185 : vector<8x1xi1> to vector<8x128xi1>
    %187 = arith.select %186, %176, %140 : vector<8x128xi1>, vector<8x128xf32>
    %cst_41 = arith.constant 0.000000e+00 : f32
    %188 = vector.broadcast %cst_41 : f32 to vector<8x128xf32>
    %189 = vector.shape_cast %181 : vector<8x1xi1> to vector<8x1xi1>
    %190 = vector.broadcast %189 : vector<8x1xi1> to vector<8x128xi1>
    %191 = arith.select %190, %178, %188 : vector<8x128xi1>, vector<8x128xf32>
    %192 = arith.index_cast %c3_i32 : i32 to index
    %c0_42 = arith.constant 0 : index
    %c0_43 = arith.constant 0 : index
    %193 = vector.load %arg4[%192, %c0_42, %c0_43] : memref<8x8x128xf32, #tpu.memory_space<vmem>>, vector<1x8x128xf32>
    %194 = vector.shape_cast %193 : vector<1x8x128xf32> to vector<8x128xf32>
    %195 = vector.shape_cast %191 : vector<8x128xf32> to vector<1x8x128xf32>
    tpu.vector_store %arg4[%192, %c0_42, %c0_43], %195 {strides = array<i32>} : memref<8x8x128xf32, #tpu.memory_space<vmem>>, vector<1x8x128xf32>,
    %c4_i32 = arith.constant 4 : i32
    %196 = arith.index_cast %c4_i32 : i32 to index
    %c0_44 = arith.constant 0 : index
    %c0_45 = arith.constant 0 : index
    %197 = vector.load %arg2[%196, %c0_44, %c0_45] : memref<8x8x512xf32, #tpu.memory_space<vmem>>, vector<1x8x512xf32>
    %198 = vector.shape_cast %197 : vector<1x8x512xf32> to vector<8x512xf32>
    %cst_46 = arith.constant dense<0.000000e+00> : vector<8x512xf32>
    %199 = tpu.matmul %184, %3, %cst_46 {dimension_numbers = #tpu.dot_dimension_numbers<[1], [0], [0], [1], [0, 0, 1, 1], [], []>} : vector<8x128xf32>, vector<128x512xf32>, vector<8x512xf32> -> vector<8x512xf32>
    %200 = arith.addf %198, %199 : vector<8x512xf32>
    %201 = vector.extract_strided_slice %200 {offsets = [0, 0], sizes = [8, 128], strides = [1, 1]} : vector<8x512xf32> to vector<8x128xf32>
    %202 = arith.negf %201 : vector<8x128xf32>
    %203 = math.exp %202 : vector<8x128xf32>
    %cst_47 = arith.constant 1.000000e+00 : f32
    %204 = vector.broadcast %cst_47 : f32 to vector<8x128xf32>
    %205 = arith.addf %204, %203 : vector<8x128xf32>
    %206 = arith.divf %204, %205 : vector<8x128xf32>
    %207 = vector.extract_strided_slice %200 {offsets = [0, 128], sizes = [8, 128], strides = [1, 1]} : vector<8x512xf32> to vector<8x128xf32>
    %208 = arith.negf %207 : vector<8x128xf32>
    %209 = math.exp %208 : vector<8x128xf32>
    %cst_48 = arith.constant 1.000000e+00 : f32
    %210 = vector.broadcast %cst_48 : f32 to vector<8x128xf32>
    %211 = arith.addf %210, %209 : vector<8x128xf32>
    %212 = arith.divf %210, %211 : vector<8x128xf32>
    %213 = vector.extract_strided_slice %200 {offsets = [0, 256], sizes = [8, 128], strides = [1, 1]} : vector<8x512xf32> to vector<8x128xf32>
    %214 = math.tanh %213 : vector<8x128xf32>
    %215 = vector.extract_strided_slice %200 {offsets = [0, 384], sizes = [8, 128], strides = [1, 1]} : vector<8x512xf32> to vector<8x128xf32>
    %216 = arith.negf %215 : vector<8x128xf32>
    %217 = math.exp %216 : vector<8x128xf32>
    %cst_49 = arith.constant 1.000000e+00 : f32
    %218 = vector.broadcast %cst_49 : f32 to vector<8x128xf32>
    %219 = arith.addf %218, %217 : vector<8x128xf32>
    %220 = arith.divf %218, %219 : vector<8x128xf32>
    %221 = arith.mulf %212, %187 : vector<8x128xf32>
    %222 = arith.mulf %206, %214 : vector<8x128xf32>
    %223 = arith.addf %221, %222 : vector<8x128xf32>
    %224 = math.tanh %223 : vector<8x128xf32>
    %225 = arith.mulf %220, %224 : vector<8x128xf32>
    %226 = arith.addi %5, %c4_i32 : i32
    %227 = vector.broadcast %226 : i32 to vector<8x1xi32>
    %228 = arith.cmpi slt, %227, %4 : vector<8x1xi32>
    %229 = vector.shape_cast %228 : vector<8x1xi1> to vector<8x1xi1>
    %230 = vector.broadcast %229 : vector<8x1xi1> to vector<8x128xi1>
    %231 = arith.select %230, %225, %184 : vector<8x128xi1>, vector<8x128xf32>
    %232 = vector.shape_cast %228 : vector<8x1xi1> to vector<8x1xi1>
    %233 = vector.broadcast %232 : vector<8x1xi1> to vector<8x128xi1>
    %234 = arith.select %233, %223, %187 : vector<8x128xi1>, vector<8x128xf32>
    %cst_50 = arith.constant 0.000000e+00 : f32
    %235 = vector.broadcast %cst_50 : f32 to vector<8x128xf32>
    %236 = vector.shape_cast %228 : vector<8x1xi1> to vector<8x1xi1>
    %237 = vector.broadcast %236 : vector<8x1xi1> to vector<8x128xi1>
    %238 = arith.select %237, %225, %235 : vector<8x128xi1>, vector<8x128xf32>
    %239 = arith.index_cast %c4_i32 : i32 to index
    %c0_51 = arith.constant 0 : index
    %c0_52 = arith.constant 0 : index
    %240 = vector.load %arg4[%239, %c0_51, %c0_52] : memref<8x8x128xf32, #tpu.memory_space<vmem>>, vector<1x8x128xf32>
    %241 = vector.shape_cast %240 : vector<1x8x128xf32> to vector<8x128xf32>
    %242 = vector.shape_cast %238 : vector<8x128xf32> to vector<1x8x128xf32>
    tpu.vector_store %arg4[%239, %c0_51, %c0_52], %242 {strides = array<i32>} : memref<8x8x128xf32, #tpu.memory_space<vmem>>, vector<1x8x128xf32>,
    %c5_i32 = arith.constant 5 : i32
    %243 = arith.index_cast %c5_i32 : i32 to index
    %c0_53 = arith.constant 0 : index
    %c0_54 = arith.constant 0 : index
    %244 = vector.load %arg2[%243, %c0_53, %c0_54] : memref<8x8x512xf32, #tpu.memory_space<vmem>>, vector<1x8x512xf32>
    %245 = vector.shape_cast %244 : vector<1x8x512xf32> to vector<8x512xf32>
    %cst_55 = arith.constant dense<0.000000e+00> : vector<8x512xf32>
    %246 = tpu.matmul %231, %3, %cst_55 {dimension_numbers = #tpu.dot_dimension_numbers<[1], [0], [0], [1], [0, 0, 1, 1], [], []>} : vector<8x128xf32>, vector<128x512xf32>, vector<8x512xf32> -> vector<8x512xf32>
    %247 = arith.addf %245, %246 : vector<8x512xf32>
    %248 = vector.extract_strided_slice %247 {offsets = [0, 0], sizes = [8, 128], strides = [1, 1]} : vector<8x512xf32> to vector<8x128xf32>
    %249 = arith.negf %248 : vector<8x128xf32>
    %250 = math.exp %249 : vector<8x128xf32>
    %cst_56 = arith.constant 1.000000e+00 : f32
    %251 = vector.broadcast %cst_56 : f32 to vector<8x128xf32>
    %252 = arith.addf %251, %250 : vector<8x128xf32>
    %253 = arith.divf %251, %252 : vector<8x128xf32>
    %254 = vector.extract_strided_slice %247 {offsets = [0, 128], sizes = [8, 128], strides = [1, 1]} : vector<8x512xf32> to vector<8x128xf32>
    %255 = arith.negf %254 : vector<8x128xf32>
    %256 = math.exp %255 : vector<8x128xf32>
    %cst_57 = arith.constant 1.000000e+00 : f32
    %257 = vector.broadcast %cst_57 : f32 to vector<8x128xf32>
    %258 = arith.addf %257, %256 : vector<8x128xf32>
    %259 = arith.divf %257, %258 : vector<8x128xf32>
    %260 = vector.extract_strided_slice %247 {offsets = [0, 256], sizes = [8, 128], strides = [1, 1]} : vector<8x512xf32> to vector<8x128xf32>
    %261 = math.tanh %260 : vector<8x128xf32>
    %262 = vector.extract_strided_slice %247 {offsets = [0, 384], sizes = [8, 128], strides = [1, 1]} : vector<8x512xf32> to vector<8x128xf32>
    %263 = arith.negf %262 : vector<8x128xf32>
    %264 = math.exp %263 : vector<8x128xf32>
    %cst_58 = arith.constant 1.000000e+00 : f32
    %265 = vector.broadcast %cst_58 : f32 to vector<8x128xf32>
    %266 = arith.addf %265, %264 : vector<8x128xf32>
    %267 = arith.divf %265, %266 : vector<8x128xf32>
    %268 = arith.mulf %259, %234 : vector<8x128xf32>
    %269 = arith.mulf %253, %261 : vector<8x128xf32>
    %270 = arith.addf %268, %269 : vector<8x128xf32>
    %271 = math.tanh %270 : vector<8x128xf32>
    %272 = arith.mulf %267, %271 : vector<8x128xf32>
    %273 = arith.addi %5, %c5_i32 : i32
    %274 = vector.broadcast %273 : i32 to vector<8x1xi32>
    %275 = arith.cmpi slt, %274, %4 : vector<8x1xi32>
    %276 = vector.shape_cast %275 : vector<8x1xi1> to vector<8x1xi1>
    %277 = vector.broadcast %276 : vector<8x1xi1> to vector<8x128xi1>
    %278 = arith.select %277, %272, %231 : vector<8x128xi1>, vector<8x128xf32>
    %279 = vector.shape_cast %275 : vector<8x1xi1> to vector<8x1xi1>
    %280 = vector.broadcast %279 : vector<8x1xi1> to vector<8x128xi1>
    %281 = arith.select %280, %270, %234 : vector<8x128xi1>, vector<8x128xf32>
    %cst_59 = arith.constant 0.000000e+00 : f32
    %282 = vector.broadcast %cst_59 : f32 to vector<8x128xf32>
    %283 = vector.shape_cast %275 : vector<8x1xi1> to vector<8x1xi1>
    %284 = vector.broadcast %283 : vector<8x1xi1> to vector<8x128xi1>
    %285 = arith.select %284, %272, %282 : vector<8x128xi1>, vector<8x128xf32>
    %286 = arith.index_cast %c5_i32 : i32 to index
    %c0_60 = arith.constant 0 : index
    %c0_61 = arith.constant 0 : index
    %287 = vector.load %arg4[%286, %c0_60, %c0_61] : memref<8x8x128xf32, #tpu.memory_space<vmem>>, vector<1x8x128xf32>
    %288 = vector.shape_cast %287 : vector<1x8x128xf32> to vector<8x128xf32>
    %289 = vector.shape_cast %285 : vector<8x128xf32> to vector<1x8x128xf32>
    tpu.vector_store %arg4[%286, %c0_60, %c0_61], %289 {strides = array<i32>} : memref<8x8x128xf32, #tpu.memory_space<vmem>>, vector<1x8x128xf32>,
    %c6_i32 = arith.constant 6 : i32
    %290 = arith.index_cast %c6_i32 : i32 to index
    %c0_62 = arith.constant 0 : index
    %c0_63 = arith.constant 0 : index
    %291 = vector.load %arg2[%290, %c0_62, %c0_63] : memref<8x8x512xf32, #tpu.memory_space<vmem>>, vector<1x8x512xf32>
    %292 = vector.shape_cast %291 : vector<1x8x512xf32> to vector<8x512xf32>
    %cst_64 = arith.constant dense<0.000000e+00> : vector<8x512xf32>
    %293 = tpu.matmul %278, %3, %cst_64 {dimension_numbers = #tpu.dot_dimension_numbers<[1], [0], [0], [1], [0, 0, 1, 1], [], []>} : vector<8x128xf32>, vector<128x512xf32>, vector<8x512xf32> -> vector<8x512xf32>
    %294 = arith.addf %292, %293 : vector<8x512xf32>
    %295 = vector.extract_strided_slice %294 {offsets = [0, 0], sizes = [8, 128], strides = [1, 1]} : vector<8x512xf32> to vector<8x128xf32>
    %296 = arith.negf %295 : vector<8x128xf32>
    %297 = math.exp %296 : vector<8x128xf32>
    %cst_65 = arith.constant 1.000000e+00 : f32
    %298 = vector.broadcast %cst_65 : f32 to vector<8x128xf32>
    %299 = arith.addf %298, %297 : vector<8x128xf32>
    %300 = arith.divf %298, %299 : vector<8x128xf32>
    %301 = vector.extract_strided_slice %294 {offsets = [0, 128], sizes = [8, 128], strides = [1, 1]} : vector<8x512xf32> to vector<8x128xf32>
    %302 = arith.negf %301 : vector<8x128xf32>
    %303 = math.exp %302 : vector<8x128xf32>
    %cst_66 = arith.constant 1.000000e+00 : f32
    %304 = vector.broadcast %cst_66 : f32 to vector<8x128xf32>
    %305 = arith.addf %304, %303 : vector<8x128xf32>
    %306 = arith.divf %304, %305 : vector<8x128xf32>
    %307 = vector.extract_strided_slice %294 {offsets = [0, 256], sizes = [8, 128], strides = [1, 1]} : vector<8x512xf32> to vector<8x128xf32>
    %308 = math.tanh %307 : vector<8x128xf32>
    %309 = vector.extract_strided_slice %294 {offsets = [0, 384], sizes = [8, 128], strides = [1, 1]} : vector<8x512xf32> to vector<8x128xf32>
    %310 = arith.negf %309 : vector<8x128xf32>
    %311 = math.exp %310 : vector<8x128xf32>
    %cst_67 = arith.constant 1.000000e+00 : f32
    %312 = vector.broadcast %cst_67 : f32 to vector<8x128xf32>
    %313 = arith.addf %312, %311 : vector<8x128xf32>
    %314 = arith.divf %312, %313 : vector<8x128xf32>
    %315 = arith.mulf %306, %281 : vector<8x128xf32>
    %316 = arith.mulf %300, %308 : vector<8x128xf32>
    %317 = arith.addf %315, %316 : vector<8x128xf32>
    %318 = math.tanh %317 : vector<8x128xf32>
    %319 = arith.mulf %314, %318 : vector<8x128xf32>
    %320 = arith.addi %5, %c6_i32 : i32
    %321 = vector.broadcast %320 : i32 to vector<8x1xi32>
    %322 = arith.cmpi slt, %321, %4 : vector<8x1xi32>
    %323 = vector.shape_cast %322 : vector<8x1xi1> to vector<8x1xi1>
    %324 = vector.broadcast %323 : vector<8x1xi1> to vector<8x128xi1>
    %325 = arith.select %324, %319, %278 : vector<8x128xi1>, vector<8x128xf32>
    %326 = vector.shape_cast %322 : vector<8x1xi1> to vector<8x1xi1>
    %327 = vector.broadcast %326 : vector<8x1xi1> to vector<8x128xi1>
    %328 = arith.select %327, %317, %281 : vector<8x128xi1>, vector<8x128xf32>
    %cst_68 = arith.constant 0.000000e+00 : f32
    %329 = vector.broadcast %cst_68 : f32 to vector<8x128xf32>
    %330 = vector.shape_cast %322 : vector<8x1xi1> to vector<8x1xi1>
    %331 = vector.broadcast %330 : vector<8x1xi1> to vector<8x128xi1>
    %332 = arith.select %331, %319, %329 : vector<8x128xi1>, vector<8x128xf32>
    %333 = arith.index_cast %c6_i32 : i32 to index
    %c0_69 = arith.constant 0 : index
    %c0_70 = arith.constant 0 : index
    %334 = vector.load %arg4[%333, %c0_69, %c0_70] : memref<8x8x128xf32, #tpu.memory_space<vmem>>, vector<1x8x128xf32>
    %335 = vector.shape_cast %334 : vector<1x8x128xf32> to vector<8x128xf32>
    %336 = vector.shape_cast %332 : vector<8x128xf32> to vector<1x8x128xf32>
    tpu.vector_store %arg4[%333, %c0_69, %c0_70], %336 {strides = array<i32>} : memref<8x8x128xf32, #tpu.memory_space<vmem>>, vector<1x8x128xf32>,
    %c7_i32 = arith.constant 7 : i32
    %337 = arith.index_cast %c7_i32 : i32 to index
    %c0_71 = arith.constant 0 : index
    %c0_72 = arith.constant 0 : index
    %338 = vector.load %arg2[%337, %c0_71, %c0_72] : memref<8x8x512xf32, #tpu.memory_space<vmem>>, vector<1x8x512xf32>
    %339 = vector.shape_cast %338 : vector<1x8x512xf32> to vector<8x512xf32>
    %cst_73 = arith.constant dense<0.000000e+00> : vector<8x512xf32>
    %340 = tpu.matmul %325, %3, %cst_73 {dimension_numbers = #tpu.dot_dimension_numbers<[1], [0], [0], [1], [0, 0, 1, 1], [], []>} : vector<8x128xf32>, vector<128x512xf32>, vector<8x512xf32> -> vector<8x512xf32>
    %341 = arith.addf %339, %340 : vector<8x512xf32>
    %342 = vector.extract_strided_slice %341 {offsets = [0, 0], sizes = [8, 128], strides = [1, 1]} : vector<8x512xf32> to vector<8x128xf32>
    %343 = arith.negf %342 : vector<8x128xf32>
    %344 = math.exp %343 : vector<8x128xf32>
    %cst_74 = arith.constant 1.000000e+00 : f32
    %345 = vector.broadcast %cst_74 : f32 to vector<8x128xf32>
    %346 = arith.addf %345, %344 : vector<8x128xf32>
    %347 = arith.divf %345, %346 : vector<8x128xf32>
    %348 = vector.extract_strided_slice %341 {offsets = [0, 128], sizes = [8, 128], strides = [1, 1]} : vector<8x512xf32> to vector<8x128xf32>
    %349 = arith.negf %348 : vector<8x128xf32>
    %350 = math.exp %349 : vector<8x128xf32>
    %cst_75 = arith.constant 1.000000e+00 : f32
    %351 = vector.broadcast %cst_75 : f32 to vector<8x128xf32>
    %352 = arith.addf %351, %350 : vector<8x128xf32>
    %353 = arith.divf %351, %352 : vector<8x128xf32>
    %354 = vector.extract_strided_slice %341 {offsets = [0, 256], sizes = [8, 128], strides = [1, 1]} : vector<8x512xf32> to vector<8x128xf32>
    %355 = math.tanh %354 : vector<8x128xf32>
    %356 = vector.extract_strided_slice %341 {offsets = [0, 384], sizes = [8, 128], strides = [1, 1]} : vector<8x512xf32> to vector<8x128xf32>
    %357 = arith.negf %356 : vector<8x128xf32>
    %358 = math.exp %357 : vector<8x128xf32>
    %cst_76 = arith.constant 1.000000e+00 : f32
    %359 = vector.broadcast %cst_76 : f32 to vector<8x128xf32>
    %360 = arith.addf %359, %358 : vector<8x128xf32>
    %361 = arith.divf %359, %360 : vector<8x128xf32>
    %362 = arith.mulf %353, %328 : vector<8x128xf32>
    %363 = arith.mulf %347, %355 : vector<8x128xf32>
    %364 = arith.addf %362, %363 : vector<8x128xf32>
    %365 = math.tanh %364 : vector<8x128xf32>
    %366 = arith.mulf %361, %365 : vector<8x128xf32>
    %367 = arith.addi %5, %c7_i32 : i32
    %368 = vector.broadcast %367 : i32 to vector<8x1xi32>
    %369 = arith.cmpi slt, %368, %4 : vector<8x1xi32>
    %370 = vector.shape_cast %369 : vector<8x1xi1> to vector<8x1xi1>
    %371 = vector.broadcast %370 : vector<8x1xi1> to vector<8x128xi1>
    %372 = arith.select %371, %366, %325 : vector<8x128xi1>, vector<8x128xf32>
    %373 = vector.shape_cast %369 : vector<8x1xi1> to vector<8x1xi1>
    %374 = vector.broadcast %373 : vector<8x1xi1> to vector<8x128xi1>
    %375 = arith.select %374, %364, %328 : vector<8x128xi1>, vector<8x128xf32>
    %cst_77 = arith.constant 0.000000e+00 : f32
    %376 = vector.broadcast %cst_77 : f32 to vector<8x128xf32>
    %377 = vector.shape_cast %369 : vector<8x1xi1> to vector<8x1xi1>
    %378 = vector.broadcast %377 : vector<8x1xi1> to vector<8x128xi1>
    %379 = arith.select %378, %366, %376 : vector<8x128xi1>, vector<8x128xf32>
    %380 = arith.index_cast %c7_i32 : i32 to index
    %c0_78 = arith.constant 0 : index
    %c0_79 = arith.constant 0 : index
    %381 = vector.load %arg4[%380, %c0_78, %c0_79] : memref<8x8x128xf32, #tpu.memory_space<vmem>>, vector<1x8x128xf32>
    %382 = vector.shape_cast %381 : vector<1x8x128xf32> to vector<8x128xf32>
    %383 = vector.shape_cast %379 : vector<8x128xf32> to vector<1x8x128xf32>
    tpu.vector_store %arg4[%380, %c0_78, %c0_79], %383 {strides = array<i32>} : memref<8x8x128xf32, #tpu.memory_space<vmem>>, vector<1x8x128xf32>,
    %c8_i32_80 = arith.constant 8 : i32
    %c0_81 = arith.constant 0 : index
    %c0_82 = arith.constant 0 : index
    %384 = vector.load %arg7[%c0_81, %c0_82] : memref<8x128xf32, #tpu.memory_space<vmem>>, vector<8x128xf32>
    tpu.vector_store %arg7[%c0_81, %c0_82], %372 {strides = array<i32>} : memref<8x128xf32, #tpu.memory_space<vmem>>, vector<8x128xf32>,
    %c0_83 = arith.constant 0 : index
    %c0_84 = arith.constant 0 : index
    %385 = vector.load %arg8[%c0_83, %c0_84] : memref<8x128xf32, #tpu.memory_space<vmem>>, vector<8x128xf32>
    tpu.vector_store %arg8[%c0_83, %c0_84], %375 {strides = array<i32>} : memref<8x128xf32, #tpu.memory_space<vmem>>, vector<8x128xf32>,
    %c0_i32_85 = arith.constant 0 : i32
    %386 = arith.cmpi eq, %arg0, %c0_i32_85 : i32
    %387 = arith.extui %386 : i1 to i32
    %c0_i32_86 = arith.constant 0 : i32
    %388 = arith.cmpi ne, %387, %c0_i32_86 : i32
    scf.if %388 {
      %c0_87 = arith.constant 0 : index
      %c0_88 = arith.constant 0 : index
      %389 = vector.load %arg5[%c0_87, %c0_88] : memref<8x128xf32, #tpu.memory_space<vmem>>, vector<8x128xf32>
      tpu.vector_store %arg5[%c0_87, %c0_88], %372 {strides = array<i32>} : memref<8x128xf32, #tpu.memory_space<vmem>>, vector<8x128xf32>,
      %c0_89 = arith.constant 0 : index
      %c0_90 = arith.constant 0 : index
      %390 = vector.load %arg6[%c0_89, %c0_90] : memref<8x128xf32, #tpu.memory_space<vmem>>, vector<8x128xf32>
      tpu.vector_store %arg6[%c0_89, %c0_90], %375 {strides = array<i32>} : memref<8x128xf32, #tpu.memory_space<vmem>>, vector<8x128xf32>,
    } else {
    }
    return
  }
  func.func @transform_0(%arg0: i32) -> (i32, i32) {
    %c0_i32 = arith.constant 0 : i32
    %c0_i32_0 = arith.constant 0 : i32
    %c0_i32_1 = arith.constant 0 : i32
    return %c0_i32, %c0_i32_0 : i32, i32
  }
  func.func @transform_1(%arg0: i32) -> (i32, i32, i32) {
    %c0_i32 = arith.constant 0 : i32
    %c0_i32_0 = arith.constant 0 : i32
    %c0_i32_1 = arith.constant 0 : i32
    return %arg0, %c0_i32, %c0_i32_0 : i32, i32, i32
  }
  func.func @transform_2(%arg0: i32) -> (i32, i32) {
    %c0_i32 = arith.constant 0 : i32
    %c0_i32_0 = arith.constant 0 : i32
    %c0_i32_1 = arith.constant 0 : i32
    return %c0_i32, %c0_i32_0 : i32, i32
  }
  func.func @transform_3(%arg0: i32) -> (i32, i32, i32) {
    %c0_i32 = arith.constant 0 : i32
    %c0_i32_0 = arith.constant 0 : i32
    %c0_i32_1 = arith.constant 0 : i32
    return %arg0, %c0_i32, %c0_i32_0 : i32, i32, i32
  }
  func.func @transform_4(%arg0: i32) -> (i32, i32) {
    %c0_i32 = arith.constant 0 : i32
    %c0_i32_0 = arith.constant 0 : i32
    %c0_i32_1 = arith.constant 0 : i32
    return %c0_i32, %c0_i32_0 : i32, i32
  }
  func.func @transform_5(%arg0: i32) -> (i32, i32) {
    %c0_i32 = arith.constant 0 : i32
    %c0_i32_0 = arith.constant 0 : i32
    %c0_i32_1 = arith.constant 0 : i32
    return %c0_i32, %c0_i32_0 : i32, i32
  }
}

module attributes {stable_mosaic.version = 11 : i64} {
  func.func @_lstm_rec_kernel(%arg0: i32, %arg1: memref<8x1xi32, #tpu.memory_space<vmem>>, %arg2: memref<8x8x512xf32, #tpu.memory_space<vmem>>, %arg3: memref<128x512xf32, #tpu.memory_space<vmem>>, %arg4: memref<8x8x128xf32, #tpu.memory_space<vmem>>, %arg5: memref<8x128xf32, #tpu.memory_space<vmem>>, %arg6: memref<8x128xf32, #tpu.memory_space<vmem>>, %arg7: memref<8x128xf32, #tpu.memory_space<vmem>>, %arg8: memref<8x128xf32, #tpu.memory_space<vmem>>) attributes {dimension_semantics = [#tpu.dimension_semantics<arbitrary>], iteration_bounds = array<i64: 1>, scalar_prefetch = 0 : i64, scratch_operands = 2 : i64, tpu.core_type = #tpu.core_type<tc>, window_params = [{pipeline_mode = #tpu.pipeline_mode<synchronous>, transform_indices = @transform_0, window_bounds = array<i64: 8, 1>}, {transform_indices = @transform_1, window_bounds = array<i64: 8, 8, 512>}, {pipeline_mode = #tpu.pipeline_mode<synchronous>, transform_indices = @transform_2, window_bounds = array<i64: 128, 512>}, {transform_indices = @transform_3, window_bounds = array<i64: 8, 8, 128>}, {pipeline_mode = #tpu.pipeline_mode<synchronous>, transform_indices = @transform_4, window_bounds = array<i64: 8, 128>}, {pipeline_mode = #tpu.pipeline_mode<synchronous>, transform_indices = @transform_5, window_bounds = array<i64: 8, 128>}]} {
    %c0_i32 = arith.constant 0 : i32
    %0 = arith.cmpi eq, %arg0, %c0_i32 : i32
    %1 = arith.extui %0 : i1 to i32
    %c0_i32_0 = arith.constant 0 : i32
    %2 = arith.cmpi ne, %1, %c0_i32_0 : i32
    scf.if %2 {
      %cst_87 = arith.constant 0.000000e+00 : f32
      %389 = vector.broadcast %cst_87 : f32 to vector<8x128xf32>
      %c0_88 = arith.constant 0 : index
      %c0_89 = arith.constant 0 : index
      %390 = vector.load %arg7[%c0_88, %c0_89] : memref<8x128xf32, #tpu.memory_space<vmem>>, vector<8x128xf32>
      tpu.vector_store %arg7[%c0_88, %c0_89], %389 {strides = array<i32>} : memref<8x128xf32, #tpu.memory_space<vmem>>, vector<8x128xf32>,
      %cst_90 = arith.constant 0.000000e+00 : f32
      %391 = vector.broadcast %cst_90 : f32 to vector<8x128xf32>
      %c0_91 = arith.constant 0 : index
      %c0_92 = arith.constant 0 : index
      %392 = vector.load %arg8[%c0_91, %c0_92] : memref<8x128xf32, #tpu.memory_space<vmem>>, vector<8x128xf32>
      tpu.vector_store %arg8[%c0_91, %c0_92], %391 {strides = array<i32>} : memref<8x128xf32, #tpu.memory_space<vmem>>, vector<8x128xf32>,
    } else {
    }
    %c0 = arith.constant 0 : index
    %c0_1 = arith.constant 0 : index
    %3 = vector.load %arg3[%c0, %c0_1] : memref<128x512xf32, #tpu.memory_space<vmem>>, vector<128x512xf32>
    %c0_2 = arith.constant 0 : index
    %c0_3 = arith.constant 0 : index
    %4 = vector.load %arg1[%c0_2, %c0_3] : memref<8x1xi32, #tpu.memory_space<vmem>>, vector<8x1xi32>
    %c8_i32 = arith.constant 8 : i32
    %5 = arith.muli %arg0, %c8_i32 : i32
    %c0_4 = arith.constant 0 : index
    %c0_5 = arith.constant 0 : index
    %6 = vector.load %arg7[%c0_4, %c0_5] : memref<8x128xf32, #tpu.memory_space<vmem>>, vector<8x128xf32>
    %c0_6 = arith.constant 0 : index
    %c0_7 = arith.constant 0 : index
    %7 = vector.load %arg8[%c0_6, %c0_7] : memref<8x128xf32, #tpu.memory_space<vmem>>, vector<8x128xf32>
    %c0_i32_8 = arith.constant 0 : i32
    %8 = arith.index_cast %c0_i32_8 : i32 to index
    %c0_9 = arith.constant 0 : index
    %c0_10 = arith.constant 0 : index
    %9 = vector.load %arg2[%8, %c0_9, %c0_10] : memref<8x8x512xf32, #tpu.memory_space<vmem>>, vector<1x8x512xf32>
    %10 = vector.shape_cast %9 : vector<1x8x512xf32> to vector<8x512xf32>
    %cst = arith.constant dense<0.000000e+00> : vector<8x512xf32>
    %11 = tpu.matmul %6, %3, %cst {dimension_numbers = #tpu.dot_dimension_numbers<[1], [0], [0], [1], [0, 0, 1, 1], [], []>} : vector<8x128xf32>, vector<128x512xf32>, vector<8x512xf32> -> vector<8x512xf32>
    %12 = arith.addf %10, %11 : vector<8x512xf32>
    %13 = vector.extract_strided_slice %12 {offsets = [0, 0], sizes = [8, 128], strides = [1, 1]} : vector<8x512xf32> to vector<8x128xf32>
    %14 = arith.negf %13 : vector<8x128xf32>
    %15 = math.exp %14 : vector<8x128xf32>
    %cst_11 = arith.constant 1.000000e+00 : f32
    %16 = vector.broadcast %cst_11 : f32 to vector<8x128xf32>
    %17 = arith.addf %16, %15 : vector<8x128xf32>
    %18 = arith.divf %16, %17 : vector<8x128xf32>
    %19 = vector.extract_strided_slice %12 {offsets = [0, 128], sizes = [8, 128], strides = [1, 1]} : vector<8x512xf32> to vector<8x128xf32>
    %20 = arith.negf %19 : vector<8x128xf32>
    %21 = math.exp %20 : vector<8x128xf32>
    %cst_12 = arith.constant 1.000000e+00 : f32
    %22 = vector.broadcast %cst_12 : f32 to vector<8x128xf32>
    %23 = arith.addf %22, %21 : vector<8x128xf32>
    %24 = arith.divf %22, %23 : vector<8x128xf32>
    %25 = vector.extract_strided_slice %12 {offsets = [0, 256], sizes = [8, 128], strides = [1, 1]} : vector<8x512xf32> to vector<8x128xf32>
    %26 = math.tanh %25 : vector<8x128xf32>
    %27 = vector.extract_strided_slice %12 {offsets = [0, 384], sizes = [8, 128], strides = [1, 1]} : vector<8x512xf32> to vector<8x128xf32>
    %28 = arith.negf %27 : vector<8x128xf32>
    %29 = math.exp %28 : vector<8x128xf32>
    %cst_13 = arith.constant 1.000000e+00 : f32
    %30 = vector.broadcast %cst_13 : f32 to vector<8x128xf32>
    %31 = arith.addf %30, %29 : vector<8x128xf32>
    %32 = arith.divf %30, %31 : vector<8x128xf32>
    %33 = arith.mulf %24, %7 : vector<8x128xf32>
    %34 = arith.mulf %18, %26 : vector<8x128xf32>
    %35 = arith.addf %33, %34 : vector<8x128xf32>
    %36 = math.tanh %35 : vector<8x128xf32>
    %37 = arith.mulf %32, %36 : vector<8x128xf32>
    %38 = arith.addi %5, %c0_i32_8 : i32
    %39 = vector.broadcast %38 : i32 to vector<8x1xi32>
    %40 = arith.cmpi slt, %39, %4 : vector<8x1xi32>
    %41 = vector.shape_cast %40 : vector<8x1xi1> to vector<8x1xi1>
    %42 = vector.broadcast %41 : vector<8x1xi1> to vector<8x128xi1>
    %43 = arith.select %42, %37, %6 : vector<8x128xi1>, vector<8x128xf32>
    %44 = vector.shape_cast %40 : vector<8x1xi1> to vector<8x1xi1>
    %45 = vector.broadcast %44 : vector<8x1xi1> to vector<8x128xi1>
    %46 = arith.select %45, %35, %7 : vector<8x128xi1>, vector<8x128xf32>
    %cst_14 = arith.constant 0.000000e+00 : f32
    %47 = vector.broadcast %cst_14 : f32 to vector<8x128xf32>
    %48 = vector.shape_cast %40 : vector<8x1xi1> to vector<8x1xi1>
    %49 = vector.broadcast %48 : vector<8x1xi1> to vector<8x128xi1>
    %50 = arith.select %49, %37, %47 : vector<8x128xi1>, vector<8x128xf32>
    %51 = arith.index_cast %c0_i32_8 : i32 to index
    %c0_15 = arith.constant 0 : index
    %c0_16 = arith.constant 0 : index
    %52 = vector.load %arg4[%51, %c0_15, %c0_16] : memref<8x8x128xf32, #tpu.memory_space<vmem>>, vector<1x8x128xf32>
    %53 = vector.shape_cast %52 : vector<1x8x128xf32> to vector<8x128xf32>
    %54 = vector.shape_cast %50 : vector<8x128xf32> to vector<1x8x128xf32>
    tpu.vector_store %arg4[%51, %c0_15, %c0_16], %54 {strides = array<i32>} : memref<8x8x128xf32, #tpu.memory_space<vmem>>, vector<1x8x128xf32>,
    %c1_i32 = arith.constant 1 : i32
    %55 = arith.index_cast %c1_i32 : i32 to index
    %c0_17 = arith.constant 0 : index
    %c0_18 = arith.constant 0 : index
    %56 = vector.load %arg2[%55, %c0_17, %c0_18] : memref<8x8x512xf32, #tpu.memory_space<vmem>>, vector<1x8x512xf32>
    %57 = vector.shape_cast %56 : vector<1x8x512xf32> to vector<8x512xf32>
    %cst_19 = arith.constant dense<0.000000e+00> : vector<8x512xf32>
    %58 = tpu.matmul %43, %3, %cst_19 {dimension_numbers = #tpu.dot_dimension_numbers<[1], [0], [0], [1], [0, 0, 1, 1], [], []>} : vector<8x128xf32>, vector<128x512xf32>, vector<8x512xf32> -> vector<8x512xf32>
    %59 = arith.addf %57, %58 : vector<8x512xf32>
    %60 = vector.extract_strided_slice %59 {offsets = [0, 0], sizes = [8, 128], strides = [1, 1]} : vector<8x512xf32> to vector<8x128xf32>
    %61 = arith.negf %60 : vector<8x128xf32>
    %62 = math.exp %61 : vector<8x128xf32>
    %cst_20 = arith.constant 1.000000e+00 : f32
    %63 = vector.broadcast %cst_20 : f32 to vector<8x128xf32>
    %64 = arith.addf %63, %62 : vector<8x128xf32>
    %65 = arith.divf %63, %64 : vector<8x128xf32>
    %66 = vector.extract_strided_slice %59 {offsets = [0, 128], sizes = [8, 128], strides = [1, 1]} : vector<8x512xf32> to vector<8x128xf32>
    %67 = arith.negf %66 : vector<8x128xf32>
    %68 = math.exp %67 : vector<8x128xf32>
    %cst_21 = arith.constant 1.000000e+00 : f32
    %69 = vector.broadcast %cst_21 : f32 to vector<8x128xf32>
    %70 = arith.addf %69, %68 : vector<8x128xf32>
    %71 = arith.divf %69, %70 : vector<8x128xf32>
    %72 = vector.extract_strided_slice %59 {offsets = [0, 256], sizes = [8, 128], strides = [1, 1]} : vector<8x512xf32> to vector<8x128xf32>
    %73 = math.tanh %72 : vector<8x128xf32>
    %74 = vector.extract_strided_slice %59 {offsets = [0, 384], sizes = [8, 128], strides = [1, 1]} : vector<8x512xf32> to vector<8x128xf32>
    %75 = arith.negf %74 : vector<8x128xf32>
    %76 = math.exp %75 : vector<8x128xf32>
    %cst_22 = arith.constant 1.000000e+00 : f32
    %77 = vector.broadcast %cst_22 : f32 to vector<8x128xf32>
    %78 = arith.addf %77, %76 : vector<8x128xf32>
    %79 = arith.divf %77, %78 : vector<8x128xf32>
    %80 = arith.mulf %71, %46 : vector<8x128xf32>
    %81 = arith.mulf %65, %73 : vector<8x128xf32>
    %82 = arith.addf %80, %81 : vector<8x128xf32>
    %83 = math.tanh %82 : vector<8x128xf32>
    %84 = arith.mulf %79, %83 : vector<8x128xf32>
    %85 = arith.addi %5, %c1_i32 : i32
    %86 = vector.broadcast %85 : i32 to vector<8x1xi32>
    %87 = arith.cmpi slt, %86, %4 : vector<8x1xi32>
    %88 = vector.shape_cast %87 : vector<8x1xi1> to vector<8x1xi1>
    %89 = vector.broadcast %88 : vector<8x1xi1> to vector<8x128xi1>
    %90 = arith.select %89, %84, %43 : vector<8x128xi1>, vector<8x128xf32>
    %91 = vector.shape_cast %87 : vector<8x1xi1> to vector<8x1xi1>
    %92 = vector.broadcast %91 : vector<8x1xi1> to vector<8x128xi1>
    %93 = arith.select %92, %82, %46 : vector<8x128xi1>, vector<8x128xf32>
    %cst_23 = arith.constant 0.000000e+00 : f32
    %94 = vector.broadcast %cst_23 : f32 to vector<8x128xf32>
    %95 = vector.shape_cast %87 : vector<8x1xi1> to vector<8x1xi1>
    %96 = vector.broadcast %95 : vector<8x1xi1> to vector<8x128xi1>
    %97 = arith.select %96, %84, %94 : vector<8x128xi1>, vector<8x128xf32>
    %98 = arith.index_cast %c1_i32 : i32 to index
    %c0_24 = arith.constant 0 : index
    %c0_25 = arith.constant 0 : index
    %99 = vector.load %arg4[%98, %c0_24, %c0_25] : memref<8x8x128xf32, #tpu.memory_space<vmem>>, vector<1x8x128xf32>
    %100 = vector.shape_cast %99 : vector<1x8x128xf32> to vector<8x128xf32>
    %101 = vector.shape_cast %97 : vector<8x128xf32> to vector<1x8x128xf32>
    tpu.vector_store %arg4[%98, %c0_24, %c0_25], %101 {strides = array<i32>} : memref<8x8x128xf32, #tpu.memory_space<vmem>>, vector<1x8x128xf32>,
    %c2_i32 = arith.constant 2 : i32
    %102 = arith.index_cast %c2_i32 : i32 to index
    %c0_26 = arith.constant 0 : index
    %c0_27 = arith.constant 0 : index
    %103 = vector.load %arg2[%102, %c0_26, %c0_27] : memref<8x8x512xf32, #tpu.memory_space<vmem>>, vector<1x8x512xf32>
    %104 = vector.shape_cast %103 : vector<1x8x512xf32> to vector<8x512xf32>
    %cst_28 = arith.constant dense<0.000000e+00> : vector<8x512xf32>
    %105 = tpu.matmul %90, %3, %cst_28 {dimension_numbers = #tpu.dot_dimension_numbers<[1], [0], [0], [1], [0, 0, 1, 1], [], []>} : vector<8x128xf32>, vector<128x512xf32>, vector<8x512xf32> -> vector<8x512xf32>
    %106 = arith.addf %104, %105 : vector<8x512xf32>
    %107 = vector.extract_strided_slice %106 {offsets = [0, 0], sizes = [8, 128], strides = [1, 1]} : vector<8x512xf32> to vector<8x128xf32>
    %108 = arith.negf %107 : vector<8x128xf32>
    %109 = math.exp %108 : vector<8x128xf32>
    %cst_29 = arith.constant 1.000000e+00 : f32
    %110 = vector.broadcast %cst_29 : f32 to vector<8x128xf32>
    %111 = arith.addf %110, %109 : vector<8x128xf32>
    %112 = arith.divf %110, %111 : vector<8x128xf32>
    %113 = vector.extract_strided_slice %106 {offsets = [0, 128], sizes = [8, 128], strides = [1, 1]} : vector<8x512xf32> to vector<8x128xf32>
    %114 = arith.negf %113 : vector<8x128xf32>
    %115 = math.exp %114 : vector<8x128xf32>
    %cst_30 = arith.constant 1.000000e+00 : f32
    %116 = vector.broadcast %cst_30 : f32 to vector<8x128xf32>
    %117 = arith.addf %116, %115 : vector<8x128xf32>
    %118 = arith.divf %116, %117 : vector<8x128xf32>
    %119 = vector.extract_strided_slice %106 {offsets = [0, 256], sizes = [8, 128], strides = [1, 1]} : vector<8x512xf32> to vector<8x128xf32>
    %120 = math.tanh %119 : vector<8x128xf32>
    %121 = vector.extract_strided_slice %106 {offsets = [0, 384], sizes = [8, 128], strides = [1, 1]} : vector<8x512xf32> to vector<8x128xf32>
    %122 = arith.negf %121 : vector<8x128xf32>
    %123 = math.exp %122 : vector<8x128xf32>
    %cst_31 = arith.constant 1.000000e+00 : f32
    %124 = vector.broadcast %cst_31 : f32 to vector<8x128xf32>
    %125 = arith.addf %124, %123 : vector<8x128xf32>
    %126 = arith.divf %124, %125 : vector<8x128xf32>
    %127 = arith.mulf %118, %93 : vector<8x128xf32>
    %128 = arith.mulf %112, %120 : vector<8x128xf32>
    %129 = arith.addf %127, %128 : vector<8x128xf32>
    %130 = math.tanh %129 : vector<8x128xf32>
    %131 = arith.mulf %126, %130 : vector<8x128xf32>
    %132 = arith.addi %5, %c2_i32 : i32
    %133 = vector.broadcast %132 : i32 to vector<8x1xi32>
    %134 = arith.cmpi slt, %133, %4 : vector<8x1xi32>
    %135 = vector.shape_cast %134 : vector<8x1xi1> to vector<8x1xi1>
    %136 = vector.broadcast %135 : vector<8x1xi1> to vector<8x128xi1>
    %137 = arith.select %136, %131, %90 : vector<8x128xi1>, vector<8x128xf32>
    %138 = vector.shape_cast %134 : vector<8x1xi1> to vector<8x1xi1>
    %139 = vector.broadcast %138 : vector<8x1xi1> to vector<8x128xi1>
    %140 = arith.select %139, %129, %93 : vector<8x128xi1>, vector<8x128xf32>
    %cst_32 = arith.constant 0.000000e+00 : f32
    %141 = vector.broadcast %cst_32 : f32 to vector<8x128xf32>
    %142 = vector.shape_cast %134 : vector<8x1xi1> to vector<8x1xi1>
    %143 = vector.broadcast %142 : vector<8x1xi1> to vector<8x128xi1>
    %144 = arith.select %143, %131, %141 : vector<8x128xi1>, vector<8x128xf32>
    %145 = arith.index_cast %c2_i32 : i32 to index
    %c0_33 = arith.constant 0 : index
    %c0_34 = arith.constant 0 : index
    %146 = vector.load %arg4[%145, %c0_33, %c0_34] : memref<8x8x128xf32, #tpu.memory_space<vmem>>, vector<1x8x128xf32>
    %147 = vector.shape_cast %146 : vector<1x8x128xf32> to vector<8x128xf32>
    %148 = vector.shape_cast %144 : vector<8x128xf32> to vector<1x8x128xf32>
    tpu.vector_store %arg4[%145, %c0_33, %c0_34], %148 {strides = array<i32>} : memref<8x8x128xf32, #tpu.memory_space<vmem>>, vector<1x8x128xf32>,
    %c3_i32 = arith.constant 3 : i32
    %149 = arith.index_cast %c3_i32 : i32 to index
    %c0_35 = arith.constant 0 : index
    %c0_36 = arith.constant 0 : index
    %150 = vector.load %arg2[%149, %c0_35, %c0_36] : memref<8x8x512xf32, #tpu.memory_space<vmem>>, vector<1x8x512xf32>
    %151 = vector.shape_cast %150 : vector<1x8x512xf32> to vector<8x512xf32>
    %cst_37 = arith.constant dense<0.000000e+00> : vector<8x512xf32>
    %152 = tpu.matmul %137, %3, %cst_37 {dimension_numbers = #tpu.dot_dimension_numbers<[1], [0], [0], [1], [0, 0, 1, 1], [], []>} : vector<8x128xf32>, vector<128x512xf32>, vector<8x512xf32> -> vector<8x512xf32>
    %153 = arith.addf %151, %152 : vector<8x512xf32>
    %154 = vector.extract_strided_slice %153 {offsets = [0, 0], sizes = [8, 128], strides = [1, 1]} : vector<8x512xf32> to vector<8x128xf32>
    %155 = arith.negf %154 : vector<8x128xf32>
    %156 = math.exp %155 : vector<8x128xf32>
    %cst_38 = arith.constant 1.000000e+00 : f32
    %157 = vector.broadcast %cst_38 : f32 to vector<8x128xf32>
    %158 = arith.addf %157, %156 : vector<8x128xf32>
    %159 = arith.divf %157, %158 : vector<8x128xf32>
    %160 = vector.extract_strided_slice %153 {offsets = [0, 128], sizes = [8, 128], strides = [1, 1]} : vector<8x512xf32> to vector<8x128xf32>
    %161 = arith.negf %160 : vector<8x128xf32>
    %162 = math.exp %161 : vector<8x128xf32>
    %cst_39 = arith.constant 1.000000e+00 : f32
    %163 = vector.broadcast %cst_39 : f32 to vector<8x128xf32>
    %164 = arith.addf %163, %162 : vector<8x128xf32>
    %165 = arith.divf %163, %164 : vector<8x128xf32>
    %166 = vector.extract_strided_slice %153 {offsets = [0, 256], sizes = [8, 128], strides = [1, 1]} : vector<8x512xf32> to vector<8x128xf32>
    %167 = math.tanh %166 : vector<8x128xf32>
    %168 = vector.extract_strided_slice %153 {offsets = [0, 384], sizes = [8, 128], strides = [1, 1]} : vector<8x512xf32> to vector<8x128xf32>
    %169 = arith.negf %168 : vector<8x128xf32>
    %170 = math.exp %169 : vector<8x128xf32>
    %cst_40 = arith.constant 1.000000e+00 : f32
    %171 = vector.broadcast %cst_40 : f32 to vector<8x128xf32>
    %172 = arith.addf %171, %170 : vector<8x128xf32>
    %173 = arith.divf %171, %172 : vector<8x128xf32>
    %174 = arith.mulf %165, %140 : vector<8x128xf32>
    %175 = arith.mulf %159, %167 : vector<8x128xf32>
    %176 = arith.addf %174, %175 : vector<8x128xf32>
    %177 = math.tanh %176 : vector<8x128xf32>
    %178 = arith.mulf %173, %177 : vector<8x128xf32>
    %179 = arith.addi %5, %c3_i32 : i32
    %180 = vector.broadcast %179 : i32 to vector<8x1xi32>
    %181 = arith.cmpi slt, %180, %4 : vector<8x1xi32>
    %182 = vector.shape_cast %181 : vector<8x1xi1> to vector<8x1xi1>
    %183 = vector.broadcast %182 : vector<8x1xi1> to vector<8x128xi1>
    %184 = arith.select %183, %178, %137 : vector<8x128xi1>, vector<8x128xf32>
    %185 = vector.shape_cast %181 : vector<8x1xi1> to vector<8x1xi1>
    %186 = vector.broadcast %185 : vector<8x1xi1> to vector<8x128xi1>
    %187 = arith.select %186, %176, %140 : vector<8x128xi1>, vector<8x128xf32>
    %cst_41 = arith.constant 0.000000e+00 : f32
    %188 = vector.broadcast %cst_41 : f32 to vector<8x128xf32>
    %189 = vector.shape_cast %181 : vector<8x1xi1> to vector<8x1xi1>
    %190 = vector.broadcast %189 : vector<8x1xi1> to vector<8x128xi1>
    %191 = arith.select %190, %178, %188 : vector<8x128xi1>, vector<8x128xf32>
    %192 = arith.index_cast %c3_i32 : i32 to index
    %c0_42 = arith.constant 0 : index
    %c0_43 = arith.constant 0 : index
    %193 = vector.load %arg4[%192, %c0_42, %c0_43] : memref<8x8x128xf32, #tpu.memory_space<vmem>>, vector<1x8x128xf32>
    %194 = vector.shape_cast %193 : vector<1x8x128xf32> to vector<8x128xf32>
    %195 = vector.shape_cast %191 : vector<8x128xf32> to vector<1x8x128xf32>
    tpu.vector_store %arg4[%192, %c0_42, %c0_43], %195 {strides = array<i32>} : memref<8x8x128xf32, #tpu.memory_space<vmem>>, vector<1x8x128xf32>,
    %c4_i32 = arith.constant 4 : i32
    %196 = arith.index_cast %c4_i32 : i32 to index
    %c0_44 = arith.constant 0 : index
    %c0_45 = arith.constant 0 : index
    %197 = vector.load %arg2[%196, %c0_44, %c0_45] : memref<8x8x512xf32, #tpu.memory_space<vmem>>, vector<1x8x512xf32>
    %198 = vector.shape_cast %197 : vector<1x8x512xf32> to vector<8x512xf32>
    %cst_46 = arith.constant dense<0.000000e+00> : vector<8x512xf32>
    %199 = tpu.matmul %184, %3, %cst_46 {dimension_numbers = #tpu.dot_dimension_numbers<[1], [0], [0], [1], [0, 0, 1, 1], [], []>} : vector<8x128xf32>, vector<128x512xf32>, vector<8x512xf32> -> vector<8x512xf32>
    %200 = arith.addf %198, %199 : vector<8x512xf32>
    %201 = vector.extract_strided_slice %200 {offsets = [0, 0], sizes = [8, 128], strides = [1, 1]} : vector<8x512xf32> to vector<8x128xf32>
    %202 = arith.negf %201 : vector<8x128xf32>
    %203 = math.exp %202 : vector<8x128xf32>
    %cst_47 = arith.constant 1.000000e+00 : f32
    %204 = vector.broadcast %cst_47 : f32 to vector<8x128xf32>
    %205 = arith.addf %204, %203 : vector<8x128xf32>
    %206 = arith.divf %204, %205 : vector<8x128xf32>
    %207 = vector.extract_strided_slice %200 {offsets = [0, 128], sizes = [8, 128], strides = [1, 1]} : vector<8x512xf32> to vector<8x128xf32>
    %208 = arith.negf %207 : vector<8x128xf32>
    %209 = math.exp %208 : vector<8x128xf32>
    %cst_48 = arith.constant 1.000000e+00 : f32
    %210 = vector.broadcast %cst_48 : f32 to vector<8x128xf32>
    %211 = arith.addf %210, %209 : vector<8x128xf32>
    %212 = arith.divf %210, %211 : vector<8x128xf32>
    %213 = vector.extract_strided_slice %200 {offsets = [0, 256], sizes = [8, 128], strides = [1, 1]} : vector<8x512xf32> to vector<8x128xf32>
    %214 = math.tanh %213 : vector<8x128xf32>
    %215 = vector.extract_strided_slice %200 {offsets = [0, 384], sizes = [8, 128], strides = [1, 1]} : vector<8x512xf32> to vector<8x128xf32>
    %216 = arith.negf %215 : vector<8x128xf32>
    %217 = math.exp %216 : vector<8x128xf32>
    %cst_49 = arith.constant 1.000000e+00 : f32
    %218 = vector.broadcast %cst_49 : f32 to vector<8x128xf32>
    %219 = arith.addf %218, %217 : vector<8x128xf32>
    %220 = arith.divf %218, %219 : vector<8x128xf32>
    %221 = arith.mulf %212, %187 : vector<8x128xf32>
    %222 = arith.mulf %206, %214 : vector<8x128xf32>
    %223 = arith.addf %221, %222 : vector<8x128xf32>
    %224 = math.tanh %223 : vector<8x128xf32>
    %225 = arith.mulf %220, %224 : vector<8x128xf32>
    %226 = arith.addi %5, %c4_i32 : i32
    %227 = vector.broadcast %226 : i32 to vector<8x1xi32>
    %228 = arith.cmpi slt, %227, %4 : vector<8x1xi32>
    %229 = vector.shape_cast %228 : vector<8x1xi1> to vector<8x1xi1>
    %230 = vector.broadcast %229 : vector<8x1xi1> to vector<8x128xi1>
    %231 = arith.select %230, %225, %184 : vector<8x128xi1>, vector<8x128xf32>
    %232 = vector.shape_cast %228 : vector<8x1xi1> to vector<8x1xi1>
    %233 = vector.broadcast %232 : vector<8x1xi1> to vector<8x128xi1>
    %234 = arith.select %233, %223, %187 : vector<8x128xi1>, vector<8x128xf32>
    %cst_50 = arith.constant 0.000000e+00 : f32
    %235 = vector.broadcast %cst_50 : f32 to vector<8x128xf32>
    %236 = vector.shape_cast %228 : vector<8x1xi1> to vector<8x1xi1>
    %237 = vector.broadcast %236 : vector<8x1xi1> to vector<8x128xi1>
    %238 = arith.select %237, %225, %235 : vector<8x128xi1>, vector<8x128xf32>
    %239 = arith.index_cast %c4_i32 : i32 to index
    %c0_51 = arith.constant 0 : index
    %c0_52 = arith.constant 0 : index
    %240 = vector.load %arg4[%239, %c0_51, %c0_52] : memref<8x8x128xf32, #tpu.memory_space<vmem>>, vector<1x8x128xf32>
    %241 = vector.shape_cast %240 : vector<1x8x128xf32> to vector<8x128xf32>
    %242 = vector.shape_cast %238 : vector<8x128xf32> to vector<1x8x128xf32>
    tpu.vector_store %arg4[%239, %c0_51, %c0_52], %242 {strides = array<i32>} : memref<8x8x128xf32, #tpu.memory_space<vmem>>, vector<1x8x128xf32>,
    %c5_i32 = arith.constant 5 : i32
    %243 = arith.index_cast %c5_i32 : i32 to index
    %c0_53 = arith.constant 0 : index
    %c0_54 = arith.constant 0 : index
    %244 = vector.load %arg2[%243, %c0_53, %c0_54] : memref<8x8x512xf32, #tpu.memory_space<vmem>>, vector<1x8x512xf32>
    %245 = vector.shape_cast %244 : vector<1x8x512xf32> to vector<8x512xf32>
    %cst_55 = arith.constant dense<0.000000e+00> : vector<8x512xf32>
    %246 = tpu.matmul %231, %3, %cst_55 {dimension_numbers = #tpu.dot_dimension_numbers<[1], [0], [0], [1], [0, 0, 1, 1], [], []>} : vector<8x128xf32>, vector<128x512xf32>, vector<8x512xf32> -> vector<8x512xf32>
    %247 = arith.addf %245, %246 : vector<8x512xf32>
    %248 = vector.extract_strided_slice %247 {offsets = [0, 0], sizes = [8, 128], strides = [1, 1]} : vector<8x512xf32> to vector<8x128xf32>
    %249 = arith.negf %248 : vector<8x128xf32>
    %250 = math.exp %249 : vector<8x128xf32>
    %cst_56 = arith.constant 1.000000e+00 : f32
    %251 = vector.broadcast %cst_56 : f32 to vector<8x128xf32>
    %252 = arith.addf %251, %250 : vector<8x128xf32>
    %253 = arith.divf %251, %252 : vector<8x128xf32>
    %254 = vector.extract_strided_slice %247 {offsets = [0, 128], sizes = [8, 128], strides = [1, 1]} : vector<8x512xf32> to vector<8x128xf32>
    %255 = arith.negf %254 : vector<8x128xf32>
    %256 = math.exp %255 : vector<8x128xf32>
    %cst_57 = arith.constant 1.000000e+00 : f32
    %257 = vector.broadcast %cst_57 : f32 to vector<8x128xf32>
    %258 = arith.addf %257, %256 : vector<8x128xf32>
    %259 = arith.divf %257, %258 : vector<8x128xf32>
    %260 = vector.extract_strided_slice %247 {offsets = [0, 256], sizes = [8, 128], strides = [1, 1]} : vector<8x512xf32> to vector<8x128xf32>
    %261 = math.tanh %260 : vector<8x128xf32>
    %262 = vector.extract_strided_slice %247 {offsets = [0, 384], sizes = [8, 128], strides = [1, 1]} : vector<8x512xf32> to vector<8x128xf32>
    %263 = arith.negf %262 : vector<8x128xf32>
    %264 = math.exp %263 : vector<8x128xf32>
    %cst_58 = arith.constant 1.000000e+00 : f32
    %265 = vector.broadcast %cst_58 : f32 to vector<8x128xf32>
    %266 = arith.addf %265, %264 : vector<8x128xf32>
    %267 = arith.divf %265, %266 : vector<8x128xf32>
    %268 = arith.mulf %259, %234 : vector<8x128xf32>
    %269 = arith.mulf %253, %261 : vector<8x128xf32>
    %270 = arith.addf %268, %269 : vector<8x128xf32>
    %271 = math.tanh %270 : vector<8x128xf32>
    %272 = arith.mulf %267, %271 : vector<8x128xf32>
    %273 = arith.addi %5, %c5_i32 : i32
    %274 = vector.broadcast %273 : i32 to vector<8x1xi32>
    %275 = arith.cmpi slt, %274, %4 : vector<8x1xi32>
    %276 = vector.shape_cast %275 : vector<8x1xi1> to vector<8x1xi1>
    %277 = vector.broadcast %276 : vector<8x1xi1> to vector<8x128xi1>
    %278 = arith.select %277, %272, %231 : vector<8x128xi1>, vector<8x128xf32>
    %279 = vector.shape_cast %275 : vector<8x1xi1> to vector<8x1xi1>
    %280 = vector.broadcast %279 : vector<8x1xi1> to vector<8x128xi1>
    %281 = arith.select %280, %270, %234 : vector<8x128xi1>, vector<8x128xf32>
    %cst_59 = arith.constant 0.000000e+00 : f32
    %282 = vector.broadcast %cst_59 : f32 to vector<8x128xf32>
    %283 = vector.shape_cast %275 : vector<8x1xi1> to vector<8x1xi1>
    %284 = vector.broadcast %283 : vector<8x1xi1> to vector<8x128xi1>
    %285 = arith.select %284, %272, %282 : vector<8x128xi1>, vector<8x128xf32>
    %286 = arith.index_cast %c5_i32 : i32 to index
    %c0_60 = arith.constant 0 : index
    %c0_61 = arith.constant 0 : index
    %287 = vector.load %arg4[%286, %c0_60, %c0_61] : memref<8x8x128xf32, #tpu.memory_space<vmem>>, vector<1x8x128xf32>
    %288 = vector.shape_cast %287 : vector<1x8x128xf32> to vector<8x128xf32>
    %289 = vector.shape_cast %285 : vector<8x128xf32> to vector<1x8x128xf32>
    tpu.vector_store %arg4[%286, %c0_60, %c0_61], %289 {strides = array<i32>} : memref<8x8x128xf32, #tpu.memory_space<vmem>>, vector<1x8x128xf32>,
    %c6_i32 = arith.constant 6 : i32
    %290 = arith.index_cast %c6_i32 : i32 to index
    %c0_62 = arith.constant 0 : index
    %c0_63 = arith.constant 0 : index
    %291 = vector.load %arg2[%290, %c0_62, %c0_63] : memref<8x8x512xf32, #tpu.memory_space<vmem>>, vector<1x8x512xf32>
    %292 = vector.shape_cast %291 : vector<1x8x512xf32> to vector<8x512xf32>
    %cst_64 = arith.constant dense<0.000000e+00> : vector<8x512xf32>
    %293 = tpu.matmul %278, %3, %cst_64 {dimension_numbers = #tpu.dot_dimension_numbers<[1], [0], [0], [1], [0, 0, 1, 1], [], []>} : vector<8x128xf32>, vector<128x512xf32>, vector<8x512xf32> -> vector<8x512xf32>
    %294 = arith.addf %292, %293 : vector<8x512xf32>
    %295 = vector.extract_strided_slice %294 {offsets = [0, 0], sizes = [8, 128], strides = [1, 1]} : vector<8x512xf32> to vector<8x128xf32>
    %296 = arith.negf %295 : vector<8x128xf32>
    %297 = math.exp %296 : vector<8x128xf32>
    %cst_65 = arith.constant 1.000000e+00 : f32
    %298 = vector.broadcast %cst_65 : f32 to vector<8x128xf32>
    %299 = arith.addf %298, %297 : vector<8x128xf32>
    %300 = arith.divf %298, %299 : vector<8x128xf32>
    %301 = vector.extract_strided_slice %294 {offsets = [0, 128], sizes = [8, 128], strides = [1, 1]} : vector<8x512xf32> to vector<8x128xf32>
    %302 = arith.negf %301 : vector<8x128xf32>
    %303 = math.exp %302 : vector<8x128xf32>
    %cst_66 = arith.constant 1.000000e+00 : f32
    %304 = vector.broadcast %cst_66 : f32 to vector<8x128xf32>
    %305 = arith.addf %304, %303 : vector<8x128xf32>
    %306 = arith.divf %304, %305 : vector<8x128xf32>
    %307 = vector.extract_strided_slice %294 {offsets = [0, 256], sizes = [8, 128], strides = [1, 1]} : vector<8x512xf32> to vector<8x128xf32>
    %308 = math.tanh %307 : vector<8x128xf32>
    %309 = vector.extract_strided_slice %294 {offsets = [0, 384], sizes = [8, 128], strides = [1, 1]} : vector<8x512xf32> to vector<8x128xf32>
    %310 = arith.negf %309 : vector<8x128xf32>
    %311 = math.exp %310 : vector<8x128xf32>
    %cst_67 = arith.constant 1.000000e+00 : f32
    %312 = vector.broadcast %cst_67 : f32 to vector<8x128xf32>
    %313 = arith.addf %312, %311 : vector<8x128xf32>
    %314 = arith.divf %312, %313 : vector<8x128xf32>
    %315 = arith.mulf %306, %281 : vector<8x128xf32>
    %316 = arith.mulf %300, %308 : vector<8x128xf32>
    %317 = arith.addf %315, %316 : vector<8x128xf32>
    %318 = math.tanh %317 : vector<8x128xf32>
    %319 = arith.mulf %314, %318 : vector<8x128xf32>
    %320 = arith.addi %5, %c6_i32 : i32
    %321 = vector.broadcast %320 : i32 to vector<8x1xi32>
    %322 = arith.cmpi slt, %321, %4 : vector<8x1xi32>
    %323 = vector.shape_cast %322 : vector<8x1xi1> to vector<8x1xi1>
    %324 = vector.broadcast %323 : vector<8x1xi1> to vector<8x128xi1>
    %325 = arith.select %324, %319, %278 : vector<8x128xi1>, vector<8x128xf32>
    %326 = vector.shape_cast %322 : vector<8x1xi1> to vector<8x1xi1>
    %327 = vector.broadcast %326 : vector<8x1xi1> to vector<8x128xi1>
    %328 = arith.select %327, %317, %281 : vector<8x128xi1>, vector<8x128xf32>
    %cst_68 = arith.constant 0.000000e+00 : f32
    %329 = vector.broadcast %cst_68 : f32 to vector<8x128xf32>
    %330 = vector.shape_cast %322 : vector<8x1xi1> to vector<8x1xi1>
    %331 = vector.broadcast %330 : vector<8x1xi1> to vector<8x128xi1>
    %332 = arith.select %331, %319, %329 : vector<8x128xi1>, vector<8x128xf32>
    %333 = arith.index_cast %c6_i32 : i32 to index
    %c0_69 = arith.constant 0 : index
    %c0_70 = arith.constant 0 : index
    %334 = vector.load %arg4[%333, %c0_69, %c0_70] : memref<8x8x128xf32, #tpu.memory_space<vmem>>, vector<1x8x128xf32>
    %335 = vector.shape_cast %334 : vector<1x8x128xf32> to vector<8x128xf32>
    %336 = vector.shape_cast %332 : vector<8x128xf32> to vector<1x8x128xf32>
    tpu.vector_store %arg4[%333, %c0_69, %c0_70], %336 {strides = array<i32>} : memref<8x8x128xf32, #tpu.memory_space<vmem>>, vector<1x8x128xf32>,
    %c7_i32 = arith.constant 7 : i32
    %337 = arith.index_cast %c7_i32 : i32 to index
    %c0_71 = arith.constant 0 : index
    %c0_72 = arith.constant 0 : index
    %338 = vector.load %arg2[%337, %c0_71, %c0_72] : memref<8x8x512xf32, #tpu.memory_space<vmem>>, vector<1x8x512xf32>
    %339 = vector.shape_cast %338 : vector<1x8x512xf32> to vector<8x512xf32>
    %cst_73 = arith.constant dense<0.000000e+00> : vector<8x512xf32>
    %340 = tpu.matmul %325, %3, %cst_73 {dimension_numbers = #tpu.dot_dimension_numbers<[1], [0], [0], [1], [0, 0, 1, 1], [], []>} : vector<8x128xf32>, vector<128x512xf32>, vector<8x512xf32> -> vector<8x512xf32>
    %341 = arith.addf %339, %340 : vector<8x512xf32>
    %342 = vector.extract_strided_slice %341 {offsets = [0, 0], sizes = [8, 128], strides = [1, 1]} : vector<8x512xf32> to vector<8x128xf32>
    %343 = arith.negf %342 : vector<8x128xf32>
    %344 = math.exp %343 : vector<8x128xf32>
    %cst_74 = arith.constant 1.000000e+00 : f32
    %345 = vector.broadcast %cst_74 : f32 to vector<8x128xf32>
    %346 = arith.addf %345, %344 : vector<8x128xf32>
    %347 = arith.divf %345, %346 : vector<8x128xf32>
    %348 = vector.extract_strided_slice %341 {offsets = [0, 128], sizes = [8, 128], strides = [1, 1]} : vector<8x512xf32> to vector<8x128xf32>
    %349 = arith.negf %348 : vector<8x128xf32>
    %350 = math.exp %349 : vector<8x128xf32>
    %cst_75 = arith.constant 1.000000e+00 : f32
    %351 = vector.broadcast %cst_75 : f32 to vector<8x128xf32>
    %352 = arith.addf %351, %350 : vector<8x128xf32>
    %353 = arith.divf %351, %352 : vector<8x128xf32>
    %354 = vector.extract_strided_slice %341 {offsets = [0, 256], sizes = [8, 128], strides = [1, 1]} : vector<8x512xf32> to vector<8x128xf32>
    %355 = math.tanh %354 : vector<8x128xf32>
    %356 = vector.extract_strided_slice %341 {offsets = [0, 384], sizes = [8, 128], strides = [1, 1]} : vector<8x512xf32> to vector<8x128xf32>
    %357 = arith.negf %356 : vector<8x128xf32>
    %358 = math.exp %357 : vector<8x128xf32>
    %cst_76 = arith.constant 1.000000e+00 : f32
    %359 = vector.broadcast %cst_76 : f32 to vector<8x128xf32>
    %360 = arith.addf %359, %358 : vector<8x128xf32>
    %361 = arith.divf %359, %360 : vector<8x128xf32>
    %362 = arith.mulf %353, %328 : vector<8x128xf32>
    %363 = arith.mulf %347, %355 : vector<8x128xf32>
    %364 = arith.addf %362, %363 : vector<8x128xf32>
    %365 = math.tanh %364 : vector<8x128xf32>
    %366 = arith.mulf %361, %365 : vector<8x128xf32>
    %367 = arith.addi %5, %c7_i32 : i32
    %368 = vector.broadcast %367 : i32 to vector<8x1xi32>
    %369 = arith.cmpi slt, %368, %4 : vector<8x1xi32>
    %370 = vector.shape_cast %369 : vector<8x1xi1> to vector<8x1xi1>
    %371 = vector.broadcast %370 : vector<8x1xi1> to vector<8x128xi1>
    %372 = arith.select %371, %366, %325 : vector<8x128xi1>, vector<8x128xf32>
    %373 = vector.shape_cast %369 : vector<8x1xi1> to vector<8x1xi1>
    %374 = vector.broadcast %373 : vector<8x1xi1> to vector<8x128xi1>
    %375 = arith.select %374, %364, %328 : vector<8x128xi1>, vector<8x128xf32>
    %cst_77 = arith.constant 0.000000e+00 : f32
    %376 = vector.broadcast %cst_77 : f32 to vector<8x128xf32>
    %377 = vector.shape_cast %369 : vector<8x1xi1> to vector<8x1xi1>
    %378 = vector.broadcast %377 : vector<8x1xi1> to vector<8x128xi1>
    %379 = arith.select %378, %366, %376 : vector<8x128xi1>, vector<8x128xf32>
    %380 = arith.index_cast %c7_i32 : i32 to index
    %c0_78 = arith.constant 0 : index
    %c0_79 = arith.constant 0 : index
    %381 = vector.load %arg4[%380, %c0_78, %c0_79] : memref<8x8x128xf32, #tpu.memory_space<vmem>>, vector<1x8x128xf32>
    %382 = vector.shape_cast %381 : vector<1x8x128xf32> to vector<8x128xf32>
    %383 = vector.shape_cast %379 : vector<8x128xf32> to vector<1x8x128xf32>
    tpu.vector_store %arg4[%380, %c0_78, %c0_79], %383 {strides = array<i32>} : memref<8x8x128xf32, #tpu.memory_space<vmem>>, vector<1x8x128xf32>,
    %c8_i32_80 = arith.constant 8 : i32
    %c0_81 = arith.constant 0 : index
    %c0_82 = arith.constant 0 : index
    %384 = vector.load %arg7[%c0_81, %c0_82] : memref<8x128xf32, #tpu.memory_space<vmem>>, vector<8x128xf32>
    tpu.vector_store %arg7[%c0_81, %c0_82], %372 {strides = array<i32>} : memref<8x128xf32, #tpu.memory_space<vmem>>, vector<8x128xf32>,
    %c0_83 = arith.constant 0 : index
    %c0_84 = arith.constant 0 : index
    %385 = vector.load %arg8[%c0_83, %c0_84] : memref<8x128xf32, #tpu.memory_space<vmem>>, vector<8x128xf32>
    tpu.vector_store %arg8[%c0_83, %c0_84], %375 {strides = array<i32>} : memref<8x128xf32, #tpu.memory_space<vmem>>, vector<8x128xf32>,
    %c0_i32_85 = arith.constant 0 : i32
    %386 = arith.cmpi eq, %arg0, %c0_i32_85 : i32
    %387 = arith.extui %386 : i1 to i32
    %c0_i32_86 = arith.constant 0 : i32
    %388 = arith.cmpi ne, %387, %c0_i32_86 : i32
    scf.if %388 {
      %c0_87 = arith.constant 0 : index
      %c0_88 = arith.constant 0 : index
      %389 = vector.load %arg5[%c0_87, %c0_88] : memref<8x128xf32, #tpu.memory_space<vmem>>, vector<8x128xf32>
      tpu.vector_store %arg5[%c0_87, %c0_88], %372 {strides = array<i32>} : memref<8x128xf32, #tpu.memory_space<vmem>>, vector<8x128xf32>,
      %c0_89 = arith.constant 0 : index
      %c0_90 = arith.constant 0 : index
      %390 = vector.load %arg6[%c0_89, %c0_90] : memref<8x128xf32, #tpu.memory_space<vmem>>, vector<8x128xf32>
      tpu.vector_store %arg6[%c0_89, %c0_90], %375 {strides = array<i32>} : memref<8x128xf32, #tpu.memory_space<vmem>>, vector<8x128xf32>,
    } else {
    }
    return
  }
  func.func @transform_0(%arg0: i32) -> (i32, i32) {
    %c0_i32 = arith.constant 0 : i32
    %c0_i32_0 = arith.constant 0 : i32
    %c0_i32_1 = arith.constant 0 : i32
    return %c0_i32, %c0_i32_0 : i32, i32
  }
  func.func @transform_1(%arg0: i32) -> (i32, i32, i32) {
    %c0_i32 = arith.constant 0 : i32
    %c0_i32_0 = arith.constant 0 : i32
    %c0_i32_1 = arith.constant 0 : i32
    return %arg0, %c0_i32, %c0_i32_0 : i32, i32, i32
  }
  func.func @transform_2(%arg0: i32) -> (i32, i32) {
    %c0_i32 = arith.constant 0 : i32
    %c0_i32_0 = arith.constant 0 : i32
    %c0_i32_1 = arith.constant 0 : i32
    return %c0_i32, %c0_i32_0 : i32, i32
  }
  func.func @transform_3(%arg0: i32) -> (i32, i32, i32) {
    %c0_i32 = arith.constant 0 : i32
    %c0_i32_0 = arith.constant 0 : i32
    %c0_i32_1 = arith.constant 0 : i32
    return %arg0, %c0_i32, %c0_i32_0 : i32, i32, i32
  }
  func.func @transform_4(%arg0: i32) -> (i32, i32) {
    %c0_i32 = arith.constant 0 : i32
    %c0_i32_0 = arith.constant 0 : i32
    %c0_i32_1 = arith.constant 0 : i32
    return %c0_i32, %c0_i32_0 : i32, i32
  }
  func.func @transform_5(%arg0: i32) -> (i32, i32) {
    %c0_i32 = arith.constant 0 : i32
    %c0_i32_0 = arith.constant 0 : i32
    %c0_i32_1 = arith.constant 0 : i32
    return %c0_i32, %c0_i32_0 : i32, i32
  }
}

module attributes {stable_mosaic.version = 11 : i64} {
  func.func @_lstm_rec_kernel(%arg0: i32, %arg1: memref<8x1xi32, #tpu.memory_space<vmem>>, %arg2: memref<8x8x512xf32, #tpu.memory_space<vmem>>, %arg3: memref<128x512xf32, #tpu.memory_space<vmem>>, %arg4: memref<8x8x128xf32, #tpu.memory_space<vmem>>, %arg5: memref<8x128xf32, #tpu.memory_space<vmem>>, %arg6: memref<8x128xf32, #tpu.memory_space<vmem>>, %arg7: memref<8x128xf32, #tpu.memory_space<vmem>>, %arg8: memref<8x128xf32, #tpu.memory_space<vmem>>) attributes {dimension_semantics = [#tpu.dimension_semantics<arbitrary>], iteration_bounds = array<i64: 1>, scalar_prefetch = 0 : i64, scratch_operands = 2 : i64, tpu.core_type = #tpu.core_type<tc>, window_params = [{pipeline_mode = #tpu.pipeline_mode<synchronous>, transform_indices = @transform_0, window_bounds = array<i64: 8, 1>}, {transform_indices = @transform_1, window_bounds = array<i64: 8, 8, 512>}, {pipeline_mode = #tpu.pipeline_mode<synchronous>, transform_indices = @transform_2, window_bounds = array<i64: 128, 512>}, {transform_indices = @transform_3, window_bounds = array<i64: 8, 8, 128>}, {pipeline_mode = #tpu.pipeline_mode<synchronous>, transform_indices = @transform_4, window_bounds = array<i64: 8, 128>}, {pipeline_mode = #tpu.pipeline_mode<synchronous>, transform_indices = @transform_5, window_bounds = array<i64: 8, 128>}]} {
    %c0_i32 = arith.constant 0 : i32
    %0 = arith.cmpi eq, %arg0, %c0_i32 : i32
    %1 = arith.extui %0 : i1 to i32
    %c0_i32_0 = arith.constant 0 : i32
    %2 = arith.cmpi ne, %1, %c0_i32_0 : i32
    scf.if %2 {
      %cst_87 = arith.constant 0.000000e+00 : f32
      %389 = vector.broadcast %cst_87 : f32 to vector<8x128xf32>
      %c0_88 = arith.constant 0 : index
      %c0_89 = arith.constant 0 : index
      %390 = vector.load %arg7[%c0_88, %c0_89] : memref<8x128xf32, #tpu.memory_space<vmem>>, vector<8x128xf32>
      tpu.vector_store %arg7[%c0_88, %c0_89], %389 {strides = array<i32>} : memref<8x128xf32, #tpu.memory_space<vmem>>, vector<8x128xf32>,
      %cst_90 = arith.constant 0.000000e+00 : f32
      %391 = vector.broadcast %cst_90 : f32 to vector<8x128xf32>
      %c0_91 = arith.constant 0 : index
      %c0_92 = arith.constant 0 : index
      %392 = vector.load %arg8[%c0_91, %c0_92] : memref<8x128xf32, #tpu.memory_space<vmem>>, vector<8x128xf32>
      tpu.vector_store %arg8[%c0_91, %c0_92], %391 {strides = array<i32>} : memref<8x128xf32, #tpu.memory_space<vmem>>, vector<8x128xf32>,
    } else {
    }
    %c0 = arith.constant 0 : index
    %c0_1 = arith.constant 0 : index
    %3 = vector.load %arg3[%c0, %c0_1] : memref<128x512xf32, #tpu.memory_space<vmem>>, vector<128x512xf32>
    %c0_2 = arith.constant 0 : index
    %c0_3 = arith.constant 0 : index
    %4 = vector.load %arg1[%c0_2, %c0_3] : memref<8x1xi32, #tpu.memory_space<vmem>>, vector<8x1xi32>
    %c8_i32 = arith.constant 8 : i32
    %5 = arith.muli %arg0, %c8_i32 : i32
    %c0_4 = arith.constant 0 : index
    %c0_5 = arith.constant 0 : index
    %6 = vector.load %arg7[%c0_4, %c0_5] : memref<8x128xf32, #tpu.memory_space<vmem>>, vector<8x128xf32>
    %c0_6 = arith.constant 0 : index
    %c0_7 = arith.constant 0 : index
    %7 = vector.load %arg8[%c0_6, %c0_7] : memref<8x128xf32, #tpu.memory_space<vmem>>, vector<8x128xf32>
    %c0_i32_8 = arith.constant 0 : i32
    %8 = arith.index_cast %c0_i32_8 : i32 to index
    %c0_9 = arith.constant 0 : index
    %c0_10 = arith.constant 0 : index
    %9 = vector.load %arg2[%8, %c0_9, %c0_10] : memref<8x8x512xf32, #tpu.memory_space<vmem>>, vector<1x8x512xf32>
    %10 = vector.shape_cast %9 : vector<1x8x512xf32> to vector<8x512xf32>
    %cst = arith.constant dense<0.000000e+00> : vector<8x512xf32>
    %11 = tpu.matmul %6, %3, %cst {dimension_numbers = #tpu.dot_dimension_numbers<[1], [0], [0], [1], [0, 0, 1, 1], [], []>} : vector<8x128xf32>, vector<128x512xf32>, vector<8x512xf32> -> vector<8x512xf32>
    %12 = arith.addf %10, %11 : vector<8x512xf32>
    %13 = vector.extract_strided_slice %12 {offsets = [0, 0], sizes = [8, 128], strides = [1, 1]} : vector<8x512xf32> to vector<8x128xf32>
    %14 = arith.negf %13 : vector<8x128xf32>
    %15 = math.exp %14 : vector<8x128xf32>
    %cst_11 = arith.constant 1.000000e+00 : f32
    %16 = vector.broadcast %cst_11 : f32 to vector<8x128xf32>
    %17 = arith.addf %16, %15 : vector<8x128xf32>
    %18 = arith.divf %16, %17 : vector<8x128xf32>
    %19 = vector.extract_strided_slice %12 {offsets = [0, 128], sizes = [8, 128], strides = [1, 1]} : vector<8x512xf32> to vector<8x128xf32>
    %20 = arith.negf %19 : vector<8x128xf32>
    %21 = math.exp %20 : vector<8x128xf32>
    %cst_12 = arith.constant 1.000000e+00 : f32
    %22 = vector.broadcast %cst_12 : f32 to vector<8x128xf32>
    %23 = arith.addf %22, %21 : vector<8x128xf32>
    %24 = arith.divf %22, %23 : vector<8x128xf32>
    %25 = vector.extract_strided_slice %12 {offsets = [0, 256], sizes = [8, 128], strides = [1, 1]} : vector<8x512xf32> to vector<8x128xf32>
    %26 = math.tanh %25 : vector<8x128xf32>
    %27 = vector.extract_strided_slice %12 {offsets = [0, 384], sizes = [8, 128], strides = [1, 1]} : vector<8x512xf32> to vector<8x128xf32>
    %28 = arith.negf %27 : vector<8x128xf32>
    %29 = math.exp %28 : vector<8x128xf32>
    %cst_13 = arith.constant 1.000000e+00 : f32
    %30 = vector.broadcast %cst_13 : f32 to vector<8x128xf32>
    %31 = arith.addf %30, %29 : vector<8x128xf32>
    %32 = arith.divf %30, %31 : vector<8x128xf32>
    %33 = arith.mulf %24, %7 : vector<8x128xf32>
    %34 = arith.mulf %18, %26 : vector<8x128xf32>
    %35 = arith.addf %33, %34 : vector<8x128xf32>
    %36 = math.tanh %35 : vector<8x128xf32>
    %37 = arith.mulf %32, %36 : vector<8x128xf32>
    %38 = arith.addi %5, %c0_i32_8 : i32
    %39 = vector.broadcast %38 : i32 to vector<8x1xi32>
    %40 = arith.cmpi slt, %39, %4 : vector<8x1xi32>
    %41 = vector.shape_cast %40 : vector<8x1xi1> to vector<8x1xi1>
    %42 = vector.broadcast %41 : vector<8x1xi1> to vector<8x128xi1>
    %43 = arith.select %42, %37, %6 : vector<8x128xi1>, vector<8x128xf32>
    %44 = vector.shape_cast %40 : vector<8x1xi1> to vector<8x1xi1>
    %45 = vector.broadcast %44 : vector<8x1xi1> to vector<8x128xi1>
    %46 = arith.select %45, %35, %7 : vector<8x128xi1>, vector<8x128xf32>
    %cst_14 = arith.constant 0.000000e+00 : f32
    %47 = vector.broadcast %cst_14 : f32 to vector<8x128xf32>
    %48 = vector.shape_cast %40 : vector<8x1xi1> to vector<8x1xi1>
    %49 = vector.broadcast %48 : vector<8x1xi1> to vector<8x128xi1>
    %50 = arith.select %49, %37, %47 : vector<8x128xi1>, vector<8x128xf32>
    %51 = arith.index_cast %c0_i32_8 : i32 to index
    %c0_15 = arith.constant 0 : index
    %c0_16 = arith.constant 0 : index
    %52 = vector.load %arg4[%51, %c0_15, %c0_16] : memref<8x8x128xf32, #tpu.memory_space<vmem>>, vector<1x8x128xf32>
    %53 = vector.shape_cast %52 : vector<1x8x128xf32> to vector<8x128xf32>
    %54 = vector.shape_cast %50 : vector<8x128xf32> to vector<1x8x128xf32>
    tpu.vector_store %arg4[%51, %c0_15, %c0_16], %54 {strides = array<i32>} : memref<8x8x128xf32, #tpu.memory_space<vmem>>, vector<1x8x128xf32>,
    %c1_i32 = arith.constant 1 : i32
    %55 = arith.index_cast %c1_i32 : i32 to index
    %c0_17 = arith.constant 0 : index
    %c0_18 = arith.constant 0 : index
    %56 = vector.load %arg2[%55, %c0_17, %c0_18] : memref<8x8x512xf32, #tpu.memory_space<vmem>>, vector<1x8x512xf32>
    %57 = vector.shape_cast %56 : vector<1x8x512xf32> to vector<8x512xf32>
    %cst_19 = arith.constant dense<0.000000e+00> : vector<8x512xf32>
    %58 = tpu.matmul %43, %3, %cst_19 {dimension_numbers = #tpu.dot_dimension_numbers<[1], [0], [0], [1], [0, 0, 1, 1], [], []>} : vector<8x128xf32>, vector<128x512xf32>, vector<8x512xf32> -> vector<8x512xf32>
    %59 = arith.addf %57, %58 : vector<8x512xf32>
    %60 = vector.extract_strided_slice %59 {offsets = [0, 0], sizes = [8, 128], strides = [1, 1]} : vector<8x512xf32> to vector<8x128xf32>
    %61 = arith.negf %60 : vector<8x128xf32>
    %62 = math.exp %61 : vector<8x128xf32>
    %cst_20 = arith.constant 1.000000e+00 : f32
    %63 = vector.broadcast %cst_20 : f32 to vector<8x128xf32>
    %64 = arith.addf %63, %62 : vector<8x128xf32>
    %65 = arith.divf %63, %64 : vector<8x128xf32>
    %66 = vector.extract_strided_slice %59 {offsets = [0, 128], sizes = [8, 128], strides = [1, 1]} : vector<8x512xf32> to vector<8x128xf32>
    %67 = arith.negf %66 : vector<8x128xf32>
    %68 = math.exp %67 : vector<8x128xf32>
    %cst_21 = arith.constant 1.000000e+00 : f32
    %69 = vector.broadcast %cst_21 : f32 to vector<8x128xf32>
    %70 = arith.addf %69, %68 : vector<8x128xf32>
    %71 = arith.divf %69, %70 : vector<8x128xf32>
    %72 = vector.extract_strided_slice %59 {offsets = [0, 256], sizes = [8, 128], strides = [1, 1]} : vector<8x512xf32> to vector<8x128xf32>
    %73 = math.tanh %72 : vector<8x128xf32>
    %74 = vector.extract_strided_slice %59 {offsets = [0, 384], sizes = [8, 128], strides = [1, 1]} : vector<8x512xf32> to vector<8x128xf32>
    %75 = arith.negf %74 : vector<8x128xf32>
    %76 = math.exp %75 : vector<8x128xf32>
    %cst_22 = arith.constant 1.000000e+00 : f32
    %77 = vector.broadcast %cst_22 : f32 to vector<8x128xf32>
    %78 = arith.addf %77, %76 : vector<8x128xf32>
    %79 = arith.divf %77, %78 : vector<8x128xf32>
    %80 = arith.mulf %71, %46 : vector<8x128xf32>
    %81 = arith.mulf %65, %73 : vector<8x128xf32>
    %82 = arith.addf %80, %81 : vector<8x128xf32>
    %83 = math.tanh %82 : vector<8x128xf32>
    %84 = arith.mulf %79, %83 : vector<8x128xf32>
    %85 = arith.addi %5, %c1_i32 : i32
    %86 = vector.broadcast %85 : i32 to vector<8x1xi32>
    %87 = arith.cmpi slt, %86, %4 : vector<8x1xi32>
    %88 = vector.shape_cast %87 : vector<8x1xi1> to vector<8x1xi1>
    %89 = vector.broadcast %88 : vector<8x1xi1> to vector<8x128xi1>
    %90 = arith.select %89, %84, %43 : vector<8x128xi1>, vector<8x128xf32>
    %91 = vector.shape_cast %87 : vector<8x1xi1> to vector<8x1xi1>
    %92 = vector.broadcast %91 : vector<8x1xi1> to vector<8x128xi1>
    %93 = arith.select %92, %82, %46 : vector<8x128xi1>, vector<8x128xf32>
    %cst_23 = arith.constant 0.000000e+00 : f32
    %94 = vector.broadcast %cst_23 : f32 to vector<8x128xf32>
    %95 = vector.shape_cast %87 : vector<8x1xi1> to vector<8x1xi1>
    %96 = vector.broadcast %95 : vector<8x1xi1> to vector<8x128xi1>
    %97 = arith.select %96, %84, %94 : vector<8x128xi1>, vector<8x128xf32>
    %98 = arith.index_cast %c1_i32 : i32 to index
    %c0_24 = arith.constant 0 : index
    %c0_25 = arith.constant 0 : index
    %99 = vector.load %arg4[%98, %c0_24, %c0_25] : memref<8x8x128xf32, #tpu.memory_space<vmem>>, vector<1x8x128xf32>
    %100 = vector.shape_cast %99 : vector<1x8x128xf32> to vector<8x128xf32>
    %101 = vector.shape_cast %97 : vector<8x128xf32> to vector<1x8x128xf32>
    tpu.vector_store %arg4[%98, %c0_24, %c0_25], %101 {strides = array<i32>} : memref<8x8x128xf32, #tpu.memory_space<vmem>>, vector<1x8x128xf32>,
    %c2_i32 = arith.constant 2 : i32
    %102 = arith.index_cast %c2_i32 : i32 to index
    %c0_26 = arith.constant 0 : index
    %c0_27 = arith.constant 0 : index
    %103 = vector.load %arg2[%102, %c0_26, %c0_27] : memref<8x8x512xf32, #tpu.memory_space<vmem>>, vector<1x8x512xf32>
    %104 = vector.shape_cast %103 : vector<1x8x512xf32> to vector<8x512xf32>
    %cst_28 = arith.constant dense<0.000000e+00> : vector<8x512xf32>
    %105 = tpu.matmul %90, %3, %cst_28 {dimension_numbers = #tpu.dot_dimension_numbers<[1], [0], [0], [1], [0, 0, 1, 1], [], []>} : vector<8x128xf32>, vector<128x512xf32>, vector<8x512xf32> -> vector<8x512xf32>
    %106 = arith.addf %104, %105 : vector<8x512xf32>
    %107 = vector.extract_strided_slice %106 {offsets = [0, 0], sizes = [8, 128], strides = [1, 1]} : vector<8x512xf32> to vector<8x128xf32>
    %108 = arith.negf %107 : vector<8x128xf32>
    %109 = math.exp %108 : vector<8x128xf32>
    %cst_29 = arith.constant 1.000000e+00 : f32
    %110 = vector.broadcast %cst_29 : f32 to vector<8x128xf32>
    %111 = arith.addf %110, %109 : vector<8x128xf32>
    %112 = arith.divf %110, %111 : vector<8x128xf32>
    %113 = vector.extract_strided_slice %106 {offsets = [0, 128], sizes = [8, 128], strides = [1, 1]} : vector<8x512xf32> to vector<8x128xf32>
    %114 = arith.negf %113 : vector<8x128xf32>
    %115 = math.exp %114 : vector<8x128xf32>
    %cst_30 = arith.constant 1.000000e+00 : f32
    %116 = vector.broadcast %cst_30 : f32 to vector<8x128xf32>
    %117 = arith.addf %116, %115 : vector<8x128xf32>
    %118 = arith.divf %116, %117 : vector<8x128xf32>
    %119 = vector.extract_strided_slice %106 {offsets = [0, 256], sizes = [8, 128], strides = [1, 1]} : vector<8x512xf32> to vector<8x128xf32>
    %120 = math.tanh %119 : vector<8x128xf32>
    %121 = vector.extract_strided_slice %106 {offsets = [0, 384], sizes = [8, 128], strides = [1, 1]} : vector<8x512xf32> to vector<8x128xf32>
    %122 = arith.negf %121 : vector<8x128xf32>
    %123 = math.exp %122 : vector<8x128xf32>
    %cst_31 = arith.constant 1.000000e+00 : f32
    %124 = vector.broadcast %cst_31 : f32 to vector<8x128xf32>
    %125 = arith.addf %124, %123 : vector<8x128xf32>
    %126 = arith.divf %124, %125 : vector<8x128xf32>
    %127 = arith.mulf %118, %93 : vector<8x128xf32>
    %128 = arith.mulf %112, %120 : vector<8x128xf32>
    %129 = arith.addf %127, %128 : vector<8x128xf32>
    %130 = math.tanh %129 : vector<8x128xf32>
    %131 = arith.mulf %126, %130 : vector<8x128xf32>
    %132 = arith.addi %5, %c2_i32 : i32
    %133 = vector.broadcast %132 : i32 to vector<8x1xi32>
    %134 = arith.cmpi slt, %133, %4 : vector<8x1xi32>
    %135 = vector.shape_cast %134 : vector<8x1xi1> to vector<8x1xi1>
    %136 = vector.broadcast %135 : vector<8x1xi1> to vector<8x128xi1>
    %137 = arith.select %136, %131, %90 : vector<8x128xi1>, vector<8x128xf32>
    %138 = vector.shape_cast %134 : vector<8x1xi1> to vector<8x1xi1>
    %139 = vector.broadcast %138 : vector<8x1xi1> to vector<8x128xi1>
    %140 = arith.select %139, %129, %93 : vector<8x128xi1>, vector<8x128xf32>
    %cst_32 = arith.constant 0.000000e+00 : f32
    %141 = vector.broadcast %cst_32 : f32 to vector<8x128xf32>
    %142 = vector.shape_cast %134 : vector<8x1xi1> to vector<8x1xi1>
    %143 = vector.broadcast %142 : vector<8x1xi1> to vector<8x128xi1>
    %144 = arith.select %143, %131, %141 : vector<8x128xi1>, vector<8x128xf32>
    %145 = arith.index_cast %c2_i32 : i32 to index
    %c0_33 = arith.constant 0 : index
    %c0_34 = arith.constant 0 : index
    %146 = vector.load %arg4[%145, %c0_33, %c0_34] : memref<8x8x128xf32, #tpu.memory_space<vmem>>, vector<1x8x128xf32>
    %147 = vector.shape_cast %146 : vector<1x8x128xf32> to vector<8x128xf32>
    %148 = vector.shape_cast %144 : vector<8x128xf32> to vector<1x8x128xf32>
    tpu.vector_store %arg4[%145, %c0_33, %c0_34], %148 {strides = array<i32>} : memref<8x8x128xf32, #tpu.memory_space<vmem>>, vector<1x8x128xf32>,
    %c3_i32 = arith.constant 3 : i32
    %149 = arith.index_cast %c3_i32 : i32 to index
    %c0_35 = arith.constant 0 : index
    %c0_36 = arith.constant 0 : index
    %150 = vector.load %arg2[%149, %c0_35, %c0_36] : memref<8x8x512xf32, #tpu.memory_space<vmem>>, vector<1x8x512xf32>
    %151 = vector.shape_cast %150 : vector<1x8x512xf32> to vector<8x512xf32>
    %cst_37 = arith.constant dense<0.000000e+00> : vector<8x512xf32>
    %152 = tpu.matmul %137, %3, %cst_37 {dimension_numbers = #tpu.dot_dimension_numbers<[1], [0], [0], [1], [0, 0, 1, 1], [], []>} : vector<8x128xf32>, vector<128x512xf32>, vector<8x512xf32> -> vector<8x512xf32>
    %153 = arith.addf %151, %152 : vector<8x512xf32>
    %154 = vector.extract_strided_slice %153 {offsets = [0, 0], sizes = [8, 128], strides = [1, 1]} : vector<8x512xf32> to vector<8x128xf32>
    %155 = arith.negf %154 : vector<8x128xf32>
    %156 = math.exp %155 : vector<8x128xf32>
    %cst_38 = arith.constant 1.000000e+00 : f32
    %157 = vector.broadcast %cst_38 : f32 to vector<8x128xf32>
    %158 = arith.addf %157, %156 : vector<8x128xf32>
    %159 = arith.divf %157, %158 : vector<8x128xf32>
    %160 = vector.extract_strided_slice %153 {offsets = [0, 128], sizes = [8, 128], strides = [1, 1]} : vector<8x512xf32> to vector<8x128xf32>
    %161 = arith.negf %160 : vector<8x128xf32>
    %162 = math.exp %161 : vector<8x128xf32>
    %cst_39 = arith.constant 1.000000e+00 : f32
    %163 = vector.broadcast %cst_39 : f32 to vector<8x128xf32>
    %164 = arith.addf %163, %162 : vector<8x128xf32>
    %165 = arith.divf %163, %164 : vector<8x128xf32>
    %166 = vector.extract_strided_slice %153 {offsets = [0, 256], sizes = [8, 128], strides = [1, 1]} : vector<8x512xf32> to vector<8x128xf32>
    %167 = math.tanh %166 : vector<8x128xf32>
    %168 = vector.extract_strided_slice %153 {offsets = [0, 384], sizes = [8, 128], strides = [1, 1]} : vector<8x512xf32> to vector<8x128xf32>
    %169 = arith.negf %168 : vector<8x128xf32>
    %170 = math.exp %169 : vector<8x128xf32>
    %cst_40 = arith.constant 1.000000e+00 : f32
    %171 = vector.broadcast %cst_40 : f32 to vector<8x128xf32>
    %172 = arith.addf %171, %170 : vector<8x128xf32>
    %173 = arith.divf %171, %172 : vector<8x128xf32>
    %174 = arith.mulf %165, %140 : vector<8x128xf32>
    %175 = arith.mulf %159, %167 : vector<8x128xf32>
    %176 = arith.addf %174, %175 : vector<8x128xf32>
    %177 = math.tanh %176 : vector<8x128xf32>
    %178 = arith.mulf %173, %177 : vector<8x128xf32>
    %179 = arith.addi %5, %c3_i32 : i32
    %180 = vector.broadcast %179 : i32 to vector<8x1xi32>
    %181 = arith.cmpi slt, %180, %4 : vector<8x1xi32>
    %182 = vector.shape_cast %181 : vector<8x1xi1> to vector<8x1xi1>
    %183 = vector.broadcast %182 : vector<8x1xi1> to vector<8x128xi1>
    %184 = arith.select %183, %178, %137 : vector<8x128xi1>, vector<8x128xf32>
    %185 = vector.shape_cast %181 : vector<8x1xi1> to vector<8x1xi1>
    %186 = vector.broadcast %185 : vector<8x1xi1> to vector<8x128xi1>
    %187 = arith.select %186, %176, %140 : vector<8x128xi1>, vector<8x128xf32>
    %cst_41 = arith.constant 0.000000e+00 : f32
    %188 = vector.broadcast %cst_41 : f32 to vector<8x128xf32>
    %189 = vector.shape_cast %181 : vector<8x1xi1> to vector<8x1xi1>
    %190 = vector.broadcast %189 : vector<8x1xi1> to vector<8x128xi1>
    %191 = arith.select %190, %178, %188 : vector<8x128xi1>, vector<8x128xf32>
    %192 = arith.index_cast %c3_i32 : i32 to index
    %c0_42 = arith.constant 0 : index
    %c0_43 = arith.constant 0 : index
    %193 = vector.load %arg4[%192, %c0_42, %c0_43] : memref<8x8x128xf32, #tpu.memory_space<vmem>>, vector<1x8x128xf32>
    %194 = vector.shape_cast %193 : vector<1x8x128xf32> to vector<8x128xf32>
    %195 = vector.shape_cast %191 : vector<8x128xf32> to vector<1x8x128xf32>
    tpu.vector_store %arg4[%192, %c0_42, %c0_43], %195 {strides = array<i32>} : memref<8x8x128xf32, #tpu.memory_space<vmem>>, vector<1x8x128xf32>,
    %c4_i32 = arith.constant 4 : i32
    %196 = arith.index_cast %c4_i32 : i32 to index
    %c0_44 = arith.constant 0 : index
    %c0_45 = arith.constant 0 : index
    %197 = vector.load %arg2[%196, %c0_44, %c0_45] : memref<8x8x512xf32, #tpu.memory_space<vmem>>, vector<1x8x512xf32>
    %198 = vector.shape_cast %197 : vector<1x8x512xf32> to vector<8x512xf32>
    %cst_46 = arith.constant dense<0.000000e+00> : vector<8x512xf32>
    %199 = tpu.matmul %184, %3, %cst_46 {dimension_numbers = #tpu.dot_dimension_numbers<[1], [0], [0], [1], [0, 0, 1, 1], [], []>} : vector<8x128xf32>, vector<128x512xf32>, vector<8x512xf32> -> vector<8x512xf32>
    %200 = arith.addf %198, %199 : vector<8x512xf32>
    %201 = vector.extract_strided_slice %200 {offsets = [0, 0], sizes = [8, 128], strides = [1, 1]} : vector<8x512xf32> to vector<8x128xf32>
    %202 = arith.negf %201 : vector<8x128xf32>
    %203 = math.exp %202 : vector<8x128xf32>
    %cst_47 = arith.constant 1.000000e+00 : f32
    %204 = vector.broadcast %cst_47 : f32 to vector<8x128xf32>
    %205 = arith.addf %204, %203 : vector<8x128xf32>
    %206 = arith.divf %204, %205 : vector<8x128xf32>
    %207 = vector.extract_strided_slice %200 {offsets = [0, 128], sizes = [8, 128], strides = [1, 1]} : vector<8x512xf32> to vector<8x128xf32>
    %208 = arith.negf %207 : vector<8x128xf32>
    %209 = math.exp %208 : vector<8x128xf32>
    %cst_48 = arith.constant 1.000000e+00 : f32
    %210 = vector.broadcast %cst_48 : f32 to vector<8x128xf32>
    %211 = arith.addf %210, %209 : vector<8x128xf32>
    %212 = arith.divf %210, %211 : vector<8x128xf32>
    %213 = vector.extract_strided_slice %200 {offsets = [0, 256], sizes = [8, 128], strides = [1, 1]} : vector<8x512xf32> to vector<8x128xf32>
    %214 = math.tanh %213 : vector<8x128xf32>
    %215 = vector.extract_strided_slice %200 {offsets = [0, 384], sizes = [8, 128], strides = [1, 1]} : vector<8x512xf32> to vector<8x128xf32>
    %216 = arith.negf %215 : vector<8x128xf32>
    %217 = math.exp %216 : vector<8x128xf32>
    %cst_49 = arith.constant 1.000000e+00 : f32
    %218 = vector.broadcast %cst_49 : f32 to vector<8x128xf32>
    %219 = arith.addf %218, %217 : vector<8x128xf32>
    %220 = arith.divf %218, %219 : vector<8x128xf32>
    %221 = arith.mulf %212, %187 : vector<8x128xf32>
    %222 = arith.mulf %206, %214 : vector<8x128xf32>
    %223 = arith.addf %221, %222 : vector<8x128xf32>
    %224 = math.tanh %223 : vector<8x128xf32>
    %225 = arith.mulf %220, %224 : vector<8x128xf32>
    %226 = arith.addi %5, %c4_i32 : i32
    %227 = vector.broadcast %226 : i32 to vector<8x1xi32>
    %228 = arith.cmpi slt, %227, %4 : vector<8x1xi32>
    %229 = vector.shape_cast %228 : vector<8x1xi1> to vector<8x1xi1>
    %230 = vector.broadcast %229 : vector<8x1xi1> to vector<8x128xi1>
    %231 = arith.select %230, %225, %184 : vector<8x128xi1>, vector<8x128xf32>
    %232 = vector.shape_cast %228 : vector<8x1xi1> to vector<8x1xi1>
    %233 = vector.broadcast %232 : vector<8x1xi1> to vector<8x128xi1>
    %234 = arith.select %233, %223, %187 : vector<8x128xi1>, vector<8x128xf32>
    %cst_50 = arith.constant 0.000000e+00 : f32
    %235 = vector.broadcast %cst_50 : f32 to vector<8x128xf32>
    %236 = vector.shape_cast %228 : vector<8x1xi1> to vector<8x1xi1>
    %237 = vector.broadcast %236 : vector<8x1xi1> to vector<8x128xi1>
    %238 = arith.select %237, %225, %235 : vector<8x128xi1>, vector<8x128xf32>
    %239 = arith.index_cast %c4_i32 : i32 to index
    %c0_51 = arith.constant 0 : index
    %c0_52 = arith.constant 0 : index
    %240 = vector.load %arg4[%239, %c0_51, %c0_52] : memref<8x8x128xf32, #tpu.memory_space<vmem>>, vector<1x8x128xf32>
    %241 = vector.shape_cast %240 : vector<1x8x128xf32> to vector<8x128xf32>
    %242 = vector.shape_cast %238 : vector<8x128xf32> to vector<1x8x128xf32>
    tpu.vector_store %arg4[%239, %c0_51, %c0_52], %242 {strides = array<i32>} : memref<8x8x128xf32, #tpu.memory_space<vmem>>, vector<1x8x128xf32>,
    %c5_i32 = arith.constant 5 : i32
    %243 = arith.index_cast %c5_i32 : i32 to index
    %c0_53 = arith.constant 0 : index
    %c0_54 = arith.constant 0 : index
    %244 = vector.load %arg2[%243, %c0_53, %c0_54] : memref<8x8x512xf32, #tpu.memory_space<vmem>>, vector<1x8x512xf32>
    %245 = vector.shape_cast %244 : vector<1x8x512xf32> to vector<8x512xf32>
    %cst_55 = arith.constant dense<0.000000e+00> : vector<8x512xf32>
    %246 = tpu.matmul %231, %3, %cst_55 {dimension_numbers = #tpu.dot_dimension_numbers<[1], [0], [0], [1], [0, 0, 1, 1], [], []>} : vector<8x128xf32>, vector<128x512xf32>, vector<8x512xf32> -> vector<8x512xf32>
    %247 = arith.addf %245, %246 : vector<8x512xf32>
    %248 = vector.extract_strided_slice %247 {offsets = [0, 0], sizes = [8, 128], strides = [1, 1]} : vector<8x512xf32> to vector<8x128xf32>
    %249 = arith.negf %248 : vector<8x128xf32>
    %250 = math.exp %249 : vector<8x128xf32>
    %cst_56 = arith.constant 1.000000e+00 : f32
    %251 = vector.broadcast %cst_56 : f32 to vector<8x128xf32>
    %252 = arith.addf %251, %250 : vector<8x128xf32>
    %253 = arith.divf %251, %252 : vector<8x128xf32>
    %254 = vector.extract_strided_slice %247 {offsets = [0, 128], sizes = [8, 128], strides = [1, 1]} : vector<8x512xf32> to vector<8x128xf32>
    %255 = arith.negf %254 : vector<8x128xf32>
    %256 = math.exp %255 : vector<8x128xf32>
    %cst_57 = arith.constant 1.000000e+00 : f32
    %257 = vector.broadcast %cst_57 : f32 to vector<8x128xf32>
    %258 = arith.addf %257, %256 : vector<8x128xf32>
    %259 = arith.divf %257, %258 : vector<8x128xf32>
    %260 = vector.extract_strided_slice %247 {offsets = [0, 256], sizes = [8, 128], strides = [1, 1]} : vector<8x512xf32> to vector<8x128xf32>
    %261 = math.tanh %260 : vector<8x128xf32>
    %262 = vector.extract_strided_slice %247 {offsets = [0, 384], sizes = [8, 128], strides = [1, 1]} : vector<8x512xf32> to vector<8x128xf32>
    %263 = arith.negf %262 : vector<8x128xf32>
    %264 = math.exp %263 : vector<8x128xf32>
    %cst_58 = arith.constant 1.000000e+00 : f32
    %265 = vector.broadcast %cst_58 : f32 to vector<8x128xf32>
    %266 = arith.addf %265, %264 : vector<8x128xf32>
    %267 = arith.divf %265, %266 : vector<8x128xf32>
    %268 = arith.mulf %259, %234 : vector<8x128xf32>
    %269 = arith.mulf %253, %261 : vector<8x128xf32>
    %270 = arith.addf %268, %269 : vector<8x128xf32>
    %271 = math.tanh %270 : vector<8x128xf32>
    %272 = arith.mulf %267, %271 : vector<8x128xf32>
    %273 = arith.addi %5, %c5_i32 : i32
    %274 = vector.broadcast %273 : i32 to vector<8x1xi32>
    %275 = arith.cmpi slt, %274, %4 : vector<8x1xi32>
    %276 = vector.shape_cast %275 : vector<8x1xi1> to vector<8x1xi1>
    %277 = vector.broadcast %276 : vector<8x1xi1> to vector<8x128xi1>
    %278 = arith.select %277, %272, %231 : vector<8x128xi1>, vector<8x128xf32>
    %279 = vector.shape_cast %275 : vector<8x1xi1> to vector<8x1xi1>
    %280 = vector.broadcast %279 : vector<8x1xi1> to vector<8x128xi1>
    %281 = arith.select %280, %270, %234 : vector<8x128xi1>, vector<8x128xf32>
    %cst_59 = arith.constant 0.000000e+00 : f32
    %282 = vector.broadcast %cst_59 : f32 to vector<8x128xf32>
    %283 = vector.shape_cast %275 : vector<8x1xi1> to vector<8x1xi1>
    %284 = vector.broadcast %283 : vector<8x1xi1> to vector<8x128xi1>
    %285 = arith.select %284, %272, %282 : vector<8x128xi1>, vector<8x128xf32>
    %286 = arith.index_cast %c5_i32 : i32 to index
    %c0_60 = arith.constant 0 : index
    %c0_61 = arith.constant 0 : index
    %287 = vector.load %arg4[%286, %c0_60, %c0_61] : memref<8x8x128xf32, #tpu.memory_space<vmem>>, vector<1x8x128xf32>
    %288 = vector.shape_cast %287 : vector<1x8x128xf32> to vector<8x128xf32>
    %289 = vector.shape_cast %285 : vector<8x128xf32> to vector<1x8x128xf32>
    tpu.vector_store %arg4[%286, %c0_60, %c0_61], %289 {strides = array<i32>} : memref<8x8x128xf32, #tpu.memory_space<vmem>>, vector<1x8x128xf32>,
    %c6_i32 = arith.constant 6 : i32
    %290 = arith.index_cast %c6_i32 : i32 to index
    %c0_62 = arith.constant 0 : index
    %c0_63 = arith.constant 0 : index
    %291 = vector.load %arg2[%290, %c0_62, %c0_63] : memref<8x8x512xf32, #tpu.memory_space<vmem>>, vector<1x8x512xf32>
    %292 = vector.shape_cast %291 : vector<1x8x512xf32> to vector<8x512xf32>
    %cst_64 = arith.constant dense<0.000000e+00> : vector<8x512xf32>
    %293 = tpu.matmul %278, %3, %cst_64 {dimension_numbers = #tpu.dot_dimension_numbers<[1], [0], [0], [1], [0, 0, 1, 1], [], []>} : vector<8x128xf32>, vector<128x512xf32>, vector<8x512xf32> -> vector<8x512xf32>
    %294 = arith.addf %292, %293 : vector<8x512xf32>
    %295 = vector.extract_strided_slice %294 {offsets = [0, 0], sizes = [8, 128], strides = [1, 1]} : vector<8x512xf32> to vector<8x128xf32>
    %296 = arith.negf %295 : vector<8x128xf32>
    %297 = math.exp %296 : vector<8x128xf32>
    %cst_65 = arith.constant 1.000000e+00 : f32
    %298 = vector.broadcast %cst_65 : f32 to vector<8x128xf32>
    %299 = arith.addf %298, %297 : vector<8x128xf32>
    %300 = arith.divf %298, %299 : vector<8x128xf32>
    %301 = vector.extract_strided_slice %294 {offsets = [0, 128], sizes = [8, 128], strides = [1, 1]} : vector<8x512xf32> to vector<8x128xf32>
    %302 = arith.negf %301 : vector<8x128xf32>
    %303 = math.exp %302 : vector<8x128xf32>
    %cst_66 = arith.constant 1.000000e+00 : f32
    %304 = vector.broadcast %cst_66 : f32 to vector<8x128xf32>
    %305 = arith.addf %304, %303 : vector<8x128xf32>
    %306 = arith.divf %304, %305 : vector<8x128xf32>
    %307 = vector.extract_strided_slice %294 {offsets = [0, 256], sizes = [8, 128], strides = [1, 1]} : vector<8x512xf32> to vector<8x128xf32>
    %308 = math.tanh %307 : vector<8x128xf32>
    %309 = vector.extract_strided_slice %294 {offsets = [0, 384], sizes = [8, 128], strides = [1, 1]} : vector<8x512xf32> to vector<8x128xf32>
    %310 = arith.negf %309 : vector<8x128xf32>
    %311 = math.exp %310 : vector<8x128xf32>
    %cst_67 = arith.constant 1.000000e+00 : f32
    %312 = vector.broadcast %cst_67 : f32 to vector<8x128xf32>
    %313 = arith.addf %312, %311 : vector<8x128xf32>
    %314 = arith.divf %312, %313 : vector<8x128xf32>
    %315 = arith.mulf %306, %281 : vector<8x128xf32>
    %316 = arith.mulf %300, %308 : vector<8x128xf32>
    %317 = arith.addf %315, %316 : vector<8x128xf32>
    %318 = math.tanh %317 : vector<8x128xf32>
    %319 = arith.mulf %314, %318 : vector<8x128xf32>
    %320 = arith.addi %5, %c6_i32 : i32
    %321 = vector.broadcast %320 : i32 to vector<8x1xi32>
    %322 = arith.cmpi slt, %321, %4 : vector<8x1xi32>
    %323 = vector.shape_cast %322 : vector<8x1xi1> to vector<8x1xi1>
    %324 = vector.broadcast %323 : vector<8x1xi1> to vector<8x128xi1>
    %325 = arith.select %324, %319, %278 : vector<8x128xi1>, vector<8x128xf32>
    %326 = vector.shape_cast %322 : vector<8x1xi1> to vector<8x1xi1>
    %327 = vector.broadcast %326 : vector<8x1xi1> to vector<8x128xi1>
    %328 = arith.select %327, %317, %281 : vector<8x128xi1>, vector<8x128xf32>
    %cst_68 = arith.constant 0.000000e+00 : f32
    %329 = vector.broadcast %cst_68 : f32 to vector<8x128xf32>
    %330 = vector.shape_cast %322 : vector<8x1xi1> to vector<8x1xi1>
    %331 = vector.broadcast %330 : vector<8x1xi1> to vector<8x128xi1>
    %332 = arith.select %331, %319, %329 : vector<8x128xi1>, vector<8x128xf32>
    %333 = arith.index_cast %c6_i32 : i32 to index
    %c0_69 = arith.constant 0 : index
    %c0_70 = arith.constant 0 : index
    %334 = vector.load %arg4[%333, %c0_69, %c0_70] : memref<8x8x128xf32, #tpu.memory_space<vmem>>, vector<1x8x128xf32>
    %335 = vector.shape_cast %334 : vector<1x8x128xf32> to vector<8x128xf32>
    %336 = vector.shape_cast %332 : vector<8x128xf32> to vector<1x8x128xf32>
    tpu.vector_store %arg4[%333, %c0_69, %c0_70], %336 {strides = array<i32>} : memref<8x8x128xf32, #tpu.memory_space<vmem>>, vector<1x8x128xf32>,
    %c7_i32 = arith.constant 7 : i32
    %337 = arith.index_cast %c7_i32 : i32 to index
    %c0_71 = arith.constant 0 : index
    %c0_72 = arith.constant 0 : index
    %338 = vector.load %arg2[%337, %c0_71, %c0_72] : memref<8x8x512xf32, #tpu.memory_space<vmem>>, vector<1x8x512xf32>
    %339 = vector.shape_cast %338 : vector<1x8x512xf32> to vector<8x512xf32>
    %cst_73 = arith.constant dense<0.000000e+00> : vector<8x512xf32>
    %340 = tpu.matmul %325, %3, %cst_73 {dimension_numbers = #tpu.dot_dimension_numbers<[1], [0], [0], [1], [0, 0, 1, 1], [], []>} : vector<8x128xf32>, vector<128x512xf32>, vector<8x512xf32> -> vector<8x512xf32>
    %341 = arith.addf %339, %340 : vector<8x512xf32>
    %342 = vector.extract_strided_slice %341 {offsets = [0, 0], sizes = [8, 128], strides = [1, 1]} : vector<8x512xf32> to vector<8x128xf32>
    %343 = arith.negf %342 : vector<8x128xf32>
    %344 = math.exp %343 : vector<8x128xf32>
    %cst_74 = arith.constant 1.000000e+00 : f32
    %345 = vector.broadcast %cst_74 : f32 to vector<8x128xf32>
    %346 = arith.addf %345, %344 : vector<8x128xf32>
    %347 = arith.divf %345, %346 : vector<8x128xf32>
    %348 = vector.extract_strided_slice %341 {offsets = [0, 128], sizes = [8, 128], strides = [1, 1]} : vector<8x512xf32> to vector<8x128xf32>
    %349 = arith.negf %348 : vector<8x128xf32>
    %350 = math.exp %349 : vector<8x128xf32>
    %cst_75 = arith.constant 1.000000e+00 : f32
    %351 = vector.broadcast %cst_75 : f32 to vector<8x128xf32>
    %352 = arith.addf %351, %350 : vector<8x128xf32>
    %353 = arith.divf %351, %352 : vector<8x128xf32>
    %354 = vector.extract_strided_slice %341 {offsets = [0, 256], sizes = [8, 128], strides = [1, 1]} : vector<8x512xf32> to vector<8x128xf32>
    %355 = math.tanh %354 : vector<8x128xf32>
    %356 = vector.extract_strided_slice %341 {offsets = [0, 384], sizes = [8, 128], strides = [1, 1]} : vector<8x512xf32> to vector<8x128xf32>
    %357 = arith.negf %356 : vector<8x128xf32>
    %358 = math.exp %357 : vector<8x128xf32>
    %cst_76 = arith.constant 1.000000e+00 : f32
    %359 = vector.broadcast %cst_76 : f32 to vector<8x128xf32>
    %360 = arith.addf %359, %358 : vector<8x128xf32>
    %361 = arith.divf %359, %360 : vector<8x128xf32>
    %362 = arith.mulf %353, %328 : vector<8x128xf32>
    %363 = arith.mulf %347, %355 : vector<8x128xf32>
    %364 = arith.addf %362, %363 : vector<8x128xf32>
    %365 = math.tanh %364 : vector<8x128xf32>
    %366 = arith.mulf %361, %365 : vector<8x128xf32>
    %367 = arith.addi %5, %c7_i32 : i32
    %368 = vector.broadcast %367 : i32 to vector<8x1xi32>
    %369 = arith.cmpi slt, %368, %4 : vector<8x1xi32>
    %370 = vector.shape_cast %369 : vector<8x1xi1> to vector<8x1xi1>
    %371 = vector.broadcast %370 : vector<8x1xi1> to vector<8x128xi1>
    %372 = arith.select %371, %366, %325 : vector<8x128xi1>, vector<8x128xf32>
    %373 = vector.shape_cast %369 : vector<8x1xi1> to vector<8x1xi1>
    %374 = vector.broadcast %373 : vector<8x1xi1> to vector<8x128xi1>
    %375 = arith.select %374, %364, %328 : vector<8x128xi1>, vector<8x128xf32>
    %cst_77 = arith.constant 0.000000e+00 : f32
    %376 = vector.broadcast %cst_77 : f32 to vector<8x128xf32>
    %377 = vector.shape_cast %369 : vector<8x1xi1> to vector<8x1xi1>
    %378 = vector.broadcast %377 : vector<8x1xi1> to vector<8x128xi1>
    %379 = arith.select %378, %366, %376 : vector<8x128xi1>, vector<8x128xf32>
    %380 = arith.index_cast %c7_i32 : i32 to index
    %c0_78 = arith.constant 0 : index
    %c0_79 = arith.constant 0 : index
    %381 = vector.load %arg4[%380, %c0_78, %c0_79] : memref<8x8x128xf32, #tpu.memory_space<vmem>>, vector<1x8x128xf32>
    %382 = vector.shape_cast %381 : vector<1x8x128xf32> to vector<8x128xf32>
    %383 = vector.shape_cast %379 : vector<8x128xf32> to vector<1x8x128xf32>
    tpu.vector_store %arg4[%380, %c0_78, %c0_79], %383 {strides = array<i32>} : memref<8x8x128xf32, #tpu.memory_space<vmem>>, vector<1x8x128xf32>,
    %c8_i32_80 = arith.constant 8 : i32
    %c0_81 = arith.constant 0 : index
    %c0_82 = arith.constant 0 : index
    %384 = vector.load %arg7[%c0_81, %c0_82] : memref<8x128xf32, #tpu.memory_space<vmem>>, vector<8x128xf32>
    tpu.vector_store %arg7[%c0_81, %c0_82], %372 {strides = array<i32>} : memref<8x128xf32, #tpu.memory_space<vmem>>, vector<8x128xf32>,
    %c0_83 = arith.constant 0 : index
    %c0_84 = arith.constant 0 : index
    %385 = vector.load %arg8[%c0_83, %c0_84] : memref<8x128xf32, #tpu.memory_space<vmem>>, vector<8x128xf32>
    tpu.vector_store %arg8[%c0_83, %c0_84], %375 {strides = array<i32>} : memref<8x128xf32, #tpu.memory_space<vmem>>, vector<8x128xf32>,
    %c0_i32_85 = arith.constant 0 : i32
    %386 = arith.cmpi eq, %arg0, %c0_i32_85 : i32
    %387 = arith.extui %386 : i1 to i32
    %c0_i32_86 = arith.constant 0 : i32
    %388 = arith.cmpi ne, %387, %c0_i32_86 : i32
    scf.if %388 {
      %c0_87 = arith.constant 0 : index
      %c0_88 = arith.constant 0 : index
      %389 = vector.load %arg5[%c0_87, %c0_88] : memref<8x128xf32, #tpu.memory_space<vmem>>, vector<8x128xf32>
      tpu.vector_store %arg5[%c0_87, %c0_88], %372 {strides = array<i32>} : memref<8x128xf32, #tpu.memory_space<vmem>>, vector<8x128xf32>,
      %c0_89 = arith.constant 0 : index
      %c0_90 = arith.constant 0 : index
      %390 = vector.load %arg6[%c0_89, %c0_90] : memref<8x128xf32, #tpu.memory_space<vmem>>, vector<8x128xf32>
      tpu.vector_store %arg6[%c0_89, %c0_90], %375 {strides = array<i32>} : memref<8x128xf32, #tpu.memory_space<vmem>>, vector<8x128xf32>,
    } else {
    }
    return
  }
  func.func @transform_0(%arg0: i32) -> (i32, i32) {
    %c0_i32 = arith.constant 0 : i32
    %c0_i32_0 = arith.constant 0 : i32
    %c0_i32_1 = arith.constant 0 : i32
    return %c0_i32, %c0_i32_0 : i32, i32
  }
  func.func @transform_1(%arg0: i32) -> (i32, i32, i32) {
    %c0_i32 = arith.constant 0 : i32
    %c0_i32_0 = arith.constant 0 : i32
    %c0_i32_1 = arith.constant 0 : i32
    return %arg0, %c0_i32, %c0_i32_0 : i32, i32, i32
  }
  func.func @transform_2(%arg0: i32) -> (i32, i32) {
    %c0_i32 = arith.constant 0 : i32
    %c0_i32_0 = arith.constant 0 : i32
    %c0_i32_1 = arith.constant 0 : i32
    return %c0_i32, %c0_i32_0 : i32, i32
  }
  func.func @transform_3(%arg0: i32) -> (i32, i32, i32) {
    %c0_i32 = arith.constant 0 : i32
    %c0_i32_0 = arith.constant 0 : i32
    %c0_i32_1 = arith.constant 0 : i32
    return %arg0, %c0_i32, %c0_i32_0 : i32, i32, i32
  }
  func.func @transform_4(%arg0: i32) -> (i32, i32) {
    %c0_i32 = arith.constant 0 : i32
    %c0_i32_0 = arith.constant 0 : i32
    %c0_i32_1 = arith.constant 0 : i32
    return %c0_i32, %c0_i32_0 : i32, i32
  }
  func.func @transform_5(%arg0: i32) -> (i32, i32) {
    %c0_i32 = arith.constant 0 : i32
    %c0_i32_0 = arith.constant 0 : i32
    %c0_i32_1 = arith.constant 0 : i32
    return %c0_i32, %c0_i32_0 : i32, i32
  }
}

module attributes {stable_mosaic.version = 11 : i64} {
  func.func @_linear_kernel(%arg0: i32, %arg1: i32, %arg2: memref<64x128xf32, #tpu.memory_space<vmem>>, %arg3: memref<128x128xf32, #tpu.memory_space<vmem>>, %arg4: memref<1x128xf32, #tpu.memory_space<vmem>>, %arg5: memref<64x128xf32, #tpu.memory_space<vmem>>) attributes {dimension_semantics = [#tpu.dimension_semantics<parallel>, #tpu.dimension_semantics<parallel>], iteration_bounds = array<i64: 1, 1>, scalar_prefetch = 0 : i64, scratch_operands = 0 : i64, tpu.core_type = #tpu.core_type<tc>, window_params = [{transform_indices = @transform_0, window_bounds = array<i64: 64, 128>}, {transform_indices = @transform_1, window_bounds = array<i64: 128, 128>}, {transform_indices = @transform_2, window_bounds = array<i64: 1, 128>}, {transform_indices = @transform_3, window_bounds = array<i64: 64, 128>}]} {
    %c0 = arith.constant 0 : index
    %c0_0 = arith.constant 0 : index
    %0 = vector.load %arg2[%c0, %c0_0] : memref<64x128xf32, #tpu.memory_space<vmem>>, vector<64x128xf32>
    %c0_1 = arith.constant 0 : index
    %c0_2 = arith.constant 0 : index
    %1 = vector.load %arg3[%c0_1, %c0_2] : memref<128x128xf32, #tpu.memory_space<vmem>>, vector<128x128xf32>
    %cst = arith.constant dense<0.000000e+00> : vector<64x128xf32>
    %2 = tpu.matmul %0, %1, %cst {dimension_numbers = #tpu.dot_dimension_numbers<[1], [0], [0], [1], [0, 0, 1, 1], [], []>} : vector<64x128xf32>, vector<128x128xf32>, vector<64x128xf32> -> vector<64x128xf32>
    %c0_3 = arith.constant 0 : index
    %c0_4 = arith.constant 0 : index
    %3 = vector.load %arg4[%c0_3, %c0_4] : memref<1x128xf32, #tpu.memory_space<vmem>>, vector<1x128xf32>
    %4 = vector.broadcast %3 : vector<1x128xf32> to vector<64x128xf32>
    %5 = arith.addf %2, %4 : vector<64x128xf32>
    %c0_5 = arith.constant 0 : index
    %c0_6 = arith.constant 0 : index
    %6 = vector.load %arg5[%c0_5, %c0_6] : memref<64x128xf32, #tpu.memory_space<vmem>>, vector<64x128xf32>
    tpu.vector_store %arg5[%c0_5, %c0_6], %5 {strides = array<i32>} : memref<64x128xf32, #tpu.memory_space<vmem>>, vector<64x128xf32>,
    return
  }
  func.func @transform_0(%arg0: i32, %arg1: i32) -> (i32, i32) {
    %c0_i32 = arith.constant 0 : i32
    %c0_i32_0 = arith.constant 0 : i32
    return %arg0, %c0_i32 : i32, i32
  }
  func.func @transform_1(%arg0: i32, %arg1: i32) -> (i32, i32) {
    %c0_i32 = arith.constant 0 : i32
    %c0_i32_0 = arith.constant 0 : i32
    return %c0_i32, %arg1 : i32, i32
  }
  func.func @transform_2(%arg0: i32, %arg1: i32) -> (i32, i32) {
    %c0_i32 = arith.constant 0 : i32
    %c0_i32_0 = arith.constant 0 : i32
    return %c0_i32, %arg1 : i32, i32
  }
  func.func @transform_3(%arg0: i32, %arg1: i32) -> (i32, i32) {
    %c0_i32 = arith.constant 0 : i32
    return %arg0, %arg1 : i32, i32
  }
}

</mosaic_0001>

<bundles_post_ra>
// kernel: seq2seq_forward.7
= control target key start
LH: loop header
LB: loop body
LE: loop exit
PB: predicated region body
PF: predicated region fallthrough
CT: control target
= control target key end

     0   :  { %s263_s1 = inlined_call_operand.vmem [shape: f32[128,128], index: 1, kind: input, shape index: {}]   ;;  %s264_s2 = inlined_call_operand.vmem [shape: f32[1,128], index: 2, kind: input, shape index: {}]   ;;  %s265_s0 = inlined_call_operand.vmem [shape: f32[64,128], index: 0, kind: input, shape index: {}]   ;;  %s266_s3 = inlined_call_operand.vmem [shape: f32[64,128], index: 3, kind: output, shape index: {}]  }
   0x1   :  { %v37_v0 = vld [vmem:[%s263_s1 + $0x78] sm:$0xff]  ;;  %v36_v1 = vld [vmem:[%s263_s1 + $0x70] sm:$0xff]  ;;  %v35_v2 = vld [vmem:[%s263_s1 + $0x68] sm:$0xff] }
   0x2   :  { %96 = vmatpush.msra.mxu2 %v37_v0  ;;  %97 = vmatpush.msra.mxu3 %v37_v0  ;;  %v34_v3 = vld [vmem:[%s263_s1 + $0x60] sm:$0xff]  ;;  %v33_v4 = vld [vmem:[%s263_s1 + $0x58] sm:$0xff]  ;;  %v32_v5 = vld [vmem:[%s263_s1 + $0x50] sm:$0xff] }
   0x3   :  { %42 = vmatpush.msra.mxu0 %v37_v0  ;;  %95 = vmatpush.msra.mxu1 %v37_v0  ;;  %v31_v6 = vld [vmem:[%s263_s1 + $0x48] sm:$0xff]  ;;  %v30_v7 = vld [vmem:[%s263_s1 + $0x40] sm:$0xff]  ;;  %v29_v8 = vld [vmem:[%s263_s1 + $0x38] sm:$0xff] }
   0x4   :  { %99 = vmatpush.msra.mxu2 %v36_v1  ;;  %100 = vmatpush.msra.mxu3 %v36_v1  ;;  %v28_v9 = vld [vmem:[%s263_s1 + $0x30] sm:$0xff]  ;;  %v27_v10 = vld [vmem:[%s263_s1 + $0x28] sm:$0xff]  ;;  %v26_v11 = vld [vmem:[%s263_s1 + $0x20] sm:$0xff] }
   0x5   :  { %43 = vmatpush.msra.mxu0 %v36_v1  ;;  %98 = vmatpush.msra.mxu1 %v36_v1  ;;  %v25_v12 = vld [vmem:[%s263_s1 + $0x18] sm:$0xff]  ;;  %v24_v13 = vld [vmem:[%s263_s1 + $0x10] sm:$0xff]  ;;  %v23_v14 = vld [vmem:[%s263_s1 + $0x8] sm:$0xff] }
   0x6   :  { %102 = vmatpush.msra.mxu2 %v35_v2  ;;  %103 = vmatpush.msra.mxu3 %v35_v2  ;;  %v22_v15 = vld [vmem:[%s263_s1] sm:$0xff]  ;;  %v20_v17 = vld [vmem:[%s265_s0 + $0x30] sm:$0xff]  ;;  %v19_v20 = vld [vmem:[%s265_s0 + $0x28] sm:$0xff] }
   0x7   :  { %44 = vmatpush.msra.mxu0 %v35_v2  ;;  %101 = vmatpush.msra.mxu1 %v35_v2  ;;  %v18_v16 = vld [vmem:[%s265_s0 + $0x20] sm:$0xff]  ;;  %v16_v19 = vld [vmem:[%s265_s0 + $0x10] sm:$0xff]  ;;  %v21_v21 = vld [vmem:[%s265_s0 + $0x38] sm:$0xff] }
   0x8   :  { %105 = vmatpush.msra.mxu2 %v34_v3  ;;  %106 = vmatpush.msra.mxu3 %v34_v3  ;;  %v14_v18 = vld [vmem:[%s265_s0] sm:$0xff]  ;;  %v15_v22 = vld [vmem:[%s265_s0 + $0x8] sm:$0xff]  ;;  %v17_v23 = vld [vmem:[%s265_s0 + $0x18] sm:$0xff] }
   0x9   :  { %45 = vmatpush.msra.mxu0 %v34_v3  ;;  %104 = vmatpush.msra.mxu1 %v34_v3  ;;  %v143_v24 = vld [vmem:[%s264_s2] ss:$0 sm:$0xff] }
   0xa   :  { %108 = vmatpush.msra.mxu2 %v33_v4  ;;  %109 = vmatpush.msra.mxu3 %v33_v4 }
   0xb   :  { %46 = vmatpush.msra.mxu0 %v33_v4  ;;  %107 = vmatpush.msra.mxu1 %v33_v4 }
   0xc   :  { %111 = vmatpush.msra.mxu2 %v32_v5  ;;  %112 = vmatpush.msra.mxu3 %v32_v5 }
   0xd   :  { %47 = vmatpush.msra.mxu0 %v32_v5  ;;  %110 = vmatpush.msra.mxu1 %v32_v5 }
   0xe   :  { %114 = vmatpush.msra.mxu2 %v31_v6  ;;  %115 = vmatpush.msra.mxu3 %v31_v6 }
   0xf   :  { %48 = vmatpush.msra.mxu0 %v31_v6  ;;  %113 = vmatpush.msra.mxu1 %v31_v6 }
  0x10   :  { %117 = vmatpush.msra.mxu2 %v30_v7  ;;  %118 = vmatpush.msra.mxu3 %v30_v7 }
  0x11   :  { %49 = vmatpush.msra.mxu0 %v30_v7  ;;  %116 = vmatpush.msra.mxu1 %v30_v7 }
  0x12   :  { %120 = vmatpush.msra.mxu2 %v29_v8  ;;  %121 = vmatpush.msra.mxu3 %v29_v8 }
  0x13   :  { %50 = vmatpush.msra.mxu0 %v29_v8  ;;  %119 = vmatpush.msra.mxu1 %v29_v8 }
  0x14   :  { %123 = vmatpush.msra.mxu2 %v28_v9  ;;  %124 = vmatpush.msra.mxu3 %v28_v9 }
  0x15   :  { %51 = vmatpush.msra.mxu0 %v28_v9  ;;  %122 = vmatpush.msra.mxu1 %v28_v9 }
  0x16   :  { %126 = vmatpush.msra.mxu2 %v27_v10  ;;  %127 = vmatpush.msra.mxu3 %v27_v10 }
  0x17   :  { %52 = vmatpush.msra.mxu0 %v27_v10  ;;  %125 = vmatpush.msra.mxu1 %v27_v10 }
  0x18   :  { %129 = vmatpush.msra.mxu2 %v26_v11  ;;  %130 = vmatpush.msra.mxu3 %v26_v11 }
  0x19   :  { %53 = vmatpush.msra.mxu0 %v26_v11  ;;  %128 = vmatpush.msra.mxu1 %v26_v11 }
  0x1a   :  { %132 = vmatpush.msra.mxu2 %v25_v12  ;;  %133 = vmatpush.msra.mxu3 %v25_v12 }
  0x1b   :  { %54 = vmatpush.msra.mxu0 %v25_v12  ;;  %131 = vmatpush.msra.mxu1 %v25_v12 }
  0x1c   :  { %135 = vmatpush.msra.mxu2 %v24_v13  ;;  %136 = vmatpush.msra.mxu3 %v24_v13 }
  0x1d   :  { %55 = vmatpush.msra.mxu0 %v24_v13  ;;  %134 = vmatpush.msra.mxu1 %v24_v13 }
  0x1e   :  { %138 = vmatpush.msra.mxu2 %v23_v14  ;;  %139 = vmatpush.msra.mxu3 %v23_v14 }
  0x1f   :  { %56 = vmatpush.msra.mxu0 %v23_v14  ;;  %137 = vmatpush.msra.mxu1 %v23_v14 }
  0x20   :  { %141 = vmatpush.msra.mxu2 %v22_v15  ;;  %142 = vmatpush.msra.mxu3 %v22_v15 }
  0x21   :  { %70 = vmatmul.f32.vlgmr.msra.gmra.mxu2 %v18_v16  ;;  %76 = vmatmul.f32.vlgmr.msra.gmra.mxu3 %v20_v17 }
  0x22   :  { %57 = vmatpush.msra.mxu0 %v22_v15  ;;  %140 = vmatpush.msra.mxu1 %v22_v15 }
  0x23   :  { %58 = vmatmul.f32.vlgmr.msra.gmra.mxu0 %v14_v18  ;;  %64 = vmatmul.f32.vlgmr.msra.gmra.mxu1 %v16_v19 }
  0x29   :  { %73 = vmatmul.f32.gmra.mxu2 %v19_v20  ;;  %79 = vmatmul.f32.gmra.mxu3 %v21_v21 }
  0x2b   :  { %61 = vmatmul.f32.gmra.mxu0 %v15_v22  ;;  %67 = vmatmul.f32.gmra.mxu1 %v17_v23 }
  0xa0   :  { %v59_v25 = vpop.f32.mrf.mxu0  ;;  %v65_v26 = vpop.f32.mrf.mxu1 }
  0xa1   :  { %v60_v27 = vadd.f32 %v143_v24, %v59_v25  ;;  %v66_v28 = vadd.f32 %v143_v24, %v65_v26 }
  0xa3   :  { %83 = vst [vmem:[%s266_s3] sm:$0xff] %v60_v27 }
  0xa4   :  { %85 = vst [vmem:[%s266_s3 + $0x10] sm:$0xff] %v66_v28  ;;  %v71_v29 = vpop.f32.mrf.mxu2  ;;  %v77_v30 = vpop.f32.mrf.mxu3 }
  0xa5   :  { %v72_v31 = vadd.f32 %v143_v24, %v71_v29  ;;  %v78_v32 = vadd.f32 %v143_v24, %v77_v30 }
  0xa7   :  { %87 = vst [vmem:[%s266_s3 + $0x20] sm:$0xff] %v72_v31 }
  0xa8   :  { %89 = vst [vmem:[%s266_s3 + $0x30] sm:$0xff] %v78_v32  ;;  %v62_v33 = vpop.f32.mrf.mxu0  ;;  %v68_v34 = vpop.f32.mrf.mxu1 }
  0xa9   :  { %v63_v35 = vadd.f32 %v143_v24, %v62_v33  ;;  %v69_v36 = vadd.f32 %v143_v24, %v68_v34 }
  0xab   :  { %84 = vst [vmem:[%s266_s3 + $0x8] sm:$0xff] %v63_v35 }
  0xac   :  { %86 = vst [vmem:[%s266_s3 + $0x18] sm:$0xff] %v69_v36  ;;  %v74_v37 = vpop.f32.mrf.mxu2  ;;  %v80_v38 = vpop.f32.mrf.mxu3 }
  0xad   :  { %v75_v39 = vadd.f32 %v143_v24, %v74_v37  ;;  %v81_v40 = vadd.f32 %v143_v24, %v80_v38 }
  0xaf   :  { %88 = vst [vmem:[%s266_s3 + $0x28] sm:$0xff] %v75_v39 }
  0xb0   :  { %90 = vst [vmem:[%s266_s3 + $0x38] sm:$0xff] %v81_v40 }

// kernel: seq2seq_forward.5
= control target key start
LH: loop header
LB: loop body
LE: loop exit
PB: predicated region body
PF: predicated region fallthrough
CT: control target
= control target key end

     0   :  { %11 = vsyncpa [#allocation5], 0  ;;  %s3192_s0 = inlined_call_operand.vmem [shape: s32[8,1], index: 0, kind: input, shape index: {}]   ;;  %s3193_s1 = inlined_call_operand.vmem [shape: f32[8,8,512], index: 1, kind: input, shape index: {}]   ;;  %s3194_s2 = inlined_call_operand.vmem [shape: f32[128,512], index: 2, kind: input, shape index: {}]   ;;  %s3195_s3 = inlined_call_operand.hbm [shape: f32[8,8,128], index: 3, kind: output, shape index: {0}]   ;;  %s3196_s4 = inlined_call_operand.vmem [shape: f32[8,128], index: 4, kind: output, shape index: {1}]   ;;  %s3197_s5 = inlined_call_operand.hbm [shape: f32[8,128], index: 5, kind: output, shape index: {2}]  }
   0x1   :  { %v1812_v0 = vld [vmem:[%s3194_s2 + $0x1e0] sm:$0xff]  ;;  %v1817_v1 = vld [vmem:[%s3194_s2 + $0x1e8] sm:$0xff]  ;;  %v1822_v2 = vld [vmem:[%s3194_s2 + $0x1f8] sm:$0xff] }
   0x2   :  { %3317 = vst [vmem:[#allocation10_spill] sm:$0xff] %v1817_v1  ;;  %97 = vmatpush.msra.mxu0 %v1812_v0  ;;  %117 = vmatpush.msra.mxu1 %v1817_v1  ;;  %v1829_v3 = vld [vmem:[%s3194_s2 + $0x1c0] sm:$0xff]  ;;  %v1834_v4 = vld [vmem:[%s3194_s2 + $0x1c8] sm:$0xff]  ;;  %v1839_v5 = vld [vmem:[%s3194_s2 + $0x1d8] sm:$0xff] }
   0x3   :  { %157 = vmatpush.msra.mxu3 %v1822_v2  ;;  %v1845_v6 = vld [vmem:[%s3194_s2 + $0x1a0] sm:$0xff]  ;;  %v1850_v7 = vld [vmem:[%s3194_s2 + $0x1a8] sm:$0xff]  ;;  %v1857_v8 = vld [vmem:[%s3194_s2 + $0x1b8] sm:$0xff] }
   0x4   :  { %98 = vmatpush.msra.mxu0 %v1829_v3  ;;  %118 = vmatpush.msra.mxu1 %v1834_v4  ;;  %v1863_v9 = vld [vmem:[%s3194_s2 + $0x180] sm:$0xff]  ;;  %v1868_v10 = vld [vmem:[%s3194_s2 + $0x188] sm:$0xff]  ;;  %v1875_v11 = vld [vmem:[%s3194_s2 + $0x198] sm:$0xff] }
   0x5   :  { %158 = vmatpush.msra.mxu3 %v1839_v5  ;;  %v1881_v12 = vld [vmem:[%s3194_s2 + $0x160] sm:$0xff]  ;;  %v1886_v13 = vld [vmem:[%s3194_s2 + $0x168] sm:$0xff]  ;;  %v1893_v14 = vld [vmem:[%s3194_s2 + $0x178] sm:$0xff] }
   0x6   :  { %99 = vmatpush.msra.mxu0 %v1845_v6  ;;  %119 = vmatpush.msra.mxu1 %v1850_v7  ;;  %v1899_v15 = vld [vmem:[%s3194_s2 + $0x140] sm:$0xff]  ;;  %v1904_v16 = vld [vmem:[%s3194_s2 + $0x148] sm:$0xff]  ;;  %v1909_v17 = vld [vmem:[%s3194_s2 + $0x1f0] sm:$0xff] }
   0x7   :  { %159 = vmatpush.msra.mxu3 %v1857_v8  ;;  %v1916_v18 = vld [vmem:[%s3194_s2 + $0x158] sm:$0xff]  ;;  %v1921_v19 = vld [vmem:[%s3194_s2 + $0x1d0] sm:$0xff]  ;;  %v1927_v20 = vld [vmem:[%s3194_s2 + $0x120] sm:$0xff]  ;;  %137 = vmatpush.msra.mxu2 %v1909_v17 }
   0x8   :  { %100 = vmatpush.msra.mxu0 %v1863_v9  ;;  %120 = vmatpush.msra.mxu1 %v1868_v10  ;;  %v1932_v21 = vld [vmem:[%s3194_s2 + $0x128] sm:$0xff]  ;;  %v1940_v22 = vld [vmem:[%s3194_s2 + $0x138] sm:$0xff]  ;;  %v1945_v23 = vld [vmem:[%s3194_s2 + $0x1b0] sm:$0xff] }
   0x9   :  { %160 = vmatpush.msra.mxu3 %v1875_v11  ;;  %v1951_v24 = vld [vmem:[%s3194_s2 + $0x100] sm:$0xff]  ;;  %v1956_v25 = vld [vmem:[%s3194_s2 + $0x108] sm:$0xff]  ;;  %138 = vmatpush.msra.mxu2 %v1921_v19  ;;  %v1964_v26 = vld [vmem:[%s3194_s2 + $0x118] sm:$0xff] }
   0xa   :  { %101 = vmatpush.msra.mxu0 %v1881_v12  ;;  %121 = vmatpush.msra.mxu1 %v1886_v13  ;;  %v1969_v27 = vld [vmem:[%s3194_s2 + $0x190] sm:$0xff]  ;;  %v1975_v28 = vld [vmem:[%s3194_s2 + $0xe0] sm:$0xff]  ;;  %v1980_v29 = vld [vmem:[%s3194_s2 + $0xe8] sm:$0xff] }
   0xb   :  { %161 = vmatpush.msra.mxu3 %v1893_v14  ;;  %139 = vmatpush.msra.mxu2 %v1945_v23  ;;  %v1988_v30 = vld [vmem:[%s3194_s2 + $0xf8] sm:$0xff]  ;;  %v1993_v31 = vld [vmem:[%s3194_s2 + $0x170] sm:$0xff]  ;;  %v1999_v32 = vld [vmem:[%s3194_s2 + $0xc0] sm:$0xff] }
   0xc   :  { %102 = vmatpush.msra.mxu0 %v1899_v15  ;;  %122 = vmatpush.msra.mxu1 %v1904_v16  ;;  %v2004_v33 = vld [vmem:[%s3194_s2 + $0xc8] sm:$0xff]  ;;  %v2012_v34 = vld [vmem:[%s3194_s2 + $0xd8] sm:$0xff]  ;;  %v2017_v35 = vld [vmem:[%s3194_s2 + $0x150] sm:$0xff] }
   0xd   :  { %162 = vmatpush.msra.mxu3 %v1916_v18  ;;  %3318 = vst [vmem:[#allocation11_spill] sm:$0xff] %v2004_v33  ;;  %140 = vmatpush.msra.mxu2 %v1969_v27  ;;  %v2023_v36 = vld [vmem:[%s3194_s2 + $0xa0] sm:$0xff]  ;;  %v2028_v37 = vld [vmem:[%s3194_s2 + $0xa8] sm:$0xff]  ;;  %v2036_v38 = vld [vmem:[%s3194_s2 + $0xb8] sm:$0xff] }
   0xe   :  { %103 = vmatpush.msra.mxu0 %v1927_v20  ;;  %123 = vmatpush.msra.mxu1 %v1932_v21  ;;  %3319 = vst [vmem:[#allocation12_spill] sm:$0xff] %v2012_v34  ;;  %v2041_v39 = vld [vmem:[%s3194_s2 + $0x130] sm:$0xff]  ;;  %v2047_v40 = vld [vmem:[%s3194_s2 + $0x80] sm:$0xff]  ;;  %v2052_v41 = vld [vmem:[%s3194_s2 + $0x88] sm:$0xff] }
   0xf   :  { %163 = vmatpush.msra.mxu3 %v1940_v22  ;;  %3320 = vst [vmem:[#allocation13_spill] sm:$0xff] %v2023_v36  ;;  %141 = vmatpush.msra.mxu2 %v1993_v31  ;;  %v2060_v42 = vld [vmem:[%s3194_s2 + $0x98] sm:$0xff]  ;;  %v2065_v43 = vld [vmem:[%s3194_s2 + $0x110] sm:$0xff]  ;;  %v2071_v44 = vld [vmem:[%s3194_s2 + $0x60] sm:$0xff] }
  0x10   :  { %104 = vmatpush.msra.mxu0 %v1951_v24  ;;  %124 = vmatpush.msra.mxu1 %v1956_v25  ;;  %3321 = vst [vmem:[#allocation14_spill] sm:$0xff] %v2028_v37  ;;  %v2076_v45 = vld [vmem:[%s3194_s2 + $0x68] sm:$0xff] }
  0x11   :  { %164 = vmatpush.msra.mxu3 %v1964_v26  ;;  %3322 = vst [vmem:[#allocation15_spill] sm:$0xff] %v2036_v38  ;;  %142 = vmatpush.msra.mxu2 %v2017_v35 }
  0x12   :  { %105 = vmatpush.msra.mxu0 %v1975_v28  ;;  %125 = vmatpush.msra.mxu1 %v1980_v29  ;;  %3323 = vst [vmem:[#allocation16_spill] sm:$0xff] %v2047_v40 }
  0x13   :  { %165 = vmatpush.msra.mxu3 %v1988_v30  ;;  %3324 = vst [vmem:[#allocation17_spill] sm:$0xff] %v2052_v41  ;;  %143 = vmatpush.msra.mxu2 %v2041_v39 }
  0x14   :  { %106 = vmatpush.msra.mxu0 %v1999_v32  ;;  %126 = vmatpush.msra.mxu1 %v2004_v33  ;;  %3325 = vst [vmem:[#allocation18_spill] sm:$0xff] %v2060_v42 }
  0x15   :  { %166 = vmatpush.msra.mxu3 %v2012_v34  ;;  %3326 = vst [vmem:[#allocation19_spill] sm:$0xff] %v2071_v44 }
  0x16   :  { %107 = vmatpush.msra.mxu0 %v2023_v36  ;;  %127 = vmatpush.msra.mxu1 %v2028_v37  ;;  %3327 = vst [vmem:[#allocation20_spill] sm:$0xff] %v2076_v45 }
  0x17   :  { %167 = vmatpush.msra.mxu3 %v2036_v38 }
  0x18   :  { %12 = vsyncpa [#allocation7], 0  ;;  %108 = vmatpush.msra.mxu0 %v2047_v40  ;;  %128 = vmatpush.msra.mxu1 %v2052_v41  ;;  %v2084_v46 = vld [vmem:[%s3194_s2 + $0x78] sm:$0xff]  ;;  %v2089_v47 = vld [vmem:[%s3194_s2 + $0xf0] sm:$0xff]  ;;  %v1773_v61 = vmov 0.0   ;;  %v3206_v62 = vmov 0  }
  0x19   :  { %3328 = vst [vmem:[#allocation21_spill] sm:$0xff] %v2084_v46  ;;  %168 = vmatpush.msra.mxu3 %v2060_v42  ;;  %v2095_v48 = vld [vmem:[%s3194_s2 + $0x40] sm:$0xff]  ;;  %v2100_v49 = vld [vmem:[%s3194_s2 + $0x48] sm:$0xff]  ;;  %144 = vmatpush.msra.mxu2 %v2065_v43  ;;  %v2108_v50 = vld [vmem:[%s3194_s2 + $0x58] sm:$0xff]  ;;  %s1439_s16 = sshll.u32 %s3197_s5, 4  ;;  %s1776_s5 = smov [#allocation4]   ;;  %s1440_s16 = int_to_ptr.hbm [resolvable:$true] %s1439_s16 }
  0x1a   :  { %3329 = vst [vmem:[#allocation22_spill] sm:$0xff] %v2095_v48  ;;  %109 = vmatpush.msra.mxu0 %v2071_v44  ;;  %129 = vmatpush.msra.mxu1 %v2076_v45  ;;  %v2113_v51 = vld [vmem:[%s3194_s2 + $0xd0] sm:$0xff]  ;;  %v2119_v52 = vld [vmem:[%s3194_s2 + $0x20] sm:$0xff]  ;;  %v2124_v53 = vld [vmem:[%s3194_s2 + $0x28] sm:$0xff]  ;;  %s1421_s17 = sshll.u32 %s1776_s5, 4  ;;  %s1423_s20 = sshll.u32 %s3195_s3, 4  ;;  %s1422_s17 = int_to_ptr.vmem [resolvable:$true] %s1421_s17  ;;  %s1424_s20 = int_to_ptr.hbm [resolvable:$true] %s1423_s20 }
  0x1b   :  { %3330 = vst [vmem:[#allocation23_spill] sm:$0xff] %v2100_v49  ;;  %169 = vmatpush.msra.mxu3 %v2084_v46  ;;  %145 = vmatpush.msra.mxu2 %v2089_v47  ;;  %v2130_v54 = vld [vmem:[%s3192_s0] sm:$0xff]  ;;  %v2137_v55 = vld [vmem:[%s3194_s2 + $0x38] sm:$0xff]  ;;  %v2142_v56 = vld [vmem:[%s3194_s2 + $0xb0] sm:$0xff]  ;;  %s1777_s23 = smov 128   ;;  %s1778_s24 = smov 8  }
  0x1c   :  { %3331 = vst [vmem:[#allocation24_spill] sm:$0xff] %v2108_v50  ;;  %110 = vmatpush.msra.mxu0 %v2095_v48  ;;  %130 = vmatpush.msra.mxu1 %v2100_v49  ;;  %v2148_v57 = vld [vmem:[%s3194_s2] sm:$0xff]  ;;  %v2153_v58 = vld [vmem:[%s3194_s2 + $0x8] sm:$0xff]  ;;  %v2161_v59 = vld [vmem:[%s3194_s2 + $0x18] sm:$0xff]  ;;  %vm1458_vm0 = vcmp.gt.s32.totalorder %v2130_v54, 0  ;;  %vm1466_vm1 = vcmp.gt.s32.totalorder %v2130_v54, 1 }
  0x1d   :  { %3332 = vst [vmem:[#allocation25_spill] sm:$0xff] %v2113_v51  ;;  %170 = vmatpush.msra.mxu3 %v2108_v50  ;;  %146 = vmatpush.msra.mxu2 %v2113_v51  ;;  %v2171_v60 = vld [vmem:[%s3194_s2 + $0x90] sm:$0xff]  ;;  %v246_v63 = vsel %vm1458_vm0, 1, %v3206_v62  ;;  %vm1506_vm2 = vcmp.gt.s32.totalorder %v2130_v54, 6 }
  0x1e   :  { %3333 = vst [vmem:[#allocation26_spill] sm:$0xff] %v2119_v52  ;;  %111 = vmatpush.msra.mxu0 %v2119_v52  ;;  %131 = vmatpush.msra.mxu1 %v2124_v53 }
  0x1f   :  { %3334 = vst [vmem:[#allocation27_spill] sm:$0xff] %v2124_v53  ;;  %171 = vmatpush.msra.mxu3 %v2137_v55  ;;  %147 = vmatpush.msra.mxu2 %v2142_v56 }
  0x20   :  { %3335 = vst [vmem:[#allocation28_spill] sm:$0xff] %v2130_v54  ;;  %112 = vmatpush.msra.mxu0 %v2148_v57  ;;  %132 = vmatpush.msra.mxu1 %v2153_v58  ;;  %v3349_v54 = vld [vmem:[#allocation10_spill] sm:$0xff] }
  0x21   :  { %3336 = vst [vmem:[#allocation29_spill] sm:$0xff] %v2137_v55  ;;  %172 = vmatpush.msra.mxu3 %v2161_v59  ;;  %113 = vmatmul.f32.vlgmr.msra.gmra.mxu0 %v1773_v61 }
  0x22   :  { %3337 = vst [vmem:[#allocation30_spill] sm:$0xff] %v2142_v56  ;;  %133 = vmatmul.f32.vlgmr.msra.gmra.mxu1 %v1773_v61  ;;  %173 = vmatmul.f32.vlgmr.msra.gmra.mxu3 %v1773_v61 }
  0x23   :  { %3338 = vst [vmem:[#allocation31_spill] sm:$0xff] %v2148_v57  ;;  %v2178_v57 = vld [vmem:[%s3194_s2 + $0x70] sm:$0xff]  ;;  %148 = vmatpush.msra.mxu2 %v2171_v60  ;;  %1525 = vset.pattern.permute.xlu0 %v3206_v62 }
  0x24   :  { %3339 = vst [vmem:[#allocation32_spill] sm:$0xff] %v2153_v58  ;;  %248 = vperm.xlu0 %1525, %v246_v63   ;;  %260 = vmatpush.msrb.mxu0 %v1812_v0  ;;  %v2193_v58 = vld [vmem:[%s3194_s2 + $0x30] sm:$0xff] }
  0x25   :  { %3340 = vst [vmem:[#allocation33_spill] sm:$0xff] %v2161_v59  ;;  %v2185_v59 = vld [vmem:[%s3194_s2 + $0x50] sm:$0xff]  ;;  %149 = vmatpush.msra.mxu2 %v2178_v57  ;;  %280 = vmatpush.msrb.mxu1 %v1817_v1  ;;  %v410_v1 = vsel %vm1466_vm1, 1, %v3206_v62 }
  0x26   :  { %3341 = vst [vmem:[#allocation34_spill] sm:$0xff] %v2171_v60  ;;  %320 = vmatpush.msrb.mxu3 %v1822_v2  ;;  %261 = vmatpush.msrb.mxu0 %v1829_v3  ;;  %v2203_v63 = vld [vmem:[%s3194_s2 + $0x10] sm:$0xff] }
  0x27   :  { %3342 = vst [vmem:[#allocation35_spill] sm:$0xff] %v2178_v57  ;;  %150 = vmatpush.msra.mxu2 %v2185_v59  ;;  %281 = vmatpush.msrb.mxu1 %v1834_v4 }
  0x28   :  { %3343 = vst [vmem:[#allocation36_spill] sm:$0xff] %v2185_v59  ;;  %321 = vmatpush.msrb.mxu3 %v1839_v5  ;;  %262 = vmatpush.msrb.mxu0 %v1845_v6 }
  0x29   :  { %3344 = vst [vmem:[#allocation37_spill] sm:$0xff] %v2193_v58  ;;  %151 = vmatpush.msra.mxu2 %v2193_v58  ;;  %282 = vmatpush.msrb.mxu1 %v1850_v7 }
  0x2a   :  { %3345 = vst [vmem:[#allocation38_spill] sm:$0xff] %v2203_v63  ;;  %322 = vmatpush.msrb.mxu3 %v1857_v8  ;;  %263 = vmatpush.msrb.mxu0 %v1863_v9 }
  0x2b   :  { %152 = vmatpush.msra.mxu2 %v2203_v63  ;;  %283 = vmatpush.msrb.mxu1 %v1868_v10 }
  0x2c   :  { %153 = vmatmul.f32.vlgmr.msra.gmra.mxu2 %v1773_v61  ;;  %412 = vperm.xlu0 %1525, %v410_v1   ;;  %v1235_v1 = vsel %vm1506_vm2, 1, %v3206_v62  ;;  %v3346_v61 = vld [vmem:[#allocation31_spill] sm:$0xff]  ;;  %v3348_v62 = vld [vmem:[#allocation33_spill] sm:$0xff] }
  0x2d   :  { %300 = vmatpush.msrb.mxu2 %v1909_v17  ;;  %323 = vmatpush.msrb.mxu3 %v1875_v11 }
  0x2e   :  { %264 = vmatpush.msrb.mxu0 %v1881_v12  ;;  %284 = vmatpush.msrb.mxu1 %v1886_v13 }
  0x2f   :  { %301 = vmatpush.msrb.mxu2 %v1921_v19  ;;  %324 = vmatpush.msrb.mxu3 %v1893_v14 }
  0x30   :  { %265 = vmatpush.msrb.mxu0 %v1899_v15  ;;  %285 = vmatpush.msrb.mxu1 %v1904_v16 }
  0x31   :  { %302 = vmatpush.msrb.mxu2 %v1945_v23  ;;  %325 = vmatpush.msrb.mxu3 %v1916_v18 }
  0x32   :  { %266 = vmatpush.msrb.mxu0 %v1927_v20  ;;  %286 = vmatpush.msrb.mxu1 %v1932_v21 }
  0x33   :  { %303 = vmatpush.msrb.mxu2 %v1969_v27  ;;  %326 = vmatpush.msrb.mxu3 %v1940_v22 }
  0x34   :  { %1237 = vperm.xlu0 %1525, %v1235_v1   ;;  %267 = vmatpush.msrb.mxu0 %v1951_v24  ;;  %v3347_v1 = vld [vmem:[#allocation32_spill] sm:$0xff] }
  0x35   :  { %304 = vmatpush.msrb.mxu2 %v1993_v31  ;;  %287 = vmatpush.msrb.mxu1 %v1956_v25 }
  0x36   :  { %327 = vmatpush.msrb.mxu3 %v1964_v26  ;;  %268 = vmatpush.msrb.mxu0 %v1975_v28 }
  0x37   :  { %305 = vmatpush.msrb.mxu2 %v2017_v35  ;;  %288 = vmatpush.msrb.mxu1 %v1980_v29 }
  0x38   :  { %328 = vmatpush.msrb.mxu3 %v1988_v30  ;;  %269 = vmatpush.msrb.mxu0 %v1999_v32 }
  0x39   :  { %306 = vmatpush.msrb.mxu2 %v2041_v39  ;;  %289 = vmatpush.msrb.mxu1 %v2004_v33 }
  0x3a   :  { %329 = vmatpush.msrb.mxu3 %v2012_v34  ;;  %270 = vmatpush.msrb.mxu0 %v2023_v36 }
  0x3b   :  { %307 = vmatpush.msrb.mxu2 %v2065_v43  ;;  %290 = vmatpush.msrb.mxu1 %v2028_v37 }
  0x3c   :  { %330 = vmatpush.msrb.mxu3 %v2036_v38  ;;  %271 = vmatpush.msrb.mxu0 %v2047_v40 }
  0x3d   :  { %308 = vmatpush.msrb.mxu2 %v2089_v47  ;;  %291 = vmatpush.msrb.mxu1 %v2052_v41 }
  0x3e   :  { %331 = vmatpush.msrb.mxu3 %v2060_v42  ;;  %272 = vmatpush.msrb.mxu0 %v2071_v44 }
  0x3f   :  { %309 = vmatpush.msrb.mxu2 %v2113_v51  ;;  %292 = vmatpush.msrb.mxu1 %v2076_v45 }
  0x40   :  { %332 = vmatpush.msrb.mxu3 %v2084_v46  ;;  %273 = vmatpush.msrb.mxu0 %v2095_v48 }
  0x41   :  { %310 = vmatpush.msrb.mxu2 %v2142_v56  ;;  %293 = vmatpush.msrb.mxu1 %v2100_v49 }
  0x42   :  { %333 = vmatpush.msrb.mxu3 %v2108_v50  ;;  %274 = vmatpush.msrb.mxu0 %v2119_v52 }
  0x43   :  { %311 = vmatpush.msrb.mxu2 %v2171_v60  ;;  %294 = vmatpush.msrb.mxu1 %v2124_v53 }
  0x44   :  { %334 = vmatpush.msrb.mxu3 %v2137_v55  ;;  %275 = vmatpush.msrb.mxu0 %v3346_v61 }
  0x45   :  { %312 = vmatpush.msrb.mxu2 %v2178_v57  ;;  %295 = vmatpush.msrb.mxu1 %v3347_v1 }
  0x46   :  { %335 = vmatpush.msrb.mxu3 %v3348_v62  ;;  %425 = vmatpush.msra.mxu0 %v1812_v0 }
  0x47   :  { %313 = vmatpush.msrb.mxu2 %v2185_v59  ;;  %445 = vmatpush.msra.mxu1 %v3349_v54 }
  0x48   :  { %485 = vmatpush.msra.mxu3 %v1822_v2  ;;  %426 = vmatpush.msra.mxu0 %v1829_v3 }
  0x49   :  { %314 = vmatpush.msrb.mxu2 %v2193_v58  ;;  %446 = vmatpush.msra.mxu1 %v1834_v4 }
  0x4a   :  { %486 = vmatpush.msra.mxu3 %v1839_v5  ;;  %427 = vmatpush.msra.mxu0 %v1845_v6 }
  0x4b   :  { %315 = vmatpush.msrb.mxu2 %v2203_v63  ;;  %447 = vmatpush.msra.mxu1 %v1850_v7 }
  0x4c   :  { %487 = vmatpush.msra.mxu3 %v1857_v8  ;;  %428 = vmatpush.msra.mxu0 %v1863_v9 }
  0x4d   :  { %465 = vmatpush.msra.mxu2 %v1909_v17  ;;  %448 = vmatpush.msra.mxu1 %v1868_v10 }
  0x4e   :  { %488 = vmatpush.msra.mxu3 %v1875_v11  ;;  %429 = vmatpush.msra.mxu0 %v1881_v12 }
  0x4f   :  { %466 = vmatpush.msra.mxu2 %v1921_v19  ;;  %449 = vmatpush.msra.mxu1 %v1886_v13 }
  0x50   :  { %489 = vmatpush.msra.mxu3 %v1893_v14  ;;  %430 = vmatpush.msra.mxu0 %v1899_v15 }
  0x51   :  { %467 = vmatpush.msra.mxu2 %v1945_v23  ;;  %450 = vmatpush.msra.mxu1 %v1904_v16 }
  0x52   :  { %490 = vmatpush.msra.mxu3 %v1916_v18  ;;  %431 = vmatpush.msra.mxu0 %v1927_v20 }
  0x53   :  { %468 = vmatpush.msra.mxu2 %v1969_v27  ;;  %451 = vmatpush.msra.mxu1 %v1932_v21 }
  0x54   :  { %491 = vmatpush.msra.mxu3 %v1940_v22  ;;  %432 = vmatpush.msra.mxu0 %v1951_v24 }
  0x55   :  { %469 = vmatpush.msra.mxu2 %v1993_v31  ;;  %452 = vmatpush.msra.mxu1 %v1956_v25 }
  0x56   :  { %492 = vmatpush.msra.mxu3 %v1964_v26  ;;  %433 = vmatpush.msra.mxu0 %v1975_v28 }
  0x57   :  { %470 = vmatpush.msra.mxu2 %v2017_v35  ;;  %453 = vmatpush.msra.mxu1 %v1980_v29 }
  0x58   :  { %493 = vmatpush.msra.mxu3 %v1988_v30  ;;  %434 = vmatpush.msra.mxu0 %v1999_v32 }
  0x59   :  { %471 = vmatpush.msra.mxu2 %v2041_v39  ;;  %454 = vmatpush.msra.mxu1 %v2004_v33 }
  0x5a   :  { %494 = vmatpush.msra.mxu3 %v2012_v34  ;;  %435 = vmatpush.msra.mxu0 %v2023_v36 }
  0x5b   :  { %472 = vmatpush.msra.mxu2 %v2065_v43  ;;  %455 = vmatpush.msra.mxu1 %v2028_v37 }
  0x5c   :  { %495 = vmatpush.msra.mxu3 %v2036_v38  ;;  %436 = vmatpush.msra.mxu0 %v2047_v40 }
  0x5d   :  { %473 = vmatpush.msra.mxu2 %v2089_v47  ;;  %456 = vmatpush.msra.mxu1 %v2052_v41 }
  0x5e   :  { %496 = vmatpush.msra.mxu3 %v2060_v42  ;;  %437 = vmatpush.msra.mxu0 %v2071_v44 }
  0x5f   :  { %474 = vmatpush.msra.mxu2 %v2113_v51  ;;  %457 = vmatpush.msra.mxu1 %v2076_v45 }
  0x60   :  { %497 = vmatpush.msra.mxu3 %v2084_v46  ;;  %438 = vmatpush.msra.mxu0 %v2095_v48 }
  0x61   :  { %475 = vmatpush.msra.mxu2 %v2142_v56  ;;  %458 = vmatpush.msra.mxu1 %v2100_v49  ;;  %v3350_v49 = vmov 0  }
  0x62   :  { %498 = vmatpush.msra.mxu3 %v2108_v50  ;;  %439 = vmatpush.msra.mxu0 %v2119_v52 }
  0x63   :  { %476 = vmatpush.msra.mxu2 %v2171_v60  ;;  %459 = vmatpush.msra.mxu1 %v2124_v53 }
  0x64   :  { %499 = vmatpush.msra.mxu3 %v2137_v55  ;;  %440 = vmatpush.msra.mxu0 %v3346_v61  ;;  %v93_v55 = vld [vmem:[%s3193_s1] sm:$0xff] }
  0x65   :  { %477 = vmatpush.msra.mxu2 %v2178_v57  ;;  %460 = vmatpush.msra.mxu1 %v3347_v1  ;;  %v94_v1 = vld [vmem:[%s3193_s1 + $0x8] sm:$0xff] }
  0x66   :  { %500 = vmatpush.msra.mxu3 %v3348_v62  ;;  %1526 = vset.pattern.permute.xlu1 %v3350_v49 }
  0x67   :  { %478 = vmatpush.msra.mxu2 %v2185_v59  ;;  %1527 = vset.pattern.permute.xlu2 %v3350_v49  ;;  %v96_v49 = vld [vmem:[%s3193_s1 + $0x18] sm:$0xff] }
  0x69   :  { %479 = vmatpush.msra.mxu2 %v2193_v58 }
  0x6b   :  { %480 = vmatpush.msra.mxu2 %v2203_v63 }
  0x9e   :  { %v114_v61 = vpop.f32.mrf.mxu0 }
  0x9f   :  { %v177_v53 = vadd.f32 %v114_v61, %v93_v55  ;;  %v134_v52 = vpop.f32.mrf.mxu1 }
  0xa0   :  { %v178_v62 = vadd.f32 %v134_v52, %v94_v1  ;;  %v95_v52 = vld [vmem:[%s3193_s1 + $0x10] sm:$0xff] }
  0xa1   :  { %v1455_v50 = vmul.f32 -1.442695, %v177_v53 }
  0xa2   :  { %v1456_v59 = vmul.f32 -1.442695, %v178_v62 }
  0xa3   :  { %1528 = vpow2.f32 %v1455_v50 }
  0xa4   :  { %1530 = vpow2.f32 %v1456_v59 }
  0xa5   :  { %v174_v63 = vpop.f32.mrf.mxu3 }
  0xa6   :  { %v180_v58 = vadd.f32 %v174_v63, %v96_v49 }
  0xa8   :  { %v1457_v48 = vmul.f32 -1.442695, %v180_v58 }
  0xa9   :  { %v1529_v46 = vpop.eup %1528 }
  0xaa   :  { %v1531_v57 = vpop.eup %1530  ;;  %v184_v45 = vadd.f32 1.0, %v1529_v46  ;;  %1532 = vpow2.f32 %v1457_v48 }
  0xab   :  { %v203_v44 = vadd.f32 1.0, %v1531_v57 }
  0xac   :  { %1534 = vrcp.f32 %v184_v45  ;;  %v196_v48 = vand.u32 2147483648, %v184_v45  ;;  %v194_v42 = vand.u32 2147483647, %v184_v45  ;;  %vm190_vm5 = vweird.f32 %v184_v45 }
  0xad   :  { %1536 = vrcp.f32 %v203_v44  ;;  %v215_v57 = vand.u32 2147483648, %v203_v44  ;;  %v213_v41 = vand.u32 2147483647, %v203_v44  ;;  %vm209_vm6 = vweird.f32 %v203_v44 }
  0xae   :  { %vm195_vm8 = vcmp.eq.f32.partialorder %v194_v42, 8.507059e+37 }
  0xaf   :  { %v154_v50 = vpop.f32.mrf.mxu2  ;;  %vm214_vm10 = vcmp.eq.f32.partialorder %v213_v41, 8.507059e+37 }
  0xb0   :  { %v1533_v53 = vpop.eup %1532  ;;  %v179_v55 = vadd.f32 %v154_v50, %v95_v52 }
  0xb1   :  { %v223_v62 = vadd.f32 1.0, %v1533_v53  ;;  %v197_v53 = vor.u32 1.1754944e-38, %v196_v48  ;;  %v3375_v48 = vld [vmem:[#allocation32_spill] sm:$0xff] }
  0xb2   :  { %v1535_v61 = vpop.eup %1534 }
  0xb3   :  { %v1537_v59 = vpop.eup %1536  ;;  %v186_v1 = vmul.f32 %v1535_v61, %v184_v45  ;;  %1538 = vrcp.f32 %v223_v62  ;;  %vm191_vm3 = vweird.f32 %v1535_v61  ;;  %v235_v33 = vand.u32 2147483648, %v223_v62 }
  0xb4   :  { %v205_v49 = vmul.f32 %v1537_v59, %v203_v44  ;;  %1540 = vtanh.f32 %v179_v55  ;;  %vm210_vm4 = vweird.f32 %v1537_v59  ;;  %vm192_vm7 = vmor %vm190_vm5, %vm191_vm3  ;;  %v216_v55 = vor.u32 1.1754944e-38, %v215_v57  ;;  %v3376_v57 = vld [vmem:[#allocation38_spill] sm:$0xff] }
  0xb5   :  { %v187_v58 = vsub.f32 1.0, %v186_v1  ;;  %vm211_vm9 = vmor %vm209_vm6, %vm210_vm4  ;;  %vm229_vm13 = vweird.f32 %v223_v62 }
  0xb6   :  { %v206_v46 = vsub.f32 1.0, %v205_v49 }
  0xb7   :  { %v188_v63 = vmul.f32 %v1535_v61, %v187_v58 }
  0xb8   :  { %v207_v60 = vmul.f32 %v1537_v59, %v206_v46 }
  0xb9   :  { %v1539_v40 = vpop.eup %1538  ;;  %v189_v38 = vadd.f32 %v1535_v61, %v188_v63  ;;  %v249_v63 = vpop.permute.xlu0 %248 }
  0xba   :  { %v1541_v52 = vpop.eup %1540  ;;  %v225_v50 = vmul.f32 %v1539_v40, %v223_v62  ;;  %v208_v56 = vadd.f32 %v1537_v59, %v207_v60  ;;  %vm250_vm11 = vcmp.eq.s32.totalorder %v249_v63, 1  ;;  %vm230_vm12 = vweird.f32 %v1539_v40 }
  0xbb   :  { %v193_v1 = vsel %vm192_vm7, %v1535_v61, %v189_v38  ;;  %v233_v38 = vand.u32 2147483647, %v223_v62  ;;  %vm231_vm14 = vmor %vm229_vm13, %vm230_vm12  ;;  %v3373_v62 = vld [vmem:[#allocation29_spill] sm:$0xff] }
  0xbc   :  { %v226_v49 = vsub.f32 1.0, %v225_v50  ;;  %v198_v58 = vsel %vm195_vm8, %v197_v53, %v193_v1  ;;  %v212_v37 = vsel %vm211_vm9, %v1537_v59, %v208_v56  ;;  %v236_v56 = vor.u32 1.1754944e-38, %v235_v33  ;;  %v3368_v33 = vld [vmem:[#allocation36_spill] sm:$0xff]  ;;  %v3374_v59 = vld [vmem:[#allocation31_spill] sm:$0xff]  ;;  %v1459_v50 = vld [vmem:[%s3193_s1 + $0x20] sm:$0xff] }
  0xbd   :  { %v217_v46 = vsel %vm214_vm10, %v216_v55, %v212_v37  ;;  %v240_v36 = vmul.f32 %v1541_v52, %v198_v58  ;;  %vm234_vm15 = vcmp.eq.f32.partialorder %v233_v38, 8.507059e+37  ;;  %v3377_v52 = vld [vmem:[#allocation33_spill] sm:$0xff]  ;;  %v1460_v53 = vld [vmem:[%s3193_s1 + $0x28] sm:$0xff] }
  0xbe   :  { %v227_v34 = vmul.f32 %v1539_v40, %v226_v49  ;;  %v239_v51 = vmul.f32 0.0, %v217_v46 }
  0xc0   :  { %v241_v45 = vadd.f32 %v240_v36, %v239_v51  ;;  %v228_v44 = vadd.f32 %v1539_v40, %v227_v34  ;;  %v3369_v36 = vld [vmem:[#allocation24_spill] sm:$0xff]  ;;  %v3371_v51 = vld [vmem:[#allocation27_spill] sm:$0xff] }
  0xc2   :  { %1542 = vtanh.f32 %v241_v45  ;;  %v2348_v60 = vsel %vm250_vm11, %v241_v45, 0.0  ;;  %v232_v42 = vsel %vm231_vm14, %v1539_v40, %v228_v44  ;;  %v3370_v40 = vld [vmem:[#allocation26_spill] sm:$0xff]  ;;  %v1462_v45 = vld [vmem:[%s3193_s1 + $0x38] sm:$0xff] }
  0xc3   :  { %v237_v41 = vsel %vm234_vm15, %v236_v56, %v232_v42 }
  0xc8   :  { %v1543_v37 = vpop.eup %1542 }
  0xc9   :  { %v243_v61 = vmul.f32 %v1543_v37, %v237_v41 }
  0xcb   :  { %1515 = vmatmul.msk.f32.vlgmr.msrb.gmra.mxu0 %vm250_vm11, %v243_v61  ;;  %1516 = vmatmul.msk.f32.vlgmr.msrb.gmra.mxu1 %vm250_vm11, %v243_v61  ;;  %v2353_v34 = vsel %vm250_vm11, %v243_v61, 0.0 }
  0xcc   :  { %1517 = vmatmul.msk.f32.vlgmr.msrb.gmra.mxu2 %vm250_vm11, %v243_v61  ;;  %1518 = vmatmul.msk.f32.vlgmr.msrb.gmra.mxu3 %vm250_vm11, %v243_v61  ;;  %254 = vst [vmem:[#allocation4] sm:$0xff] %v2353_v34 }
  0xcd   :  { %590 = vmatpush.msrb.mxu0 %v1812_v0  ;;  %610 = vmatpush.msrb.mxu1 %v3349_v54  ;;  %v3351_v0 = vld [vmem:[#allocation11_spill] sm:$0xff]  ;;  %v3372_v54 = vld [vmem:[#allocation37_spill] sm:$0xff] }
  0xce   :  { %630 = vmatpush.msrb.mxu2 %v1909_v17  ;;  %650 = vmatpush.msrb.mxu3 %v1822_v2  ;;  %v3352_v2 = vld [vmem:[#allocation25_spill] sm:$0xff] }
  0xcf   :  { %591 = vmatpush.msrb.mxu0 %v1829_v3  ;;  %611 = vmatpush.msrb.mxu1 %v1834_v4  ;;  %v3353_v3 = vld [vmem:[#allocation12_spill] sm:$0xff]  ;;  %v3354_v4 = vld [vmem:[#allocation13_spill] sm:$0xff] }
  0xd0   :  { %631 = vmatpush.msrb.mxu2 %v1921_v19  ;;  %651 = vmatpush.msrb.mxu3 %v1839_v5  ;;  %v3355_v5 = vld [vmem:[#allocation14_spill] sm:$0xff] }
  0xd1   :  { %592 = vmatpush.msrb.mxu0 %v1845_v6  ;;  %612 = vmatpush.msrb.mxu1 %v1850_v7  ;;  %v3356_v6 = vld [vmem:[#allocation30_spill] sm:$0xff]  ;;  %v3357_v7 = vld [vmem:[#allocation15_spill] sm:$0xff] }
  0xd2   :  { %632 = vmatpush.msrb.mxu2 %v1945_v23  ;;  %652 = vmatpush.msrb.mxu3 %v1857_v8  ;;  %v3358_v8 = vld [vmem:[#allocation16_spill] sm:$0xff] }
  0xd3   :  { %593 = vmatpush.msrb.mxu0 %v1863_v9  ;;  %613 = vmatpush.msrb.mxu1 %v1868_v10  ;;  %v3359_v9 = vld [vmem:[#allocation17_spill] sm:$0xff]  ;;  %v3360_v10 = vld [vmem:[#allocation34_spill] sm:$0xff] }
  0xd4   :  { %633 = vmatpush.msrb.mxu2 %v1969_v27  ;;  %653 = vmatpush.msrb.mxu3 %v1875_v11  ;;  %v3361_v11 = vld [vmem:[#allocation18_spill] sm:$0xff] }
  0xd5   :  { %594 = vmatpush.msrb.mxu0 %v1881_v12  ;;  %614 = vmatpush.msrb.mxu1 %v1886_v13  ;;  %v3362_v12 = vld [vmem:[#allocation19_spill] sm:$0xff]  ;;  %v3363_v13 = vld [vmem:[#allocation20_spill] sm:$0xff] }
  0xd6   :  { %634 = vmatpush.msrb.mxu2 %v1993_v31  ;;  %654 = vmatpush.msrb.mxu3 %v1893_v14  ;;  %v3364_v14 = vld [vmem:[#allocation35_spill] sm:$0xff] }
  0xd7   :  { %595 = vmatpush.msrb.mxu0 %v1899_v15  ;;  %615 = vmatpush.msrb.mxu1 %v1904_v16  ;;  %v3365_v15 = vld [vmem:[#allocation21_spill] sm:$0xff]  ;;  %v3366_v16 = vld [vmem:[#allocation22_spill] sm:$0xff] }
  0xd8   :  { %635 = vmatpush.msrb.mxu2 %v2017_v35  ;;  %655 = vmatpush.msrb.mxu3 %v1916_v18  ;;  %v3367_v18 = vld [vmem:[#allocation23_spill] sm:$0xff] }
  0xd9   :  { %596 = vmatpush.msrb.mxu0 %v1927_v20  ;;  %616 = vmatpush.msrb.mxu1 %v1932_v21 }
  0xda   :  { %636 = vmatpush.msrb.mxu2 %v2041_v39  ;;  %656 = vmatpush.msrb.mxu3 %v1940_v22 }
  0xdb   :  { %597 = vmatpush.msrb.mxu0 %v1951_v24  ;;  %617 = vmatpush.msrb.mxu1 %v1956_v25 }
  0xdc   :  { %637 = vmatpush.msrb.mxu2 %v2065_v43  ;;  %657 = vmatpush.msrb.mxu3 %v1964_v26 }
  0xdd   :  { %598 = vmatpush.msrb.mxu0 %v1975_v28  ;;  %618 = vmatpush.msrb.mxu1 %v1980_v29 }
  0xde   :  { %638 = vmatpush.msrb.mxu2 %v2089_v47  ;;  %658 = vmatpush.msrb.mxu3 %v1988_v30 }
  0xdf   :  { %599 = vmatpush.msrb.mxu0 %v1999_v32  ;;  %619 = vmatpush.msrb.mxu1 %v3351_v0 }
  0xe0   :  { %639 = vmatpush.msrb.mxu2 %v3352_v2  ;;  %659 = vmatpush.msrb.mxu3 %v3353_v3 }
  0xe1   :  { %600 = vmatpush.msrb.mxu0 %v3354_v4  ;;  %620 = vmatpush.msrb.mxu1 %v3355_v5 }
  0xe2   :  { %640 = vmatpush.msrb.mxu2 %v3356_v6  ;;  %660 = vmatpush.msrb.mxu3 %v3357_v7 }
  0xe3   :  { %601 = vmatpush.msrb.mxu0 %v3358_v8  ;;  %621 = vmatpush.msrb.mxu1 %v3359_v9 }
  0xe4   :  { %641 = vmatpush.msrb.mxu2 %v3360_v10  ;;  %661 = vmatpush.msrb.mxu3 %v3361_v11 }
  0xe5   :  { %602 = vmatpush.msrb.mxu0 %v3362_v12  ;;  %622 = vmatpush.msrb.mxu1 %v3363_v13 }
  0xe6   :  { %642 = vmatpush.msrb.mxu2 %v3364_v14  ;;  %662 = vmatpush.msrb.mxu3 %v3365_v15 }
  0xe7   :  { %603 = vmatpush.msrb.mxu0 %v3366_v16  ;;  %623 = vmatpush.msrb.mxu1 %v3367_v18 }
  0xe8   :  { %643 = vmatpush.msrb.mxu2 %v3368_v33  ;;  %663 = vmatpush.msrb.mxu3 %v3369_v36 }
  0xe9   :  { %604 = vmatpush.msrb.mxu0 %v3370_v40  ;;  %624 = vmatpush.msrb.mxu1 %v3371_v51 }
  0xea   :  { %644 = vmatpush.msrb.mxu2 %v3372_v54  ;;  %664 = vmatpush.msrb.mxu3 %v3373_v62 }
  0xeb   :  { %605 = vmatpush.msrb.mxu0 %v3374_v59  ;;  %625 = vmatpush.msrb.mxu1 %v3375_v48 }
  0xec   :  { %645 = vmatpush.msrb.mxu2 %v3376_v57  ;;  %665 = vmatpush.msrb.mxu3 %v3377_v52 }
 0x148   :  { %v277_v55 = vpop.f32.mrf.mxu0  ;;  %v297_v1 = vpop.f32.mrf.mxu1 }
 0x149   :  { %v340_v49 = vadd.f32 %v1459_v50, %v277_v55  ;;  %v341_v58 = vadd.f32 %v1460_v53, %v297_v1  ;;  %v3378_v50 = vld [vmem:[#allocation28_spill] sm:$0xff]  ;;  %v1461_v53 = vld [vmem:[%s3193_s1 + $0x30] sm:$0xff]  ;;  %v3379_v1 = vmov 0  }
 0x14a   :  { %vm1474_vm0 = vcmp.gt.s32.totalorder %v3378_v50, 2  ;;  %vm1482_vm1 = vcmp.gt.s32.totalorder %v3378_v50, 3  ;;  %vm1514_vm7 = vcmp.gt.s32.totalorder %v3378_v50, 7 }
 0x14b   :  { %v1463_v46 = vmul.f32 -1.442695, %v340_v49  ;;  %v1464_v63 = vmul.f32 -1.442695, %v341_v58  ;;  %v575_v49 = vsel %vm1474_vm0, 1, %v3379_v1 }
 0x14c   :  { %577 = vperm.xlu1 %1526, %v575_v49  }
 0x14d   :  { %1544 = vpow2.f32 %v1463_v46 }
 0x14e   :  { %1546 = vpow2.f32 %v1464_v63 }
 0x14f   :  { %v337_v44 = vpop.f32.mrf.mxu3  ;;  %v317_v55 = vpop.f32.mrf.mxu2 }
 0x150   :  { %v343_v38 = vadd.f32 %v1462_v45, %v337_v44  ;;  %v342_v45 = vadd.f32 %v1461_v53, %v317_v55 }
 0x152   :  { %v1465_v42 = vmul.f32 -1.442695, %v343_v38 }
 0x153   :  { %v1545_v56 = vpop.eup %1544 }
 0x154   :  { %v1547_v37 = vpop.eup %1546  ;;  %v347_v41 = vadd.f32 1.0, %v1545_v56  ;;  %1548 = vpow2.f32 %v1465_v42 }
 0x155   :  { %v366_v61 = vadd.f32 1.0, %v1547_v37  ;;  %v740_v37 = vsel %vm1482_vm1, 1, %v3379_v1 }
 0x156   :  { %1550 = vrcp.f32 %v347_v41  ;;  %v359_v57 = vand.u32 2147483648, %v347_v41  ;;  %v357_v62 = vand.u32 2147483647, %v347_v41  ;;  %742 = vperm.xlu1 %1526, %v740_v37   ;;  %vm353_vm5 = vweird.f32 %v347_v41 }
 0x157   :  { %1552 = vrcp.f32 %v366_v61  ;;  %v378_v48 = vand.u32 2147483648, %v366_v61  ;;  %vm372_vm4 = vweird.f32 %v366_v61 }
 0x158   :  { %v360_v54 = vor.u32 1.1754944e-38, %v359_v57  ;;  %vm358_vm9 = vcmp.eq.f32.partialorder %v357_v62, 8.507059e+37 }
 0x15a   :  { %v1549_v58 = vpop.eup %1548 }
 0x15b   :  { %v386_v46 = vadd.f32 1.0, %v1549_v58  ;;  %v376_v58 = vand.u32 2147483647, %v366_v61 }
 0x15c   :  { %v1551_v63 = vpop.eup %1550 }
 0x15d   :  { %v1553_v44 = vpop.eup %1552  ;;  %v349_v38 = vmul.f32 %v1551_v63, %v347_v41  ;;  %1554 = vrcp.f32 %v386_v46  ;;  %vm354_vm2 = vweird.f32 %v1551_v63  ;;  %vm377_vm10 = vcmp.eq.f32.partialorder %v376_v58, 8.507059e+37 }
 0x15e   :  { %v368_v42 = vmul.f32 %v1553_v44, %v366_v61  ;;  %1556 = vtanh.f32 %v342_v45  ;;  %vm373_vm3 = vweird.f32 %v1553_v44  ;;  %vm355_vm6 = vmor %vm353_vm5, %vm354_vm2  ;;  %v379_v45 = vor.u32 1.1754944e-38, %v378_v48  ;;  %v413_v61 = vpop.permute.xlu0 %412 }
 0x15f   :  { %v350_v56 = vsub.f32 1.0, %v349_v38  ;;  %vm374_vm8 = vmor %vm372_vm4, %vm373_vm3  ;;  %vm414_vm11 = vcmp.eq.s32.totalorder %v413_v61, 1  ;;  %v398_v62 = vand.u32 2147483648, %v386_v46  ;;  %vm392_vm13 = vweird.f32 %v386_v46 }
 0x160   :  { %v369_v52 = vsub.f32 1.0, %v368_v42 }
 0x161   :  { %v351_v59 = vmul.f32 %v1551_v63, %v350_v56  ;;  %v399_v48 = vor.u32 1.1754944e-38, %v398_v62 }
 0x162   :  { %v370_v49 = vmul.f32 %v1553_v44, %v369_v52 }
 0x163   :  { %v1555_v53 = vpop.eup %1554  ;;  %v352_v55 = vadd.f32 %v1551_v63, %v351_v59  ;;  %v1400_v59 = vsel %vm1514_vm7, 1, %v3379_v1 }
 0x164   :  { %v371_v38 = vadd.f32 %v1553_v44, %v370_v49  ;;  %v388_v51 = vmul.f32 %v1555_v53, %v386_v46  ;;  %v1557_v56 = vpop.eup %1556  ;;  %1402 = vperm.xlu1 %1526, %v1400_v59   ;;  %vm393_vm12 = vweird.f32 %v1555_v53  ;;  %v2552_v59 = vld [vmem:[%s3194_s2 + $0x140] sm:$0xff] }
 0x165   :  { %v356_v42 = vsel %vm355_vm6, %v1551_v63, %v352_v55  ;;  %vm394_vm14 = vmor %vm392_vm13, %vm393_vm12  ;;  %v2482_v55 = vld [vmem:[%s3194_s2 + $0x1c8] sm:$0xff] }
 0x166   :  { %v361_v40 = vsel %vm358_vm9, %v360_v54, %v356_v42  ;;  %v375_v52 = vsel %vm374_vm8, %v1553_v44, %v371_v38  ;;  %v389_v36 = vsub.f32 1.0, %v388_v51  ;;  %v396_v51 = vand.u32 2147483647, %v386_v46  ;;  %v2470_v46 = vld [vmem:[%s3194_s2 + $0x1f8] sm:$0xff]  ;;  %v2495_v38 = vld [vmem:[%s3194_s2 + $0x1a0] sm:$0xff] }
 0x167   :  { %v380_v37 = vsel %vm377_vm10, %v379_v45, %v375_v52  ;;  %v403_v33 = vmul.f32 %v1557_v56, %v361_v40  ;;  %v2501_v45 = vld [vmem:[%s3194_s2 + $0x1a8] sm:$0xff]  ;;  %v2514_v42 = vld [vmem:[%s3194_s2 + $0x180] sm:$0xff] }
 0x168   :  { %v402_v41 = vmul.f32 %v380_v37, %v2348_v60  ;;  %v390_v57 = vmul.f32 %v1555_v53, %v389_v36  ;;  %vm397_vm15 = vcmp.eq.f32.partialorder %v396_v51, 8.507059e+37  ;;  %v2520_v56 = vld [vmem:[%s3194_s2 + $0x188] sm:$0xff]  ;;  %v2533_v52 = vld [vmem:[%s3194_s2 + $0x160] sm:$0xff] }
 0x169   :  { %v2539_v37 = vld [vmem:[%s3194_s2 + $0x168] sm:$0xff] }
 0x16a   :  { %v404_v49 = vadd.f32 %v403_v33, %v402_v41  ;;  %v391_v50 = vadd.f32 %v1555_v53, %v390_v57  ;;  %v2558_v41 = vld [vmem:[%s3194_s2 + $0x148] sm:$0xff] }
 0x16c   :  { %1558 = vtanh.f32 %v404_v49  ;;  %v2443_v54 = vsel %vm414_vm11, %v404_v49, %v2348_v60  ;;  %v395_v40 = vsel %vm394_vm14, %v1555_v53, %v391_v50  ;;  %v2457_v60 = vld [vmem:[%s3194_s2 + $0x1e0] sm:$0xff] }
 0x16d   :  { %v400_v36 = vsel %vm397_vm15, %v399_v48, %v395_v40  ;;  %v2476_v53 = vld [vmem:[%s3194_s2 + $0x1c0] sm:$0xff] }
 0x172   :  { %v1559_v63 = vpop.eup %1558 }
 0x173   :  { %v406_v44 = vmul.f32 %v1559_v63, %v400_v36 }
 0x175   :  { %v2447_v33 = vsel %vm414_vm11, %v406_v44, %v2353_v34  ;;  %v417_v58 = vsel %vm414_vm11, %v406_v44, 0.0  ;;  %v2463_v34 = vld [vmem:[%s3194_s2 + $0x1e8] sm:$0xff] }
 0x176   :  { %419 = vst [vmem:[#allocation4 + $0x8] sm:$0xff] %v417_v58  ;;  %441 = vmatmul.f32.vlgmr.msra.gmra.mxu0 %v2447_v33  ;;  %461 = vmatmul.f32.vlgmr.msra.gmra.mxu1 %v2447_v33 }
 0x177   :  { %481 = vmatmul.f32.vlgmr.msra.gmra.mxu2 %v2447_v33  ;;  %501 = vmatmul.f32.vlgmr.msra.gmra.mxu3 %v2447_v33 }
 0x178   :  { %755 = vmatpush.msra.mxu0 %v2457_v60  ;;  %775 = vmatpush.msra.mxu1 %v2463_v34 }
 0x179   :  { %795 = vmatpush.msra.mxu2 %v1909_v17  ;;  %815 = vmatpush.msra.mxu3 %v2470_v46  ;;  %v2489_v17 = vld [vmem:[%s3194_s2 + $0x1d8] sm:$0xff] }
 0x17a   :  { %756 = vmatpush.msra.mxu0 %v2476_v53  ;;  %776 = vmatpush.msra.mxu1 %v2482_v55 }
 0x17b   :  { %796 = vmatpush.msra.mxu2 %v1921_v19  ;;  %816 = vmatpush.msra.mxu3 %v2489_v17  ;;  %v2508_v19 = vld [vmem:[%s3194_s2 + $0x1b8] sm:$0xff] }
 0x17c   :  { %757 = vmatpush.msra.mxu0 %v2495_v38  ;;  %777 = vmatpush.msra.mxu1 %v2501_v45 }
 0x17d   :  { %797 = vmatpush.msra.mxu2 %v1945_v23  ;;  %817 = vmatpush.msra.mxu3 %v2508_v19  ;;  %v2527_v23 = vld [vmem:[%s3194_s2 + $0x198] sm:$0xff] }
 0x17e   :  { %758 = vmatpush.msra.mxu0 %v2514_v42  ;;  %778 = vmatpush.msra.mxu1 %v2520_v56 }
 0x17f   :  { %798 = vmatpush.msra.mxu2 %v1969_v27  ;;  %818 = vmatpush.msra.mxu3 %v2527_v23  ;;  %v2546_v27 = vld [vmem:[%s3194_s2 + $0x178] sm:$0xff] }
 0x180   :  { %759 = vmatpush.msra.mxu0 %v2533_v52  ;;  %779 = vmatpush.msra.mxu1 %v2539_v37 }
 0x181   :  { %799 = vmatpush.msra.mxu2 %v1993_v31  ;;  %819 = vmatpush.msra.mxu3 %v2546_v27  ;;  %v2565_v31 = vld [vmem:[%s3194_s2 + $0x158] sm:$0xff] }
 0x182   :  { %760 = vmatpush.msra.mxu0 %v2552_v59  ;;  %780 = vmatpush.msra.mxu1 %v2558_v41 }
 0x183   :  { %800 = vmatpush.msra.mxu2 %v2017_v35  ;;  %820 = vmatpush.msra.mxu3 %v2565_v31  ;;  %v1467_v35 = vld [vmem:[%s3193_s1 + $0x40] sm:$0xff] }
 0x184   :  { %761 = vmatpush.msra.mxu0 %v1927_v20  ;;  %781 = vmatpush.msra.mxu1 %v1932_v21  ;;  %v3380_v20 = vld [vmem:[#allocation36_spill] sm:$0xff] }
 0x185   :  { %801 = vmatpush.msra.mxu2 %v2041_v39  ;;  %821 = vmatpush.msra.mxu3 %v1940_v22  ;;  %v3381_v21 = vld [vmem:[#allocation24_spill] sm:$0xff]  ;;  %v3382_v22 = vld [vmem:[#allocation26_spill] sm:$0xff] }
 0x186   :  { %762 = vmatpush.msra.mxu0 %v1951_v24  ;;  %782 = vmatpush.msra.mxu1 %v1956_v25  ;;  %v3383_v24 = vld [vmem:[#allocation27_spill] sm:$0xff]  ;;  %v3384_v25 = vld [vmem:[#allocation37_spill] sm:$0xff]  ;;  %v1468_v39 = vld [vmem:[%s3193_s1 + $0x48] sm:$0xff] }
 0x187   :  { %802 = vmatpush.msra.mxu2 %v2065_v43  ;;  %822 = vmatpush.msra.mxu3 %v1964_v26  ;;  %v3385_v26 = vld [vmem:[#allocation29_spill] sm:$0xff] }
 0x188   :  { %763 = vmatpush.msra.mxu0 %v1975_v28  ;;  %783 = vmatpush.msra.mxu1 %v1980_v29  ;;  %v3386_v28 = vld [vmem:[#allocation31_spill] sm:$0xff]  ;;  %v3387_v29 = vld [vmem:[#allocation32_spill] sm:$0xff] }
 0x189   :  { %803 = vmatpush.msra.mxu2 %v2089_v47  ;;  %823 = vmatpush.msra.mxu3 %v1988_v30  ;;  %v3388_v30 = vld [vmem:[#allocation38_spill] sm:$0xff] }
 0x18a   :  { %764 = vmatpush.msra.mxu0 %v1999_v32  ;;  %784 = vmatpush.msra.mxu1 %v3351_v0  ;;  %v3389_v32 = vld [vmem:[#allocation33_spill] sm:$0xff] }
 0x18b   :  { %804 = vmatpush.msra.mxu2 %v3352_v2  ;;  %824 = vmatpush.msra.mxu3 %v3353_v3 }
 0x18c   :  { %765 = vmatpush.msra.mxu0 %v3354_v4  ;;  %785 = vmatpush.msra.mxu1 %v3355_v5  ;;  %v1470_v5 = vld [vmem:[%s3193_s1 + $0x58] sm:$0xff] }
 0x18d   :  { %805 = vmatpush.msra.mxu2 %v3356_v6  ;;  %825 = vmatpush.msra.mxu3 %v3357_v7 }
 0x18e   :  { %766 = vmatpush.msra.mxu0 %v3358_v8  ;;  %786 = vmatpush.msra.mxu1 %v3359_v9 }
 0x18f   :  { %806 = vmatpush.msra.mxu2 %v3360_v10  ;;  %826 = vmatpush.msra.mxu3 %v3361_v11 }
 0x190   :  { %767 = vmatpush.msra.mxu0 %v3362_v12  ;;  %787 = vmatpush.msra.mxu1 %v3363_v13  ;;  %v1469_v13 = vld [vmem:[%s3193_s1 + $0x50] sm:$0xff] }
 0x191   :  { %807 = vmatpush.msra.mxu2 %v3364_v14  ;;  %827 = vmatpush.msra.mxu3 %v3365_v15 }
 0x192   :  { %768 = vmatpush.msra.mxu0 %v3366_v16  ;;  %788 = vmatpush.msra.mxu1 %v3367_v18 }
 0x193   :  { %808 = vmatpush.msra.mxu2 %v3380_v20  ;;  %828 = vmatpush.msra.mxu3 %v3381_v21 }
 0x194   :  { %769 = vmatpush.msra.mxu0 %v3382_v22  ;;  %789 = vmatpush.msra.mxu1 %v3383_v24 }
 0x195   :  { %809 = vmatpush.msra.mxu2 %v3384_v25  ;;  %829 = vmatpush.msra.mxu3 %v3385_v26 }
 0x196   :  { %770 = vmatpush.msra.mxu0 %v3386_v28  ;;  %790 = vmatpush.msra.mxu1 %v3387_v29 }
 0x197   :  { %810 = vmatpush.msra.mxu2 %v3388_v30  ;;  %830 = vmatpush.msra.mxu3 %v3389_v32 }
 0x1f3   :  { %v442_v43 = vpop.f32.mrf.mxu0  ;;  %v462_v47 = vpop.f32.mrf.mxu1 }
 0x1f4   :  { %v505_v0 = vadd.f32 %v1467_v35, %v442_v43  ;;  %v506_v2 = vadd.f32 %v1468_v39, %v462_v47  ;;  %v578_v47 = vpop.permute.xlu1 %577 }
 0x1f5   :  { %vm579_vm8 = vcmp.eq.s32.totalorder %v578_v47, 1  ;;  %v2835_v47 = vld [vmem:[%s3194_s2 + $0x60] sm:$0xff] }
 0x1f6   :  { %v1471_v3 = vmul.f32 -1.442695, %v505_v0  ;;  %v1472_v4 = vmul.f32 -1.442695, %v506_v2  ;;  %3402 = vst [vmem:[#allocation19_spill] sm:$0xff] %v2835_v47 }
 0x1f8   :  { %1560 = vpow2.f32 %v1471_v3 }
 0x1f9   :  { %1562 = vpow2.f32 %v1472_v4 }
 0x1fa   :  { %v502_v6 = vpop.f32.mrf.mxu3  ;;  %v482_v14 = vpop.f32.mrf.mxu2 }
 0x1fb   :  { %v508_v7 = vadd.f32 %v1470_v5, %v502_v6  ;;  %v507_v57 = vadd.f32 %v1469_v13, %v482_v14 }
 0x1fd   :  { %v1473_v8 = vmul.f32 -1.442695, %v508_v7 }
 0x1fe   :  { %v1561_v9 = vpop.eup %1560 }
 0x1ff   :  { %v1563_v10 = vpop.eup %1562  ;;  %v512_v11 = vadd.f32 1.0, %v1561_v9  ;;  %1564 = vpow2.f32 %v1473_v8 }
 0x200   :  { %v531_v12 = vadd.f32 1.0, %v1563_v10 }
 0x201   :  { %1566 = vrcp.f32 %v512_v11  ;;  %v524_v40 = vand.u32 2147483648, %v512_v11  ;;  %v522_v63 = vand.u32 2147483647, %v512_v11  ;;  %vm518_vm2 = vweird.f32 %v512_v11 }
 0x202   :  { %1568 = vrcp.f32 %v531_v12  ;;  %v543_v36 = vand.u32 2147483648, %v531_v12  ;;  %v541_v58 = vand.u32 2147483647, %v531_v12  ;;  %vm537_vm4 = vweird.f32 %v531_v12 }
 0x203   :  { %v525_v22 = vor.u32 1.1754944e-38, %v524_v40  ;;  %vm523_vm5 = vcmp.eq.f32.partialorder %v522_v63, 8.507059e+37  ;;  %v2721_v40 = vld [vmem:[%s3194_s2 + $0x108] sm:$0xff]  ;;  %v2733_v63 = vld [vmem:[%s3194_s2 + $0x118] sm:$0xff] }
 0x204   :  { %v544_v28 = vor.u32 1.1754944e-38, %v543_v36  ;;  %vm542_vm7 = vcmp.eq.f32.partialorder %v541_v58, 8.507059e+37  ;;  %v2739_v36 = vld [vmem:[%s3194_s2 + $0xe0] sm:$0xff]  ;;  %v2751_v58 = vld [vmem:[%s3194_s2 + $0xf0] sm:$0xff] }
 0x205   :  { %v1565_v15 = vpop.eup %1564 }
 0x206   :  { %v551_v16 = vadd.f32 1.0, %v1565_v15  ;;  %v2657_v15 = vld [vmem:[%s3194_s2 + $0x1b0] sm:$0xff] }
 0x207   :  { %v1567_v18 = vpop.eup %1566 }
 0x208   :  { %v1569_v61 = vpop.eup %1568  ;;  %v514_v49 = vmul.f32 %v1567_v18, %v512_v11  ;;  %1570 = vrcp.f32 %v551_v16  ;;  %vm519_vm0 = vweird.f32 %v1567_v18  ;;  %v563_v5 = vand.u32 2147483648, %v551_v16 }
 0x209   :  { %v533_v50 = vmul.f32 %v1569_v61, %v531_v12  ;;  %1572 = vtanh.f32 %v507_v57  ;;  %vm538_vm1 = vweird.f32 %v1569_v61  ;;  %vm520_vm3 = vmor %vm518_vm2, %vm519_vm0  ;;  %vm557_vm10 = vweird.f32 %v551_v16  ;;  %v2684_v57 = vld [vmem:[%s3194_s2 + $0x150] sm:$0xff] }
 0x20a   :  { %v515_v62 = vsub.f32 1.0, %v514_v49  ;;  %vm539_vm6 = vmor %vm537_vm4, %vm538_vm1  ;;  %v561_v7 = vand.u32 2147483647, %v551_v16  ;;  %v564_v9 = vor.u32 1.1754944e-38, %v563_v5  ;;  %v2697_v49 = vld [vmem:[%s3194_s2 + $0x128] sm:$0xff] }
 0x20b   :  { %v534_v51 = vsub.f32 1.0, %v533_v50  ;;  %v2703_v50 = vld [vmem:[%s3194_s2 + $0x130] sm:$0xff]  ;;  %v2865_v5 = vld [vmem:[%s3194_s2 + $0x48] sm:$0xff] }
 0x20c   :  { %v516_v48 = vmul.f32 %v1567_v18, %v515_v62  ;;  %vm562_vm12 = vcmp.eq.f32.partialorder %v561_v7, 8.507059e+37  ;;  %v2709_v62 = vld [vmem:[%s3194_s2 + $0x138] sm:$0xff]  ;;  %3407 = vst [vmem:[#allocation23_spill] sm:$0xff] %v2865_v5  ;;  %v2871_v7 = vld [vmem:[%s3194_s2 + $0x50] sm:$0xff] }
 0x20d   :  { %v535_v44 = vmul.f32 %v1569_v61, %v534_v51  ;;  %v2715_v51 = vld [vmem:[%s3194_s2 + $0x100] sm:$0xff]  ;;  %3408 = vst [vmem:[#allocation28_spill] sm:$0xff] %v2871_v7 }
 0x20e   :  { %v1571_v20 = vpop.eup %1570  ;;  %v517_v21 = vadd.f32 %v1567_v18, %v516_v48  ;;  %v2727_v48 = vld [vmem:[%s3194_s2 + $0x110] sm:$0xff] }
 0x20f   :  { %v553_v24 = vmul.f32 %v1571_v20, %v551_v16  ;;  %v536_v25 = vadd.f32 %v1569_v61, %v535_v44  ;;  %v1573_v29 = vpop.eup %1572  ;;  %vm558_vm9 = vweird.f32 %v1571_v20  ;;  %v2666_v16 = vld [vmem:[%s3194_s2 + $0x190] sm:$0xff]  ;;  %v2745_v44 = vld [vmem:[%s3194_s2 + $0xe8] sm:$0xff] }
 0x210   :  { %v521_v26 = vsel %vm520_vm3, %v1567_v18, %v517_v21  ;;  %vm559_vm11 = vmor %vm557_vm10, %vm558_vm9  ;;  %v2675_v18 = vld [vmem:[%s3194_s2 + $0x170] sm:$0xff]  ;;  %v2763_v21 = vld [vmem:[%s3194_s2 + $0xc0] sm:$0xff] }
 0x211   :  { %v526_v30 = vsel %vm523_vm5, %v525_v22, %v521_v26  ;;  %v554_v32 = vsub.f32 1.0, %v553_v24  ;;  %v540_v35 = vsel %vm539_vm6, %v1569_v61, %v536_v25  ;;  %v2691_v61 = vld [vmem:[%s3194_s2 + $0x120] sm:$0xff]  ;;  %3390 = vst [vmem:[#allocation10_spill] sm:$0xff] %v2763_v21  ;;  %v2769_v22 = vld [vmem:[%s3194_s2 + $0xc8] sm:$0xff]  ;;  %v2775_v24 = vld [vmem:[%s3194_s2 + $0xd0] sm:$0xff] }
 0x212   :  { %v568_v39 = vmul.f32 %v1573_v29, %v526_v30  ;;  %v545_v43 = vsel %vm542_vm7, %v544_v28, %v540_v35  ;;  %3391 = vst [vmem:[#allocation11_spill] sm:$0xff] %v2769_v22  ;;  %v2781_v25 = vld [vmem:[%s3194_s2 + $0xd8] sm:$0xff]  ;;  %v2787_v26 = vld [vmem:[%s3194_s2 + $0xa0] sm:$0xff]  ;;  %v2793_v28 = vld [vmem:[%s3194_s2 + $0xa8] sm:$0xff] }
 0x213   :  { %v555_v0 = vmul.f32 %v1571_v20, %v554_v32  ;;  %v567_v2 = vmul.f32 %v545_v43, %v2443_v54  ;;  %3392 = vst [vmem:[#allocation25_spill] sm:$0xff] %v2775_v24  ;;  %v2799_v29 = vld [vmem:[%s3194_s2 + $0xb0] sm:$0xff]  ;;  %v2805_v30 = vld [vmem:[%s3194_s2 + $0xb8] sm:$0xff]  ;;  %v2811_v32 = vld [vmem:[%s3194_s2 + $0x80] sm:$0xff] }
 0x214   :  { %3393 = vst [vmem:[#allocation12_spill] sm:$0xff] %v2781_v25  ;;  %v2817_v35 = vld [vmem:[%s3194_s2 + $0x88] sm:$0xff]  ;;  %v2829_v43 = vld [vmem:[%s3194_s2 + $0x98] sm:$0xff] }
 0x215   :  { %v569_v3 = vadd.f32 %v568_v39, %v567_v2  ;;  %v556_v4 = vadd.f32 %v1571_v20, %v555_v0  ;;  %3394 = vst [vmem:[#allocation13_spill] sm:$0xff] %v2787_v26  ;;  %v2823_v39 = vld [vmem:[%s3194_s2 + $0x90] sm:$0xff]  ;;  %v2841_v0 = vld [vmem:[%s3194_s2 + $0x68] sm:$0xff] }
 0x216   :  { %3395 = vst [vmem:[#allocation14_spill] sm:$0xff] %v2793_v28  ;;  %v2847_v2 = vld [vmem:[%s3194_s2 + $0x70] sm:$0xff] }
 0x217   :  { %1574 = vtanh.f32 %v569_v3  ;;  %v2623_v6 = vsel %vm579_vm8, %v569_v3, %v2443_v54  ;;  %v560_v8 = vsel %vm559_vm11, %v1571_v20, %v556_v4  ;;  %v2639_v54 = vld [vmem:[%s3194_s2 + $0x1f0] sm:$0xff]  ;;  %v2757_v20 = vld [vmem:[%s3194_s2 + $0xf8] sm:$0xff]  ;;  %3396 = vst [vmem:[#allocation30_spill] sm:$0xff] %v2799_v29  ;;  %v2859_v4 = vld [vmem:[%s3194_s2 + $0x40] sm:$0xff] }
 0x218   :  { %v565_v11 = vsel %vm562_vm12, %v564_v9, %v560_v8  ;;  %3397 = vst [vmem:[#allocation15_spill] sm:$0xff] %v2805_v30  ;;  %v2853_v3 = vld [vmem:[%s3194_s2 + $0x78] sm:$0xff]  ;;  %v2883_v9 = vld [vmem:[%s3194_s2 + $0x20] sm:$0xff] }
 0x219   :  { %3398 = vst [vmem:[#allocation16_spill] sm:$0xff] %v2811_v32  ;;  %v2877_v8 = vld [vmem:[%s3194_s2 + $0x58] sm:$0xff] }
 0x21a   :  { %3399 = vst [vmem:[#allocation17_spill] sm:$0xff] %v2817_v35 }
 0x21b   :  { %3400 = vst [vmem:[#allocation34_spill] sm:$0xff] %v2823_v39 }
 0x21c   :  { %3401 = vst [vmem:[#allocation18_spill] sm:$0xff] %v2829_v43 }
 0x21d   :  { %v1575_v10 = vpop.eup %1574  ;;  %3403 = vst [vmem:[#allocation20_spill] sm:$0xff] %v2841_v0 }
 0x21e   :  { %v571_v12 = vmul.f32 %v1575_v10, %v565_v11  ;;  %3404 = vst [vmem:[#allocation35_spill] sm:$0xff] %v2847_v2  ;;  %v2889_v10 = vld [vmem:[%s3194_s2 + $0x28] sm:$0xff]  ;;  %v2895_v11 = vld [vmem:[%s3194_s2 + $0x30] sm:$0xff] }
 0x21f   :  { %3405 = vst [vmem:[#allocation21_spill] sm:$0xff] %v2853_v3 }
 0x220   :  { %v2627_v13 = vsel %vm579_vm8, %v571_v12, %v2447_v33  ;;  %v582_v14 = vsel %vm579_vm8, %v571_v12, 0.0  ;;  %v2648_v33 = vld [vmem:[%s3194_s2 + $0x1d0] sm:$0xff]  ;;  %3406 = vst [vmem:[#allocation22_spill] sm:$0xff] %v2859_v4  ;;  %v2901_v12 = vld [vmem:[%s3194_s2 + $0x38] sm:$0xff] }
 0x221   :  { %584 = vst [vmem:[#allocation4 + $0x10] sm:$0xff] %v582_v14  ;;  %606 = vmatmul.f32.vlgmr.msrb.gmra.mxu0 %v2627_v13  ;;  %626 = vmatmul.f32.vlgmr.msrb.gmra.mxu1 %v2627_v13  ;;  %v2907_v14 = vld [vmem:[%s3194_s2] sm:$0xff] }
 0x222   :  { %646 = vmatmul.f32.vlgmr.msrb.gmra.mxu2 %v2627_v13  ;;  %666 = vmatmul.f32.vlgmr.msrb.gmra.mxu3 %v2627_v13  ;;  %3409 = vst [vmem:[#allocation36_spill] sm:$0xff] %v2877_v8 }
 0x223   :  { %920 = vmatpush.msrb.mxu0 %v2457_v60  ;;  %940 = vmatpush.msrb.mxu1 %v2463_v34  ;;  %3410 = vst [vmem:[#allocation24_spill] sm:$0xff] %v2883_v9 }
 0x224   :  { %960 = vmatpush.msrb.mxu2 %v2639_v54  ;;  %980 = vmatpush.msrb.mxu3 %v2470_v46  ;;  %3411 = vst [vmem:[#allocation26_spill] sm:$0xff] %v2889_v10 }
 0x225   :  { %921 = vmatpush.msrb.mxu0 %v2476_v53  ;;  %941 = vmatpush.msrb.mxu1 %v2482_v55  ;;  %3412 = vst [vmem:[#allocation27_spill] sm:$0xff] %v2895_v11 }
 0x226   :  { %961 = vmatpush.msrb.mxu2 %v2648_v33  ;;  %981 = vmatpush.msrb.mxu3 %v2489_v17  ;;  %3413 = vst [vmem:[#allocation37_spill] sm:$0xff] %v2901_v12 }
 0x227   :  { %922 = vmatpush.msrb.mxu0 %v2495_v38  ;;  %942 = vmatpush.msrb.mxu1 %v2501_v45  ;;  %3414 = vst [vmem:[#allocation29_spill] sm:$0xff] %v2907_v14 }
 0x228   :  { %962 = vmatpush.msrb.mxu2 %v2657_v15  ;;  %982 = vmatpush.msrb.mxu3 %v2508_v19 }
 0x229   :  { %923 = vmatpush.msrb.mxu0 %v2514_v42  ;;  %943 = vmatpush.msrb.mxu1 %v2520_v56 }
 0x22a   :  { %963 = vmatpush.msrb.mxu2 %v2666_v16  ;;  %983 = vmatpush.msrb.mxu3 %v2527_v23 }
 0x22b   :  { %924 = vmatpush.msrb.mxu0 %v2533_v52  ;;  %944 = vmatpush.msrb.mxu1 %v2539_v37 }
 0x22c   :  { %964 = vmatpush.msrb.mxu2 %v2675_v18  ;;  %984 = vmatpush.msrb.mxu3 %v2546_v27 }
 0x22d   :  { %925 = vmatpush.msrb.mxu0 %v2552_v59  ;;  %945 = vmatpush.msrb.mxu1 %v2558_v41 }
 0x22e   :  { %965 = vmatpush.msrb.mxu2 %v2684_v57  ;;  %985 = vmatpush.msrb.mxu3 %v2565_v31 }
 0x22f   :  { %926 = vmatpush.msrb.mxu0 %v2691_v61  ;;  %946 = vmatpush.msrb.mxu1 %v2697_v49 }
 0x230   :  { %966 = vmatpush.msrb.mxu2 %v2703_v50  ;;  %986 = vmatpush.msrb.mxu3 %v2709_v62 }
 0x231   :  { %927 = vmatpush.msrb.mxu0 %v2715_v51  ;;  %947 = vmatpush.msrb.mxu1 %v2721_v40 }
 0x232   :  { %967 = vmatpush.msrb.mxu2 %v2727_v48  ;;  %987 = vmatpush.msrb.mxu3 %v2733_v63 }
 0x233   :  { %928 = vmatpush.msrb.mxu0 %v2739_v36  ;;  %948 = vmatpush.msrb.mxu1 %v2745_v44 }
 0x234   :  { %968 = vmatpush.msrb.mxu2 %v2751_v58  ;;  %988 = vmatpush.msrb.mxu3 %v2757_v20 }
 0x235   :  { %929 = vmatpush.msrb.mxu0 %v2763_v21  ;;  %949 = vmatpush.msrb.mxu1 %v2769_v22 }
 0x236   :  { %969 = vmatpush.msrb.mxu2 %v2775_v24  ;;  %989 = vmatpush.msrb.mxu3 %v2781_v25 }
 0x237   :  { %930 = vmatpush.msrb.mxu0 %v2787_v26  ;;  %950 = vmatpush.msrb.mxu1 %v2793_v28 }
 0x238   :  { %970 = vmatpush.msrb.mxu2 %v2799_v29  ;;  %990 = vmatpush.msrb.mxu3 %v2805_v30 }
 0x239   :  { %931 = vmatpush.msrb.mxu0 %v2811_v32  ;;  %951 = vmatpush.msrb.mxu1 %v2817_v35 }
 0x23a   :  { %971 = vmatpush.msrb.mxu2 %v2823_v39  ;;  %991 = vmatpush.msrb.mxu3 %v2829_v43 }
 0x23b   :  { %932 = vmatpush.msrb.mxu0 %v2835_v47  ;;  %952 = vmatpush.msrb.mxu1 %v2841_v0 }
 0x23c   :  { %972 = vmatpush.msrb.mxu2 %v2847_v2  ;;  %992 = vmatpush.msrb.mxu3 %v2853_v3  ;;  %v1478_v3 = vld [vmem:[%s3193_s1 + $0x78] sm:$0xff] }
 0x23d   :  { %933 = vmatpush.msrb.mxu0 %v2859_v4  ;;  %953 = vmatpush.msrb.mxu1 %v2865_v5 }
 0x23e   :  { %973 = vmatpush.msrb.mxu2 %v2871_v7  ;;  %993 = vmatpush.msrb.mxu3 %v2877_v8 }
 0x23f   :  { %934 = vmatpush.msrb.mxu0 %v2883_v9  ;;  %954 = vmatpush.msrb.mxu1 %v2889_v10  ;;  %v2913_v10 = vld [vmem:[%s3194_s2 + $0x8] sm:$0xff] }
 0x240   :  { %974 = vmatpush.msrb.mxu2 %v2895_v11  ;;  %994 = vmatpush.msrb.mxu3 %v2901_v12  ;;  %3415 = vst [vmem:[#allocation31_spill] sm:$0xff] %v2913_v10  ;;  %v2919_v11 = vld [vmem:[%s3194_s2 + $0x10] sm:$0xff]  ;;  %v2925_v12 = vld [vmem:[%s3194_s2 + $0x18] sm:$0xff] }
 0x241   :  { %935 = vmatpush.msrb.mxu0 %v2907_v14  ;;  %955 = vmatpush.msrb.mxu1 %v2913_v10  ;;  %3416 = vst [vmem:[#allocation32_spill] sm:$0xff] %v2919_v11  ;;  %v1475_v14 = vld [vmem:[%s3193_s1 + $0x60] sm:$0xff]  ;;  %v1476_v10 = vld [vmem:[%s3193_s1 + $0x68] sm:$0xff] }
 0x242   :  { %975 = vmatpush.msrb.mxu2 %v2919_v11  ;;  %3417 = vst [vmem:[#allocation38_spill] sm:$0xff] %v2925_v12  ;;  %995 = vmatpush.msrb.mxu3 %v2925_v12 }
 0x29e   :  { %v607_v9 = vpop.f32.mrf.mxu0  ;;  %v627_v8 = vpop.f32.mrf.mxu1 }
 0x29f   :  { %v670_v7 = vadd.f32 %v1475_v14, %v607_v9  ;;  %v671_v5 = vadd.f32 %v1476_v10, %v627_v8 }
 0x2a1   :  { %v1479_v11 = vmul.f32 -1.442695, %v670_v7  ;;  %v1480_v4 = vmul.f32 -1.442695, %v671_v5  ;;  %v1720_v5 = vld [vmem:[%s3192_s0] sm:$0xff]  ;;  %v1477_v7 = vld [vmem:[%s3193_s1 + $0x70] sm:$0xff] }
 0x2a2   :  { %vm1490_vm13 = vcmp.gt.s32.totalorder %v1720_v5, 4  ;;  %vm1498_vm14 = vcmp.gt.s32.totalorder %v1720_v5, 5 }
 0x2a3   :  { %1576 = vpow2.f32 %v1479_v11 }
 0x2a4   :  { %1578 = vpow2.f32 %v1480_v4 }
 0x2a5   :  { %v667_v12 = vpop.f32.mrf.mxu3  ;;  %v647_v4 = vpop.f32.mrf.mxu2 }
 0x2a6   :  { %v673_v2 = vadd.f32 %v1478_v3, %v667_v12  ;;  %v905_v3 = vsel %vm1490_vm13, 1, %v3379_v1  ;;  %v1070_v12 = vsel %vm1498_vm14, 1, %v3379_v1 }
 0x2a7   :  { %907 = vperm.xlu2 %1527, %v905_v3  }
 0x2a8   :  { %v1481_v0 = vmul.f32 -1.442695, %v673_v2 }
 0x2a9   :  { %v1577_v47 = vpop.eup %1576 }
 0x2aa   :  { %v1579_v43 = vpop.eup %1578  ;;  %v677_v39 = vadd.f32 1.0, %v1577_v47  ;;  %1580 = vpow2.f32 %v1481_v0  ;;  %v672_v0 = vadd.f32 %v1477_v7, %v647_v4 }
 0x2ab   :  { %v696_v35 = vadd.f32 1.0, %v1579_v43 }
 0x2ac   :  { %1582 = vrcp.f32 %v677_v39  ;;  %v689_v32 = vand.u32 2147483648, %v677_v39  ;;  %v687_v28 = vand.u32 2147483647, %v677_v39  ;;  %vm683_vm1 = vweird.f32 %v677_v39 }
 0x2ad   :  { %1584 = vrcp.f32 %v696_v35  ;;  %v708_v30 = vand.u32 2147483648, %v696_v35  ;;  %v706_v3 = vand.u32 2147483647, %v696_v35  ;;  %vm702_vm2 = vweird.f32 %v696_v35 }
 0x2ae   :  { %v690_v4 = vor.u32 1.1754944e-38, %v689_v32  ;;  %vm688_vm5 = vcmp.eq.f32.partialorder %v687_v28, 8.507059e+37 }
 0x2af   :  { %1072 = vperm.xlu2 %1527, %v1070_v12   ;;  %v709_v1 = vor.u32 1.1754944e-38, %v708_v30  ;;  %vm707_vm6 = vcmp.eq.f32.partialorder %v706_v3, 8.507059e+37 }
 0x2b0   :  { %v1581_v2 = vpop.eup %1580 }
 0x2b1   :  { %v716_v8 = vadd.f32 1.0, %v1581_v2 }
 0x2b2   :  { %v1583_v47 = vpop.eup %1582 }
 0x2b3   :  { %v1585_v43 = vpop.eup %1584  ;;  %v679_v9 = vmul.f32 %v1583_v47, %v677_v39  ;;  %1586 = vrcp.f32 %v716_v8  ;;  %vm684_vm15 = vweird.f32 %v1583_v47  ;;  %v743_v39 = vpop.permute.xlu1 %742  ;;  %vm722_vm9 = vweird.f32 %v716_v8 }
 0x2b4   :  { %v698_v10 = vmul.f32 %v1585_v43, %v696_v35  ;;  %1588 = vtanh.f32 %v672_v0  ;;  %vm703_vm0 = vweird.f32 %v1585_v43  ;;  %vm685_vm3 = vmor %vm683_vm1, %vm684_vm15  ;;  %vm744_vm7 = vcmp.eq.s32.totalorder %v743_v39, 1  ;;  %v3432_v39 = vld [vmem:[#allocation21_spill] sm:$0xff] }
 0x2b5   :  { %v680_v11 = vsub.f32 1.0, %v679_v9  ;;  %vm704_vm4 = vmor %vm702_vm2, %vm703_vm0  ;;  %v726_v30 = vand.u32 2147483647, %v716_v8 }
 0x2b6   :  { %v699_v14 = vsub.f32 1.0, %v698_v10 }
 0x2b7   :  { %v681_v29 = vmul.f32 %v1583_v47, %v680_v11  ;;  %vm727_vm11 = vcmp.eq.f32.partialorder %v726_v30, 8.507059e+37  ;;  %v3436_v30 = vld [vmem:[#allocation36_spill] sm:$0xff] }
 0x2b8   :  { %v700_v26 = vmul.f32 %v1585_v43, %v699_v14 }
 0x2b9   :  { %v1587_v7 = vpop.eup %1586  ;;  %v682_v5 = vadd.f32 %v1583_v47, %v681_v29 }
 0x2ba   :  { %v701_v2 = vadd.f32 %v1585_v43, %v700_v26  ;;  %v718_v9 = vmul.f32 %v1587_v7, %v716_v8  ;;  %v1589_v0 = vpop.eup %1588  ;;  %vm723_vm8 = vweird.f32 %v1587_v7  ;;  %v728_v26 = vand.u32 2147483648, %v716_v8  ;;  %v3420_v8 = vld [vmem:[#allocation12_spill] sm:$0xff] }
 0x2bb   :  { %v686_v10 = vsel %vm685_vm3, %v1583_v47, %v682_v5  ;;  %vm724_vm10 = vmor %vm722_vm9, %vm723_vm8 }
 0x2bc   :  { %v691_v11 = vsel %vm688_vm5, %v690_v4, %v686_v10  ;;  %v705_v25 = vsel %vm704_vm4, %v1585_v43, %v701_v2  ;;  %v719_v14 = vsub.f32 1.0, %v718_v9  ;;  %v3422_v4 = vld [vmem:[#allocation14_spill] sm:$0xff]  ;;  %v3424_v9 = vld [vmem:[#allocation15_spill] sm:$0xff]  ;;  %v3426_v10 = vld [vmem:[#allocation17_spill] sm:$0xff] }
 0x2bd   :  { %v710_v24 = vsel %vm707_vm6, %v709_v1, %v705_v25  ;;  %v733_v22 = vmul.f32 %v1589_v0, %v691_v11  ;;  %v729_v25 = vor.u32 1.1754944e-38, %v728_v26  ;;  %v3423_v2 = vld [vmem:[#allocation30_spill] sm:$0xff]  ;;  %v3425_v1 = vld [vmem:[#allocation16_spill] sm:$0xff] }
 0x2be   :  { %v732_v12 = vmul.f32 %v710_v24, %v2623_v6  ;;  %v720_v29 = vmul.f32 %v1587_v7, %v719_v14  ;;  %v3427_v0 = vld [vmem:[#allocation34_spill] sm:$0xff]  ;;  %v3429_v14 = vld [vmem:[#allocation19_spill] sm:$0xff]  ;;  %v3435_v26 = vld [vmem:[#allocation28_spill] sm:$0xff] }
 0x2bf   :  { %v3428_v11 = vld [vmem:[#allocation18_spill] sm:$0xff] }
 0x2c0   :  { %v734_v35 = vadd.f32 %v733_v22, %v732_v12  ;;  %v721_v32 = vadd.f32 %v1587_v7, %v720_v29  ;;  %v3430_v12 = vld [vmem:[#allocation20_spill] sm:$0xff]  ;;  %v3431_v29 = vld [vmem:[#allocation35_spill] sm:$0xff] }
 0x2c2   :  { %1590 = vtanh.f32 %v734_v35  ;;  %v2948_v28 = vsel %vm744_vm7, %v734_v35, %v2623_v6  ;;  %v725_v47 = vsel %vm724_vm10, %v1587_v7, %v721_v32  ;;  %v3418_v6 = vld [vmem:[#allocation11_spill] sm:$0xff]  ;;  %v3421_v7 = vld [vmem:[#allocation13_spill] sm:$0xff]  ;;  %v3433_v35 = vld [vmem:[#allocation22_spill] sm:$0xff] }
 0x2c3   :  { %v730_v24 = vsel %vm727_vm11, %v729_v25, %v725_v47  ;;  %v3434_v32 = vld [vmem:[#allocation23_spill] sm:$0xff]  ;;  %v3437_v47 = vld [vmem:[#allocation24_spill] sm:$0xff]  ;;  %v3438_v25 = vld [vmem:[#allocation26_spill] sm:$0xff] }
 0x2c8   :  { %v1591_v43 = vpop.eup %1590 }
 0x2c9   :  { %v736_v3 = vmul.f32 %v1591_v43, %v730_v24  ;;  %v3439_v43 = vld [vmem:[#allocation27_spill] sm:$0xff]  ;;  %v3440_v24 = vld [vmem:[#allocation37_spill] sm:$0xff] }
 0x2cb   :  { %v2952_v22 = vsel %vm744_vm7, %v736_v3, %v2627_v13  ;;  %v747_v5 = vsel %vm744_vm7, %v736_v3, 0.0  ;;  %v3419_v13 = vld [vmem:[#allocation25_spill] sm:$0xff] }
 0x2cc   :  { %749 = vst [vmem:[#allocation4 + $0x18] sm:$0xff] %v747_v5  ;;  %771 = vmatmul.f32.vlgmr.msra.gmra.mxu0 %v2952_v22  ;;  %791 = vmatmul.f32.vlgmr.msra.gmra.mxu1 %v2952_v22  ;;  %v3441_v3 = vld [vmem:[#allocation29_spill] sm:$0xff]  ;;  %v3442_v5 = vld [vmem:[#allocation31_spill] sm:$0xff] }
 0x2cd   :  { %811 = vmatmul.f32.vlgmr.msra.gmra.mxu2 %v2952_v22  ;;  %831 = vmatmul.f32.vlgmr.msra.gmra.mxu3 %v2952_v22 }
 0x2ce   :  { %1085 = vmatpush.msra.mxu0 %v2457_v60  ;;  %1105 = vmatpush.msra.mxu1 %v2463_v34 }
 0x2cf   :  { %1125 = vmatpush.msra.mxu2 %v2639_v54  ;;  %1145 = vmatpush.msra.mxu3 %v2470_v46 }
 0x2d0   :  { %1086 = vmatpush.msra.mxu0 %v2476_v53  ;;  %1106 = vmatpush.msra.mxu1 %v2482_v55 }
 0x2d1   :  { %1126 = vmatpush.msra.mxu2 %v2648_v33  ;;  %1146 = vmatpush.msra.mxu3 %v2489_v17 }
 0x2d2   :  { %1087 = vmatpush.msra.mxu0 %v2495_v38  ;;  %1107 = vmatpush.msra.mxu1 %v2501_v45 }
 0x2d3   :  { %1127 = vmatpush.msra.mxu2 %v2657_v15  ;;  %1147 = vmatpush.msra.mxu3 %v2508_v19 }
 0x2d4   :  { %1088 = vmatpush.msra.mxu0 %v2514_v42  ;;  %1108 = vmatpush.msra.mxu1 %v2520_v56 }
 0x2d5   :  { %1128 = vmatpush.msra.mxu2 %v2666_v16  ;;  %1148 = vmatpush.msra.mxu3 %v2527_v23 }
 0x2d6   :  { %1089 = vmatpush.msra.mxu0 %v2533_v52  ;;  %1109 = vmatpush.msra.mxu1 %v2539_v37 }
 0x2d7   :  { %1129 = vmatpush.msra.mxu2 %v2675_v18  ;;  %1149 = vmatpush.msra.mxu3 %v2546_v27 }
 0x2d8   :  { %1090 = vmatpush.msra.mxu0 %v2552_v59  ;;  %1110 = vmatpush.msra.mxu1 %v2558_v41 }
 0x2d9   :  { %1130 = vmatpush.msra.mxu2 %v2684_v57  ;;  %1150 = vmatpush.msra.mxu3 %v2565_v31 }
 0x2da   :  { %1091 = vmatpush.msra.mxu0 %v2691_v61  ;;  %1111 = vmatpush.msra.mxu1 %v2697_v49 }
 0x2db   :  { %1131 = vmatpush.msra.mxu2 %v2703_v50  ;;  %1151 = vmatpush.msra.mxu3 %v2709_v62 }
 0x2dc   :  { %1092 = vmatpush.msra.mxu0 %v2715_v51  ;;  %1112 = vmatpush.msra.mxu1 %v2721_v40 }
 0x2dd   :  { %1132 = vmatpush.msra.mxu2 %v2727_v48  ;;  %1152 = vmatpush.msra.mxu3 %v2733_v63 }
 0x2de   :  { %1093 = vmatpush.msra.mxu0 %v2739_v36  ;;  %1113 = vmatpush.msra.mxu1 %v2745_v44 }
 0x2df   :  { %1133 = vmatpush.msra.mxu2 %v2751_v58  ;;  %1153 = vmatpush.msra.mxu3 %v2757_v20 }
 0x2e0   :  { %1094 = vmatpush.msra.mxu0 %v2763_v21  ;;  %1114 = vmatpush.msra.mxu1 %v3418_v6 }
 0x2e1   :  { %1134 = vmatpush.msra.mxu2 %v3419_v13  ;;  %1154 = vmatpush.msra.mxu3 %v3420_v8 }
 0x2e2   :  { %1095 = vmatpush.msra.mxu0 %v3421_v7  ;;  %1115 = vmatpush.msra.mxu1 %v3422_v4 }
 0x2e3   :  { %1135 = vmatpush.msra.mxu2 %v3423_v2  ;;  %1155 = vmatpush.msra.mxu3 %v3424_v9 }
 0x2e4   :  { %1096 = vmatpush.msra.mxu0 %v3425_v1  ;;  %1116 = vmatpush.msra.mxu1 %v3426_v10 }
 0x2e5   :  { %1136 = vmatpush.msra.mxu2 %v3427_v0  ;;  %1156 = vmatpush.msra.mxu3 %v3428_v11 }
 0x2e6   :  { %1097 = vmatpush.msra.mxu0 %v3429_v14  ;;  %1117 = vmatpush.msra.mxu1 %v3430_v12 }
 0x2e7   :  { %1137 = vmatpush.msra.mxu2 %v3431_v29  ;;  %1157 = vmatpush.msra.mxu3 %v3432_v39  ;;  %v3443_v39 = vld [vmem:[#allocation32_spill] sm:$0xff] }
 0x2e8   :  { %1098 = vmatpush.msra.mxu0 %v3433_v35  ;;  %1118 = vmatpush.msra.mxu1 %v3434_v32  ;;  %v3444_v35 = vld [vmem:[#allocation38_spill] sm:$0xff] }
 0x2e9   :  { %1138 = vmatpush.msra.mxu2 %v3435_v26  ;;  %1158 = vmatpush.msra.mxu3 %v3436_v30  ;;  %v1483_v30 = vld [vmem:[%s3193_s1 + $0x80] sm:$0xff] }
 0x2ea   :  { %1099 = vmatpush.msra.mxu0 %v3437_v47  ;;  %1119 = vmatpush.msra.mxu1 %v3438_v25  ;;  %v1484_v25 = vld [vmem:[%s3193_s1 + $0x88] sm:$0xff] }
 0x2eb   :  { %1139 = vmatpush.msra.mxu2 %v3439_v43  ;;  %1159 = vmatpush.msra.mxu3 %v3440_v24 }
 0x2ec   :  { %1100 = vmatpush.msra.mxu0 %v3441_v3  ;;  %1120 = vmatpush.msra.mxu1 %v3442_v5 }
 0x2ed   :  { %1140 = vmatpush.msra.mxu2 %v3443_v39  ;;  %1160 = vmatpush.msra.mxu3 %v3444_v35  ;;  %v1486_v39 = vld [vmem:[%s3193_s1 + $0x98] sm:$0xff] }
 0x301   :  { %v908_v8 = vpop.permute.xlu2 %907 }
 0x302   :  { %vm909_vm4 = vcmp.eq.s32.totalorder %v908_v8, 1 }
 0x349   :  { %v772_v47 = vpop.f32.mrf.mxu0  ;;  %v792_v43 = vpop.f32.mrf.mxu1 }
 0x34a   :  { %v835_v26 = vadd.f32 %v1483_v30, %v772_v47  ;;  %v836_v24 = vadd.f32 %v1484_v25, %v792_v43 }
 0x34c   :  { %v1487_v32 = vmul.f32 -1.442695, %v835_v26  ;;  %v1488_v3 = vmul.f32 -1.442695, %v836_v24  ;;  %v1485_v26 = vld [vmem:[%s3193_s1 + $0x90] sm:$0xff] }
 0x34e   :  { %1592 = vpow2.f32 %v1487_v32 }
 0x34f   :  { %1594 = vpow2.f32 %v1488_v3 }
 0x350   :  { %v832_v35 = vpop.f32.mrf.mxu3  ;;  %v812_v32 = vpop.f32.mrf.mxu2 }
 0x351   :  { %v838_v5 = vadd.f32 %v1486_v39, %v832_v35  ;;  %v837_v43 = vadd.f32 %v1485_v26, %v812_v32 }
 0x353   :  { %v1489_v29 = vmul.f32 -1.442695, %v838_v5 }
 0x354   :  { %v1593_v12 = vpop.eup %1592 }
 0x355   :  { %v1595_v14 = vpop.eup %1594  ;;  %v842_v11 = vadd.f32 1.0, %v1593_v12  ;;  %1596 = vpow2.f32 %v1489_v29 }
 0x356   :  { %v861_v0 = vadd.f32 1.0, %v1595_v14 }
 0x357   :  { %1598 = vrcp.f32 %v842_v11  ;;  %v854_v12 = vand.u32 2147483648, %v842_v11  ;;  %v852_v29 = vand.u32 2147483647, %v842_v11  ;;  %vm848_vm14 = vweird.f32 %v842_v11 }
 0x358   :  { %1600 = vrcp.f32 %v861_v0  ;;  %v873_v10 = vand.u32 2147483648, %v861_v0  ;;  %v871_v9 = vand.u32 2147483647, %v861_v0  ;;  %vm867_vm0 = vweird.f32 %v861_v0 }
 0x359   :  { %v855_v26 = vor.u32 1.1754944e-38, %v854_v12  ;;  %vm853_vm1 = vcmp.eq.f32.partialorder %v852_v29, 8.507059e+37 }
 0x35a   :  { %vm872_vm3 = vcmp.eq.f32.partialorder %v871_v9, 8.507059e+37 }
 0x35b   :  { %v1597_v30 = vpop.eup %1596 }
 0x35c   :  { %v881_v47 = vadd.f32 1.0, %v1597_v30 }
 0x35d   :  { %v1599_v25 = vpop.eup %1598 }
 0x35e   :  { %v1601_v24 = vpop.eup %1600  ;;  %v844_v3 = vmul.f32 %v1599_v25, %v842_v11  ;;  %1602 = vrcp.f32 %v881_v47  ;;  %vm849_vm12 = vweird.f32 %v1599_v25  ;;  %vm887_vm6 = vweird.f32 %v881_v47 }
 0x35f   :  { %v863_v39 = vmul.f32 %v1601_v24, %v861_v0  ;;  %1604 = vtanh.f32 %v837_v43  ;;  %vm868_vm13 = vweird.f32 %v1601_v24  ;;  %vm850_vm15 = vmor %vm848_vm14, %vm849_vm12 }
 0x360   :  { %v845_v35 = vsub.f32 1.0, %v844_v3  ;;  %vm869_vm2 = vmor %vm867_vm0, %vm868_vm13  ;;  %v874_v3 = vor.u32 1.1754944e-38, %v873_v10 }
 0x361   :  { %v864_v5 = vsub.f32 1.0, %v863_v39 }
 0x362   :  { %v846_v14 = vmul.f32 %v1599_v25, %v845_v35 }
 0x363   :  { %v865_v1 = vmul.f32 %v1601_v24, %v864_v5 }
 0x364   :  { %v1603_v2 = vpop.eup %1602  ;;  %v847_v4 = vadd.f32 %v1599_v25, %v846_v14 }
 0x365   :  { %v883_v32 = vmul.f32 %v1603_v2, %v881_v47  ;;  %v866_v30 = vadd.f32 %v1601_v24, %v865_v1  ;;  %v1605_v43 = vpop.eup %1604  ;;  %vm888_vm5 = vweird.f32 %v1603_v2  ;;  %v893_v1 = vand.u32 2147483648, %v881_v47 }
 0x366   :  { %v851_v7 = vsel %vm850_vm15, %v1599_v25, %v847_v4  ;;  %vm889_vm7 = vmor %vm887_vm6, %vm888_vm5 }
 0x367   :  { %v856_v39 = vsel %vm853_vm1, %v855_v26, %v851_v7  ;;  %v884_v35 = vsub.f32 1.0, %v883_v32  ;;  %v870_v13 = vsel %vm869_vm2, %v1601_v24, %v866_v30  ;;  %v891_v7 = vand.u32 2147483647, %v881_v47  ;;  %v1493_v32 = vld [vmem:[%s3193_s1 + $0xb0] sm:$0xff] }
 0x368   :  { %v898_v5 = vmul.f32 %v1605_v43, %v856_v39  ;;  %v875_v6 = vsel %vm872_vm3, %v874_v3, %v870_v13  ;;  %v894_v9 = vor.u32 1.1754944e-38, %v893_v1 }
 0x369   :  { %v885_v21 = vmul.f32 %v1603_v2, %v884_v35  ;;  %v897_v11 = vmul.f32 %v875_v6, %v2948_v28  ;;  %vm892_vm8 = vcmp.eq.f32.partialorder %v891_v7, 8.507059e+37 }
 0x36b   :  { %v899_v12 = vadd.f32 %v898_v5, %v897_v11  ;;  %v886_v14 = vadd.f32 %v1603_v2, %v885_v21 }
 0x36d   :  { %1606 = vtanh.f32 %v899_v12  ;;  %v3038_v4 = vsel %vm909_vm4, %v899_v12, %v2948_v28  ;;  %v890_v10 = vsel %vm889_vm7, %v1603_v2, %v886_v14  ;;  %v1494_v28 = vld [vmem:[%s3193_s1 + $0xb8] sm:$0xff] }
 0x36e   :  { %v895_v0 = vsel %vm892_vm8, %v894_v9, %v890_v10 }
 0x373   :  { %v1607_v13 = vpop.eup %1606 }
 0x374   :  { %v901_v25 = vmul.f32 %v1607_v13, %v895_v0 }
 0x376   :  { %v3042_v6 = vsel %vm909_vm4, %v901_v25, %v2952_v22  ;;  %v912_v21 = vsel %vm909_vm4, %v901_v25, 0.0 }
 0x377   :  { %914 = vst [vmem:[#allocation4 + $0x20] sm:$0xff] %v912_v21  ;;  %936 = vmatmul.f32.vlgmr.msrb.gmra.mxu0 %v3042_v6  ;;  %956 = vmatmul.f32.vlgmr.msrb.gmra.mxu1 %v3042_v6 }
 0x378   :  { %976 = vmatmul.f32.vlgmr.msrb.gmra.mxu2 %v3042_v6  ;;  %996 = vmatmul.f32.vlgmr.msrb.gmra.mxu3 %v3042_v6 }
 0x379   :  { %1250 = vmatpush.msrb.mxu0 %v2457_v60  ;;  %1270 = vmatpush.msrb.mxu1 %v2463_v34  ;;  %v3445_v60 = vld [vmem:[#allocation10_spill] sm:$0xff]  ;;  %v3446_v34 = vld [vmem:[#allocation11_spill] sm:$0xff] }
 0x37a   :  { %1290 = vmatpush.msrb.mxu2 %v2639_v54  ;;  %1310 = vmatpush.msrb.mxu3 %v2470_v46  ;;  %v3447_v46 = vld [vmem:[#allocation25_spill] sm:$0xff]  ;;  %v3463_v54 = vld [vmem:[#allocation28_spill] sm:$0xff] }
 0x37b   :  { %1251 = vmatpush.msrb.mxu0 %v2476_v53  ;;  %1271 = vmatpush.msrb.mxu1 %v2482_v55  ;;  %v3448_v53 = vld [vmem:[#allocation12_spill] sm:$0xff]  ;;  %v3449_v55 = vld [vmem:[#allocation13_spill] sm:$0xff] }
 0x37c   :  { %1291 = vmatpush.msrb.mxu2 %v2648_v33  ;;  %1311 = vmatpush.msrb.mxu3 %v2489_v17  ;;  %v3450_v17 = vld [vmem:[#allocation14_spill] sm:$0xff]  ;;  %v3464_v33 = vld [vmem:[#allocation36_spill] sm:$0xff] }
 0x37d   :  { %1252 = vmatpush.msrb.mxu0 %v2495_v38  ;;  %1272 = vmatpush.msrb.mxu1 %v2501_v45  ;;  %v3451_v38 = vld [vmem:[#allocation30_spill] sm:$0xff]  ;;  %v3452_v45 = vld [vmem:[#allocation15_spill] sm:$0xff] }
 0x37e   :  { %1292 = vmatpush.msrb.mxu2 %v2657_v15  ;;  %1312 = vmatpush.msrb.mxu3 %v2508_v19  ;;  %v3453_v19 = vld [vmem:[#allocation16_spill] sm:$0xff] }
 0x37f   :  { %1253 = vmatpush.msrb.mxu0 %v2514_v42  ;;  %1273 = vmatpush.msrb.mxu1 %v2520_v56  ;;  %v3454_v42 = vld [vmem:[#allocation17_spill] sm:$0xff]  ;;  %v3455_v56 = vld [vmem:[#allocation34_spill] sm:$0xff]  ;;  %v3465_v15 = vld [vmem:[#allocation24_spill] sm:$0xff] }
 0x380   :  { %1293 = vmatpush.msrb.mxu2 %v2666_v16  ;;  %1313 = vmatpush.msrb.mxu3 %v2527_v23  ;;  %v3456_v23 = vld [vmem:[#allocation18_spill] sm:$0xff] }
 0x381   :  { %1254 = vmatpush.msrb.mxu0 %v2533_v52  ;;  %1274 = vmatpush.msrb.mxu1 %v2539_v37  ;;  %v3457_v52 = vld [vmem:[#allocation19_spill] sm:$0xff]  ;;  %v3458_v37 = vld [vmem:[#allocation20_spill] sm:$0xff]  ;;  %v3466_v16 = vld [vmem:[#allocation26_spill] sm:$0xff] }
 0x382   :  { %1294 = vmatpush.msrb.mxu2 %v2675_v18  ;;  %1314 = vmatpush.msrb.mxu3 %v2546_v27  ;;  %v3459_v27 = vld [vmem:[#allocation35_spill] sm:$0xff] }
 0x383   :  { %1255 = vmatpush.msrb.mxu0 %v2552_v59  ;;  %1275 = vmatpush.msrb.mxu1 %v2558_v41  ;;  %v3460_v59 = vld [vmem:[#allocation21_spill] sm:$0xff]  ;;  %v3461_v41 = vld [vmem:[#allocation22_spill] sm:$0xff]  ;;  %v3467_v18 = vld [vmem:[#allocation27_spill] sm:$0xff] }
 0x384   :  { %1295 = vmatpush.msrb.mxu2 %v2684_v57  ;;  %1315 = vmatpush.msrb.mxu3 %v2565_v31  ;;  %v3462_v31 = vld [vmem:[#allocation23_spill] sm:$0xff]  ;;  %v3468_v57 = vld [vmem:[#allocation37_spill] sm:$0xff] }
 0x385   :  { %1256 = vmatpush.msrb.mxu0 %v2691_v61  ;;  %1276 = vmatpush.msrb.mxu1 %v2697_v49  ;;  %v3469_v61 = vld [vmem:[#allocation29_spill] sm:$0xff]  ;;  %v3470_v49 = vld [vmem:[#allocation31_spill] sm:$0xff] }
 0x386   :  { %1296 = vmatpush.msrb.mxu2 %v2703_v50  ;;  %1316 = vmatpush.msrb.mxu3 %v2709_v62  ;;  %v3471_v50 = vld [vmem:[#allocation32_spill] sm:$0xff]  ;;  %v3472_v62 = vld [vmem:[#allocation38_spill] sm:$0xff] }
 0x387   :  { %1257 = vmatpush.msrb.mxu0 %v2715_v51  ;;  %1277 = vmatpush.msrb.mxu1 %v2721_v40  ;;  %v1491_v51 = vld [vmem:[%s3193_s1 + $0xa0] sm:$0xff]  ;;  %v1492_v40 = vld [vmem:[%s3193_s1 + $0xa8] sm:$0xff] }
 0x388   :  { %1297 = vmatpush.msrb.mxu2 %v2727_v48  ;;  %1317 = vmatpush.msrb.mxu3 %v2733_v63 }
 0x389   :  { %1258 = vmatpush.msrb.mxu0 %v2739_v36  ;;  %1278 = vmatpush.msrb.mxu1 %v2745_v44 }
 0x38a   :  { %1298 = vmatpush.msrb.mxu2 %v2751_v58  ;;  %1318 = vmatpush.msrb.mxu3 %v2757_v20 }
 0x38b   :  { %1259 = vmatpush.msrb.mxu0 %v3445_v60  ;;  %1279 = vmatpush.msrb.mxu1 %v3446_v34 }
 0x38c   :  { %1299 = vmatpush.msrb.mxu2 %v3447_v46  ;;  %1319 = vmatpush.msrb.mxu3 %v3448_v53 }
 0x38d   :  { %1260 = vmatpush.msrb.mxu0 %v3449_v55  ;;  %1280 = vmatpush.msrb.mxu1 %v3450_v17 }
 0x38e   :  { %1300 = vmatpush.msrb.mxu2 %v3451_v38  ;;  %1320 = vmatpush.msrb.mxu3 %v3452_v45 }
 0x38f   :  { %1261 = vmatpush.msrb.mxu0 %v3453_v19  ;;  %1281 = vmatpush.msrb.mxu1 %v3454_v42 }
 0x390   :  { %1301 = vmatpush.msrb.mxu2 %v3455_v56  ;;  %1321 = vmatpush.msrb.mxu3 %v3456_v23 }
 0x391   :  { %1262 = vmatpush.msrb.mxu0 %v3457_v52  ;;  %1282 = vmatpush.msrb.mxu1 %v3458_v37  ;;  %v1073_v52 = vpop.permute.xlu2 %1072 }
 0x392   :  { %1302 = vmatpush.msrb.mxu2 %v3459_v27  ;;  %1322 = vmatpush.msrb.mxu3 %v3460_v59  ;;  %vm1074_vm1 = vcmp.eq.s32.totalorder %v1073_v52, 1 }
 0x393   :  { %1263 = vmatpush.msrb.mxu0 %v3461_v41  ;;  %1283 = vmatpush.msrb.mxu1 %v3462_v31 }
 0x394   :  { %1303 = vmatpush.msrb.mxu2 %v3463_v54  ;;  %1323 = vmatpush.msrb.mxu3 %v3464_v33 }
 0x395   :  { %1264 = vmatpush.msrb.mxu0 %v3465_v15  ;;  %1284 = vmatpush.msrb.mxu1 %v3466_v16 }
 0x396   :  { %1304 = vmatpush.msrb.mxu2 %v3467_v18  ;;  %1324 = vmatpush.msrb.mxu3 %v3468_v57 }
 0x397   :  { %1265 = vmatpush.msrb.mxu0 %v3469_v61  ;;  %1285 = vmatpush.msrb.mxu1 %v3470_v49 }
 0x398   :  { %1305 = vmatpush.msrb.mxu2 %v3471_v50  ;;  %1325 = vmatpush.msrb.mxu3 %v3472_v62 }
 0x3f4   :  { %v937_v48 = vpop.f32.mrf.mxu0  ;;  %v957_v63 = vpop.f32.mrf.mxu1 }
 0x3f5   :  { %v1000_v36 = vadd.f32 %v1491_v51, %v937_v48  ;;  %v1001_v44 = vadd.f32 %v1492_v40, %v957_v63 }
 0x3f7   :  { %v1495_v58 = vmul.f32 -1.442695, %v1000_v36  ;;  %v1496_v20 = vmul.f32 -1.442695, %v1001_v44  ;;  %v1502_v44 = vld [vmem:[%s3193_s1 + $0xd8] sm:$0xff] }
 0x3f9   :  { %1608 = vpow2.f32 %v1495_v58 }
 0x3fa   :  { %1610 = vpow2.f32 %v1496_v20 }
 0x3fb   :  { %v997_v22 = vpop.f32.mrf.mxu3  ;;  %v977_v30 = vpop.f32.mrf.mxu2 }
 0x3fc   :  { %v1003_v8 = vadd.f32 %v1494_v28, %v997_v22  ;;  %v1002_v35 = vadd.f32 %v1493_v32, %v977_v30 }
 0x3fe   :  { %v1497_v2 = vmul.f32 -1.442695, %v1003_v8 }
 0x3ff   :  { %v1609_v47 = vpop.eup %1608 }
 0x400   :  { %v1611_v24 = vpop.eup %1610  ;;  %v1007_v29 = vadd.f32 1.0, %v1609_v47  ;;  %1612 = vpow2.f32 %v1497_v2 }
 0x401   :  { %v1026_v26 = vadd.f32 1.0, %v1611_v24  ;;  %v1501_v24 = vld [vmem:[%s3193_s1 + $0xd0] sm:$0xff] }
 0x402   :  { %1614 = vrcp.f32 %v1007_v29  ;;  %v1019_v7 = vand.u32 2147483648, %v1007_v29  ;;  %v1017_v13 = vand.u32 2147483647, %v1007_v29  ;;  %vm1013_vm11 = vweird.f32 %v1007_v29 }
 0x403   :  { %1616 = vrcp.f32 %v1026_v26  ;;  %v1038_v10 = vand.u32 2147483648, %v1026_v26  ;;  %v1036_v25 = vand.u32 2147483647, %v1026_v26  ;;  %vm1032_vm12 = vweird.f32 %v1026_v26 }
 0x404   :  { %v1020_v34 = vor.u32 1.1754944e-38, %v1019_v7  ;;  %vm1018_vm15 = vcmp.eq.f32.partialorder %v1017_v13, 8.507059e+37 }
 0x405   :  { %v1039_v55 = vor.u32 1.1754944e-38, %v1038_v10  ;;  %vm1037_vm0 = vcmp.eq.f32.partialorder %v1036_v25, 8.507059e+37 }
 0x406   :  { %v1613_v3 = vpop.eup %1612 }
 0x407   :  { %v1046_v43 = vadd.f32 1.0, %v1613_v3 }
 0x408   :  { %v1615_v39 = vpop.eup %1614 }
 0x409   :  { %v1617_v5 = vpop.eup %1616  ;;  %v1009_v11 = vmul.f32 %v1615_v39, %v1007_v29  ;;  %1618 = vrcp.f32 %v1046_v43  ;;  %vm1014_vm9 = vweird.f32 %v1615_v39  ;;  %v1058_v31 = vand.u32 2147483648, %v1046_v43 }
 0x40a   :  { %v1028_v12 = vmul.f32 %v1617_v5, %v1026_v26  ;;  %1620 = vtanh.f32 %v1002_v35  ;;  %vm1033_vm10 = vweird.f32 %v1617_v5  ;;  %vm1015_vm13 = vmor %vm1013_vm11, %vm1014_vm9  ;;  %vm1052_vm3 = vweird.f32 %v1046_v43 }
 0x40b   :  { %v1010_v14 = vsub.f32 1.0, %v1009_v11  ;;  %vm1034_vm14 = vmor %vm1032_vm12, %vm1033_vm10  ;;  %v1056_v33 = vand.u32 2147483647, %v1046_v43  ;;  %v1059_v16 = vor.u32 1.1754944e-38, %v1058_v31 }
 0x40c   :  { %v1029_v1 = vsub.f32 1.0, %v1028_v12 }
 0x40d   :  { %v1011_v9 = vmul.f32 %v1615_v39, %v1010_v14  ;;  %vm1057_vm5 = vcmp.eq.f32.partialorder %v1056_v33, 8.507059e+37 }
 0x40e   :  { %v1030_v0 = vmul.f32 %v1617_v5, %v1029_v1 }
 0x40f   :  { %v1619_v21 = vpop.eup %1618  ;;  %v1012_v60 = vadd.f32 %v1615_v39, %v1011_v9 }
 0x410   :  { %v1031_v46 = vadd.f32 %v1617_v5, %v1030_v0  ;;  %v1048_v53 = vmul.f32 %v1619_v21, %v1046_v43  ;;  %v1621_v38 = vpop.eup %1620  ;;  %vm1053_vm2 = vweird.f32 %v1619_v21 }
 0x411   :  { %v1016_v17 = vsel %vm1015_vm13, %v1615_v39, %v1012_v60  ;;  %vm1054_vm4 = vmor %vm1052_vm3, %vm1053_vm2 }
 0x412   :  { %v1021_v45 = vsel %vm1018_vm15, %v1020_v34, %v1016_v17  ;;  %v1035_v19 = vsel %vm1034_vm14, %v1617_v5, %v1031_v46  ;;  %v1049_v42 = vsub.f32 1.0, %v1048_v53 }
 0x413   :  { %v1040_v56 = vsel %vm1037_vm0, %v1039_v55, %v1035_v19  ;;  %v1063_v23 = vmul.f32 %v1621_v38, %v1021_v45 }
 0x414   :  { %v1062_v37 = vmul.f32 %v1040_v56, %v3038_v4  ;;  %v1050_v27 = vmul.f32 %v1619_v21, %v1049_v42  ;;  %v1238_v42 = vpop.permute.xlu0 %1237 }
 0x415   :  { %vm1239_vm14 = vcmp.eq.s32.totalorder %v1238_v42, 1 }
 0x416   :  { %v1064_v59 = vadd.f32 %v1063_v23, %v1062_v37  ;;  %v1051_v41 = vadd.f32 %v1619_v21, %v1050_v27 }
 0x418   :  { %1622 = vtanh.f32 %v1064_v59  ;;  %v3128_v54 = vsel %vm1074_vm1, %v1064_v59, %v3038_v4  ;;  %v1055_v15 = vsel %vm1054_vm4, %v1619_v21, %v1051_v41  ;;  %v1499_v4 = vld [vmem:[%s3193_s1 + $0xc0] sm:$0xff] }
 0x419   :  { %v1060_v57 = vsel %vm1057_vm5, %v1059_v16, %v1055_v15 }
 0x41e   :  { %v1623_v18 = vpop.eup %1622 }
 0x41f   :  { %v1066_v61 = vmul.f32 %v1623_v18, %v1060_v57 }
 0x421   :  { %v3132_v49 = vsel %vm1074_vm1, %v1066_v61, %v3042_v6  ;;  %v1077_v50 = vsel %vm1074_vm1, %v1066_v61, 0.0  ;;  %v1500_v6 = vld [vmem:[%s3193_s1 + $0xc8] sm:$0xff] }
 0x422   :  { %1079 = vst [vmem:[#allocation4 + $0x28] sm:$0xff] %v1077_v50  ;;  %1101 = vmatmul.f32.vlgmr.msra.gmra.mxu0 %v3132_v49  ;;  %1121 = vmatmul.f32.vlgmr.msra.gmra.mxu1 %v3132_v49 }
 0x423   :  { %1141 = vmatmul.f32.vlgmr.msra.gmra.mxu2 %v3132_v49  ;;  %1161 = vmatmul.f32.vlgmr.msra.gmra.mxu3 %v3132_v49 }
 0x49f   :  { %v1102_v62 = vpop.f32.mrf.mxu0  ;;  %v1122_v51 = vpop.f32.mrf.mxu1 }
 0x4a0   :  { %v1165_v40 = vadd.f32 %v1499_v4, %v1102_v62  ;;  %v1166_v48 = vadd.f32 %v1500_v6, %v1122_v51 }
 0x4a2   :  { %v1503_v63 = vmul.f32 -1.442695, %v1165_v40  ;;  %v1504_v36 = vmul.f32 -1.442695, %v1166_v48  ;;  %v1510_v48 = vld [vmem:[%s3193_s1 + $0xf8] sm:$0xff] }
 0x4a4   :  { %1624 = vpow2.f32 %v1503_v63 }
 0x4a5   :  { %1626 = vpow2.f32 %v1504_v36 }
 0x4a6   :  { %v1162_v58 = vpop.f32.mrf.mxu3  ;;  %v1142_v29 = vpop.f32.mrf.mxu2 }
 0x4a7   :  { %v1168_v20 = vadd.f32 %v1502_v44, %v1162_v58  ;;  %v1167_v3 = vadd.f32 %v1501_v24, %v1142_v29 }
 0x4a9   :  { %v1505_v28 = vmul.f32 -1.442695, %v1168_v20 }
 0x4aa   :  { %v1625_v22 = vpop.eup %1624 }
 0x4ab   :  { %v1627_v8 = vpop.eup %1626  ;;  %v1172_v2 = vadd.f32 1.0, %v1625_v22  ;;  %1628 = vpow2.f32 %v1505_v28 }
 0x4ac   :  { %v1191_v47 = vadd.f32 1.0, %v1627_v8  ;;  %v1509_v8 = vld [vmem:[%s3193_s1 + $0xf0] sm:$0xff] }
 0x4ad   :  { %1630 = vrcp.f32 %v1172_v2  ;;  %v1184_v12 = vand.u32 2147483648, %v1172_v2  ;;  %v1182_v7 = vand.u32 2147483647, %v1172_v2  ;;  %vm1178_vm8 = vweird.f32 %v1172_v2 }
 0x4ae   :  { %1632 = vrcp.f32 %v1191_v47  ;;  %v1203_v14 = vand.u32 2147483648, %v1191_v47  ;;  %v1201_v9 = vand.u32 2147483647, %v1191_v47  ;;  %vm1197_vm9 = vweird.f32 %v1191_v47 }
 0x4af   :  { %v1185_v25 = vor.u32 1.1754944e-38, %v1184_v12  ;;  %vm1183_vm12 = vcmp.eq.f32.partialorder %v1182_v7, 8.507059e+37 }
 0x4b0   :  { %v1204_v34 = vor.u32 1.1754944e-38, %v1203_v14  ;;  %vm1202_vm13 = vcmp.eq.f32.partialorder %v1201_v9, 8.507059e+37 }
 0x4b1   :  { %v1629_v26 = vpop.eup %1628 }
 0x4b2   :  { %v1211_v32 = vadd.f32 1.0, %v1629_v26 }
 0x4b3   :  { %v1631_v30 = vpop.eup %1630 }
 0x4b4   :  { %v1633_v43 = vpop.eup %1632  ;;  %v1174_v39 = vmul.f32 %v1631_v30, %v1172_v2  ;;  %1634 = vrcp.f32 %v1211_v32  ;;  %vm1179_vm6 = vweird.f32 %v1631_v30  ;;  %v1223_v27 = vand.u32 2147483648, %v1211_v32 }
 0x4b5   :  { %v1193_v35 = vmul.f32 %v1633_v43, %v1191_v47  ;;  %1636 = vtanh.f32 %v1167_v3  ;;  %vm1198_vm7 = vweird.f32 %v1633_v43  ;;  %vm1180_vm10 = vmor %vm1178_vm8, %vm1179_vm6  ;;  %vm1217_vm0 = vweird.f32 %v1211_v32 }
 0x4b6   :  { %v1175_v5 = vsub.f32 1.0, %v1174_v39  ;;  %vm1199_vm11 = vmor %vm1197_vm9, %vm1198_vm7  ;;  %v1221_v41 = vand.u32 2147483647, %v1211_v32  ;;  %v1224_v33 = vor.u32 1.1754944e-38, %v1223_v27 }
 0x4b7   :  { %v1194_v11 = vsub.f32 1.0, %v1193_v35 }
 0x4b8   :  { %v1176_v1 = vmul.f32 %v1631_v30, %v1175_v5  ;;  %vm1222_vm2 = vcmp.eq.f32.partialorder %v1221_v41, 8.507059e+37 }
 0x4b9   :  { %v1195_v10 = vmul.f32 %v1633_v43, %v1194_v11 }
 0x4ba   :  { %v1635_v13 = vpop.eup %1634  ;;  %v1177_v0 = vadd.f32 %v1631_v30, %v1176_v1 }
 0x4bb   :  { %v1196_v21 = vadd.f32 %v1633_v43, %v1195_v10  ;;  %v1213_v60 = vmul.f32 %v1635_v13, %v1211_v32  ;;  %v1637_v53 = vpop.eup %1636  ;;  %vm1218_vm15 = vweird.f32 %v1635_v13 }
 0x4bc   :  { %v1181_v46 = vsel %vm1180_vm10, %v1631_v30, %v1177_v0  ;;  %vm1219_vm1 = vmor %vm1217_vm0, %vm1218_vm15 }
 0x4bd   :  { %v1186_v55 = vsel %vm1183_vm12, %v1185_v25, %v1181_v46  ;;  %v1200_v17 = vsel %vm1199_vm11, %v1633_v43, %v1196_v21  ;;  %v1214_v38 = vsub.f32 1.0, %v1213_v60 }
 0x4be   :  { %v1205_v45 = vsel %vm1202_vm13, %v1204_v34, %v1200_v17  ;;  %v1228_v19 = vmul.f32 %v1637_v53, %v1186_v55 }
 0x4bf   :  { %v1227_v56 = vmul.f32 %v1205_v45, %v3128_v54  ;;  %v1215_v23 = vmul.f32 %v1635_v13, %v1214_v38  ;;  %v1403_v38 = vpop.permute.xlu1 %1402 }
 0x4c0   :  { %vm1404_vm11 = vcmp.eq.s32.totalorder %v1403_v38, 1 }
 0x4c1   :  { %v1229_v52 = vadd.f32 %v1228_v19, %v1227_v56  ;;  %v1216_v37 = vadd.f32 %v1635_v13, %v1215_v23 }
 0x4c3   :  { %1638 = vtanh.f32 %v1229_v52  ;;  %v3154_v59 = vsel %vm1239_vm14, %v1229_v52, %v3128_v54  ;;  %v1220_v31 = vsel %vm1219_vm1, %v1635_v13, %v1216_v37  ;;  %v1507_v54 = vld [vmem:[%s3193_s1 + $0xe0] sm:$0xff] }
 0x4c4   :  { %v1225_v16 = vsel %vm1222_vm2, %v1224_v33, %v1220_v31 }
 0x4c9   :  { %v1639_v15 = vpop.eup %1638 }
 0x4ca   :  { %v1231_v18 = vmul.f32 %v1639_v15, %v1225_v16 }
 0x4cc   :  { %v3158_v57 = vsel %vm1239_vm14, %v1231_v18, %v3132_v49  ;;  %v1242_v61 = vsel %vm1239_vm14, %v1231_v18, 0.0  ;;  %v1508_v49 = vld [vmem:[%s3193_s1 + $0xe8] sm:$0xff]  ;;  %s1775_s1 = smov [#allocation6]  }
 0x4cd   :  { %1244 = vst [vmem:[#allocation4 + $0x30] sm:$0xff] %v1242_v61  ;;  %1266 = vmatmul.f32.vlgmr.msrb.gmra.mxu0 %v3158_v57  ;;  %1286 = vmatmul.f32.vlgmr.msrb.gmra.mxu1 %v3158_v57  ;;  %s1437_s13 = sshll.u32 %s1775_s1, 4  ;;  %s1438_s13 = int_to_ptr.vmem [resolvable:$true] %s1437_s13 }
 0x4ce   :  { %1306 = vmatmul.f32.vlgmr.msrb.gmra.mxu2 %v3158_v57  ;;  %1326 = vmatmul.f32.vlgmr.msrb.gmra.mxu3 %v3158_v57 }
 0x54a   :  { %v1267_v50 = vpop.f32.mrf.mxu0  ;;  %v1287_v4 = vpop.f32.mrf.mxu1 }
 0x54b   :  { %v1330_v6 = vadd.f32 %v1507_v54, %v1267_v50  ;;  %v1331_v62 = vadd.f32 %v1508_v49, %v1287_v4 }
 0x54d   :  { %v1511_v51 = vmul.f32 -1.442695, %v1330_v6  ;;  %v1512_v40 = vmul.f32 -1.442695, %v1331_v62 }
 0x54f   :  { %1640 = vpow2.f32 %v1511_v51 }
 0x550   :  { %1642 = vpow2.f32 %v1512_v40 }
 0x551   :  { %v1327_v63 = vpop.f32.mrf.mxu3  ;;  %v1307_v2 = vpop.f32.mrf.mxu2 }
 0x552   :  { %v1333_v36 = vadd.f32 %v1510_v48, %v1327_v63  ;;  %v1332_v26 = vadd.f32 %v1509_v8, %v1307_v2 }
 0x554   :  { %v1513_v44 = vmul.f32 -1.442695, %v1333_v36 }
 0x555   :  { %v1641_v58 = vpop.eup %1640 }
 0x556   :  { %v1643_v20 = vpop.eup %1642  ;;  %v1337_v28 = vadd.f32 1.0, %v1641_v58  ;;  %1644 = vpow2.f32 %v1513_v44 }
 0x557   :  { %v1356_v22 = vadd.f32 1.0, %v1643_v20 }
 0x558   :  { %1646 = vrcp.f32 %v1337_v28  ;;  %v1349_v35 = vand.u32 2147483648, %v1337_v28  ;;  %v1347_v12 = vand.u32 2147483647, %v1337_v28  ;;  %vm1343_vm5 = vweird.f32 %v1337_v28 }
 0x559   :  { %1648 = vrcp.f32 %v1356_v22  ;;  %v1368_v5 = vand.u32 2147483648, %v1356_v22  ;;  %v1366_v1 = vand.u32 2147483647, %v1356_v22  ;;  %vm1362_vm6 = vweird.f32 %v1356_v22 }
 0x55a   :  { %v1350_v9 = vor.u32 1.1754944e-38, %v1349_v35  ;;  %vm1348_vm9 = vcmp.eq.f32.partialorder %v1347_v12, 8.507059e+37 }
 0x55b   :  { %v1369_v25 = vor.u32 1.1754944e-38, %v1368_v5  ;;  %vm1367_vm10 = vcmp.eq.f32.partialorder %v1366_v1, 8.507059e+37 }
 0x55c   :  { %v1645_v47 = vpop.eup %1644 }
 0x55d   :  { %v1376_v24 = vadd.f32 1.0, %v1645_v47 }
 0x55e   :  { %v1647_v29 = vpop.eup %1646 }
 0x55f   :  { %v1649_v32 = vpop.eup %1648  ;;  %v1339_v30 = vmul.f32 %v1647_v29, %v1337_v28  ;;  %1650 = vrcp.f32 %v1376_v24  ;;  %vm1344_vm3 = vweird.f32 %v1647_v29  ;;  %v1388_v23 = vand.u32 2147483648, %v1376_v24 }
 0x560   :  { %v1358_v3 = vmul.f32 %v1649_v32, %v1356_v22  ;;  %1652 = vtanh.f32 %v1332_v26  ;;  %vm1363_vm4 = vweird.f32 %v1649_v32  ;;  %vm1345_vm7 = vmor %vm1343_vm5, %vm1344_vm3  ;;  %vm1382_vm13 = vweird.f32 %v1376_v24 }
 0x561   :  { %v1340_v43 = vsub.f32 1.0, %v1339_v30  ;;  %vm1364_vm8 = vmor %vm1362_vm6, %vm1363_vm4  ;;  %v1386_v37 = vand.u32 2147483647, %v1376_v24  ;;  %v1389_v41 = vor.u32 1.1754944e-38, %v1388_v23 }
 0x562   :  { %v1359_v39 = vsub.f32 1.0, %v1358_v3 }
 0x563   :  { %v1341_v11 = vmul.f32 %v1647_v29, %v1340_v43  ;;  %vm1387_vm15 = vcmp.eq.f32.partialorder %v1386_v37, 8.507059e+37 }
 0x564   :  { %v1360_v14 = vmul.f32 %v1649_v32, %v1359_v39 }
 0x565   :  { %v1651_v7 = vpop.eup %1650  ;;  %v1342_v10 = vadd.f32 %v1647_v29, %v1341_v11 }
 0x566   :  { %v1361_v13 = vadd.f32 %v1649_v32, %v1360_v14  ;;  %v1378_v0 = vmul.f32 %v1651_v7, %v1376_v24  ;;  %v1653_v60 = vpop.eup %1652  ;;  %vm1383_vm12 = vweird.f32 %v1651_v7 }
 0x567   :  { %v1346_v21 = vsel %vm1345_vm7, %v1647_v29, %v1342_v10  ;;  %vm1384_vm14 = vmor %vm1382_vm13, %vm1383_vm12 }
 0x568   :  { %v1351_v34 = vsel %vm1348_vm9, %v1350_v9, %v1346_v21  ;;  %v1365_v46 = vsel %vm1364_vm8, %v1649_v32, %v1361_v13  ;;  %v1379_v53 = vsub.f32 1.0, %v1378_v0 }
 0x569   :  { %v1370_v55 = vsel %vm1367_vm10, %v1369_v25, %v1365_v46  ;;  %v1393_v17 = vmul.f32 %v1653_v60, %v1351_v34 }
 0x56a   :  { %v1392_v45 = vmul.f32 %v1370_v55, %v3154_v59  ;;  %v1380_v19 = vmul.f32 %v1651_v7, %v1379_v53 }
 0x56c   :  { %v1394_v42 = vadd.f32 %v1393_v17, %v1392_v45  ;;  %v1381_v56 = vadd.f32 %v1651_v7, %v1380_v19 }
 0x56e   :  { %1654 = vtanh.f32 %v1394_v42  ;;  %v1406_v52 = vsel %vm1404_vm11, %v1394_v42, %v3154_v59  ;;  %v1385_v27 = vsel %vm1384_vm14, %v1651_v7, %v1381_v56 }
 0x56f   :  { %1416 = vst [vmem:[#allocation6] sm:$0xff] %v1406_v52  ;;  %v1390_v33 = vsel %vm1387_vm15, %v1389_v41, %v1385_v27 }
 0x570   :  { %1442 = dma.vmem_to_hbm [thread:$0]  %s1438_s13, 128, %s1440_s16, [#allocation7]  }
 0x574   :  { %v1655_v31 = vpop.eup %1654 }
 0x575   :  { %v1396_v15 = vmul.f32 %v1655_v31, %v1390_v33 }
 0x577   :  { %v1405_v59 = vsel %vm1404_vm11, %v1396_v15, %v3158_v57  ;;  %v1407_v16 = vsel %vm1404_vm11, %v1396_v15, 0.0 }
 0x578   :  { %1409 = vst [vmem:[#allocation4 + $0x38] sm:$0xff] %v1407_v16 }
 0x579   :  { %1415 = vst [vmem:[%s3196_s4] sm:$0xff] %v1405_v59 }
 0x57a   :  { %1429 = dma.vmem_to_hbm [thread:$0]  %s1422_s17, 1024, %s1424_s20, [#allocation5], %s1777_s23, %s1777_s23, %s1778_s24  }
 0x57b   :  { %1769 = dma.done.wait [#allocation5], 1024  }
 0x57c   :  { %1770 = vsyncadd [#allocation5], 4294966272 }
 0x57d   :  { %1771 = dma.done.wait [#allocation7], 128  }
 0x57e   :  { %1772 = vsyncadd [#allocation7], 4294967168 }
 0x57f   :  { %1453 = vsyncpa [#allocation5], 1 }
 0x580   :  { %1454 = vsyncpa [#allocation7], 1 }

// kernel: seq2seq_forward.4
= control target key start
LH: loop header
LB: loop body
LE: loop exit
PB: predicated region body
PF: predicated region fallthrough
CT: control target
= control target key end

     0   :  { %11 = vsyncpa [#allocation5], 0  ;;  %s2882_s0 = inlined_call_operand.vmem [shape: s32[8,1], index: 0, kind: input, shape index: {}]   ;;  %s2883_s1 = inlined_call_operand.vmem [shape: f32[8,8,512], index: 1, kind: input, shape index: {}]   ;;  %s2884_s2 = inlined_call_operand.hbm [shape: f32[128,512], index: 2, kind: input, shape index: {}]   ;;  %s2885_s3 = inlined_call_operand.vmem [shape: f32[8,8,128], index: 3, kind: output, shape index: {0}]   ;;  %s2886_s4 = inlined_call_operand.hbm [shape: f32[8,128], index: 4, kind: output, shape index: {1}]   ;;  %s2887_s5 = inlined_call_operand.hbm [shape: f32[8,128], index: 5, kind: output, shape index: {2}]  }
   0x1   :  { %12 = vsyncpa [#allocation6], 0 }
   0x2   :  { %13 = vsyncpa [#allocation9], 0  ;;  %s22_s20 = sshll.u32 %s2884_s2, 4  ;;  %s1822_s21 = smov [#allocation4]   ;;  %s23_s20 = int_to_ptr.hbm [resolvable:$true] %s22_s20 }
   0x3   :  { %s24_s22 = sshll.u32 %s1822_s21, 4  ;;  %s1823_s23 = smov 512   ;;  %s25_s22 = int_to_ptr.vmem [resolvable:$true] %s24_s22 }
   0x4   :  { %s1824_s24 = smov 32  }
   0x5   :  { %30 = dma.hbm_to_vmem [thread:$0]  %s23_s20, 8192, %s25_s22, [#allocation5], %s1823_s23, %s1823_s23, %s1824_s24  }
   0x6   :  { %1816 = dma.done.wait [#allocation5], 8192  }
   0x7   :  { %1817 = vsyncadd [#allocation5], 4294959104  ;;  %v1862_v0 = vld [vmem:[#allocation4 + $0x1e0] sm:$0xff]  ;;  %v1864_v1 = vld [vmem:[#allocation4 + $0x1e8] sm:$0xff]  ;;  %v1825_v61 = vmov 0.0   ;;  %v2894_v62 = vmov 0  }
   0x8   :  { %3008 = vst [vmem:[#allocation13_spill] sm:$0xff] %v1864_v1  ;;  %v1866_v2 = vld [vmem:[#allocation4 + $0x1f8] sm:$0xff]  ;;  %113 = vmatpush.msra.mxu0 %v1862_v0  ;;  %133 = vmatpush.msra.mxu1 %v1864_v1  ;;  %v1870_v3 = vld [vmem:[#allocation4 + $0x1c0] sm:$0xff]  ;;  %v1872_v4 = vld [vmem:[#allocation4 + $0x1c8] sm:$0xff]  ;;  %s1453_s29 = sshll.u32 %s2887_s5, 4  ;;  %s1828_s5 = smov [#allocation7]   ;;  %s1454_s29 = int_to_ptr.hbm [resolvable:$true] %s1453_s29 }
   0x9   :  { %v1874_v5 = vld [vmem:[#allocation4 + $0x1d8] sm:$0xff]  ;;  %173 = vmatpush.msra.mxu3 %v1866_v2  ;;  %v1877_v6 = vld [vmem:[#allocation4 + $0x1a0] sm:$0xff]  ;;  %v1879_v7 = vld [vmem:[#allocation4 + $0x1a8] sm:$0xff]  ;;  %1548 = vset.pattern.permute.xlu0 %v2894_v62  ;;  %s1440_s30 = sshll.u32 %s1828_s5, 4  ;;  %s1442_s8 = sshll.u32 %s2886_s4, 4  ;;  %s1441_s30 = int_to_ptr.vmem [resolvable:$true] %s1440_s30  ;;  %s1443_s8 = int_to_ptr.hbm [resolvable:$true] %s1442_s8 }
   0xa   :  { %114 = vmatpush.msra.mxu0 %v1870_v3  ;;  %134 = vmatpush.msra.mxu1 %v1872_v4  ;;  %v1883_v8 = vld [vmem:[#allocation4 + $0x1b8] sm:$0xff]  ;;  %v1886_v9 = vld [vmem:[#allocation4 + $0x180] sm:$0xff]  ;;  %v1888_v10 = vld [vmem:[#allocation4 + $0x188] sm:$0xff] }
   0xb   :  { %174 = vmatpush.msra.mxu3 %v1874_v5  ;;  %v1892_v11 = vld [vmem:[#allocation4 + $0x198] sm:$0xff]  ;;  %v1895_v12 = vld [vmem:[#allocation4 + $0x160] sm:$0xff]  ;;  %v1897_v13 = vld [vmem:[#allocation4 + $0x168] sm:$0xff] }
   0xc   :  { %115 = vmatpush.msra.mxu0 %v1877_v6  ;;  %135 = vmatpush.msra.mxu1 %v1879_v7  ;;  %v1901_v14 = vld [vmem:[#allocation4 + $0x178] sm:$0xff]  ;;  %v1904_v15 = vld [vmem:[#allocation4 + $0x140] sm:$0xff]  ;;  %v1906_v16 = vld [vmem:[#allocation4 + $0x148] sm:$0xff] }
   0xd   :  { %175 = vmatpush.msra.mxu3 %v1883_v8  ;;  %v1908_v17 = vld [vmem:[#allocation4 + $0x1f0] sm:$0xff]  ;;  %v1912_v18 = vld [vmem:[#allocation4 + $0x158] sm:$0xff]  ;;  %v1917_v20 = vld [vmem:[#allocation4 + $0x120] sm:$0xff] }
   0xe   :  { %116 = vmatpush.msra.mxu0 %v1886_v9  ;;  %136 = vmatpush.msra.mxu1 %v1888_v10  ;;  %v1914_v19 = vld [vmem:[#allocation4 + $0x1d0] sm:$0xff]  ;;  %v1919_v21 = vld [vmem:[#allocation4 + $0x128] sm:$0xff]  ;;  %v1924_v22 = vld [vmem:[#allocation4 + $0x138] sm:$0xff] }
   0xf   :  { %176 = vmatpush.msra.mxu3 %v1892_v11  ;;  %153 = vmatpush.msra.mxu2 %v1908_v17  ;;  %v1926_v23 = vld [vmem:[#allocation4 + $0x1b0] sm:$0xff]  ;;  %v1929_v24 = vld [vmem:[#allocation4 + $0x100] sm:$0xff]  ;;  %v1931_v25 = vld [vmem:[#allocation4 + $0x108] sm:$0xff] }
  0x10   :  { %117 = vmatpush.msra.mxu0 %v1895_v12  ;;  %137 = vmatpush.msra.mxu1 %v1897_v13  ;;  %v1936_v26 = vld [vmem:[#allocation4 + $0x118] sm:$0xff]  ;;  %v1938_v27 = vld [vmem:[#allocation4 + $0x190] sm:$0xff]  ;;  %v1941_v28 = vld [vmem:[#allocation4 + $0xe0] sm:$0xff] }
  0x11   :  { %177 = vmatpush.msra.mxu3 %v1901_v14  ;;  %154 = vmatpush.msra.mxu2 %v1914_v19  ;;  %v1943_v29 = vld [vmem:[#allocation4 + $0xe8] sm:$0xff]  ;;  %v1948_v30 = vld [vmem:[#allocation4 + $0xf8] sm:$0xff]  ;;  %v1950_v31 = vld [vmem:[#allocation4 + $0x170] sm:$0xff] }
  0x12   :  { %118 = vmatpush.msra.mxu0 %v1904_v15  ;;  %138 = vmatpush.msra.mxu1 %v1906_v16  ;;  %v1953_v32 = vld [vmem:[#allocation4 + $0xc0] sm:$0xff]  ;;  %v1955_v33 = vld [vmem:[#allocation4 + $0xc8] sm:$0xff]  ;;  %v1960_v34 = vld [vmem:[#allocation4 + $0xd8] sm:$0xff] }
  0x13   :  { %178 = vmatpush.msra.mxu3 %v1912_v18  ;;  %155 = vmatpush.msra.mxu2 %v1926_v23  ;;  %3009 = vst [vmem:[#allocation14_spill] sm:$0xff] %v1955_v33  ;;  %v1962_v35 = vld [vmem:[#allocation4 + $0x150] sm:$0xff]  ;;  %v1965_v36 = vld [vmem:[#allocation4 + $0xa0] sm:$0xff]  ;;  %v1967_v37 = vld [vmem:[#allocation4 + $0xa8] sm:$0xff] }
  0x14   :  { %119 = vmatpush.msra.mxu0 %v1917_v20  ;;  %139 = vmatpush.msra.mxu1 %v1919_v21  ;;  %3010 = vst [vmem:[#allocation15_spill] sm:$0xff] %v1960_v34  ;;  %v1972_v38 = vld [vmem:[#allocation4 + $0xb8] sm:$0xff]  ;;  %v1974_v39 = vld [vmem:[#allocation4 + $0x130] sm:$0xff]  ;;  %v1977_v40 = vld [vmem:[#allocation4 + $0x80] sm:$0xff] }
  0x15   :  { %179 = vmatpush.msra.mxu3 %v1924_v22  ;;  %156 = vmatpush.msra.mxu2 %v1938_v27  ;;  %3011 = vst [vmem:[#allocation16_spill] sm:$0xff] %v1965_v36  ;;  %v1979_v41 = vld [vmem:[#allocation4 + $0x88] sm:$0xff]  ;;  %v1984_v42 = vld [vmem:[#allocation4 + $0x98] sm:$0xff]  ;;  %v1986_v43 = vld [vmem:[#allocation4 + $0x110] sm:$0xff] }
  0x16   :  { %120 = vmatpush.msra.mxu0 %v1929_v24  ;;  %140 = vmatpush.msra.mxu1 %v1931_v25  ;;  %3012 = vst [vmem:[#allocation17_spill] sm:$0xff] %v1967_v37  ;;  %v1989_v44 = vld [vmem:[#allocation4 + $0x60] sm:$0xff]  ;;  %v1991_v45 = vld [vmem:[#allocation4 + $0x68] sm:$0xff]  ;;  %v1996_v46 = vld [vmem:[#allocation4 + $0x78] sm:$0xff] }
  0x17   :  { %180 = vmatpush.msra.mxu3 %v1936_v26  ;;  %157 = vmatpush.msra.mxu2 %v1950_v31  ;;  %3013 = vst [vmem:[#allocation18_spill] sm:$0xff] %v1972_v38  ;;  %v1998_v47 = vld [vmem:[#allocation4 + $0xf0] sm:$0xff]  ;;  %v2001_v48 = vld [vmem:[#allocation4 + $0x40] sm:$0xff]  ;;  %v2003_v49 = vld [vmem:[#allocation4 + $0x48] sm:$0xff] }
  0x18   :  { %121 = vmatpush.msra.mxu0 %v1941_v28  ;;  %141 = vmatpush.msra.mxu1 %v1943_v29  ;;  %3014 = vst [vmem:[#allocation19_spill] sm:$0xff] %v1977_v40  ;;  %v2008_v50 = vld [vmem:[#allocation4 + $0x58] sm:$0xff]  ;;  %v2010_v51 = vld [vmem:[#allocation4 + $0xd0] sm:$0xff]  ;;  %v2013_v52 = vld [vmem:[#allocation4 + $0x20] sm:$0xff] }
  0x19   :  { %181 = vmatpush.msra.mxu3 %v1948_v30  ;;  %3015 = vst [vmem:[#allocation20_spill] sm:$0xff] %v1979_v41  ;;  %158 = vmatpush.msra.mxu2 %v1962_v35  ;;  %v2015_v53 = vld [vmem:[#allocation4 + $0x28] sm:$0xff]  ;;  %v2021_v54 = vld [vmem:[%s2882_s0] sm:$0xff]  ;;  %v2025_v55 = vld [vmem:[#allocation4 + $0x38] sm:$0xff] }
  0x1a   :  { %122 = vmatpush.msra.mxu0 %v1953_v32  ;;  %142 = vmatpush.msra.mxu1 %v1955_v33  ;;  %3016 = vst [vmem:[#allocation21_spill] sm:$0xff] %v1984_v42  ;;  %v2027_v56 = vld [vmem:[#allocation4 + $0xb0] sm:$0xff]  ;;  %v2030_v57 = vld [vmem:[#allocation4] sm:$0xff]  ;;  %v2032_v58 = vld [vmem:[#allocation4 + $0x8] sm:$0xff]  ;;  %vm1473_vm0 = vcmp.gt.s32.totalorder %v2021_v54, 0  ;;  %vm1481_vm1 = vcmp.gt.s32.totalorder %v2021_v54, 1 }
  0x1b   :  { %182 = vmatpush.msra.mxu3 %v1960_v34  ;;  %3017 = vst [vmem:[#allocation22_spill] sm:$0xff] %v1989_v44  ;;  %159 = vmatpush.msra.mxu2 %v1974_v39  ;;  %v2037_v59 = vld [vmem:[#allocation4 + $0x18] sm:$0xff]  ;;  %v2044_v60 = vld [vmem:[#allocation4 + $0x90] sm:$0xff]  ;;  %v262_v63 = vsel %vm1473_vm0, 1, %v2894_v62  ;;  %vm1526_vm2 = vcmp.gt.s32.totalorder %v2021_v54, 6 }
  0x1c   :  { %123 = vmatpush.msra.mxu0 %v1965_v36  ;;  %143 = vmatpush.msra.mxu1 %v1967_v37  ;;  %3018 = vst [vmem:[#allocation23_spill] sm:$0xff] %v1991_v45  ;;  %v2064_v62 = vld [vmem:[#allocation4 + $0x10] sm:$0xff] }
  0x1d   :  { %183 = vmatpush.msra.mxu3 %v1972_v38  ;;  %3019 = vst [vmem:[#allocation24_spill] sm:$0xff] %v1996_v46  ;;  %160 = vmatpush.msra.mxu2 %v1986_v43 }
  0x1e   :  { %124 = vmatpush.msra.mxu0 %v1977_v40  ;;  %144 = vmatpush.msra.mxu1 %v1979_v41  ;;  %3020 = vst [vmem:[#allocation25_spill] sm:$0xff] %v2001_v48 }
  0x1f   :  { %184 = vmatpush.msra.mxu3 %v1984_v42  ;;  %3021 = vst [vmem:[#allocation26_spill] sm:$0xff] %v2003_v49  ;;  %161 = vmatpush.msra.mxu2 %v1998_v47 }
  0x20   :  { %125 = vmatpush.msra.mxu0 %v1989_v44  ;;  %145 = vmatpush.msra.mxu1 %v1991_v45  ;;  %3022 = vst [vmem:[#allocation27_spill] sm:$0xff] %v2008_v50 }
  0x21   :  { %3023 = vst [vmem:[#allocation28_spill] sm:$0xff] %v2010_v51  ;;  %185 = vmatpush.msra.mxu3 %v1996_v46  ;;  %162 = vmatpush.msra.mxu2 %v2010_v51 }
  0x22   :  { %3024 = vst [vmem:[#allocation29_spill] sm:$0xff] %v2013_v52  ;;  %126 = vmatpush.msra.mxu0 %v2001_v48  ;;  %146 = vmatpush.msra.mxu1 %v2003_v49 }
  0x23   :  { %3025 = vst [vmem:[#allocation30_spill] sm:$0xff] %v2015_v53  ;;  %186 = vmatpush.msra.mxu3 %v2008_v50  ;;  %163 = vmatpush.msra.mxu2 %v2027_v56 }
  0x24   :  { %3026 = vst [vmem:[#allocation31_spill] sm:$0xff] %v2021_v54  ;;  %127 = vmatpush.msra.mxu0 %v2013_v52  ;;  %147 = vmatpush.msra.mxu1 %v2015_v53  ;;  %v2048_v53 = vld [vmem:[#allocation4 + $0x70] sm:$0xff] }
  0x25   :  { %3027 = vst [vmem:[#allocation32_spill] sm:$0xff] %v2025_v55  ;;  %187 = vmatpush.msra.mxu3 %v2025_v55  ;;  %164 = vmatpush.msra.mxu2 %v2044_v60 }
  0x26   :  { %3028 = vst [vmem:[#allocation33_spill] sm:$0xff] %v2027_v56  ;;  %128 = vmatpush.msra.mxu0 %v2030_v57  ;;  %148 = vmatpush.msra.mxu1 %v2032_v58 }
  0x27   :  { %3029 = vst [vmem:[#allocation34_spill] sm:$0xff] %v2030_v57  ;;  %188 = vmatpush.msra.mxu3 %v2037_v59  ;;  %129 = vmatmul.f32.vlgmr.msra.gmra.mxu0 %v1825_v61  ;;  %v2052_v57 = vld [vmem:[#allocation4 + $0x50] sm:$0xff] }
  0x28   :  { %3030 = vst [vmem:[#allocation35_spill] sm:$0xff] %v2032_v58  ;;  %149 = vmatmul.f32.vlgmr.msra.gmra.mxu1 %v1825_v61  ;;  %189 = vmatmul.f32.vlgmr.msra.gmra.mxu3 %v1825_v61 }
  0x29   :  { %3031 = vst [vmem:[#allocation36_spill] sm:$0xff] %v2037_v59  ;;  %264 = vperm.xlu0 %1548, %v262_v63   ;;  %276 = vmatpush.msrb.mxu0 %v1862_v0  ;;  %v2057_v59 = vld [vmem:[#allocation4 + $0x30] sm:$0xff]  ;;  %v3037_v63 = vmov 0  }
  0x2a   :  { %3032 = vst [vmem:[#allocation37_spill] sm:$0xff] %v2044_v60  ;;  %165 = vmatpush.msra.mxu2 %v2048_v53  ;;  %296 = vmatpush.msrb.mxu1 %v1864_v1  ;;  %v426_v1 = vsel %vm1481_vm1, 1, %v3037_v63 }
  0x2b   :  { %3033 = vst [vmem:[#allocation38_spill] sm:$0xff] %v2048_v53  ;;  %336 = vmatpush.msrb.mxu3 %v1866_v2  ;;  %277 = vmatpush.msrb.mxu0 %v1870_v3 }
  0x2c   :  { %3034 = vst [vmem:[#allocation39_spill] sm:$0xff] %v2052_v57  ;;  %166 = vmatpush.msra.mxu2 %v2052_v57  ;;  %297 = vmatpush.msrb.mxu1 %v1872_v4 }
  0x2d   :  { %3035 = vst [vmem:[#allocation40_spill] sm:$0xff] %v2057_v59  ;;  %337 = vmatpush.msrb.mxu3 %v1874_v5  ;;  %278 = vmatpush.msrb.mxu0 %v1877_v6 }
  0x2e   :  { %3036 = vst [vmem:[#allocation41_spill] sm:$0xff] %v2064_v62  ;;  %167 = vmatpush.msra.mxu2 %v2057_v59  ;;  %298 = vmatpush.msrb.mxu1 %v1879_v7 }
  0x2f   :  { %338 = vmatpush.msrb.mxu3 %v1883_v8  ;;  %279 = vmatpush.msrb.mxu0 %v1886_v9 }
  0x30   :  { %168 = vmatpush.msra.mxu2 %v2064_v62  ;;  %299 = vmatpush.msrb.mxu1 %v1888_v10  ;;  %v3040_v54 = vld [vmem:[#allocation36_spill] sm:$0xff] }
  0x31   :  { %169 = vmatmul.f32.vlgmr.msra.gmra.mxu2 %v1825_v61  ;;  %428 = vperm.xlu0 %1548, %v426_v1   ;;  %v1251_v1 = vsel %vm1526_vm2, 1, %v3037_v63  ;;  %v3038_v61 = vld [vmem:[#allocation30_spill] sm:$0xff]  ;;  %v3041_v63 = vld [vmem:[#allocation13_spill] sm:$0xff] }
  0x32   :  { %316 = vmatpush.msrb.mxu2 %v1908_v17  ;;  %339 = vmatpush.msrb.mxu3 %v1892_v11 }
  0x33   :  { %280 = vmatpush.msrb.mxu0 %v1895_v12  ;;  %300 = vmatpush.msrb.mxu1 %v1897_v13 }
  0x34   :  { %317 = vmatpush.msrb.mxu2 %v1914_v19  ;;  %340 = vmatpush.msrb.mxu3 %v1901_v14 }
  0x35   :  { %281 = vmatpush.msrb.mxu0 %v1904_v15  ;;  %301 = vmatpush.msrb.mxu1 %v1906_v16 }
  0x36   :  { %318 = vmatpush.msrb.mxu2 %v1926_v23  ;;  %341 = vmatpush.msrb.mxu3 %v1912_v18 }
  0x37   :  { %282 = vmatpush.msrb.mxu0 %v1917_v20  ;;  %302 = vmatpush.msrb.mxu1 %v1919_v21 }
  0x38   :  { %319 = vmatpush.msrb.mxu2 %v1938_v27  ;;  %342 = vmatpush.msrb.mxu3 %v1924_v22 }
  0x39   :  { %1253 = vperm.xlu0 %1548, %v1251_v1   ;;  %283 = vmatpush.msrb.mxu0 %v1929_v24  ;;  %v3039_v1 = vld [vmem:[#allocation34_spill] sm:$0xff] }
  0x3a   :  { %320 = vmatpush.msrb.mxu2 %v1950_v31  ;;  %303 = vmatpush.msrb.mxu1 %v1931_v25 }
  0x3b   :  { %343 = vmatpush.msrb.mxu3 %v1936_v26  ;;  %284 = vmatpush.msrb.mxu0 %v1941_v28 }
  0x3c   :  { %321 = vmatpush.msrb.mxu2 %v1962_v35  ;;  %304 = vmatpush.msrb.mxu1 %v1943_v29 }
  0x3d   :  { %344 = vmatpush.msrb.mxu3 %v1948_v30  ;;  %285 = vmatpush.msrb.mxu0 %v1953_v32 }
  0x3e   :  { %322 = vmatpush.msrb.mxu2 %v1974_v39  ;;  %305 = vmatpush.msrb.mxu1 %v1955_v33 }
  0x3f   :  { %345 = vmatpush.msrb.mxu3 %v1960_v34  ;;  %286 = vmatpush.msrb.mxu0 %v1965_v36 }
  0x40   :  { %323 = vmatpush.msrb.mxu2 %v1986_v43  ;;  %306 = vmatpush.msrb.mxu1 %v1967_v37 }
  0x41   :  { %346 = vmatpush.msrb.mxu3 %v1972_v38  ;;  %287 = vmatpush.msrb.mxu0 %v1977_v40 }
  0x42   :  { %324 = vmatpush.msrb.mxu2 %v1998_v47  ;;  %307 = vmatpush.msrb.mxu1 %v1979_v41 }
  0x43   :  { %347 = vmatpush.msrb.mxu3 %v1984_v42  ;;  %288 = vmatpush.msrb.mxu0 %v1989_v44 }
  0x44   :  { %325 = vmatpush.msrb.mxu2 %v2010_v51  ;;  %308 = vmatpush.msrb.mxu1 %v1991_v45 }
  0x45   :  { %348 = vmatpush.msrb.mxu3 %v1996_v46  ;;  %289 = vmatpush.msrb.mxu0 %v2001_v48 }
  0x46   :  { %326 = vmatpush.msrb.mxu2 %v2027_v56  ;;  %309 = vmatpush.msrb.mxu1 %v2003_v49 }
  0x47   :  { %349 = vmatpush.msrb.mxu3 %v2008_v50  ;;  %290 = vmatpush.msrb.mxu0 %v2013_v52 }
  0x48   :  { %327 = vmatpush.msrb.mxu2 %v2044_v60  ;;  %310 = vmatpush.msrb.mxu1 %v3038_v61 }
  0x49   :  { %350 = vmatpush.msrb.mxu3 %v2025_v55  ;;  %291 = vmatpush.msrb.mxu0 %v3039_v1 }
  0x4a   :  { %328 = vmatpush.msrb.mxu2 %v2048_v53  ;;  %311 = vmatpush.msrb.mxu1 %v2032_v58 }
  0x4b   :  { %351 = vmatpush.msrb.mxu3 %v3040_v54  ;;  %441 = vmatpush.msra.mxu0 %v1862_v0 }
  0x4c   :  { %329 = vmatpush.msrb.mxu2 %v2052_v57  ;;  %461 = vmatpush.msra.mxu1 %v3041_v63 }
  0x4d   :  { %501 = vmatpush.msra.mxu3 %v1866_v2  ;;  %442 = vmatpush.msra.mxu0 %v1870_v3 }
  0x4e   :  { %330 = vmatpush.msrb.mxu2 %v2057_v59  ;;  %462 = vmatpush.msra.mxu1 %v1872_v4 }
  0x4f   :  { %502 = vmatpush.msra.mxu3 %v1874_v5  ;;  %443 = vmatpush.msra.mxu0 %v1877_v6 }
  0x50   :  { %331 = vmatpush.msrb.mxu2 %v2064_v62  ;;  %463 = vmatpush.msra.mxu1 %v1879_v7 }
  0x51   :  { %503 = vmatpush.msra.mxu3 %v1883_v8  ;;  %444 = vmatpush.msra.mxu0 %v1886_v9 }
  0x52   :  { %481 = vmatpush.msra.mxu2 %v1908_v17  ;;  %464 = vmatpush.msra.mxu1 %v1888_v10 }
  0x53   :  { %504 = vmatpush.msra.mxu3 %v1892_v11  ;;  %445 = vmatpush.msra.mxu0 %v1895_v12 }
  0x54   :  { %482 = vmatpush.msra.mxu2 %v1914_v19  ;;  %465 = vmatpush.msra.mxu1 %v1897_v13 }
  0x55   :  { %505 = vmatpush.msra.mxu3 %v1901_v14  ;;  %446 = vmatpush.msra.mxu0 %v1904_v15 }
  0x56   :  { %483 = vmatpush.msra.mxu2 %v1926_v23  ;;  %466 = vmatpush.msra.mxu1 %v1906_v16 }
  0x57   :  { %506 = vmatpush.msra.mxu3 %v1912_v18  ;;  %447 = vmatpush.msra.mxu0 %v1917_v20 }
  0x58   :  { %484 = vmatpush.msra.mxu2 %v1938_v27  ;;  %467 = vmatpush.msra.mxu1 %v1919_v21 }
  0x59   :  { %507 = vmatpush.msra.mxu3 %v1924_v22  ;;  %448 = vmatpush.msra.mxu0 %v1929_v24 }
  0x5a   :  { %485 = vmatpush.msra.mxu2 %v1950_v31  ;;  %468 = vmatpush.msra.mxu1 %v1931_v25 }
  0x5b   :  { %508 = vmatpush.msra.mxu3 %v1936_v26  ;;  %449 = vmatpush.msra.mxu0 %v1941_v28 }
  0x5c   :  { %486 = vmatpush.msra.mxu2 %v1962_v35  ;;  %469 = vmatpush.msra.mxu1 %v1943_v29 }
  0x5d   :  { %509 = vmatpush.msra.mxu3 %v1948_v30  ;;  %450 = vmatpush.msra.mxu0 %v1953_v32 }
  0x5e   :  { %487 = vmatpush.msra.mxu2 %v1974_v39  ;;  %470 = vmatpush.msra.mxu1 %v1955_v33 }
  0x5f   :  { %510 = vmatpush.msra.mxu3 %v1960_v34  ;;  %451 = vmatpush.msra.mxu0 %v1965_v36 }
  0x60   :  { %488 = vmatpush.msra.mxu2 %v1986_v43  ;;  %471 = vmatpush.msra.mxu1 %v1967_v37 }
  0x61   :  { %511 = vmatpush.msra.mxu3 %v1972_v38  ;;  %452 = vmatpush.msra.mxu0 %v1977_v40 }
  0x62   :  { %489 = vmatpush.msra.mxu2 %v1998_v47  ;;  %472 = vmatpush.msra.mxu1 %v1979_v41 }
  0x63   :  { %512 = vmatpush.msra.mxu3 %v1984_v42  ;;  %453 = vmatpush.msra.mxu0 %v1989_v44 }
  0x64   :  { %490 = vmatpush.msra.mxu2 %v2010_v51  ;;  %473 = vmatpush.msra.mxu1 %v1991_v45 }
  0x65   :  { %513 = vmatpush.msra.mxu3 %v1996_v46  ;;  %454 = vmatpush.msra.mxu0 %v2001_v48 }
  0x66   :  { %491 = vmatpush.msra.mxu2 %v2027_v56  ;;  %474 = vmatpush.msra.mxu1 %v2003_v49  ;;  %v3042_v49 = vmov 0  }
  0x67   :  { %514 = vmatpush.msra.mxu3 %v2008_v50  ;;  %455 = vmatpush.msra.mxu0 %v2013_v52 }
  0x68   :  { %492 = vmatpush.msra.mxu2 %v2044_v60  ;;  %475 = vmatpush.msra.mxu1 %v3038_v61 }
  0x69   :  { %515 = vmatpush.msra.mxu3 %v2025_v55  ;;  %456 = vmatpush.msra.mxu0 %v3039_v1  ;;  %v109_v55 = vld [vmem:[%s2883_s1] sm:$0xff] }
  0x6a   :  { %493 = vmatpush.msra.mxu2 %v2048_v53  ;;  %476 = vmatpush.msra.mxu1 %v2032_v58  ;;  %v110_v58 = vld [vmem:[%s2883_s1 + $0x8] sm:$0xff] }
  0x6b   :  { %516 = vmatpush.msra.mxu3 %v3040_v54  ;;  %1549 = vset.pattern.permute.xlu1 %v3042_v49 }
  0x6c   :  { %494 = vmatpush.msra.mxu2 %v2052_v57  ;;  %1550 = vset.pattern.permute.xlu2 %v3042_v49  ;;  %v112_v49 = vld [vmem:[%s2883_s1 + $0x18] sm:$0xff] }
  0x6e   :  { %495 = vmatpush.msra.mxu2 %v2057_v59 }
  0x70   :  { %496 = vmatpush.msra.mxu2 %v2064_v62 }
  0xa4   :  { %v130_v1 = vpop.f32.mrf.mxu0 }
  0xa5   :  { %v193_v61 = vadd.f32 %v130_v1, %v109_v55  ;;  %v150_v52 = vpop.f32.mrf.mxu1 }
  0xa6   :  { %v194_v54 = vadd.f32 %v150_v52, %v110_v58  ;;  %v111_v52 = vld [vmem:[%s2883_s1 + $0x10] sm:$0xff] }
  0xa7   :  { %v1470_v50 = vmul.f32 -1.442695, %v193_v61 }
  0xa8   :  { %v1471_v57 = vmul.f32 -1.442695, %v194_v54 }
  0xa9   :  { %1551 = vpow2.f32 %v1470_v50 }
  0xaa   :  { %1553 = vpow2.f32 %v1471_v57 }
  0xab   :  { %v190_v62 = vpop.f32.mrf.mxu3 }
  0xac   :  { %v196_v59 = vadd.f32 %v190_v62, %v112_v49 }
  0xae   :  { %v1472_v48 = vmul.f32 -1.442695, %v196_v59 }
  0xaf   :  { %v1552_v46 = vpop.eup %1551 }
  0xb0   :  { %v1554_v53 = vpop.eup %1553  ;;  %v200_v45 = vadd.f32 1.0, %v1552_v46  ;;  %1555 = vpow2.f32 %v1472_v48 }
  0xb1   :  { %v219_v44 = vadd.f32 1.0, %v1554_v53 }
  0xb2   :  { %1557 = vrcp.f32 %v200_v45  ;;  %v212_v48 = vand.u32 2147483648, %v200_v45  ;;  %v210_v42 = vand.u32 2147483647, %v200_v45  ;;  %vm206_vm5 = vweird.f32 %v200_v45 }
  0xb3   :  { %1559 = vrcp.f32 %v219_v44  ;;  %v231_v53 = vand.u32 2147483648, %v219_v44  ;;  %v229_v41 = vand.u32 2147483647, %v219_v44  ;;  %vm225_vm6 = vweird.f32 %v219_v44 }
  0xb4   :  { %v170_v50 = vpop.f32.mrf.mxu2  ;;  %vm211_vm8 = vcmp.eq.f32.partialorder %v210_v42, 8.507059e+37 }
  0xb5   :  { %v195_v55 = vadd.f32 %v170_v50, %v111_v52  ;;  %vm230_vm10 = vcmp.eq.f32.partialorder %v229_v41, 8.507059e+37 }
  0xb6   :  { %v1556_v54 = vpop.eup %1555 }
  0xb7   :  { %v239_v58 = vadd.f32 1.0, %v1556_v54  ;;  %v213_v54 = vor.u32 1.1754944e-38, %v212_v48  ;;  %v3067_v48 = vld [vmem:[#allocation35_spill] sm:$0xff] }
  0xb8   :  { %v1558_v61 = vpop.eup %1557 }
  0xb9   :  { %v1560_v57 = vpop.eup %1559  ;;  %v202_v1 = vmul.f32 %v1558_v61, %v200_v45  ;;  %1561 = vrcp.f32 %v239_v58  ;;  %vm207_vm3 = vweird.f32 %v1558_v61  ;;  %v251_v33 = vand.u32 2147483648, %v239_v58 }
  0xba   :  { %v221_v49 = vmul.f32 %v1560_v57, %v219_v44  ;;  %1563 = vtanh.f32 %v195_v55  ;;  %vm226_vm4 = vweird.f32 %v1560_v57  ;;  %vm208_vm7 = vmor %vm206_vm5, %vm207_vm3  ;;  %v232_v55 = vor.u32 1.1754944e-38, %v231_v53  ;;  %v3068_v53 = vld [vmem:[#allocation41_spill] sm:$0xff] }
  0xbb   :  { %v203_v59 = vsub.f32 1.0, %v202_v1  ;;  %vm227_vm9 = vmor %vm225_vm6, %vm226_vm4  ;;  %vm245_vm13 = vweird.f32 %v239_v58 }
  0xbc   :  { %v222_v46 = vsub.f32 1.0, %v221_v49 }
  0xbd   :  { %v204_v62 = vmul.f32 %v1558_v61, %v203_v59 }
  0xbe   :  { %v223_v60 = vmul.f32 %v1560_v57, %v222_v46 }
  0xbf   :  { %v1562_v40 = vpop.eup %1561  ;;  %v205_v38 = vadd.f32 %v1558_v61, %v204_v62  ;;  %v265_v62 = vpop.permute.xlu0 %264 }
  0xc0   :  { %v1564_v52 = vpop.eup %1563  ;;  %v241_v50 = vmul.f32 %v1562_v40, %v239_v58  ;;  %v224_v56 = vadd.f32 %v1560_v57, %v223_v60  ;;  %vm266_vm11 = vcmp.eq.s32.totalorder %v265_v62, 1  ;;  %vm246_vm12 = vweird.f32 %v1562_v40 }
  0xc1   :  { %v209_v1 = vsel %vm208_vm7, %v1558_v61, %v205_v38  ;;  %v249_v38 = vand.u32 2147483647, %v239_v58  ;;  %vm247_vm14 = vmor %vm245_vm13, %vm246_vm12  ;;  %v3065_v58 = vld [vmem:[#allocation32_spill] sm:$0xff] }
  0xc2   :  { %v242_v49 = vsub.f32 1.0, %v241_v50  ;;  %v214_v59 = vsel %vm211_vm8, %v213_v54, %v209_v1  ;;  %v228_v37 = vsel %vm227_vm9, %v1560_v57, %v224_v56  ;;  %v252_v56 = vor.u32 1.1754944e-38, %v251_v33  ;;  %v3060_v33 = vld [vmem:[#allocation39_spill] sm:$0xff]  ;;  %v3066_v57 = vld [vmem:[#allocation34_spill] sm:$0xff]  ;;  %v1475_v54 = vld [vmem:[%s2883_s1 + $0x28] sm:$0xff] }
  0xc3   :  { %v233_v46 = vsel %vm230_vm10, %v232_v55, %v228_v37  ;;  %v256_v36 = vmul.f32 %v1564_v52, %v214_v59  ;;  %vm250_vm15 = vcmp.eq.f32.partialorder %v249_v38, 8.507059e+37  ;;  %v3069_v52 = vld [vmem:[#allocation36_spill] sm:$0xff]  ;;  %v1474_v50 = vld [vmem:[%s2883_s1 + $0x20] sm:$0xff] }
  0xc4   :  { %v243_v34 = vmul.f32 %v1562_v40, %v242_v49  ;;  %v255_v51 = vmul.f32 0.0, %v233_v46 }
  0xc6   :  { %v257_v45 = vadd.f32 %v256_v36, %v255_v51  ;;  %v244_v44 = vadd.f32 %v1562_v40, %v243_v34  ;;  %v3061_v36 = vld [vmem:[#allocation27_spill] sm:$0xff]  ;;  %v3063_v51 = vld [vmem:[#allocation30_spill] sm:$0xff] }
  0xc8   :  { %1565 = vtanh.f32 %v257_v45  ;;  %v2209_v60 = vsel %vm266_vm11, %v257_v45, 0.0  ;;  %v248_v42 = vsel %vm247_vm14, %v1562_v40, %v244_v44  ;;  %v3062_v40 = vld [vmem:[#allocation29_spill] sm:$0xff]  ;;  %v1477_v45 = vld [vmem:[%s2883_s1 + $0x38] sm:$0xff] }
  0xc9   :  { %v253_v41 = vsel %vm250_vm15, %v252_v56, %v248_v42 }
  0xce   :  { %v1566_v37 = vpop.eup %1565 }
  0xcf   :  { %v259_v61 = vmul.f32 %v1566_v37, %v253_v41 }
  0xd1   :  { %1537 = vmatmul.msk.f32.vlgmr.msrb.gmra.mxu0 %vm266_vm11, %v259_v61  ;;  %1538 = vmatmul.msk.f32.vlgmr.msrb.gmra.mxu1 %vm266_vm11, %v259_v61  ;;  %v2214_v34 = vsel %vm266_vm11, %v259_v61, 0.0 }
  0xd2   :  { %1539 = vmatmul.msk.f32.vlgmr.msrb.gmra.mxu2 %vm266_vm11, %v259_v61  ;;  %1540 = vmatmul.msk.f32.vlgmr.msrb.gmra.mxu3 %vm266_vm11, %v259_v61  ;;  %270 = vst [vmem:[%s2885_s3] sm:$0xff] %v2214_v34 }
  0xd3   :  { %606 = vmatpush.msrb.mxu0 %v1862_v0  ;;  %626 = vmatpush.msrb.mxu1 %v3041_v63  ;;  %v3043_v0 = vld [vmem:[#allocation14_spill] sm:$0xff]  ;;  %v3064_v63 = vld [vmem:[#allocation40_spill] sm:$0xff] }
  0xd4   :  { %646 = vmatpush.msrb.mxu2 %v1908_v17  ;;  %666 = vmatpush.msrb.mxu3 %v1866_v2  ;;  %v3044_v2 = vld [vmem:[#allocation28_spill] sm:$0xff] }
  0xd5   :  { %607 = vmatpush.msrb.mxu0 %v1870_v3  ;;  %627 = vmatpush.msrb.mxu1 %v1872_v4  ;;  %v3045_v3 = vld [vmem:[#allocation15_spill] sm:$0xff]  ;;  %v3046_v4 = vld [vmem:[#allocation16_spill] sm:$0xff] }
  0xd6   :  { %647 = vmatpush.msrb.mxu2 %v1914_v19  ;;  %667 = vmatpush.msrb.mxu3 %v1874_v5  ;;  %v3047_v5 = vld [vmem:[#allocation17_spill] sm:$0xff] }
  0xd7   :  { %608 = vmatpush.msrb.mxu0 %v1877_v6  ;;  %628 = vmatpush.msrb.mxu1 %v1879_v7  ;;  %v3048_v6 = vld [vmem:[#allocation33_spill] sm:$0xff]  ;;  %v3049_v7 = vld [vmem:[#allocation18_spill] sm:$0xff] }
  0xd8   :  { %648 = vmatpush.msrb.mxu2 %v1926_v23  ;;  %668 = vmatpush.msrb.mxu3 %v1883_v8  ;;  %v3050_v8 = vld [vmem:[#allocation19_spill] sm:$0xff] }
  0xd9   :  { %609 = vmatpush.msrb.mxu0 %v1886_v9  ;;  %629 = vmatpush.msrb.mxu1 %v1888_v10  ;;  %v3051_v9 = vld [vmem:[#allocation20_spill] sm:$0xff]  ;;  %v3052_v10 = vld [vmem:[#allocation37_spill] sm:$0xff] }
  0xda   :  { %649 = vmatpush.msrb.mxu2 %v1938_v27  ;;  %669 = vmatpush.msrb.mxu3 %v1892_v11  ;;  %v3053_v11 = vld [vmem:[#allocation21_spill] sm:$0xff] }
  0xdb   :  { %610 = vmatpush.msrb.mxu0 %v1895_v12  ;;  %630 = vmatpush.msrb.mxu1 %v1897_v13  ;;  %v3054_v12 = vld [vmem:[#allocation22_spill] sm:$0xff]  ;;  %v3055_v13 = vld [vmem:[#allocation23_spill] sm:$0xff] }
  0xdc   :  { %650 = vmatpush.msrb.mxu2 %v1950_v31  ;;  %670 = vmatpush.msrb.mxu3 %v1901_v14  ;;  %v3056_v14 = vld [vmem:[#allocation38_spill] sm:$0xff] }
  0xdd   :  { %611 = vmatpush.msrb.mxu0 %v1904_v15  ;;  %631 = vmatpush.msrb.mxu1 %v1906_v16  ;;  %v3057_v15 = vld [vmem:[#allocation24_spill] sm:$0xff]  ;;  %v3058_v16 = vld [vmem:[#allocation25_spill] sm:$0xff] }
  0xde   :  { %651 = vmatpush.msrb.mxu2 %v1962_v35  ;;  %671 = vmatpush.msrb.mxu3 %v1912_v18  ;;  %v3059_v18 = vld [vmem:[#allocation26_spill] sm:$0xff] }
  0xdf   :  { %612 = vmatpush.msrb.mxu0 %v1917_v20  ;;  %632 = vmatpush.msrb.mxu1 %v1919_v21 }
  0xe0   :  { %652 = vmatpush.msrb.mxu2 %v1974_v39  ;;  %672 = vmatpush.msrb.mxu3 %v1924_v22 }
  0xe1   :  { %613 = vmatpush.msrb.mxu0 %v1929_v24  ;;  %633 = vmatpush.msrb.mxu1 %v1931_v25 }
  0xe2   :  { %653 = vmatpush.msrb.mxu2 %v1986_v43  ;;  %673 = vmatpush.msrb.mxu3 %v1936_v26 }
  0xe3   :  { %614 = vmatpush.msrb.mxu0 %v1941_v28  ;;  %634 = vmatpush.msrb.mxu1 %v1943_v29 }
  0xe4   :  { %654 = vmatpush.msrb.mxu2 %v1998_v47  ;;  %674 = vmatpush.msrb.mxu3 %v1948_v30 }
  0xe5   :  { %615 = vmatpush.msrb.mxu0 %v1953_v32  ;;  %635 = vmatpush.msrb.mxu1 %v3043_v0 }
  0xe6   :  { %655 = vmatpush.msrb.mxu2 %v3044_v2  ;;  %675 = vmatpush.msrb.mxu3 %v3045_v3 }
  0xe7   :  { %616 = vmatpush.msrb.mxu0 %v3046_v4  ;;  %636 = vmatpush.msrb.mxu1 %v3047_v5 }
  0xe8   :  { %656 = vmatpush.msrb.mxu2 %v3048_v6  ;;  %676 = vmatpush.msrb.mxu3 %v3049_v7 }
  0xe9   :  { %617 = vmatpush.msrb.mxu0 %v3050_v8  ;;  %637 = vmatpush.msrb.mxu1 %v3051_v9 }
  0xea   :  { %657 = vmatpush.msrb.mxu2 %v3052_v10  ;;  %677 = vmatpush.msrb.mxu3 %v3053_v11 }
  0xeb   :  { %618 = vmatpush.msrb.mxu0 %v3054_v12  ;;  %638 = vmatpush.msrb.mxu1 %v3055_v13 }
  0xec   :  { %658 = vmatpush.msrb.mxu2 %v3056_v14  ;;  %678 = vmatpush.msrb.mxu3 %v3057_v15 }
  0xed   :  { %619 = vmatpush.msrb.mxu0 %v3058_v16  ;;  %639 = vmatpush.msrb.mxu1 %v3059_v18 }
  0xee   :  { %659 = vmatpush.msrb.mxu2 %v3060_v33  ;;  %679 = vmatpush.msrb.mxu3 %v3061_v36 }
  0xef   :  { %620 = vmatpush.msrb.mxu0 %v3062_v40  ;;  %640 = vmatpush.msrb.mxu1 %v3063_v51 }
  0xf0   :  { %660 = vmatpush.msrb.mxu2 %v3064_v63  ;;  %680 = vmatpush.msrb.mxu3 %v3065_v58 }
  0xf1   :  { %621 = vmatpush.msrb.mxu0 %v3066_v57  ;;  %641 = vmatpush.msrb.mxu1 %v3067_v48 }
  0xf2   :  { %661 = vmatpush.msrb.mxu2 %v3068_v53  ;;  %681 = vmatpush.msrb.mxu3 %v3069_v52 }
 0x14e   :  { %v293_v55 = vpop.f32.mrf.mxu0  ;;  %v313_v1 = vpop.f32.mrf.mxu1 }
 0x14f   :  { %v356_v49 = vadd.f32 %v1474_v50, %v293_v55  ;;  %v357_v59 = vadd.f32 %v1475_v54, %v313_v1  ;;  %v3070_v50 = vld [vmem:[#allocation31_spill] sm:$0xff]  ;;  %v1476_v54 = vld [vmem:[%s2883_s1 + $0x30] sm:$0xff]  ;;  %v3071_v1 = vmov 0  }
 0x150   :  { %vm1490_vm0 = vcmp.gt.s32.totalorder %v3070_v50, 2  ;;  %vm1499_vm1 = vcmp.gt.s32.totalorder %v3070_v50, 3  ;;  %vm1535_vm7 = vcmp.gt.s32.totalorder %v3070_v50, 7 }
 0x151   :  { %v1478_v46 = vmul.f32 -1.442695, %v356_v49  ;;  %v1479_v62 = vmul.f32 -1.442695, %v357_v59  ;;  %v591_v49 = vsel %vm1490_vm0, 1, %v3071_v1 }
 0x152   :  { %593 = vperm.xlu1 %1549, %v591_v49  }
 0x153   :  { %1567 = vpow2.f32 %v1478_v46 }
 0x154   :  { %1569 = vpow2.f32 %v1479_v62 }
 0x155   :  { %v353_v44 = vpop.f32.mrf.mxu3  ;;  %v333_v55 = vpop.f32.mrf.mxu2 }
 0x156   :  { %v359_v38 = vadd.f32 %v1477_v45, %v353_v44  ;;  %v358_v45 = vadd.f32 %v1476_v54, %v333_v55 }
 0x158   :  { %v1480_v42 = vmul.f32 -1.442695, %v359_v38 }
 0x159   :  { %v1568_v56 = vpop.eup %1567 }
 0x15a   :  { %v1570_v37 = vpop.eup %1569  ;;  %v363_v41 = vadd.f32 1.0, %v1568_v56  ;;  %1571 = vpow2.f32 %v1480_v42 }
 0x15b   :  { %v382_v61 = vadd.f32 1.0, %v1570_v37  ;;  %v756_v37 = vsel %vm1499_vm1, 1, %v3071_v1 }
 0x15c   :  { %1573 = vrcp.f32 %v363_v41  ;;  %v375_v53 = vand.u32 2147483648, %v363_v41  ;;  %v373_v58 = vand.u32 2147483647, %v363_v41  ;;  %758 = vperm.xlu1 %1549, %v756_v37   ;;  %vm369_vm5 = vweird.f32 %v363_v41 }
 0x15d   :  { %1575 = vrcp.f32 %v382_v61  ;;  %v394_v48 = vand.u32 2147483648, %v382_v61  ;;  %vm388_vm4 = vweird.f32 %v382_v61 }
 0x15e   :  { %v376_v63 = vor.u32 1.1754944e-38, %v375_v53  ;;  %vm374_vm9 = vcmp.eq.f32.partialorder %v373_v58, 8.507059e+37 }
 0x160   :  { %v1572_v59 = vpop.eup %1571 }
 0x161   :  { %v402_v46 = vadd.f32 1.0, %v1572_v59  ;;  %v392_v59 = vand.u32 2147483647, %v382_v61 }
 0x162   :  { %v1574_v62 = vpop.eup %1573 }
 0x163   :  { %v1576_v44 = vpop.eup %1575  ;;  %v365_v38 = vmul.f32 %v1574_v62, %v363_v41  ;;  %1577 = vrcp.f32 %v402_v46  ;;  %vm370_vm2 = vweird.f32 %v1574_v62  ;;  %vm393_vm10 = vcmp.eq.f32.partialorder %v392_v59, 8.507059e+37 }
 0x164   :  { %v384_v42 = vmul.f32 %v1576_v44, %v382_v61  ;;  %1579 = vtanh.f32 %v358_v45  ;;  %vm389_vm3 = vweird.f32 %v1576_v44  ;;  %vm371_vm6 = vmor %vm369_vm5, %vm370_vm2  ;;  %v395_v45 = vor.u32 1.1754944e-38, %v394_v48  ;;  %v429_v61 = vpop.permute.xlu0 %428 }
 0x165   :  { %v366_v56 = vsub.f32 1.0, %v365_v38  ;;  %vm390_vm8 = vmor %vm388_vm4, %vm389_vm3  ;;  %vm430_vm11 = vcmp.eq.s32.totalorder %v429_v61, 1  ;;  %v414_v58 = vand.u32 2147483648, %v402_v46  ;;  %vm408_vm13 = vweird.f32 %v402_v46 }
 0x166   :  { %v385_v52 = vsub.f32 1.0, %v384_v42 }
 0x167   :  { %v367_v57 = vmul.f32 %v1574_v62, %v366_v56  ;;  %v415_v48 = vor.u32 1.1754944e-38, %v414_v58 }
 0x168   :  { %v386_v49 = vmul.f32 %v1576_v44, %v385_v52 }
 0x169   :  { %v1578_v54 = vpop.eup %1577  ;;  %v368_v55 = vadd.f32 %v1574_v62, %v367_v57  ;;  %v1416_v57 = vsel %vm1535_vm7, 1, %v3071_v1 }
 0x16a   :  { %v387_v38 = vadd.f32 %v1576_v44, %v386_v49  ;;  %v404_v51 = vmul.f32 %v1578_v54, %v402_v46  ;;  %v1580_v56 = vpop.eup %1579  ;;  %1418 = vperm.xlu1 %1549, %v1416_v57   ;;  %vm409_vm12 = vweird.f32 %v1578_v54  ;;  %v2368_v57 = vld [vmem:[#allocation4 + $0x178] sm:$0xff] }
 0x16b   :  { %v372_v42 = vsel %vm371_vm6, %v1574_v62, %v368_v55  ;;  %vm410_vm14 = vmor %vm408_vm13, %vm409_vm12  ;;  %v2334_v55 = vld [vmem:[#allocation4 + $0x1c8] sm:$0xff] }
 0x16c   :  { %v377_v40 = vsel %vm374_vm9, %v376_v63, %v372_v42  ;;  %v391_v52 = vsel %vm390_vm8, %v1576_v44, %v387_v38  ;;  %v405_v36 = vsub.f32 1.0, %v404_v51  ;;  %v412_v51 = vand.u32 2147483647, %v402_v46  ;;  %v2328_v46 = vld [vmem:[#allocation4 + $0x1f8] sm:$0xff] }
 0x16d   :  { %v396_v37 = vsel %vm393_vm10, %v395_v45, %v391_v52  ;;  %v419_v33 = vmul.f32 %v1580_v56, %v377_v40  ;;  %v2338_v38 = vld [vmem:[#allocation4 + $0x1d8] sm:$0xff]  ;;  %v2341_v45 = vld [vmem:[#allocation4 + $0x1a0] sm:$0xff] }
 0x16e   :  { %v418_v41 = vmul.f32 %v396_v37, %v2209_v60  ;;  %v406_v53 = vmul.f32 %v1578_v54, %v405_v36  ;;  %vm413_vm15 = vcmp.eq.f32.partialorder %v412_v51, 8.507059e+37  ;;  %v2348_v42 = vld [vmem:[#allocation4 + $0x1b8] sm:$0xff]  ;;  %v2351_v56 = vld [vmem:[#allocation4 + $0x180] sm:$0xff] }
 0x16f   :  { %v2358_v52 = vld [vmem:[#allocation4 + $0x198] sm:$0xff]  ;;  %v2361_v37 = vld [vmem:[#allocation4 + $0x160] sm:$0xff] }
 0x170   :  { %v420_v49 = vadd.f32 %v419_v33, %v418_v41  ;;  %v407_v50 = vadd.f32 %v1578_v54, %v406_v53  ;;  %v2371_v41 = vld [vmem:[#allocation4 + $0x140] sm:$0xff]  ;;  %v2378_v53 = vld [vmem:[#allocation4 + $0x158] sm:$0xff] }
 0x172   :  { %1581 = vtanh.f32 %v420_v49  ;;  %v2307_v63 = vsel %vm430_vm11, %v420_v49, %v2209_v60  ;;  %v411_v40 = vsel %vm410_vm14, %v1578_v54, %v407_v50  ;;  %v2321_v60 = vld [vmem:[#allocation4 + $0x1e0] sm:$0xff] }
 0x173   :  { %v416_v36 = vsel %vm413_vm15, %v415_v48, %v411_v40  ;;  %v2331_v54 = vld [vmem:[#allocation4 + $0x1c0] sm:$0xff] }
 0x178   :  { %v1582_v62 = vpop.eup %1581 }
 0x179   :  { %v422_v44 = vmul.f32 %v1582_v62, %v416_v36 }
 0x17b   :  { %v2311_v33 = vsel %vm430_vm11, %v422_v44, %v2214_v34  ;;  %v433_v59 = vsel %vm430_vm11, %v422_v44, 0.0  ;;  %v2324_v34 = vld [vmem:[#allocation4 + $0x1e8] sm:$0xff] }
 0x17c   :  { %1482 = vst [vmem:[%s2885_s3 + $0x8] sm:$0xff] %v433_v59  ;;  %457 = vmatmul.f32.vlgmr.msra.gmra.mxu0 %v2311_v33  ;;  %477 = vmatmul.f32.vlgmr.msra.gmra.mxu1 %v2311_v33 }
 0x17d   :  { %497 = vmatmul.f32.vlgmr.msra.gmra.mxu2 %v2311_v33  ;;  %517 = vmatmul.f32.vlgmr.msra.gmra.mxu3 %v2311_v33 }
 0x17e   :  { %771 = vmatpush.msra.mxu0 %v2321_v60  ;;  %791 = vmatpush.msra.mxu1 %v2324_v34 }
 0x17f   :  { %811 = vmatpush.msra.mxu2 %v1908_v17  ;;  %831 = vmatpush.msra.mxu3 %v2328_v46  ;;  %v2344_v17 = vld [vmem:[#allocation4 + $0x1a8] sm:$0xff] }
 0x180   :  { %772 = vmatpush.msra.mxu0 %v2331_v54  ;;  %792 = vmatpush.msra.mxu1 %v2334_v55 }
 0x181   :  { %812 = vmatpush.msra.mxu2 %v1914_v19  ;;  %832 = vmatpush.msra.mxu3 %v2338_v38  ;;  %v2354_v19 = vld [vmem:[#allocation4 + $0x188] sm:$0xff] }
 0x182   :  { %773 = vmatpush.msra.mxu0 %v2341_v45  ;;  %793 = vmatpush.msra.mxu1 %v2344_v17 }
 0x183   :  { %813 = vmatpush.msra.mxu2 %v1926_v23  ;;  %833 = vmatpush.msra.mxu3 %v2348_v42  ;;  %v2364_v23 = vld [vmem:[#allocation4 + $0x168] sm:$0xff] }
 0x184   :  { %774 = vmatpush.msra.mxu0 %v2351_v56  ;;  %794 = vmatpush.msra.mxu1 %v2354_v19 }
 0x185   :  { %814 = vmatpush.msra.mxu2 %v1938_v27  ;;  %834 = vmatpush.msra.mxu3 %v2358_v52  ;;  %v2374_v27 = vld [vmem:[#allocation4 + $0x148] sm:$0xff] }
 0x186   :  { %775 = vmatpush.msra.mxu0 %v2361_v37  ;;  %795 = vmatpush.msra.mxu1 %v2364_v23 }
 0x187   :  { %815 = vmatpush.msra.mxu2 %v1950_v31  ;;  %835 = vmatpush.msra.mxu3 %v2368_v57  ;;  %v3081_v31 = vld [vmem:[#allocation36_spill] sm:$0xff] }
 0x188   :  { %776 = vmatpush.msra.mxu0 %v2371_v41  ;;  %796 = vmatpush.msra.mxu1 %v2374_v27 }
 0x189   :  { %816 = vmatpush.msra.mxu2 %v1962_v35  ;;  %836 = vmatpush.msra.mxu3 %v2378_v53  ;;  %v1484_v35 = vld [vmem:[%s2883_s1 + $0x48] sm:$0xff] }
 0x18a   :  { %777 = vmatpush.msra.mxu0 %v1917_v20  ;;  %797 = vmatpush.msra.mxu1 %v1919_v21  ;;  %v3072_v20 = vld [vmem:[#allocation39_spill] sm:$0xff] }
 0x18b   :  { %817 = vmatpush.msra.mxu2 %v1974_v39  ;;  %837 = vmatpush.msra.mxu3 %v1924_v22  ;;  %v3073_v21 = vld [vmem:[#allocation27_spill] sm:$0xff]  ;;  %v3074_v22 = vld [vmem:[#allocation29_spill] sm:$0xff] }
 0x18c   :  { %778 = vmatpush.msra.mxu0 %v1929_v24  ;;  %798 = vmatpush.msra.mxu1 %v1931_v25  ;;  %v3075_v24 = vld [vmem:[#allocation30_spill] sm:$0xff]  ;;  %v3076_v25 = vld [vmem:[#allocation40_spill] sm:$0xff] }
 0x18d   :  { %818 = vmatpush.msra.mxu2 %v1986_v43  ;;  %838 = vmatpush.msra.mxu3 %v1936_v26  ;;  %v3077_v26 = vld [vmem:[#allocation32_spill] sm:$0xff] }
 0x18e   :  { %779 = vmatpush.msra.mxu0 %v1941_v28  ;;  %799 = vmatpush.msra.mxu1 %v1943_v29  ;;  %v3078_v28 = vld [vmem:[#allocation34_spill] sm:$0xff]  ;;  %v3079_v29 = vld [vmem:[#allocation35_spill] sm:$0xff] }
 0x18f   :  { %819 = vmatpush.msra.mxu2 %v1998_v47  ;;  %839 = vmatpush.msra.mxu3 %v1948_v30  ;;  %v3080_v30 = vld [vmem:[#allocation41_spill] sm:$0xff] }
 0x190   :  { %780 = vmatpush.msra.mxu0 %v1953_v32  ;;  %800 = vmatpush.msra.mxu1 %v3043_v0  ;;  %v1483_v32 = vld [vmem:[%s2883_s1 + $0x40] sm:$0xff] }
 0x191   :  { %820 = vmatpush.msra.mxu2 %v3044_v2  ;;  %840 = vmatpush.msra.mxu3 %v3045_v3 }
 0x192   :  { %781 = vmatpush.msra.mxu0 %v3046_v4  ;;  %801 = vmatpush.msra.mxu1 %v3047_v5  ;;  %v1486_v4 = vld [vmem:[%s2883_s1 + $0x58] sm:$0xff] }
 0x193   :  { %821 = vmatpush.msra.mxu2 %v3048_v6  ;;  %841 = vmatpush.msra.mxu3 %v3049_v7 }
 0x194   :  { %782 = vmatpush.msra.mxu0 %v3050_v8  ;;  %802 = vmatpush.msra.mxu1 %v3051_v9 }
 0x195   :  { %822 = vmatpush.msra.mxu2 %v3052_v10  ;;  %842 = vmatpush.msra.mxu3 %v3053_v11 }
 0x196   :  { %783 = vmatpush.msra.mxu0 %v3054_v12  ;;  %803 = vmatpush.msra.mxu1 %v3055_v13  ;;  %v1485_v12 = vld [vmem:[%s2883_s1 + $0x50] sm:$0xff] }
 0x197   :  { %823 = vmatpush.msra.mxu2 %v3056_v14  ;;  %843 = vmatpush.msra.mxu3 %v3057_v15 }
 0x198   :  { %784 = vmatpush.msra.mxu0 %v3058_v16  ;;  %804 = vmatpush.msra.mxu1 %v3059_v18 }
 0x199   :  { %824 = vmatpush.msra.mxu2 %v3072_v20  ;;  %844 = vmatpush.msra.mxu3 %v3073_v21 }
 0x19a   :  { %785 = vmatpush.msra.mxu0 %v3074_v22  ;;  %805 = vmatpush.msra.mxu1 %v3075_v24 }
 0x19b   :  { %825 = vmatpush.msra.mxu2 %v3076_v25  ;;  %845 = vmatpush.msra.mxu3 %v3077_v26 }
 0x19c   :  { %786 = vmatpush.msra.mxu0 %v3078_v28  ;;  %806 = vmatpush.msra.mxu1 %v3079_v29 }
 0x19d   :  { %826 = vmatpush.msra.mxu2 %v3080_v30  ;;  %846 = vmatpush.msra.mxu3 %v3081_v31 }
 0x1f9   :  { %v458_v39 = vpop.f32.mrf.mxu0  ;;  %v478_v43 = vpop.f32.mrf.mxu1 }
 0x1fa   :  { %v521_v47 = vadd.f32 %v1483_v32, %v458_v39  ;;  %v522_v0 = vadd.f32 %v1484_v35, %v478_v43  ;;  %v594_v43 = vpop.permute.xlu1 %593 }
 0x1fb   :  { %vm595_vm8 = vcmp.eq.s32.totalorder %v594_v43, 1  ;;  %v2558_v43 = vld [vmem:[#allocation4 + $0x60] sm:$0xff] }
 0x1fc   :  { %v1487_v2 = vmul.f32 -1.442695, %v521_v47  ;;  %v1488_v3 = vmul.f32 -1.442695, %v522_v0  ;;  %3094 = vst [vmem:[#allocation22_spill] sm:$0xff] %v2558_v43 }
 0x1fe   :  { %1583 = vpow2.f32 %v1487_v2 }
 0x1ff   :  { %1585 = vpow2.f32 %v1488_v3 }
 0x200   :  { %v518_v5 = vpop.f32.mrf.mxu3  ;;  %v498_v13 = vpop.f32.mrf.mxu2 }
 0x201   :  { %v524_v6 = vadd.f32 %v1486_v4, %v518_v5  ;;  %v523_v18 = vadd.f32 %v1485_v12, %v498_v13 }
 0x203   :  { %v1489_v7 = vmul.f32 -1.442695, %v524_v6 }
 0x204   :  { %v1584_v8 = vpop.eup %1583 }
 0x205   :  { %v1586_v9 = vpop.eup %1585  ;;  %v528_v10 = vadd.f32 1.0, %v1584_v8  ;;  %1587 = vpow2.f32 %v1489_v7 }
 0x206   :  { %v547_v11 = vadd.f32 1.0, %v1586_v9 }
 0x207   :  { %1589 = vrcp.f32 %v528_v10  ;;  %v540_v40 = vand.u32 2147483648, %v528_v10  ;;  %v538_v62 = vand.u32 2147483647, %v528_v10  ;;  %vm534_vm2 = vweird.f32 %v528_v10 }
 0x208   :  { %1591 = vrcp.f32 %v547_v11  ;;  %v559_v36 = vand.u32 2147483648, %v547_v11  ;;  %v557_v59 = vand.u32 2147483647, %v547_v11  ;;  %vm553_vm4 = vweird.f32 %v547_v11 }
 0x209   :  { %v541_v22 = vor.u32 1.1754944e-38, %v540_v40  ;;  %vm539_vm5 = vcmp.eq.f32.partialorder %v538_v62, 8.507059e+37  ;;  %v2501_v40 = vld [vmem:[#allocation4 + $0x108] sm:$0xff]  ;;  %v2507_v62 = vld [vmem:[#allocation4 + $0x118] sm:$0xff] }
 0x20a   :  { %v560_v28 = vor.u32 1.1754944e-38, %v559_v36  ;;  %vm558_vm7 = vcmp.eq.f32.partialorder %v557_v59, 8.507059e+37  ;;  %v2510_v36 = vld [vmem:[#allocation4 + $0xe0] sm:$0xff]  ;;  %v2516_v59 = vld [vmem:[#allocation4 + $0xf0] sm:$0xff] }
 0x20b   :  { %v1588_v14 = vpop.eup %1587 }
 0x20c   :  { %v567_v15 = vadd.f32 1.0, %v1588_v14  ;;  %v2464_v14 = vld [vmem:[#allocation4 + $0x1b0] sm:$0xff] }
 0x20d   :  { %v1590_v16 = vpop.eup %1589 }
 0x20e   :  { %v1592_v61 = vpop.eup %1591  ;;  %v530_v49 = vmul.f32 %v1590_v16, %v528_v10  ;;  %1593 = vrcp.f32 %v567_v15  ;;  %vm535_vm0 = vweird.f32 %v1590_v16  ;;  %v579_v4 = vand.u32 2147483648, %v567_v15 }
 0x20f   :  { %v549_v50 = vmul.f32 %v1592_v61, %v547_v11  ;;  %1595 = vtanh.f32 %v523_v18  ;;  %vm554_vm1 = vweird.f32 %v1592_v61  ;;  %vm536_vm3 = vmor %vm534_vm2, %vm535_vm0  ;;  %vm573_vm10 = vweird.f32 %v567_v15  ;;  %v2482_v18 = vld [vmem:[#allocation4 + $0x150] sm:$0xff] }
 0x210   :  { %v531_v58 = vsub.f32 1.0, %v530_v49  ;;  %vm555_vm6 = vmor %vm553_vm4, %vm554_vm1  ;;  %v577_v6 = vand.u32 2147483647, %v567_v15  ;;  %v580_v8 = vor.u32 1.1754944e-38, %v579_v4  ;;  %v2489_v49 = vld [vmem:[#allocation4 + $0x128] sm:$0xff] }
 0x211   :  { %v550_v51 = vsub.f32 1.0, %v549_v50  ;;  %v2492_v50 = vld [vmem:[#allocation4 + $0x130] sm:$0xff]  ;;  %v2573_v4 = vld [vmem:[#allocation4 + $0x48] sm:$0xff] }
 0x212   :  { %v532_v48 = vmul.f32 %v1590_v16, %v531_v58  ;;  %vm578_vm12 = vcmp.eq.f32.partialorder %v577_v6, 8.507059e+37  ;;  %v2495_v58 = vld [vmem:[#allocation4 + $0x138] sm:$0xff]  ;;  %3099 = vst [vmem:[#allocation26_spill] sm:$0xff] %v2573_v4  ;;  %v2576_v6 = vld [vmem:[#allocation4 + $0x50] sm:$0xff] }
 0x213   :  { %v551_v44 = vmul.f32 %v1592_v61, %v550_v51  ;;  %v2498_v51 = vld [vmem:[#allocation4 + $0x100] sm:$0xff]  ;;  %3100 = vst [vmem:[#allocation31_spill] sm:$0xff] %v2576_v6 }
 0x214   :  { %v1594_v20 = vpop.eup %1593  ;;  %v533_v21 = vadd.f32 %v1590_v16, %v532_v48  ;;  %v2504_v48 = vld [vmem:[#allocation4 + $0x110] sm:$0xff] }
 0x215   :  { %v569_v24 = vmul.f32 %v1594_v20, %v567_v15  ;;  %v552_v25 = vadd.f32 %v1592_v61, %v551_v44  ;;  %v1596_v29 = vpop.eup %1595  ;;  %vm574_vm9 = vweird.f32 %v1594_v20  ;;  %v2470_v15 = vld [vmem:[#allocation4 + $0x190] sm:$0xff]  ;;  %v2513_v44 = vld [vmem:[#allocation4 + $0xe8] sm:$0xff] }
 0x216   :  { %v537_v26 = vsel %vm536_vm3, %v1590_v16, %v533_v21  ;;  %vm575_vm11 = vmor %vm573_vm10, %vm574_vm9  ;;  %v2476_v16 = vld [vmem:[#allocation4 + $0x170] sm:$0xff]  ;;  %v2522_v21 = vld [vmem:[#allocation4 + $0xc0] sm:$0xff] }
 0x217   :  { %v542_v30 = vsel %vm539_vm5, %v541_v22, %v537_v26  ;;  %v570_v31 = vsub.f32 1.0, %v569_v24  ;;  %v556_v32 = vsel %vm555_vm6, %v1592_v61, %v552_v25  ;;  %v2486_v61 = vld [vmem:[#allocation4 + $0x120] sm:$0xff]  ;;  %3082 = vst [vmem:[#allocation13_spill] sm:$0xff] %v2522_v21  ;;  %v2525_v22 = vld [vmem:[#allocation4 + $0xc8] sm:$0xff]  ;;  %v2528_v24 = vld [vmem:[#allocation4 + $0xd0] sm:$0xff] }
 0x218   :  { %v584_v35 = vmul.f32 %v1596_v29, %v542_v30  ;;  %v561_v39 = vsel %vm558_vm7, %v560_v28, %v556_v32  ;;  %3083 = vst [vmem:[#allocation14_spill] sm:$0xff] %v2525_v22  ;;  %v2531_v25 = vld [vmem:[#allocation4 + $0xd8] sm:$0xff]  ;;  %v2534_v26 = vld [vmem:[#allocation4 + $0xa0] sm:$0xff]  ;;  %v2537_v28 = vld [vmem:[#allocation4 + $0xa8] sm:$0xff] }
 0x219   :  { %v571_v47 = vmul.f32 %v1594_v20, %v570_v31  ;;  %v583_v0 = vmul.f32 %v561_v39, %v2307_v63  ;;  %3084 = vst [vmem:[#allocation28_spill] sm:$0xff] %v2528_v24  ;;  %v2540_v29 = vld [vmem:[#allocation4 + $0xb0] sm:$0xff]  ;;  %v2543_v30 = vld [vmem:[#allocation4 + $0xb8] sm:$0xff]  ;;  %v2546_v31 = vld [vmem:[#allocation4 + $0x80] sm:$0xff] }
 0x21a   :  { %3085 = vst [vmem:[#allocation15_spill] sm:$0xff] %v2531_v25  ;;  %v2549_v32 = vld [vmem:[#allocation4 + $0x88] sm:$0xff]  ;;  %v2555_v39 = vld [vmem:[#allocation4 + $0x98] sm:$0xff] }
 0x21b   :  { %v585_v2 = vadd.f32 %v584_v35, %v583_v0  ;;  %v572_v3 = vadd.f32 %v1594_v20, %v571_v47  ;;  %3086 = vst [vmem:[#allocation16_spill] sm:$0xff] %v2534_v26  ;;  %v2552_v35 = vld [vmem:[#allocation4 + $0x90] sm:$0xff]  ;;  %v2561_v47 = vld [vmem:[#allocation4 + $0x68] sm:$0xff] }
 0x21c   :  { %3087 = vst [vmem:[#allocation17_spill] sm:$0xff] %v2537_v28  ;;  %v2564_v0 = vld [vmem:[#allocation4 + $0x70] sm:$0xff] }
 0x21d   :  { %1597 = vtanh.f32 %v585_v2  ;;  %v2436_v5 = vsel %vm595_vm8, %v585_v2, %v2307_v63  ;;  %v576_v7 = vsel %vm575_vm11, %v1594_v20, %v572_v3  ;;  %v2452_v63 = vld [vmem:[#allocation4 + $0x1f0] sm:$0xff]  ;;  %v2519_v20 = vld [vmem:[#allocation4 + $0xf8] sm:$0xff]  ;;  %3088 = vst [vmem:[#allocation33_spill] sm:$0xff] %v2540_v29  ;;  %v2570_v3 = vld [vmem:[#allocation4 + $0x40] sm:$0xff] }
 0x21e   :  { %v581_v10 = vsel %vm578_vm12, %v580_v8, %v576_v7  ;;  %3089 = vst [vmem:[#allocation18_spill] sm:$0xff] %v2543_v30  ;;  %v2567_v2 = vld [vmem:[#allocation4 + $0x78] sm:$0xff]  ;;  %v2582_v8 = vld [vmem:[#allocation4 + $0x20] sm:$0xff] }
 0x21f   :  { %3090 = vst [vmem:[#allocation19_spill] sm:$0xff] %v2546_v31  ;;  %v2579_v7 = vld [vmem:[#allocation4 + $0x58] sm:$0xff] }
 0x220   :  { %3091 = vst [vmem:[#allocation20_spill] sm:$0xff] %v2549_v32 }
 0x221   :  { %3092 = vst [vmem:[#allocation37_spill] sm:$0xff] %v2552_v35 }
 0x222   :  { %3093 = vst [vmem:[#allocation21_spill] sm:$0xff] %v2555_v39 }
 0x223   :  { %v1598_v9 = vpop.eup %1597  ;;  %3095 = vst [vmem:[#allocation23_spill] sm:$0xff] %v2561_v47 }
 0x224   :  { %v587_v11 = vmul.f32 %v1598_v9, %v581_v10  ;;  %3096 = vst [vmem:[#allocation38_spill] sm:$0xff] %v2564_v0  ;;  %v2585_v9 = vld [vmem:[#allocation4 + $0x28] sm:$0xff]  ;;  %v2588_v10 = vld [vmem:[#allocation4 + $0x30] sm:$0xff] }
 0x225   :  { %3097 = vst [vmem:[#allocation24_spill] sm:$0xff] %v2567_v2 }
 0x226   :  { %v2440_v12 = vsel %vm595_vm8, %v587_v11, %v2311_v33  ;;  %v598_v13 = vsel %vm595_vm8, %v587_v11, 0.0  ;;  %v2458_v33 = vld [vmem:[#allocation4 + $0x1d0] sm:$0xff]  ;;  %3098 = vst [vmem:[#allocation25_spill] sm:$0xff] %v2570_v3  ;;  %v2591_v11 = vld [vmem:[#allocation4 + $0x38] sm:$0xff] }
 0x227   :  { %1491 = vst [vmem:[%s2885_s3 + $0x10] sm:$0xff] %v598_v13  ;;  %622 = vmatmul.f32.vlgmr.msrb.gmra.mxu0 %v2440_v12  ;;  %642 = vmatmul.f32.vlgmr.msrb.gmra.mxu1 %v2440_v12  ;;  %v2594_v13 = vld [vmem:[#allocation4] sm:$0xff] }
 0x228   :  { %662 = vmatmul.f32.vlgmr.msrb.gmra.mxu2 %v2440_v12  ;;  %682 = vmatmul.f32.vlgmr.msrb.gmra.mxu3 %v2440_v12  ;;  %3101 = vst [vmem:[#allocation39_spill] sm:$0xff] %v2579_v7 }
 0x229   :  { %936 = vmatpush.msrb.mxu0 %v2321_v60  ;;  %956 = vmatpush.msrb.mxu1 %v2324_v34  ;;  %3102 = vst [vmem:[#allocation27_spill] sm:$0xff] %v2582_v8 }
 0x22a   :  { %976 = vmatpush.msrb.mxu2 %v2452_v63  ;;  %996 = vmatpush.msrb.mxu3 %v2328_v46  ;;  %3103 = vst [vmem:[#allocation29_spill] sm:$0xff] %v2585_v9 }
 0x22b   :  { %937 = vmatpush.msrb.mxu0 %v2331_v54  ;;  %957 = vmatpush.msrb.mxu1 %v2334_v55  ;;  %3104 = vst [vmem:[#allocation30_spill] sm:$0xff] %v2588_v10 }
 0x22c   :  { %977 = vmatpush.msrb.mxu2 %v2458_v33  ;;  %997 = vmatpush.msrb.mxu3 %v2338_v38  ;;  %3105 = vst [vmem:[#allocation40_spill] sm:$0xff] %v2591_v11 }
 0x22d   :  { %938 = vmatpush.msrb.mxu0 %v2341_v45  ;;  %958 = vmatpush.msrb.mxu1 %v2344_v17  ;;  %3106 = vst [vmem:[#allocation32_spill] sm:$0xff] %v2594_v13 }
 0x22e   :  { %978 = vmatpush.msrb.mxu2 %v2464_v14  ;;  %998 = vmatpush.msrb.mxu3 %v2348_v42 }
 0x22f   :  { %939 = vmatpush.msrb.mxu0 %v2351_v56  ;;  %959 = vmatpush.msrb.mxu1 %v2354_v19 }
 0x230   :  { %979 = vmatpush.msrb.mxu2 %v2470_v15  ;;  %999 = vmatpush.msrb.mxu3 %v2358_v52 }
 0x231   :  { %940 = vmatpush.msrb.mxu0 %v2361_v37  ;;  %960 = vmatpush.msrb.mxu1 %v2364_v23 }
 0x232   :  { %980 = vmatpush.msrb.mxu2 %v2476_v16  ;;  %1000 = vmatpush.msrb.mxu3 %v2368_v57 }
 0x233   :  { %941 = vmatpush.msrb.mxu0 %v2371_v41  ;;  %961 = vmatpush.msrb.mxu1 %v2374_v27 }
 0x234   :  { %981 = vmatpush.msrb.mxu2 %v2482_v18  ;;  %1001 = vmatpush.msrb.mxu3 %v2378_v53 }
 0x235   :  { %942 = vmatpush.msrb.mxu0 %v2486_v61  ;;  %962 = vmatpush.msrb.mxu1 %v2489_v49 }
 0x236   :  { %982 = vmatpush.msrb.mxu2 %v2492_v50  ;;  %1002 = vmatpush.msrb.mxu3 %v2495_v58 }
 0x237   :  { %943 = vmatpush.msrb.mxu0 %v2498_v51  ;;  %963 = vmatpush.msrb.mxu1 %v2501_v40 }
 0x238   :  { %983 = vmatpush.msrb.mxu2 %v2504_v48  ;;  %1003 = vmatpush.msrb.mxu3 %v2507_v62 }
 0x239   :  { %944 = vmatpush.msrb.mxu0 %v2510_v36  ;;  %964 = vmatpush.msrb.mxu1 %v2513_v44 }
 0x23a   :  { %984 = vmatpush.msrb.mxu2 %v2516_v59  ;;  %1004 = vmatpush.msrb.mxu3 %v2519_v20 }
 0x23b   :  { %945 = vmatpush.msrb.mxu0 %v2522_v21  ;;  %965 = vmatpush.msrb.mxu1 %v2525_v22 }
 0x23c   :  { %985 = vmatpush.msrb.mxu2 %v2528_v24  ;;  %1005 = vmatpush.msrb.mxu3 %v2531_v25 }
 0x23d   :  { %946 = vmatpush.msrb.mxu0 %v2534_v26  ;;  %966 = vmatpush.msrb.mxu1 %v2537_v28 }
 0x23e   :  { %986 = vmatpush.msrb.mxu2 %v2540_v29  ;;  %1006 = vmatpush.msrb.mxu3 %v2543_v30 }
 0x23f   :  { %947 = vmatpush.msrb.mxu0 %v2546_v31  ;;  %967 = vmatpush.msrb.mxu1 %v2549_v32 }
 0x240   :  { %987 = vmatpush.msrb.mxu2 %v2552_v35  ;;  %1007 = vmatpush.msrb.mxu3 %v2555_v39 }
 0x241   :  { %948 = vmatpush.msrb.mxu0 %v2558_v43  ;;  %968 = vmatpush.msrb.mxu1 %v2561_v47 }
 0x242   :  { %988 = vmatpush.msrb.mxu2 %v2564_v0  ;;  %1008 = vmatpush.msrb.mxu3 %v2567_v2 }
 0x243   :  { %949 = vmatpush.msrb.mxu0 %v2570_v3  ;;  %969 = vmatpush.msrb.mxu1 %v2573_v4 }
 0x244   :  { %989 = vmatpush.msrb.mxu2 %v2576_v6  ;;  %1009 = vmatpush.msrb.mxu3 %v2579_v7  ;;  %v2597_v7 = vld [vmem:[#allocation4 + $0x8] sm:$0xff] }
 0x245   :  { %950 = vmatpush.msrb.mxu0 %v2582_v8  ;;  %970 = vmatpush.msrb.mxu1 %v2585_v9  ;;  %3107 = vst [vmem:[#allocation34_spill] sm:$0xff] %v2597_v7  ;;  %v2600_v8 = vld [vmem:[#allocation4 + $0x10] sm:$0xff]  ;;  %v2603_v9 = vld [vmem:[#allocation4 + $0x18] sm:$0xff] }
 0x246   :  { %990 = vmatpush.msrb.mxu2 %v2588_v10  ;;  %1010 = vmatpush.msrb.mxu3 %v2591_v11  ;;  %3108 = vst [vmem:[#allocation35_spill] sm:$0xff] %v2600_v8  ;;  %v1492_v11 = vld [vmem:[%s2883_s1 + $0x60] sm:$0xff] }
 0x247   :  { %951 = vmatpush.msrb.mxu0 %v2594_v13  ;;  %971 = vmatpush.msrb.mxu1 %v2597_v7  ;;  %3109 = vst [vmem:[#allocation41_spill] sm:$0xff] %v2603_v9  ;;  %v1493_v13 = vld [vmem:[%s2883_s1 + $0x68] sm:$0xff] }
 0x248   :  { %991 = vmatpush.msrb.mxu2 %v2600_v8  ;;  %1011 = vmatpush.msrb.mxu3 %v2603_v9  ;;  %v1495_v8 = vld [vmem:[%s2883_s1 + $0x78] sm:$0xff] }
 0x2a4   :  { %v623_v10 = vpop.f32.mrf.mxu0  ;;  %v643_v6 = vpop.f32.mrf.mxu1 }
 0x2a5   :  { %v686_v4 = vadd.f32 %v1492_v11, %v623_v10  ;;  %v687_v7 = vadd.f32 %v1493_v13, %v643_v6 }
 0x2a7   :  { %v1496_v3 = vmul.f32 -1.442695, %v686_v4  ;;  %v1497_v2 = vmul.f32 -1.442695, %v687_v7  ;;  %v1743_v4 = vld [vmem:[%s2882_s0] sm:$0xff] }
 0x2a8   :  { %vm1508_vm13 = vcmp.gt.s32.totalorder %v1743_v4, 4  ;;  %vm1517_vm14 = vcmp.gt.s32.totalorder %v1743_v4, 5 }
 0x2a9   :  { %1599 = vpow2.f32 %v1496_v3  ;;  %v1494_v3 = vld [vmem:[%s2883_s1 + $0x70] sm:$0xff]  ;;  %v921_v6 = vsel %vm1508_vm13, 1, %v3071_v1  ;;  %v1086_v11 = vsel %vm1517_vm14, 1, %v3071_v1 }
 0x2aa   :  { %1601 = vpow2.f32 %v1497_v2  ;;  %923 = vperm.xlu2 %1550, %v921_v6  }
 0x2ab   :  { %v683_v9 = vpop.f32.mrf.mxu3  ;;  %v663_v2 = vpop.f32.mrf.mxu2 }
 0x2ac   :  { %v689_v0 = vadd.f32 %v1495_v8, %v683_v9 }
 0x2ae   :  { %v1498_v47 = vmul.f32 -1.442695, %v689_v0 }
 0x2af   :  { %v1600_v43 = vpop.eup %1599 }
 0x2b0   :  { %v1602_v39 = vpop.eup %1601  ;;  %v693_v35 = vadd.f32 1.0, %v1600_v43  ;;  %1603 = vpow2.f32 %v1498_v47  ;;  %v688_v47 = vadd.f32 %v1494_v3, %v663_v2 }
 0x2b1   :  { %v712_v32 = vadd.f32 1.0, %v1602_v39 }
 0x2b2   :  { %1605 = vrcp.f32 %v693_v35  ;;  %v705_v31 = vand.u32 2147483648, %v693_v35  ;;  %v703_v28 = vand.u32 2147483647, %v693_v35  ;;  %1088 = vperm.xlu2 %1550, %v1086_v11   ;;  %vm699_vm1 = vweird.f32 %v693_v35 }
 0x2b3   :  { %1607 = vrcp.f32 %v712_v32  ;;  %v724_v30 = vand.u32 2147483648, %v712_v32  ;;  %v722_v6 = vand.u32 2147483647, %v712_v32  ;;  %vm718_vm2 = vweird.f32 %v712_v32 }
 0x2b4   :  { %v706_v2 = vor.u32 1.1754944e-38, %v705_v31  ;;  %vm704_vm5 = vcmp.eq.f32.partialorder %v703_v28, 8.507059e+37 }
 0x2b5   :  { %v725_v1 = vor.u32 1.1754944e-38, %v724_v30  ;;  %vm723_vm6 = vcmp.eq.f32.partialorder %v722_v6, 8.507059e+37 }
 0x2b6   :  { %v1604_v0 = vpop.eup %1603 }
 0x2b7   :  { %v732_v7 = vadd.f32 1.0, %v1604_v0 }
 0x2b8   :  { %v1606_v43 = vpop.eup %1605 }
 0x2b9   :  { %v1608_v39 = vpop.eup %1607  ;;  %v695_v8 = vmul.f32 %v1606_v43, %v693_v35  ;;  %1609 = vrcp.f32 %v732_v7  ;;  %vm700_vm15 = vweird.f32 %v1606_v43  ;;  %v759_v35 = vpop.permute.xlu1 %758  ;;  %vm738_vm9 = vweird.f32 %v732_v7 }
 0x2ba   :  { %v714_v9 = vmul.f32 %v1608_v39, %v712_v32  ;;  %1611 = vtanh.f32 %v688_v47  ;;  %vm719_vm0 = vweird.f32 %v1608_v39  ;;  %vm701_vm3 = vmor %vm699_vm1, %vm700_vm15  ;;  %vm760_vm7 = vcmp.eq.s32.totalorder %v759_v35, 1  ;;  %v3124_v35 = vld [vmem:[#allocation24_spill] sm:$0xff] }
 0x2bb   :  { %v696_v10 = vsub.f32 1.0, %v695_v8  ;;  %vm720_vm4 = vmor %vm718_vm2, %vm719_vm0  ;;  %v742_v30 = vand.u32 2147483647, %v732_v7 }
 0x2bc   :  { %v715_v13 = vsub.f32 1.0, %v714_v9 }
 0x2bd   :  { %v697_v29 = vmul.f32 %v1606_v43, %v696_v10  ;;  %vm743_vm11 = vcmp.eq.f32.partialorder %v742_v30, 8.507059e+37  ;;  %v3128_v30 = vld [vmem:[#allocation39_spill] sm:$0xff] }
 0x2be   :  { %v716_v26 = vmul.f32 %v1608_v39, %v715_v13 }
 0x2bf   :  { %v1610_v3 = vpop.eup %1609  ;;  %v698_v4 = vadd.f32 %v1606_v43, %v697_v29 }
 0x2c0   :  { %v717_v0 = vadd.f32 %v1608_v39, %v716_v26  ;;  %v734_v8 = vmul.f32 %v1610_v3, %v732_v7  ;;  %v1612_v47 = vpop.eup %1611  ;;  %vm739_vm8 = vweird.f32 %v1610_v3  ;;  %v744_v26 = vand.u32 2147483648, %v732_v7  ;;  %v3112_v7 = vld [vmem:[#allocation15_spill] sm:$0xff] }
 0x2c1   :  { %v702_v9 = vsel %vm701_vm3, %v1606_v43, %v698_v4  ;;  %vm740_vm10 = vmor %vm738_vm9, %vm739_vm8 }
 0x2c2   :  { %v707_v10 = vsel %vm704_vm5, %v706_v2, %v702_v9  ;;  %v721_v25 = vsel %vm720_vm4, %v1608_v39, %v717_v0  ;;  %v735_v13 = vsub.f32 1.0, %v734_v8  ;;  %v3114_v2 = vld [vmem:[#allocation17_spill] sm:$0xff]  ;;  %v3116_v8 = vld [vmem:[#allocation18_spill] sm:$0xff]  ;;  %v3118_v9 = vld [vmem:[#allocation20_spill] sm:$0xff] }
 0x2c3   :  { %v726_v24 = vsel %vm723_vm6, %v725_v1, %v721_v25  ;;  %v749_v22 = vmul.f32 %v1612_v47, %v707_v10  ;;  %v745_v25 = vor.u32 1.1754944e-38, %v744_v26  ;;  %v3115_v0 = vld [vmem:[#allocation33_spill] sm:$0xff]  ;;  %v3117_v1 = vld [vmem:[#allocation19_spill] sm:$0xff] }
 0x2c4   :  { %v748_v11 = vmul.f32 %v726_v24, %v2436_v5  ;;  %v736_v29 = vmul.f32 %v1610_v3, %v735_v13  ;;  %v3119_v47 = vld [vmem:[#allocation37_spill] sm:$0xff]  ;;  %v3121_v13 = vld [vmem:[#allocation22_spill] sm:$0xff]  ;;  %v3127_v26 = vld [vmem:[#allocation31_spill] sm:$0xff] }
 0x2c5   :  { %v3120_v10 = vld [vmem:[#allocation21_spill] sm:$0xff] }
 0x2c6   :  { %v750_v32 = vadd.f32 %v749_v22, %v748_v11  ;;  %v737_v31 = vadd.f32 %v1610_v3, %v736_v29  ;;  %v3122_v11 = vld [vmem:[#allocation23_spill] sm:$0xff]  ;;  %v3123_v29 = vld [vmem:[#allocation38_spill] sm:$0xff] }
 0x2c8   :  { %1613 = vtanh.f32 %v750_v32  ;;  %v2626_v28 = vsel %vm760_vm7, %v750_v32, %v2436_v5  ;;  %v741_v43 = vsel %vm740_vm10, %v1610_v3, %v737_v31  ;;  %v3110_v5 = vld [vmem:[#allocation14_spill] sm:$0xff]  ;;  %v3113_v3 = vld [vmem:[#allocation16_spill] sm:$0xff]  ;;  %v3125_v32 = vld [vmem:[#allocation25_spill] sm:$0xff] }
 0x2c9   :  { %v746_v24 = vsel %vm743_vm11, %v745_v25, %v741_v43  ;;  %v3126_v31 = vld [vmem:[#allocation26_spill] sm:$0xff]  ;;  %v3129_v43 = vld [vmem:[#allocation27_spill] sm:$0xff]  ;;  %v3130_v25 = vld [vmem:[#allocation29_spill] sm:$0xff] }
 0x2ce   :  { %v1614_v39 = vpop.eup %1613 }
 0x2cf   :  { %v752_v6 = vmul.f32 %v1614_v39, %v746_v24  ;;  %v3131_v39 = vld [vmem:[#allocation30_spill] sm:$0xff]  ;;  %v3132_v24 = vld [vmem:[#allocation40_spill] sm:$0xff] }
 0x2d1   :  { %v2630_v22 = vsel %vm760_vm7, %v752_v6, %v2440_v12  ;;  %v763_v4 = vsel %vm760_vm7, %v752_v6, 0.0  ;;  %v3111_v12 = vld [vmem:[#allocation28_spill] sm:$0xff] }
 0x2d2   :  { %1500 = vst [vmem:[%s2885_s3 + $0x18] sm:$0xff] %v763_v4  ;;  %787 = vmatmul.f32.vlgmr.msra.gmra.mxu0 %v2630_v22  ;;  %807 = vmatmul.f32.vlgmr.msra.gmra.mxu1 %v2630_v22  ;;  %v3133_v6 = vld [vmem:[#allocation32_spill] sm:$0xff]  ;;  %v3134_v4 = vld [vmem:[#allocation34_spill] sm:$0xff] }
 0x2d3   :  { %827 = vmatmul.f32.vlgmr.msra.gmra.mxu2 %v2630_v22  ;;  %847 = vmatmul.f32.vlgmr.msra.gmra.mxu3 %v2630_v22 }
 0x2d4   :  { %1101 = vmatpush.msra.mxu0 %v2321_v60  ;;  %1121 = vmatpush.msra.mxu1 %v2324_v34 }
 0x2d5   :  { %1141 = vmatpush.msra.mxu2 %v2452_v63  ;;  %1161 = vmatpush.msra.mxu3 %v2328_v46 }
 0x2d6   :  { %1102 = vmatpush.msra.mxu0 %v2331_v54  ;;  %1122 = vmatpush.msra.mxu1 %v2334_v55 }
 0x2d7   :  { %1142 = vmatpush.msra.mxu2 %v2458_v33  ;;  %1162 = vmatpush.msra.mxu3 %v2338_v38 }
 0x2d8   :  { %1103 = vmatpush.msra.mxu0 %v2341_v45  ;;  %1123 = vmatpush.msra.mxu1 %v2344_v17 }
 0x2d9   :  { %1143 = vmatpush.msra.mxu2 %v2464_v14  ;;  %1163 = vmatpush.msra.mxu3 %v2348_v42 }
 0x2da   :  { %1104 = vmatpush.msra.mxu0 %v2351_v56  ;;  %1124 = vmatpush.msra.mxu1 %v2354_v19 }
 0x2db   :  { %1144 = vmatpush.msra.mxu2 %v2470_v15  ;;  %1164 = vmatpush.msra.mxu3 %v2358_v52 }
 0x2dc   :  { %1105 = vmatpush.msra.mxu0 %v2361_v37  ;;  %1125 = vmatpush.msra.mxu1 %v2364_v23 }
 0x2dd   :  { %1145 = vmatpush.msra.mxu2 %v2476_v16  ;;  %1165 = vmatpush.msra.mxu3 %v2368_v57 }
 0x2de   :  { %1106 = vmatpush.msra.mxu0 %v2371_v41  ;;  %1126 = vmatpush.msra.mxu1 %v2374_v27 }
 0x2df   :  { %1146 = vmatpush.msra.mxu2 %v2482_v18  ;;  %1166 = vmatpush.msra.mxu3 %v2378_v53 }
 0x2e0   :  { %1107 = vmatpush.msra.mxu0 %v2486_v61  ;;  %1127 = vmatpush.msra.mxu1 %v2489_v49 }
 0x2e1   :  { %1147 = vmatpush.msra.mxu2 %v2492_v50  ;;  %1167 = vmatpush.msra.mxu3 %v2495_v58 }
 0x2e2   :  { %1108 = vmatpush.msra.mxu0 %v2498_v51  ;;  %1128 = vmatpush.msra.mxu1 %v2501_v40 }
 0x2e3   :  { %1148 = vmatpush.msra.mxu2 %v2504_v48  ;;  %1168 = vmatpush.msra.mxu3 %v2507_v62 }
 0x2e4   :  { %1109 = vmatpush.msra.mxu0 %v2510_v36  ;;  %1129 = vmatpush.msra.mxu1 %v2513_v44 }
 0x2e5   :  { %1149 = vmatpush.msra.mxu2 %v2516_v59  ;;  %1169 = vmatpush.msra.mxu3 %v2519_v20 }
 0x2e6   :  { %1110 = vmatpush.msra.mxu0 %v2522_v21  ;;  %1130 = vmatpush.msra.mxu1 %v3110_v5 }
 0x2e7   :  { %1150 = vmatpush.msra.mxu2 %v3111_v12  ;;  %1170 = vmatpush.msra.mxu3 %v3112_v7 }
 0x2e8   :  { %1111 = vmatpush.msra.mxu0 %v3113_v3  ;;  %1131 = vmatpush.msra.mxu1 %v3114_v2 }
 0x2e9   :  { %1151 = vmatpush.msra.mxu2 %v3115_v0  ;;  %1171 = vmatpush.msra.mxu3 %v3116_v8 }
 0x2ea   :  { %1112 = vmatpush.msra.mxu0 %v3117_v1  ;;  %1132 = vmatpush.msra.mxu1 %v3118_v9 }
 0x2eb   :  { %1152 = vmatpush.msra.mxu2 %v3119_v47  ;;  %1172 = vmatpush.msra.mxu3 %v3120_v10 }
 0x2ec   :  { %1113 = vmatpush.msra.mxu0 %v3121_v13  ;;  %1133 = vmatpush.msra.mxu1 %v3122_v11 }
 0x2ed   :  { %1153 = vmatpush.msra.mxu2 %v3123_v29  ;;  %1173 = vmatpush.msra.mxu3 %v3124_v35  ;;  %v3135_v35 = vld [vmem:[#allocation35_spill] sm:$0xff] }
 0x2ee   :  { %1114 = vmatpush.msra.mxu0 %v3125_v32  ;;  %1134 = vmatpush.msra.mxu1 %v3126_v31  ;;  %v3136_v32 = vld [vmem:[#allocation41_spill] sm:$0xff] }
 0x2ef   :  { %1154 = vmatpush.msra.mxu2 %v3127_v26  ;;  %1174 = vmatpush.msra.mxu3 %v3128_v30  ;;  %v1501_v30 = vld [vmem:[%s2883_s1 + $0x80] sm:$0xff] }
 0x2f0   :  { %1115 = vmatpush.msra.mxu0 %v3129_v43  ;;  %1135 = vmatpush.msra.mxu1 %v3130_v25  ;;  %v1502_v25 = vld [vmem:[%s2883_s1 + $0x88] sm:$0xff] }
 0x2f1   :  { %1155 = vmatpush.msra.mxu2 %v3131_v39  ;;  %1175 = vmatpush.msra.mxu3 %v3132_v24 }
 0x2f2   :  { %1116 = vmatpush.msra.mxu0 %v3133_v6  ;;  %1136 = vmatpush.msra.mxu1 %v3134_v4 }
 0x2f3   :  { %1156 = vmatpush.msra.mxu2 %v3135_v35  ;;  %1176 = vmatpush.msra.mxu3 %v3136_v32  ;;  %v1504_v35 = vld [vmem:[%s2883_s1 + $0x98] sm:$0xff] }
 0x304   :  { %v924_v7 = vpop.permute.xlu2 %923 }
 0x305   :  { %vm925_vm4 = vcmp.eq.s32.totalorder %v924_v7, 1 }
 0x34f   :  { %v788_v43 = vpop.f32.mrf.mxu0  ;;  %v808_v39 = vpop.f32.mrf.mxu1 }
 0x350   :  { %v851_v26 = vadd.f32 %v1501_v30, %v788_v43  ;;  %v852_v24 = vadd.f32 %v1502_v25, %v808_v39 }
 0x352   :  { %v1505_v31 = vmul.f32 -1.442695, %v851_v26  ;;  %v1506_v6 = vmul.f32 -1.442695, %v852_v24  ;;  %v1503_v26 = vld [vmem:[%s2883_s1 + $0x90] sm:$0xff] }
 0x354   :  { %1615 = vpow2.f32 %v1505_v31 }
 0x355   :  { %1617 = vpow2.f32 %v1506_v6 }
 0x356   :  { %v848_v32 = vpop.f32.mrf.mxu3  ;;  %v828_v31 = vpop.f32.mrf.mxu2 }
 0x357   :  { %v854_v4 = vadd.f32 %v1504_v35, %v848_v32  ;;  %v853_v39 = vadd.f32 %v1503_v26, %v828_v31 }
 0x359   :  { %v1507_v29 = vmul.f32 -1.442695, %v854_v4 }
 0x35a   :  { %v1616_v11 = vpop.eup %1615 }
 0x35b   :  { %v1618_v13 = vpop.eup %1617  ;;  %v858_v10 = vadd.f32 1.0, %v1616_v11  ;;  %1619 = vpow2.f32 %v1507_v29 }
 0x35c   :  { %v877_v47 = vadd.f32 1.0, %v1618_v13 }
 0x35d   :  { %1621 = vrcp.f32 %v858_v10  ;;  %v870_v11 = vand.u32 2147483648, %v858_v10  ;;  %v868_v29 = vand.u32 2147483647, %v858_v10  ;;  %vm864_vm14 = vweird.f32 %v858_v10 }
 0x35e   :  { %1623 = vrcp.f32 %v877_v47  ;;  %v889_v9 = vand.u32 2147483648, %v877_v47  ;;  %v887_v8 = vand.u32 2147483647, %v877_v47  ;;  %vm883_vm0 = vweird.f32 %v877_v47 }
 0x35f   :  { %v871_v26 = vor.u32 1.1754944e-38, %v870_v11  ;;  %vm869_vm1 = vcmp.eq.f32.partialorder %v868_v29, 8.507059e+37 }
 0x360   :  { %vm888_vm3 = vcmp.eq.f32.partialorder %v887_v8, 8.507059e+37 }
 0x361   :  { %v1620_v30 = vpop.eup %1619 }
 0x362   :  { %v897_v43 = vadd.f32 1.0, %v1620_v30 }
 0x363   :  { %v1622_v25 = vpop.eup %1621 }
 0x364   :  { %v1624_v24 = vpop.eup %1623  ;;  %v860_v6 = vmul.f32 %v1622_v25, %v858_v10  ;;  %1625 = vrcp.f32 %v897_v43  ;;  %vm865_vm12 = vweird.f32 %v1622_v25  ;;  %vm903_vm6 = vweird.f32 %v897_v43 }
 0x365   :  { %v879_v35 = vmul.f32 %v1624_v24, %v877_v47  ;;  %1627 = vtanh.f32 %v853_v39  ;;  %vm884_vm13 = vweird.f32 %v1624_v24  ;;  %vm866_vm15 = vmor %vm864_vm14, %vm865_vm12 }
 0x366   :  { %v861_v32 = vsub.f32 1.0, %v860_v6  ;;  %vm885_vm2 = vmor %vm883_vm0, %vm884_vm13  ;;  %v890_v6 = vor.u32 1.1754944e-38, %v889_v9 }
 0x367   :  { %v880_v4 = vsub.f32 1.0, %v879_v35 }
 0x368   :  { %v862_v13 = vmul.f32 %v1622_v25, %v861_v32 }
 0x369   :  { %v881_v1 = vmul.f32 %v1624_v24, %v880_v4 }
 0x36a   :  { %v1626_v0 = vpop.eup %1625  ;;  %v863_v2 = vadd.f32 %v1622_v25, %v862_v13 }
 0x36b   :  { %v899_v31 = vmul.f32 %v1626_v0, %v897_v43  ;;  %v882_v30 = vadd.f32 %v1624_v24, %v881_v1  ;;  %v1628_v39 = vpop.eup %1627  ;;  %vm904_vm5 = vweird.f32 %v1626_v0  ;;  %v909_v1 = vand.u32 2147483648, %v897_v43 }
 0x36c   :  { %v867_v3 = vsel %vm866_vm15, %v1622_v25, %v863_v2  ;;  %vm905_vm7 = vmor %vm903_vm6, %vm904_vm5 }
 0x36d   :  { %v872_v35 = vsel %vm869_vm1, %v871_v26, %v867_v3  ;;  %v900_v32 = vsub.f32 1.0, %v899_v31  ;;  %v886_v12 = vsel %vm885_vm2, %v1624_v24, %v882_v30  ;;  %v907_v3 = vand.u32 2147483647, %v897_v43  ;;  %v1512_v31 = vld [vmem:[%s2883_s1 + $0xb0] sm:$0xff] }
 0x36e   :  { %v914_v4 = vmul.f32 %v1628_v39, %v872_v35  ;;  %v891_v5 = vsel %vm888_vm3, %v890_v6, %v886_v12  ;;  %v910_v8 = vor.u32 1.1754944e-38, %v909_v1 }
 0x36f   :  { %v901_v21 = vmul.f32 %v1626_v0, %v900_v32  ;;  %v913_v10 = vmul.f32 %v891_v5, %v2626_v28  ;;  %vm908_vm8 = vcmp.eq.f32.partialorder %v907_v3, 8.507059e+37 }
 0x371   :  { %v915_v11 = vadd.f32 %v914_v4, %v913_v10  ;;  %v902_v13 = vadd.f32 %v1626_v0, %v901_v21 }
 0x373   :  { %1629 = vtanh.f32 %v915_v11  ;;  %v2719_v2 = vsel %vm925_vm4, %v915_v11, %v2626_v28  ;;  %v906_v9 = vsel %vm905_vm7, %v1626_v0, %v902_v13  ;;  %v1513_v28 = vld [vmem:[%s2883_s1 + $0xb8] sm:$0xff] }
 0x374   :  { %v911_v47 = vsel %vm908_vm8, %v910_v8, %v906_v9 }
 0x379   :  { %v1630_v12 = vpop.eup %1629 }
 0x37a   :  { %v917_v25 = vmul.f32 %v1630_v12, %v911_v47 }
 0x37c   :  { %v2723_v5 = vsel %vm925_vm4, %v917_v25, %v2630_v22  ;;  %v928_v21 = vsel %vm925_vm4, %v917_v25, 0.0 }
 0x37d   :  { %1509 = vst [vmem:[%s2885_s3 + $0x20] sm:$0xff] %v928_v21  ;;  %952 = vmatmul.f32.vlgmr.msrb.gmra.mxu0 %v2723_v5  ;;  %972 = vmatmul.f32.vlgmr.msrb.gmra.mxu1 %v2723_v5 }
 0x37e   :  { %992 = vmatmul.f32.vlgmr.msrb.gmra.mxu2 %v2723_v5  ;;  %1012 = vmatmul.f32.vlgmr.msrb.gmra.mxu3 %v2723_v5 }
 0x37f   :  { %1266 = vmatpush.msrb.mxu0 %v2321_v60  ;;  %1286 = vmatpush.msrb.mxu1 %v2324_v34  ;;  %v3137_v60 = vld [vmem:[#allocation13_spill] sm:$0xff]  ;;  %v3138_v34 = vld [vmem:[#allocation14_spill] sm:$0xff] }
 0x380   :  { %1306 = vmatpush.msrb.mxu2 %v2452_v63  ;;  %1326 = vmatpush.msrb.mxu3 %v2328_v46  ;;  %v3139_v46 = vld [vmem:[#allocation28_spill] sm:$0xff]  ;;  %v3155_v63 = vld [vmem:[#allocation31_spill] sm:$0xff] }
 0x381   :  { %1267 = vmatpush.msrb.mxu0 %v2331_v54  ;;  %1287 = vmatpush.msrb.mxu1 %v2334_v55  ;;  %v3140_v54 = vld [vmem:[#allocation15_spill] sm:$0xff]  ;;  %v3141_v55 = vld [vmem:[#allocation16_spill] sm:$0xff] }
 0x382   :  { %1307 = vmatpush.msrb.mxu2 %v2458_v33  ;;  %1327 = vmatpush.msrb.mxu3 %v2338_v38  ;;  %v3142_v38 = vld [vmem:[#allocation17_spill] sm:$0xff]  ;;  %v3156_v33 = vld [vmem:[#allocation39_spill] sm:$0xff] }
 0x383   :  { %1268 = vmatpush.msrb.mxu0 %v2341_v45  ;;  %1288 = vmatpush.msrb.mxu1 %v2344_v17  ;;  %v3143_v45 = vld [vmem:[#allocation33_spill] sm:$0xff]  ;;  %v3144_v17 = vld [vmem:[#allocation18_spill] sm:$0xff] }
 0x384   :  { %1308 = vmatpush.msrb.mxu2 %v2464_v14  ;;  %1328 = vmatpush.msrb.mxu3 %v2348_v42  ;;  %v3145_v42 = vld [vmem:[#allocation19_spill] sm:$0xff] }
 0x385   :  { %1269 = vmatpush.msrb.mxu0 %v2351_v56  ;;  %1289 = vmatpush.msrb.mxu1 %v2354_v19  ;;  %v3146_v56 = vld [vmem:[#allocation20_spill] sm:$0xff]  ;;  %v3147_v19 = vld [vmem:[#allocation37_spill] sm:$0xff]  ;;  %v3157_v14 = vld [vmem:[#allocation27_spill] sm:$0xff] }
 0x386   :  { %1309 = vmatpush.msrb.mxu2 %v2470_v15  ;;  %1329 = vmatpush.msrb.mxu3 %v2358_v52  ;;  %v3148_v52 = vld [vmem:[#allocation21_spill] sm:$0xff] }
 0x387   :  { %1270 = vmatpush.msrb.mxu0 %v2361_v37  ;;  %1290 = vmatpush.msrb.mxu1 %v2364_v23  ;;  %v3149_v37 = vld [vmem:[#allocation22_spill] sm:$0xff]  ;;  %v3150_v23 = vld [vmem:[#allocation23_spill] sm:$0xff]  ;;  %v3158_v15 = vld [vmem:[#allocation29_spill] sm:$0xff] }
 0x388   :  { %1310 = vmatpush.msrb.mxu2 %v2476_v16  ;;  %1330 = vmatpush.msrb.mxu3 %v2368_v57  ;;  %v3151_v57 = vld [vmem:[#allocation38_spill] sm:$0xff] }
 0x389   :  { %1271 = vmatpush.msrb.mxu0 %v2371_v41  ;;  %1291 = vmatpush.msrb.mxu1 %v2374_v27  ;;  %v3152_v41 = vld [vmem:[#allocation24_spill] sm:$0xff]  ;;  %v3153_v27 = vld [vmem:[#allocation25_spill] sm:$0xff]  ;;  %v3159_v16 = vld [vmem:[#allocation30_spill] sm:$0xff] }
 0x38a   :  { %1311 = vmatpush.msrb.mxu2 %v2482_v18  ;;  %1331 = vmatpush.msrb.mxu3 %v2378_v53  ;;  %v3154_v53 = vld [vmem:[#allocation26_spill] sm:$0xff]  ;;  %v3160_v18 = vld [vmem:[#allocation40_spill] sm:$0xff] }
 0x38b   :  { %1272 = vmatpush.msrb.mxu0 %v2486_v61  ;;  %1292 = vmatpush.msrb.mxu1 %v2489_v49  ;;  %v3161_v61 = vld [vmem:[#allocation32_spill] sm:$0xff]  ;;  %v3162_v49 = vld [vmem:[#allocation34_spill] sm:$0xff] }
 0x38c   :  { %1312 = vmatpush.msrb.mxu2 %v2492_v50  ;;  %1332 = vmatpush.msrb.mxu3 %v2495_v58  ;;  %v3163_v50 = vld [vmem:[#allocation35_spill] sm:$0xff]  ;;  %v3164_v58 = vld [vmem:[#allocation41_spill] sm:$0xff] }
 0x38d   :  { %1273 = vmatpush.msrb.mxu0 %v2498_v51  ;;  %1293 = vmatpush.msrb.mxu1 %v2501_v40  ;;  %v1510_v51 = vld [vmem:[%s2883_s1 + $0xa0] sm:$0xff]  ;;  %v1511_v40 = vld [vmem:[%s2883_s1 + $0xa8] sm:$0xff] }
 0x38e   :  { %1313 = vmatpush.msrb.mxu2 %v2504_v48  ;;  %1333 = vmatpush.msrb.mxu3 %v2507_v62 }
 0x38f   :  { %1274 = vmatpush.msrb.mxu0 %v2510_v36  ;;  %1294 = vmatpush.msrb.mxu1 %v2513_v44 }
 0x390   :  { %1314 = vmatpush.msrb.mxu2 %v2516_v59  ;;  %1334 = vmatpush.msrb.mxu3 %v2519_v20 }
 0x391   :  { %1275 = vmatpush.msrb.mxu0 %v3137_v60  ;;  %1295 = vmatpush.msrb.mxu1 %v3138_v34 }
 0x392   :  { %1315 = vmatpush.msrb.mxu2 %v3139_v46  ;;  %1335 = vmatpush.msrb.mxu3 %v3140_v54 }
 0x393   :  { %1276 = vmatpush.msrb.mxu0 %v3141_v55  ;;  %1296 = vmatpush.msrb.mxu1 %v3142_v38 }
 0x394   :  { %1316 = vmatpush.msrb.mxu2 %v3143_v45  ;;  %1336 = vmatpush.msrb.mxu3 %v3144_v17 }
 0x395   :  { %1277 = vmatpush.msrb.mxu0 %v3145_v42  ;;  %1297 = vmatpush.msrb.mxu1 %v3146_v56 }
 0x396   :  { %1317 = vmatpush.msrb.mxu2 %v3147_v19  ;;  %1337 = vmatpush.msrb.mxu3 %v3148_v52 }
 0x397   :  { %1278 = vmatpush.msrb.mxu0 %v3149_v37  ;;  %1298 = vmatpush.msrb.mxu1 %v3150_v23  ;;  %v1089_v37 = vpop.permute.xlu2 %1088 }
 0x398   :  { %1318 = vmatpush.msrb.mxu2 %v3151_v57  ;;  %1338 = vmatpush.msrb.mxu3 %v3152_v41  ;;  %vm1090_vm1 = vcmp.eq.s32.totalorder %v1089_v37, 1 }
 0x399   :  { %1279 = vmatpush.msrb.mxu0 %v3153_v27  ;;  %1299 = vmatpush.msrb.mxu1 %v3154_v53 }
 0x39a   :  { %1319 = vmatpush.msrb.mxu2 %v3155_v63  ;;  %1339 = vmatpush.msrb.mxu3 %v3156_v33 }
 0x39b   :  { %1280 = vmatpush.msrb.mxu0 %v3157_v14  ;;  %1300 = vmatpush.msrb.mxu1 %v3158_v15 }
 0x39c   :  { %1320 = vmatpush.msrb.mxu2 %v3159_v16  ;;  %1340 = vmatpush.msrb.mxu3 %v3160_v18 }
 0x39d   :  { %1281 = vmatpush.msrb.mxu0 %v3161_v61  ;;  %1301 = vmatpush.msrb.mxu1 %v3162_v49 }
 0x39e   :  { %1321 = vmatpush.msrb.mxu2 %v3163_v50  ;;  %1341 = vmatpush.msrb.mxu3 %v3164_v58 }
 0x3fa   :  { %v953_v48 = vpop.f32.mrf.mxu0  ;;  %v973_v62 = vpop.f32.mrf.mxu1 }
 0x3fb   :  { %v1016_v36 = vadd.f32 %v1510_v51, %v953_v48  ;;  %v1017_v44 = vadd.f32 %v1511_v40, %v973_v62 }
 0x3fd   :  { %v1514_v59 = vmul.f32 -1.442695, %v1016_v36  ;;  %v1515_v20 = vmul.f32 -1.442695, %v1017_v44  ;;  %v1522_v44 = vld [vmem:[%s2883_s1 + $0xd8] sm:$0xff] }
 0x3ff   :  { %1631 = vpow2.f32 %v1514_v59 }
 0x400   :  { %1633 = vpow2.f32 %v1515_v20 }
 0x401   :  { %v1013_v22 = vpop.f32.mrf.mxu3  ;;  %v993_v30 = vpop.f32.mrf.mxu2 }
 0x402   :  { %v1019_v7 = vadd.f32 %v1513_v28, %v1013_v22  ;;  %v1018_v32 = vadd.f32 %v1512_v31, %v993_v30 }
 0x404   :  { %v1516_v0 = vmul.f32 -1.442695, %v1019_v7 }
 0x405   :  { %v1632_v43 = vpop.eup %1631 }
 0x406   :  { %v1634_v24 = vpop.eup %1633  ;;  %v1023_v29 = vadd.f32 1.0, %v1632_v43  ;;  %1635 = vpow2.f32 %v1516_v0 }
 0x407   :  { %v1042_v26 = vadd.f32 1.0, %v1634_v24  ;;  %v1521_v24 = vld [vmem:[%s2883_s1 + $0xd0] sm:$0xff] }
 0x408   :  { %1637 = vrcp.f32 %v1023_v29  ;;  %v1035_v3 = vand.u32 2147483648, %v1023_v29  ;;  %v1033_v12 = vand.u32 2147483647, %v1023_v29  ;;  %vm1029_vm11 = vweird.f32 %v1023_v29 }
 0x409   :  { %1639 = vrcp.f32 %v1042_v26  ;;  %v1054_v9 = vand.u32 2147483648, %v1042_v26  ;;  %v1052_v25 = vand.u32 2147483647, %v1042_v26  ;;  %vm1048_vm12 = vweird.f32 %v1042_v26 }
 0x40a   :  { %v1036_v34 = vor.u32 1.1754944e-38, %v1035_v3  ;;  %vm1034_vm15 = vcmp.eq.f32.partialorder %v1033_v12, 8.507059e+37 }
 0x40b   :  { %v1055_v55 = vor.u32 1.1754944e-38, %v1054_v9  ;;  %vm1053_vm0 = vcmp.eq.f32.partialorder %v1052_v25, 8.507059e+37 }
 0x40c   :  { %v1636_v6 = vpop.eup %1635 }
 0x40d   :  { %v1062_v39 = vadd.f32 1.0, %v1636_v6 }
 0x40e   :  { %v1638_v35 = vpop.eup %1637 }
 0x40f   :  { %v1640_v4 = vpop.eup %1639  ;;  %v1025_v10 = vmul.f32 %v1638_v35, %v1023_v29  ;;  %1641 = vrcp.f32 %v1062_v39  ;;  %vm1030_vm9 = vweird.f32 %v1638_v35  ;;  %v1074_v53 = vand.u32 2147483648, %v1062_v39 }
 0x410   :  { %v1044_v11 = vmul.f32 %v1640_v4, %v1042_v26  ;;  %1643 = vtanh.f32 %v1018_v32  ;;  %vm1049_vm10 = vweird.f32 %v1640_v4  ;;  %vm1031_vm13 = vmor %vm1029_vm11, %vm1030_vm9  ;;  %vm1068_vm3 = vweird.f32 %v1062_v39 }
 0x411   :  { %v1026_v13 = vsub.f32 1.0, %v1025_v10  ;;  %vm1050_vm14 = vmor %vm1048_vm12, %vm1049_vm10  ;;  %v1072_v33 = vand.u32 2147483647, %v1062_v39  ;;  %v1075_v15 = vor.u32 1.1754944e-38, %v1074_v53 }
 0x412   :  { %v1045_v1 = vsub.f32 1.0, %v1044_v11 }
 0x413   :  { %v1027_v8 = vmul.f32 %v1638_v35, %v1026_v13  ;;  %vm1073_vm5 = vcmp.eq.f32.partialorder %v1072_v33, 8.507059e+37 }
 0x414   :  { %v1046_v47 = vmul.f32 %v1640_v4, %v1045_v1 }
 0x415   :  { %v1642_v21 = vpop.eup %1641  ;;  %v1028_v60 = vadd.f32 %v1638_v35, %v1027_v8 }
 0x416   :  { %v1047_v46 = vadd.f32 %v1640_v4, %v1046_v47  ;;  %v1064_v54 = vmul.f32 %v1642_v21, %v1062_v39  ;;  %v1644_v45 = vpop.eup %1643  ;;  %vm1069_vm2 = vweird.f32 %v1642_v21 }
 0x417   :  { %v1032_v38 = vsel %vm1031_vm13, %v1638_v35, %v1028_v60  ;;  %vm1070_vm4 = vmor %vm1068_vm3, %vm1069_vm2 }
 0x418   :  { %v1037_v17 = vsel %vm1034_vm15, %v1036_v34, %v1032_v38  ;;  %v1051_v42 = vsel %vm1050_vm14, %v1640_v4, %v1047_v46  ;;  %v1065_v56 = vsub.f32 1.0, %v1064_v54 }
 0x419   :  { %v1056_v19 = vsel %vm1053_vm0, %v1055_v55, %v1051_v42  ;;  %v1079_v52 = vmul.f32 %v1644_v45, %v1037_v17 }
 0x41a   :  { %v1078_v23 = vmul.f32 %v1056_v19, %v2719_v2  ;;  %v1066_v57 = vmul.f32 %v1642_v21, %v1065_v56  ;;  %v1254_v56 = vpop.permute.xlu0 %1253 }
 0x41b   :  { %vm1255_vm14 = vcmp.eq.s32.totalorder %v1254_v56, 1 }
 0x41c   :  { %v1080_v41 = vadd.f32 %v1079_v52, %v1078_v23  ;;  %v1067_v27 = vadd.f32 %v1642_v21, %v1066_v57 }
 0x41e   :  { %1645 = vtanh.f32 %v1080_v41  ;;  %v2812_v63 = vsel %vm1090_vm1, %v1080_v41, %v2719_v2  ;;  %v1071_v14 = vsel %vm1070_vm4, %v1642_v21, %v1067_v27  ;;  %v1519_v2 = vld [vmem:[%s2883_s1 + $0xc0] sm:$0xff] }
 0x41f   :  { %v1076_v18 = vsel %vm1073_vm5, %v1075_v15, %v1071_v14 }
 0x424   :  { %v1646_v16 = vpop.eup %1645 }
 0x425   :  { %v1082_v61 = vmul.f32 %v1646_v16, %v1076_v18 }
 0x427   :  { %v2816_v49 = vsel %vm1090_vm1, %v1082_v61, %v2723_v5  ;;  %v1093_v50 = vsel %vm1090_vm1, %v1082_v61, 0.0  ;;  %v1520_v5 = vld [vmem:[%s2883_s1 + $0xc8] sm:$0xff] }
 0x428   :  { %1518 = vst [vmem:[%s2885_s3 + $0x28] sm:$0xff] %v1093_v50  ;;  %1117 = vmatmul.f32.vlgmr.msra.gmra.mxu0 %v2816_v49  ;;  %1137 = vmatmul.f32.vlgmr.msra.gmra.mxu1 %v2816_v49 }
 0x429   :  { %1157 = vmatmul.f32.vlgmr.msra.gmra.mxu2 %v2816_v49  ;;  %1177 = vmatmul.f32.vlgmr.msra.gmra.mxu3 %v2816_v49 }
 0x4a5   :  { %v1118_v58 = vpop.f32.mrf.mxu0  ;;  %v1138_v51 = vpop.f32.mrf.mxu1 }
 0x4a6   :  { %v1181_v40 = vadd.f32 %v1519_v2, %v1118_v58  ;;  %v1182_v48 = vadd.f32 %v1520_v5, %v1138_v51 }
 0x4a8   :  { %v1523_v62 = vmul.f32 -1.442695, %v1181_v40  ;;  %v1524_v36 = vmul.f32 -1.442695, %v1182_v48  ;;  %v1531_v48 = vld [vmem:[%s2883_s1 + $0xf8] sm:$0xff] }
 0x4aa   :  { %1647 = vpow2.f32 %v1523_v62 }
 0x4ab   :  { %1649 = vpow2.f32 %v1524_v36 }
 0x4ac   :  { %v1178_v59 = vpop.f32.mrf.mxu3  ;;  %v1158_v29 = vpop.f32.mrf.mxu2 }
 0x4ad   :  { %v1184_v20 = vadd.f32 %v1522_v44, %v1178_v59  ;;  %v1183_v6 = vadd.f32 %v1521_v24, %v1158_v29 }
 0x4af   :  { %v1525_v28 = vmul.f32 -1.442695, %v1184_v20 }
 0x4b0   :  { %v1648_v22 = vpop.eup %1647 }
 0x4b1   :  { %v1650_v7 = vpop.eup %1649  ;;  %v1188_v0 = vadd.f32 1.0, %v1648_v22  ;;  %1651 = vpow2.f32 %v1525_v28 }
 0x4b2   :  { %v1207_v43 = vadd.f32 1.0, %v1650_v7  ;;  %v1530_v7 = vld [vmem:[%s2883_s1 + $0xf0] sm:$0xff] }
 0x4b3   :  { %1653 = vrcp.f32 %v1188_v0  ;;  %v1200_v11 = vand.u32 2147483648, %v1188_v0  ;;  %v1198_v3 = vand.u32 2147483647, %v1188_v0  ;;  %vm1194_vm8 = vweird.f32 %v1188_v0 }
 0x4b4   :  { %1655 = vrcp.f32 %v1207_v43  ;;  %v1219_v13 = vand.u32 2147483648, %v1207_v43  ;;  %v1217_v8 = vand.u32 2147483647, %v1207_v43  ;;  %vm1213_vm9 = vweird.f32 %v1207_v43 }
 0x4b5   :  { %v1201_v25 = vor.u32 1.1754944e-38, %v1200_v11  ;;  %vm1199_vm12 = vcmp.eq.f32.partialorder %v1198_v3, 8.507059e+37 }
 0x4b6   :  { %v1220_v34 = vor.u32 1.1754944e-38, %v1219_v13  ;;  %vm1218_vm13 = vcmp.eq.f32.partialorder %v1217_v8, 8.507059e+37 }
 0x4b7   :  { %v1652_v26 = vpop.eup %1651 }
 0x4b8   :  { %v1227_v31 = vadd.f32 1.0, %v1652_v26 }
 0x4b9   :  { %v1654_v30 = vpop.eup %1653 }
 0x4ba   :  { %v1656_v39 = vpop.eup %1655  ;;  %v1190_v35 = vmul.f32 %v1654_v30, %v1188_v0  ;;  %1657 = vrcp.f32 %v1227_v31  ;;  %vm1195_vm6 = vweird.f32 %v1654_v30  ;;  %v1239_v57 = vand.u32 2147483648, %v1227_v31 }
 0x4bb   :  { %v1209_v32 = vmul.f32 %v1656_v39, %v1207_v43  ;;  %1659 = vtanh.f32 %v1183_v6  ;;  %vm1214_vm7 = vweird.f32 %v1656_v39  ;;  %vm1196_vm10 = vmor %vm1194_vm8, %vm1195_vm6  ;;  %vm1233_vm0 = vweird.f32 %v1227_v31 }
 0x4bc   :  { %v1191_v4 = vsub.f32 1.0, %v1190_v35  ;;  %vm1215_vm11 = vmor %vm1213_vm9, %vm1214_vm7  ;;  %v1237_v27 = vand.u32 2147483647, %v1227_v31  ;;  %v1240_v33 = vor.u32 1.1754944e-38, %v1239_v57 }
 0x4bd   :  { %v1210_v10 = vsub.f32 1.0, %v1209_v32 }
 0x4be   :  { %v1192_v1 = vmul.f32 %v1654_v30, %v1191_v4  ;;  %vm1238_vm2 = vcmp.eq.f32.partialorder %v1237_v27, 8.507059e+37 }
 0x4bf   :  { %v1211_v9 = vmul.f32 %v1656_v39, %v1210_v10 }
 0x4c0   :  { %v1658_v12 = vpop.eup %1657  ;;  %v1193_v47 = vadd.f32 %v1654_v30, %v1192_v1 }
 0x4c1   :  { %v1212_v21 = vadd.f32 %v1656_v39, %v1211_v9  ;;  %v1229_v60 = vmul.f32 %v1658_v12, %v1227_v31  ;;  %v1660_v54 = vpop.eup %1659  ;;  %vm1234_vm15 = vweird.f32 %v1658_v12 }
 0x4c2   :  { %v1197_v46 = vsel %vm1196_vm10, %v1654_v30, %v1193_v47  ;;  %vm1235_vm1 = vmor %vm1233_vm0, %vm1234_vm15 }
 0x4c3   :  { %v1202_v55 = vsel %vm1199_vm12, %v1201_v25, %v1197_v46  ;;  %v1216_v38 = vsel %vm1215_vm11, %v1656_v39, %v1212_v21  ;;  %v1230_v45 = vsub.f32 1.0, %v1229_v60 }
 0x4c4   :  { %v1221_v17 = vsel %vm1218_vm13, %v1220_v34, %v1216_v38  ;;  %v1244_v42 = vmul.f32 %v1660_v54, %v1202_v55 }
 0x4c5   :  { %v1243_v19 = vmul.f32 %v1221_v17, %v2812_v63  ;;  %v1231_v52 = vmul.f32 %v1658_v12, %v1230_v45  ;;  %v1419_v45 = vpop.permute.xlu1 %1418 }
 0x4c6   :  { %vm1420_vm11 = vcmp.eq.s32.totalorder %v1419_v45, 1 }
 0x4c7   :  { %v1245_v37 = vadd.f32 %v1244_v42, %v1243_v19  ;;  %v1232_v23 = vadd.f32 %v1658_v12, %v1231_v52 }
 0x4c9   :  { %1661 = vtanh.f32 %v1245_v37  ;;  %v2841_v41 = vsel %vm1255_vm14, %v1245_v37, %v2812_v63  ;;  %v1236_v53 = vsel %vm1235_vm1, %v1658_v12, %v1232_v23  ;;  %v1528_v63 = vld [vmem:[%s2883_s1 + $0xe0] sm:$0xff] }
 0x4ca   :  { %v1241_v15 = vsel %vm1238_vm2, %v1240_v33, %v1236_v53 }
 0x4cf   :  { %v1662_v14 = vpop.eup %1661 }
 0x4d0   :  { %v1247_v16 = vmul.f32 %v1662_v14, %v1241_v15 }
 0x4d2   :  { %v2845_v18 = vsel %vm1255_vm14, %v1247_v16, %v2816_v49  ;;  %v1258_v61 = vsel %vm1255_vm14, %v1247_v16, 0.0  ;;  %v1529_v49 = vld [vmem:[%s2883_s1 + $0xe8] sm:$0xff]  ;;  %s1827_s1 = smov [#allocation8]  }
 0x4d3   :  { %1527 = vst [vmem:[%s2885_s3 + $0x30] sm:$0xff] %v1258_v61  ;;  %1282 = vmatmul.f32.vlgmr.msrb.gmra.mxu0 %v2845_v18  ;;  %1302 = vmatmul.f32.vlgmr.msrb.gmra.mxu1 %v2845_v18  ;;  %s1451_s26 = sshll.u32 %s1827_s1, 4  ;;  %s1452_s26 = int_to_ptr.vmem [resolvable:$true] %s1451_s26 }
 0x4d4   :  { %1322 = vmatmul.f32.vlgmr.msrb.gmra.mxu2 %v2845_v18  ;;  %1342 = vmatmul.f32.vlgmr.msrb.gmra.mxu3 %v2845_v18 }
 0x550   :  { %v1283_v50 = vpop.f32.mrf.mxu0  ;;  %v1303_v2 = vpop.f32.mrf.mxu1 }
 0x551   :  { %v1346_v5 = vadd.f32 %v1528_v63, %v1283_v50  ;;  %v1347_v58 = vadd.f32 %v1529_v49, %v1303_v2 }
 0x553   :  { %v1532_v51 = vmul.f32 -1.442695, %v1346_v5  ;;  %v1533_v40 = vmul.f32 -1.442695, %v1347_v58 }
 0x555   :  { %1663 = vpow2.f32 %v1532_v51 }
 0x556   :  { %1665 = vpow2.f32 %v1533_v40 }
 0x557   :  { %v1343_v62 = vpop.f32.mrf.mxu3  ;;  %v1323_v0 = vpop.f32.mrf.mxu2 }
 0x558   :  { %v1349_v36 = vadd.f32 %v1531_v48, %v1343_v62  ;;  %v1348_v26 = vadd.f32 %v1530_v7, %v1323_v0 }
 0x55a   :  { %v1534_v44 = vmul.f32 -1.442695, %v1349_v36 }
 0x55b   :  { %v1664_v59 = vpop.eup %1663 }
 0x55c   :  { %v1666_v20 = vpop.eup %1665  ;;  %v1353_v28 = vadd.f32 1.0, %v1664_v59  ;;  %1667 = vpow2.f32 %v1534_v44 }
 0x55d   :  { %v1372_v22 = vadd.f32 1.0, %v1666_v20 }
 0x55e   :  { %1669 = vrcp.f32 %v1353_v28  ;;  %v1365_v32 = vand.u32 2147483648, %v1353_v28  ;;  %v1363_v11 = vand.u32 2147483647, %v1353_v28  ;;  %vm1359_vm5 = vweird.f32 %v1353_v28 }
 0x55f   :  { %1671 = vrcp.f32 %v1372_v22  ;;  %v1384_v4 = vand.u32 2147483648, %v1372_v22  ;;  %v1382_v1 = vand.u32 2147483647, %v1372_v22  ;;  %vm1378_vm6 = vweird.f32 %v1372_v22 }
 0x560   :  { %v1366_v8 = vor.u32 1.1754944e-38, %v1365_v32  ;;  %vm1364_vm9 = vcmp.eq.f32.partialorder %v1363_v11, 8.507059e+37 }
 0x561   :  { %v1385_v25 = vor.u32 1.1754944e-38, %v1384_v4  ;;  %vm1383_vm10 = vcmp.eq.f32.partialorder %v1382_v1, 8.507059e+37 }
 0x562   :  { %v1668_v43 = vpop.eup %1667 }
 0x563   :  { %v1392_v24 = vadd.f32 1.0, %v1668_v43 }
 0x564   :  { %v1670_v29 = vpop.eup %1669 }
 0x565   :  { %v1672_v31 = vpop.eup %1671  ;;  %v1355_v30 = vmul.f32 %v1670_v29, %v1353_v28  ;;  %1673 = vrcp.f32 %v1392_v24  ;;  %vm1360_vm3 = vweird.f32 %v1670_v29  ;;  %v1404_v52 = vand.u32 2147483648, %v1392_v24 }
 0x566   :  { %v1374_v6 = vmul.f32 %v1672_v31, %v1372_v22  ;;  %1675 = vtanh.f32 %v1348_v26  ;;  %vm1379_vm4 = vweird.f32 %v1672_v31  ;;  %vm1361_vm7 = vmor %vm1359_vm5, %vm1360_vm3  ;;  %vm1398_vm13 = vweird.f32 %v1392_v24 }
 0x567   :  { %v1356_v39 = vsub.f32 1.0, %v1355_v30  ;;  %vm1380_vm8 = vmor %vm1378_vm6, %vm1379_vm4  ;;  %v1402_v23 = vand.u32 2147483647, %v1392_v24  ;;  %v1405_v27 = vor.u32 1.1754944e-38, %v1404_v52 }
 0x568   :  { %v1375_v35 = vsub.f32 1.0, %v1374_v6 }
 0x569   :  { %v1357_v10 = vmul.f32 %v1670_v29, %v1356_v39  ;;  %vm1403_vm15 = vcmp.eq.f32.partialorder %v1402_v23, 8.507059e+37 }
 0x56a   :  { %v1376_v13 = vmul.f32 %v1672_v31, %v1375_v35 }
 0x56b   :  { %v1674_v3 = vpop.eup %1673  ;;  %v1358_v9 = vadd.f32 %v1670_v29, %v1357_v10 }
 0x56c   :  { %v1377_v12 = vadd.f32 %v1672_v31, %v1376_v13  ;;  %v1394_v47 = vmul.f32 %v1674_v3, %v1392_v24  ;;  %v1676_v60 = vpop.eup %1675  ;;  %vm1399_vm12 = vweird.f32 %v1674_v3 }
 0x56d   :  { %v1362_v21 = vsel %vm1361_vm7, %v1670_v29, %v1358_v9  ;;  %vm1400_vm14 = vmor %vm1398_vm13, %vm1399_vm12 }
 0x56e   :  { %v1367_v34 = vsel %vm1364_vm9, %v1366_v8, %v1362_v21  ;;  %v1381_v46 = vsel %vm1380_vm8, %v1672_v31, %v1377_v12  ;;  %v1395_v54 = vsub.f32 1.0, %v1394_v47 }
 0x56f   :  { %v1386_v55 = vsel %vm1383_vm10, %v1385_v25, %v1381_v46  ;;  %v1409_v38 = vmul.f32 %v1676_v60, %v1367_v34 }
 0x570   :  { %v1408_v17 = vmul.f32 %v1386_v55, %v2841_v41  ;;  %v1396_v42 = vmul.f32 %v1674_v3, %v1395_v54 }
 0x572   :  { %v1410_v56 = vadd.f32 %v1409_v38, %v1408_v17  ;;  %v1397_v19 = vadd.f32 %v1674_v3, %v1396_v42 }
 0x574   :  { %1677 = vtanh.f32 %v1410_v56  ;;  %v1422_v37 = vsel %vm1420_vm11, %v1410_v56, %v2841_v41  ;;  %v1401_v57 = vsel %vm1400_vm14, %v1674_v3, %v1397_v19 }
 0x575   :  { %1432 = vst [vmem:[#allocation8] sm:$0xff] %v1422_v37  ;;  %v1406_v33 = vsel %vm1403_vm15, %v1405_v27, %v1401_v57 }
 0x576   :  { %1456 = dma.vmem_to_hbm [thread:$0]  %s1452_s26, 128, %s1454_s29, [#allocation9]  }
 0x57a   :  { %v1678_v53 = vpop.eup %1677 }
 0x57b   :  { %v1412_v14 = vmul.f32 %v1678_v53, %v1406_v33 }
 0x57d   :  { %v1421_v41 = vsel %vm1420_vm11, %v1412_v14, %v2845_v18  ;;  %v1423_v15 = vsel %vm1420_vm11, %v1412_v14, 0.0 }
 0x57e   :  { %1536 = vst [vmem:[%s2885_s3 + $0x38] sm:$0xff] %v1423_v15 }
 0x57f   :  { %1431 = vst [vmem:[#allocation7] sm:$0xff] %v1421_v41 }
 0x580   :  { %1445 = dma.vmem_to_hbm [thread:$0]  %s1441_s30, 128, %s1443_s8, [#allocation6]  }
 0x581   :  { %1818 = dma.done.wait [#allocation6], 128  }
 0x582   :  { %1819 = vsyncadd [#allocation6], 4294967168 }
 0x583   :  { %1820 = dma.done.wait [#allocation9], 128  }
 0x584   :  { %1821 = vsyncadd [#allocation9], 4294967168 }
 0x585   :  { %1467 = vsyncpa [#allocation5], 1 }
 0x586   :  { %1468 = vsyncpa [#allocation6], 1 }
 0x587   :  { %1469 = vsyncpa [#allocation9], 1 }

// kernel: seq2seq_forward.6
= control target key start
LH: loop header
LB: loop body
LE: loop exit
PB: predicated region body
PF: predicated region fallthrough
CT: control target
= control target key end

     0   :  { %11 = vsyncpa [#allocation5], 0  ;;  %s3214_s0 = inlined_call_operand.vmem [shape: s32[8,1], index: 0, kind: input, shape index: {}]   ;;  %s3215_s1 = inlined_call_operand.vmem [shape: f32[8,8,512], index: 1, kind: input, shape index: {}]   ;;  %s3216_s2 = inlined_call_operand.vmem [shape: f32[128,512], index: 2, kind: input, shape index: {}]   ;;  %s3217_s3 = inlined_call_operand.vmem [shape: f32[8,8,128], index: 3, kind: output, shape index: {0}]   ;;  %s3218_s4 = inlined_call_operand.hbm [shape: f32[8,128], index: 4, kind: output, shape index: {1}]   ;;  %s3219_s5 = inlined_call_operand.hbm [shape: f32[8,128], index: 5, kind: output, shape index: {2}]  }
   0x1   :  { %v1813_v0 = vld [vmem:[%s3216_s2 + $0x1e0] sm:$0xff]  ;;  %v1818_v1 = vld [vmem:[%s3216_s2 + $0x1e8] sm:$0xff]  ;;  %v1823_v2 = vld [vmem:[%s3216_s2 + $0x1f8] sm:$0xff] }
   0x2   :  { %3339 = vst [vmem:[#allocation10_spill] sm:$0xff] %v1818_v1  ;;  %97 = vmatpush.msra.mxu0 %v1813_v0  ;;  %117 = vmatpush.msra.mxu1 %v1818_v1  ;;  %v1830_v3 = vld [vmem:[%s3216_s2 + $0x1c0] sm:$0xff]  ;;  %v1835_v4 = vld [vmem:[%s3216_s2 + $0x1c8] sm:$0xff]  ;;  %v1840_v5 = vld [vmem:[%s3216_s2 + $0x1d8] sm:$0xff] }
   0x3   :  { %157 = vmatpush.msra.mxu3 %v1823_v2  ;;  %v1846_v6 = vld [vmem:[%s3216_s2 + $0x1a0] sm:$0xff]  ;;  %v1851_v7 = vld [vmem:[%s3216_s2 + $0x1a8] sm:$0xff]  ;;  %v1858_v8 = vld [vmem:[%s3216_s2 + $0x1b8] sm:$0xff] }
   0x4   :  { %98 = vmatpush.msra.mxu0 %v1830_v3  ;;  %118 = vmatpush.msra.mxu1 %v1835_v4  ;;  %v1864_v9 = vld [vmem:[%s3216_s2 + $0x180] sm:$0xff]  ;;  %v1869_v10 = vld [vmem:[%s3216_s2 + $0x188] sm:$0xff]  ;;  %v1876_v11 = vld [vmem:[%s3216_s2 + $0x198] sm:$0xff] }
   0x5   :  { %158 = vmatpush.msra.mxu3 %v1840_v5  ;;  %v1882_v12 = vld [vmem:[%s3216_s2 + $0x160] sm:$0xff]  ;;  %v1887_v13 = vld [vmem:[%s3216_s2 + $0x168] sm:$0xff]  ;;  %v1894_v14 = vld [vmem:[%s3216_s2 + $0x178] sm:$0xff] }
   0x6   :  { %99 = vmatpush.msra.mxu0 %v1846_v6  ;;  %119 = vmatpush.msra.mxu1 %v1851_v7  ;;  %v1900_v15 = vld [vmem:[%s3216_s2 + $0x140] sm:$0xff]  ;;  %v1905_v16 = vld [vmem:[%s3216_s2 + $0x148] sm:$0xff]  ;;  %v1910_v17 = vld [vmem:[%s3216_s2 + $0x1f0] sm:$0xff] }
   0x7   :  { %159 = vmatpush.msra.mxu3 %v1858_v8  ;;  %v1917_v18 = vld [vmem:[%s3216_s2 + $0x158] sm:$0xff]  ;;  %v1922_v19 = vld [vmem:[%s3216_s2 + $0x1d0] sm:$0xff]  ;;  %v1928_v20 = vld [vmem:[%s3216_s2 + $0x120] sm:$0xff]  ;;  %137 = vmatpush.msra.mxu2 %v1910_v17 }
   0x8   :  { %100 = vmatpush.msra.mxu0 %v1864_v9  ;;  %120 = vmatpush.msra.mxu1 %v1869_v10  ;;  %v1933_v21 = vld [vmem:[%s3216_s2 + $0x128] sm:$0xff]  ;;  %v1941_v22 = vld [vmem:[%s3216_s2 + $0x138] sm:$0xff]  ;;  %v1946_v23 = vld [vmem:[%s3216_s2 + $0x1b0] sm:$0xff] }
   0x9   :  { %160 = vmatpush.msra.mxu3 %v1876_v11  ;;  %v1952_v24 = vld [vmem:[%s3216_s2 + $0x100] sm:$0xff]  ;;  %v1957_v25 = vld [vmem:[%s3216_s2 + $0x108] sm:$0xff]  ;;  %138 = vmatpush.msra.mxu2 %v1922_v19  ;;  %v1965_v26 = vld [vmem:[%s3216_s2 + $0x118] sm:$0xff] }
   0xa   :  { %101 = vmatpush.msra.mxu0 %v1882_v12  ;;  %121 = vmatpush.msra.mxu1 %v1887_v13  ;;  %v1970_v27 = vld [vmem:[%s3216_s2 + $0x190] sm:$0xff]  ;;  %v1976_v28 = vld [vmem:[%s3216_s2 + $0xe0] sm:$0xff]  ;;  %v1981_v29 = vld [vmem:[%s3216_s2 + $0xe8] sm:$0xff] }
   0xb   :  { %161 = vmatpush.msra.mxu3 %v1894_v14  ;;  %139 = vmatpush.msra.mxu2 %v1946_v23  ;;  %v1989_v30 = vld [vmem:[%s3216_s2 + $0xf8] sm:$0xff]  ;;  %v1994_v31 = vld [vmem:[%s3216_s2 + $0x170] sm:$0xff]  ;;  %v2000_v32 = vld [vmem:[%s3216_s2 + $0xc0] sm:$0xff] }
   0xc   :  { %102 = vmatpush.msra.mxu0 %v1900_v15  ;;  %122 = vmatpush.msra.mxu1 %v1905_v16  ;;  %v2005_v33 = vld [vmem:[%s3216_s2 + $0xc8] sm:$0xff]  ;;  %v2013_v34 = vld [vmem:[%s3216_s2 + $0xd8] sm:$0xff]  ;;  %v2018_v35 = vld [vmem:[%s3216_s2 + $0x150] sm:$0xff] }
   0xd   :  { %162 = vmatpush.msra.mxu3 %v1917_v18  ;;  %3340 = vst [vmem:[#allocation11_spill] sm:$0xff] %v2005_v33  ;;  %140 = vmatpush.msra.mxu2 %v1970_v27  ;;  %v2024_v36 = vld [vmem:[%s3216_s2 + $0xa0] sm:$0xff]  ;;  %v2029_v37 = vld [vmem:[%s3216_s2 + $0xa8] sm:$0xff]  ;;  %v2037_v38 = vld [vmem:[%s3216_s2 + $0xb8] sm:$0xff] }
   0xe   :  { %103 = vmatpush.msra.mxu0 %v1928_v20  ;;  %123 = vmatpush.msra.mxu1 %v1933_v21  ;;  %3341 = vst [vmem:[#allocation12_spill] sm:$0xff] %v2013_v34  ;;  %v2042_v39 = vld [vmem:[%s3216_s2 + $0x130] sm:$0xff]  ;;  %v2048_v40 = vld [vmem:[%s3216_s2 + $0x80] sm:$0xff]  ;;  %v2053_v41 = vld [vmem:[%s3216_s2 + $0x88] sm:$0xff] }
   0xf   :  { %163 = vmatpush.msra.mxu3 %v1941_v22  ;;  %3342 = vst [vmem:[#allocation13_spill] sm:$0xff] %v2024_v36  ;;  %141 = vmatpush.msra.mxu2 %v1994_v31  ;;  %v2061_v42 = vld [vmem:[%s3216_s2 + $0x98] sm:$0xff]  ;;  %v2066_v43 = vld [vmem:[%s3216_s2 + $0x110] sm:$0xff]  ;;  %v2072_v44 = vld [vmem:[%s3216_s2 + $0x60] sm:$0xff] }
  0x10   :  { %104 = vmatpush.msra.mxu0 %v1952_v24  ;;  %124 = vmatpush.msra.mxu1 %v1957_v25  ;;  %3343 = vst [vmem:[#allocation14_spill] sm:$0xff] %v2029_v37  ;;  %v2077_v45 = vld [vmem:[%s3216_s2 + $0x68] sm:$0xff] }
  0x11   :  { %164 = vmatpush.msra.mxu3 %v1965_v26  ;;  %3344 = vst [vmem:[#allocation15_spill] sm:$0xff] %v2037_v38  ;;  %142 = vmatpush.msra.mxu2 %v2018_v35 }
  0x12   :  { %105 = vmatpush.msra.mxu0 %v1976_v28  ;;  %125 = vmatpush.msra.mxu1 %v1981_v29  ;;  %3345 = vst [vmem:[#allocation16_spill] sm:$0xff] %v2048_v40 }
  0x13   :  { %165 = vmatpush.msra.mxu3 %v1989_v30  ;;  %3346 = vst [vmem:[#allocation17_spill] sm:$0xff] %v2053_v41  ;;  %143 = vmatpush.msra.mxu2 %v2042_v39 }
  0x14   :  { %106 = vmatpush.msra.mxu0 %v2000_v32  ;;  %126 = vmatpush.msra.mxu1 %v2005_v33  ;;  %3347 = vst [vmem:[#allocation18_spill] sm:$0xff] %v2061_v42 }
  0x15   :  { %166 = vmatpush.msra.mxu3 %v2013_v34  ;;  %3348 = vst [vmem:[#allocation19_spill] sm:$0xff] %v2072_v44 }
  0x16   :  { %107 = vmatpush.msra.mxu0 %v2024_v36  ;;  %127 = vmatpush.msra.mxu1 %v2029_v37  ;;  %3349 = vst [vmem:[#allocation20_spill] sm:$0xff] %v2077_v45 }
  0x17   :  { %167 = vmatpush.msra.mxu3 %v2037_v38 }
  0x18   :  { %12 = vsyncpa [#allocation7], 0  ;;  %108 = vmatpush.msra.mxu0 %v2048_v40  ;;  %128 = vmatpush.msra.mxu1 %v2053_v41  ;;  %v2085_v46 = vld [vmem:[%s3216_s2 + $0x78] sm:$0xff]  ;;  %v2090_v47 = vld [vmem:[%s3216_s2 + $0xf0] sm:$0xff]  ;;  %v1776_v61 = vmov 0.0   ;;  %v3228_v62 = vmov 0  }
  0x19   :  { %3350 = vst [vmem:[#allocation21_spill] sm:$0xff] %v2085_v46  ;;  %168 = vmatpush.msra.mxu3 %v2061_v42  ;;  %v2096_v48 = vld [vmem:[%s3216_s2 + $0x40] sm:$0xff]  ;;  %v2101_v49 = vld [vmem:[%s3216_s2 + $0x48] sm:$0xff]  ;;  %144 = vmatpush.msra.mxu2 %v2066_v43  ;;  %v2109_v50 = vld [vmem:[%s3216_s2 + $0x58] sm:$0xff]  ;;  %s1437_s30 = sshll.u32 %s3219_s5, 4  ;;  %s1779_s5 = smov [#allocation4]   ;;  %s1438_s30 = int_to_ptr.hbm [resolvable:$true] %s1437_s30 }
  0x1a   :  { %3351 = vst [vmem:[#allocation22_spill] sm:$0xff] %v2096_v48  ;;  %109 = vmatpush.msra.mxu0 %v2072_v44  ;;  %129 = vmatpush.msra.mxu1 %v2077_v45  ;;  %v2114_v51 = vld [vmem:[%s3216_s2 + $0xd0] sm:$0xff]  ;;  %v2120_v52 = vld [vmem:[%s3216_s2 + $0x20] sm:$0xff]  ;;  %v2125_v53 = vld [vmem:[%s3216_s2 + $0x28] sm:$0xff]  ;;  %s1424_s6 = sshll.u32 %s1779_s5, 4  ;;  %s1426_s9 = sshll.u32 %s3218_s4, 4  ;;  %s1425_s6 = int_to_ptr.vmem [resolvable:$true] %s1424_s6  ;;  %s1427_s9 = int_to_ptr.hbm [resolvable:$true] %s1426_s9 }
  0x1b   :  { %3352 = vst [vmem:[#allocation23_spill] sm:$0xff] %v2101_v49  ;;  %169 = vmatpush.msra.mxu3 %v2085_v46  ;;  %145 = vmatpush.msra.mxu2 %v2090_v47  ;;  %v2131_v54 = vld [vmem:[%s3214_s0] sm:$0xff]  ;;  %v2138_v55 = vld [vmem:[%s3216_s2 + $0x38] sm:$0xff]  ;;  %v2143_v56 = vld [vmem:[%s3216_s2 + $0xb0] sm:$0xff] }
  0x1c   :  { %3353 = vst [vmem:[#allocation24_spill] sm:$0xff] %v2109_v50  ;;  %110 = vmatpush.msra.mxu0 %v2096_v48  ;;  %130 = vmatpush.msra.mxu1 %v2101_v49  ;;  %v2149_v57 = vld [vmem:[%s3216_s2] sm:$0xff]  ;;  %v2154_v58 = vld [vmem:[%s3216_s2 + $0x8] sm:$0xff]  ;;  %v2162_v59 = vld [vmem:[%s3216_s2 + $0x18] sm:$0xff]  ;;  %vm1456_vm0 = vcmp.gt.s32.totalorder %v2131_v54, 0  ;;  %vm1464_vm1 = vcmp.gt.s32.totalorder %v2131_v54, 1 }
  0x1d   :  { %3354 = vst [vmem:[#allocation25_spill] sm:$0xff] %v2114_v51  ;;  %170 = vmatpush.msra.mxu3 %v2109_v50  ;;  %146 = vmatpush.msra.mxu2 %v2114_v51  ;;  %v2172_v60 = vld [vmem:[%s3216_s2 + $0x90] sm:$0xff]  ;;  %v246_v63 = vsel %vm1456_vm0, 1, %v3228_v62  ;;  %vm1509_vm2 = vcmp.gt.s32.totalorder %v2131_v54, 6 }
  0x1e   :  { %3355 = vst [vmem:[#allocation26_spill] sm:$0xff] %v2120_v52  ;;  %111 = vmatpush.msra.mxu0 %v2120_v52  ;;  %131 = vmatpush.msra.mxu1 %v2125_v53 }
  0x1f   :  { %3356 = vst [vmem:[#allocation27_spill] sm:$0xff] %v2125_v53  ;;  %171 = vmatpush.msra.mxu3 %v2138_v55  ;;  %147 = vmatpush.msra.mxu2 %v2143_v56 }
  0x20   :  { %3357 = vst [vmem:[#allocation28_spill] sm:$0xff] %v2131_v54  ;;  %112 = vmatpush.msra.mxu0 %v2149_v57  ;;  %132 = vmatpush.msra.mxu1 %v2154_v58  ;;  %v3371_v54 = vld [vmem:[#allocation10_spill] sm:$0xff] }
  0x21   :  { %3358 = vst [vmem:[#allocation29_spill] sm:$0xff] %v2138_v55  ;;  %172 = vmatpush.msra.mxu3 %v2162_v59  ;;  %113 = vmatmul.f32.vlgmr.msra.gmra.mxu0 %v1776_v61 }
  0x22   :  { %3359 = vst [vmem:[#allocation30_spill] sm:$0xff] %v2143_v56  ;;  %133 = vmatmul.f32.vlgmr.msra.gmra.mxu1 %v1776_v61  ;;  %173 = vmatmul.f32.vlgmr.msra.gmra.mxu3 %v1776_v61 }
  0x23   :  { %3360 = vst [vmem:[#allocation31_spill] sm:$0xff] %v2149_v57  ;;  %v2179_v57 = vld [vmem:[%s3216_s2 + $0x70] sm:$0xff]  ;;  %148 = vmatpush.msra.mxu2 %v2172_v60  ;;  %1528 = vset.pattern.permute.xlu0 %v3228_v62 }
  0x24   :  { %3361 = vst [vmem:[#allocation32_spill] sm:$0xff] %v2154_v58  ;;  %248 = vperm.xlu0 %1528, %v246_v63   ;;  %260 = vmatpush.msrb.mxu0 %v1813_v0  ;;  %v2194_v58 = vld [vmem:[%s3216_s2 + $0x30] sm:$0xff] }
  0x25   :  { %3362 = vst [vmem:[#allocation33_spill] sm:$0xff] %v2162_v59  ;;  %v2186_v59 = vld [vmem:[%s3216_s2 + $0x50] sm:$0xff]  ;;  %149 = vmatpush.msra.mxu2 %v2179_v57  ;;  %280 = vmatpush.msrb.mxu1 %v1818_v1  ;;  %v410_v1 = vsel %vm1464_vm1, 1, %v3228_v62 }
  0x26   :  { %3363 = vst [vmem:[#allocation34_spill] sm:$0xff] %v2172_v60  ;;  %320 = vmatpush.msrb.mxu3 %v1823_v2  ;;  %261 = vmatpush.msrb.mxu0 %v1830_v3  ;;  %v2204_v63 = vld [vmem:[%s3216_s2 + $0x10] sm:$0xff] }
  0x27   :  { %3364 = vst [vmem:[#allocation35_spill] sm:$0xff] %v2179_v57  ;;  %150 = vmatpush.msra.mxu2 %v2186_v59  ;;  %281 = vmatpush.msrb.mxu1 %v1835_v4 }
  0x28   :  { %3365 = vst [vmem:[#allocation36_spill] sm:$0xff] %v2186_v59  ;;  %321 = vmatpush.msrb.mxu3 %v1840_v5  ;;  %262 = vmatpush.msrb.mxu0 %v1846_v6 }
  0x29   :  { %3366 = vst [vmem:[#allocation37_spill] sm:$0xff] %v2194_v58  ;;  %151 = vmatpush.msra.mxu2 %v2194_v58  ;;  %282 = vmatpush.msrb.mxu1 %v1851_v7 }
  0x2a   :  { %3367 = vst [vmem:[#allocation38_spill] sm:$0xff] %v2204_v63  ;;  %322 = vmatpush.msrb.mxu3 %v1858_v8  ;;  %263 = vmatpush.msrb.mxu0 %v1864_v9 }
  0x2b   :  { %152 = vmatpush.msra.mxu2 %v2204_v63  ;;  %283 = vmatpush.msrb.mxu1 %v1869_v10 }
  0x2c   :  { %153 = vmatmul.f32.vlgmr.msra.gmra.mxu2 %v1776_v61  ;;  %412 = vperm.xlu0 %1528, %v410_v1   ;;  %v1235_v1 = vsel %vm1509_vm2, 1, %v3228_v62  ;;  %v3368_v61 = vld [vmem:[#allocation31_spill] sm:$0xff]  ;;  %v3370_v62 = vld [vmem:[#allocation33_spill] sm:$0xff] }
  0x2d   :  { %300 = vmatpush.msrb.mxu2 %v1910_v17  ;;  %323 = vmatpush.msrb.mxu3 %v1876_v11 }
  0x2e   :  { %264 = vmatpush.msrb.mxu0 %v1882_v12  ;;  %284 = vmatpush.msrb.mxu1 %v1887_v13 }
  0x2f   :  { %301 = vmatpush.msrb.mxu2 %v1922_v19  ;;  %324 = vmatpush.msrb.mxu3 %v1894_v14 }
  0x30   :  { %265 = vmatpush.msrb.mxu0 %v1900_v15  ;;  %285 = vmatpush.msrb.mxu1 %v1905_v16 }
  0x31   :  { %302 = vmatpush.msrb.mxu2 %v1946_v23  ;;  %325 = vmatpush.msrb.mxu3 %v1917_v18 }
  0x32   :  { %266 = vmatpush.msrb.mxu0 %v1928_v20  ;;  %286 = vmatpush.msrb.mxu1 %v1933_v21 }
  0x33   :  { %303 = vmatpush.msrb.mxu2 %v1970_v27  ;;  %326 = vmatpush.msrb.mxu3 %v1941_v22 }
  0x34   :  { %1237 = vperm.xlu0 %1528, %v1235_v1   ;;  %267 = vmatpush.msrb.mxu0 %v1952_v24  ;;  %v3369_v1 = vld [vmem:[#allocation32_spill] sm:$0xff] }
  0x35   :  { %304 = vmatpush.msrb.mxu2 %v1994_v31  ;;  %287 = vmatpush.msrb.mxu1 %v1957_v25 }
  0x36   :  { %327 = vmatpush.msrb.mxu3 %v1965_v26  ;;  %268 = vmatpush.msrb.mxu0 %v1976_v28 }
  0x37   :  { %305 = vmatpush.msrb.mxu2 %v2018_v35  ;;  %288 = vmatpush.msrb.mxu1 %v1981_v29 }
  0x38   :  { %328 = vmatpush.msrb.mxu3 %v1989_v30  ;;  %269 = vmatpush.msrb.mxu0 %v2000_v32 }
  0x39   :  { %306 = vmatpush.msrb.mxu2 %v2042_v39  ;;  %289 = vmatpush.msrb.mxu1 %v2005_v33 }
  0x3a   :  { %329 = vmatpush.msrb.mxu3 %v2013_v34  ;;  %270 = vmatpush.msrb.mxu0 %v2024_v36 }
  0x3b   :  { %307 = vmatpush.msrb.mxu2 %v2066_v43  ;;  %290 = vmatpush.msrb.mxu1 %v2029_v37 }
  0x3c   :  { %330 = vmatpush.msrb.mxu3 %v2037_v38  ;;  %271 = vmatpush.msrb.mxu0 %v2048_v40 }
  0x3d   :  { %308 = vmatpush.msrb.mxu2 %v2090_v47  ;;  %291 = vmatpush.msrb.mxu1 %v2053_v41 }
  0x3e   :  { %331 = vmatpush.msrb.mxu3 %v2061_v42  ;;  %272 = vmatpush.msrb.mxu0 %v2072_v44 }
  0x3f   :  { %309 = vmatpush.msrb.mxu2 %v2114_v51  ;;  %292 = vmatpush.msrb.mxu1 %v2077_v45 }
  0x40   :  { %332 = vmatpush.msrb.mxu3 %v2085_v46  ;;  %273 = vmatpush.msrb.mxu0 %v2096_v48 }
  0x41   :  { %310 = vmatpush.msrb.mxu2 %v2143_v56  ;;  %293 = vmatpush.msrb.mxu1 %v2101_v49 }
  0x42   :  { %333 = vmatpush.msrb.mxu3 %v2109_v50  ;;  %274 = vmatpush.msrb.mxu0 %v2120_v52 }
  0x43   :  { %311 = vmatpush.msrb.mxu2 %v2172_v60  ;;  %294 = vmatpush.msrb.mxu1 %v2125_v53 }
  0x44   :  { %334 = vmatpush.msrb.mxu3 %v2138_v55  ;;  %275 = vmatpush.msrb.mxu0 %v3368_v61 }
  0x45   :  { %312 = vmatpush.msrb.mxu2 %v2179_v57  ;;  %295 = vmatpush.msrb.mxu1 %v3369_v1 }
  0x46   :  { %335 = vmatpush.msrb.mxu3 %v3370_v62  ;;  %425 = vmatpush.msra.mxu0 %v1813_v0 }
  0x47   :  { %313 = vmatpush.msrb.mxu2 %v2186_v59  ;;  %445 = vmatpush.msra.mxu1 %v3371_v54 }
  0x48   :  { %485 = vmatpush.msra.mxu3 %v1823_v2  ;;  %426 = vmatpush.msra.mxu0 %v1830_v3 }
  0x49   :  { %314 = vmatpush.msrb.mxu2 %v2194_v58  ;;  %446 = vmatpush.msra.mxu1 %v1835_v4 }
  0x4a   :  { %486 = vmatpush.msra.mxu3 %v1840_v5  ;;  %427 = vmatpush.msra.mxu0 %v1846_v6 }
  0x4b   :  { %315 = vmatpush.msrb.mxu2 %v2204_v63  ;;  %447 = vmatpush.msra.mxu1 %v1851_v7 }
  0x4c   :  { %487 = vmatpush.msra.mxu3 %v1858_v8  ;;  %428 = vmatpush.msra.mxu0 %v1864_v9 }
  0x4d   :  { %465 = vmatpush.msra.mxu2 %v1910_v17  ;;  %448 = vmatpush.msra.mxu1 %v1869_v10 }
  0x4e   :  { %488 = vmatpush.msra.mxu3 %v1876_v11  ;;  %429 = vmatpush.msra.mxu0 %v1882_v12 }
  0x4f   :  { %466 = vmatpush.msra.mxu2 %v1922_v19  ;;  %449 = vmatpush.msra.mxu1 %v1887_v13 }
  0x50   :  { %489 = vmatpush.msra.mxu3 %v1894_v14  ;;  %430 = vmatpush.msra.mxu0 %v1900_v15 }
  0x51   :  { %467 = vmatpush.msra.mxu2 %v1946_v23  ;;  %450 = vmatpush.msra.mxu1 %v1905_v16 }
  0x52   :  { %490 = vmatpush.msra.mxu3 %v1917_v18  ;;  %431 = vmatpush.msra.mxu0 %v1928_v20 }
  0x53   :  { %468 = vmatpush.msra.mxu2 %v1970_v27  ;;  %451 = vmatpush.msra.mxu1 %v1933_v21 }
  0x54   :  { %491 = vmatpush.msra.mxu3 %v1941_v22  ;;  %432 = vmatpush.msra.mxu0 %v1952_v24 }
  0x55   :  { %469 = vmatpush.msra.mxu2 %v1994_v31  ;;  %452 = vmatpush.msra.mxu1 %v1957_v25 }
  0x56   :  { %492 = vmatpush.msra.mxu3 %v1965_v26  ;;  %433 = vmatpush.msra.mxu0 %v1976_v28 }
  0x57   :  { %470 = vmatpush.msra.mxu2 %v2018_v35  ;;  %453 = vmatpush.msra.mxu1 %v1981_v29 }
  0x58   :  { %493 = vmatpush.msra.mxu3 %v1989_v30  ;;  %434 = vmatpush.msra.mxu0 %v2000_v32 }
  0x59   :  { %471 = vmatpush.msra.mxu2 %v2042_v39  ;;  %454 = vmatpush.msra.mxu1 %v2005_v33 }
  0x5a   :  { %494 = vmatpush.msra.mxu3 %v2013_v34  ;;  %435 = vmatpush.msra.mxu0 %v2024_v36 }
  0x5b   :  { %472 = vmatpush.msra.mxu2 %v2066_v43  ;;  %455 = vmatpush.msra.mxu1 %v2029_v37 }
  0x5c   :  { %495 = vmatpush.msra.mxu3 %v2037_v38  ;;  %436 = vmatpush.msra.mxu0 %v2048_v40 }
  0x5d   :  { %473 = vmatpush.msra.mxu2 %v2090_v47  ;;  %456 = vmatpush.msra.mxu1 %v2053_v41 }
  0x5e   :  { %496 = vmatpush.msra.mxu3 %v2061_v42  ;;  %437 = vmatpush.msra.mxu0 %v2072_v44 }
  0x5f   :  { %474 = vmatpush.msra.mxu2 %v2114_v51  ;;  %457 = vmatpush.msra.mxu1 %v2077_v45 }
  0x60   :  { %497 = vmatpush.msra.mxu3 %v2085_v46  ;;  %438 = vmatpush.msra.mxu0 %v2096_v48 }
  0x61   :  { %475 = vmatpush.msra.mxu2 %v2143_v56  ;;  %458 = vmatpush.msra.mxu1 %v2101_v49  ;;  %v3372_v49 = vmov 0  }
  0x62   :  { %498 = vmatpush.msra.mxu3 %v2109_v50  ;;  %439 = vmatpush.msra.mxu0 %v2120_v52 }
  0x63   :  { %476 = vmatpush.msra.mxu2 %v2172_v60  ;;  %459 = vmatpush.msra.mxu1 %v2125_v53 }
  0x64   :  { %499 = vmatpush.msra.mxu3 %v2138_v55  ;;  %440 = vmatpush.msra.mxu0 %v3368_v61  ;;  %v93_v55 = vld [vmem:[%s3215_s1] sm:$0xff] }
  0x65   :  { %477 = vmatpush.msra.mxu2 %v2179_v57  ;;  %460 = vmatpush.msra.mxu1 %v3369_v1  ;;  %v94_v1 = vld [vmem:[%s3215_s1 + $0x8] sm:$0xff] }
  0x66   :  { %500 = vmatpush.msra.mxu3 %v3370_v62  ;;  %1529 = vset.pattern.permute.xlu1 %v3372_v49 }
  0x67   :  { %478 = vmatpush.msra.mxu2 %v2186_v59  ;;  %1530 = vset.pattern.permute.xlu2 %v3372_v49  ;;  %v96_v49 = vld [vmem:[%s3215_s1 + $0x18] sm:$0xff] }
  0x69   :  { %479 = vmatpush.msra.mxu2 %v2194_v58 }
  0x6b   :  { %480 = vmatpush.msra.mxu2 %v2204_v63 }
  0x9e   :  { %v114_v61 = vpop.f32.mrf.mxu0 }
  0x9f   :  { %v177_v53 = vadd.f32 %v114_v61, %v93_v55  ;;  %v134_v52 = vpop.f32.mrf.mxu1 }
  0xa0   :  { %v178_v62 = vadd.f32 %v134_v52, %v94_v1  ;;  %v95_v52 = vld [vmem:[%s3215_s1 + $0x10] sm:$0xff] }
  0xa1   :  { %v1453_v50 = vmul.f32 -1.442695, %v177_v53 }
  0xa2   :  { %v1454_v59 = vmul.f32 -1.442695, %v178_v62 }
  0xa3   :  { %1531 = vpow2.f32 %v1453_v50 }
  0xa4   :  { %1533 = vpow2.f32 %v1454_v59 }
  0xa5   :  { %v174_v63 = vpop.f32.mrf.mxu3 }
  0xa6   :  { %v180_v58 = vadd.f32 %v174_v63, %v96_v49 }
  0xa8   :  { %v1455_v48 = vmul.f32 -1.442695, %v180_v58 }
  0xa9   :  { %v1532_v46 = vpop.eup %1531 }
  0xaa   :  { %v1534_v57 = vpop.eup %1533  ;;  %v184_v45 = vadd.f32 1.0, %v1532_v46  ;;  %1535 = vpow2.f32 %v1455_v48 }
  0xab   :  { %v203_v44 = vadd.f32 1.0, %v1534_v57 }
  0xac   :  { %1537 = vrcp.f32 %v184_v45  ;;  %v196_v48 = vand.u32 2147483648, %v184_v45  ;;  %v194_v42 = vand.u32 2147483647, %v184_v45  ;;  %vm190_vm5 = vweird.f32 %v184_v45 }
  0xad   :  { %1539 = vrcp.f32 %v203_v44  ;;  %v215_v57 = vand.u32 2147483648, %v203_v44  ;;  %v213_v41 = vand.u32 2147483647, %v203_v44  ;;  %vm209_vm6 = vweird.f32 %v203_v44 }
  0xae   :  { %vm195_vm8 = vcmp.eq.f32.partialorder %v194_v42, 8.507059e+37 }
  0xaf   :  { %v154_v50 = vpop.f32.mrf.mxu2  ;;  %vm214_vm10 = vcmp.eq.f32.partialorder %v213_v41, 8.507059e+37 }
  0xb0   :  { %v1536_v53 = vpop.eup %1535  ;;  %v179_v55 = vadd.f32 %v154_v50, %v95_v52 }
  0xb1   :  { %v223_v62 = vadd.f32 1.0, %v1536_v53  ;;  %v197_v53 = vor.u32 1.1754944e-38, %v196_v48  ;;  %v3397_v48 = vld [vmem:[#allocation32_spill] sm:$0xff] }
  0xb2   :  { %v1538_v61 = vpop.eup %1537 }
  0xb3   :  { %v1540_v59 = vpop.eup %1539  ;;  %v186_v1 = vmul.f32 %v1538_v61, %v184_v45  ;;  %1541 = vrcp.f32 %v223_v62  ;;  %vm191_vm3 = vweird.f32 %v1538_v61  ;;  %v235_v33 = vand.u32 2147483648, %v223_v62 }
  0xb4   :  { %v205_v49 = vmul.f32 %v1540_v59, %v203_v44  ;;  %1543 = vtanh.f32 %v179_v55  ;;  %vm210_vm4 = vweird.f32 %v1540_v59  ;;  %vm192_vm7 = vmor %vm190_vm5, %vm191_vm3  ;;  %v216_v55 = vor.u32 1.1754944e-38, %v215_v57  ;;  %v3398_v57 = vld [vmem:[#allocation38_spill] sm:$0xff] }
  0xb5   :  { %v187_v58 = vsub.f32 1.0, %v186_v1  ;;  %vm211_vm9 = vmor %vm209_vm6, %vm210_vm4  ;;  %vm229_vm13 = vweird.f32 %v223_v62 }
  0xb6   :  { %v206_v46 = vsub.f32 1.0, %v205_v49 }
  0xb7   :  { %v188_v63 = vmul.f32 %v1538_v61, %v187_v58 }
  0xb8   :  { %v207_v60 = vmul.f32 %v1540_v59, %v206_v46 }
  0xb9   :  { %v1542_v40 = vpop.eup %1541  ;;  %v189_v38 = vadd.f32 %v1538_v61, %v188_v63  ;;  %v249_v63 = vpop.permute.xlu0 %248 }
  0xba   :  { %v1544_v52 = vpop.eup %1543  ;;  %v225_v50 = vmul.f32 %v1542_v40, %v223_v62  ;;  %v208_v56 = vadd.f32 %v1540_v59, %v207_v60  ;;  %vm250_vm11 = vcmp.eq.s32.totalorder %v249_v63, 1  ;;  %vm230_vm12 = vweird.f32 %v1542_v40 }
  0xbb   :  { %v193_v1 = vsel %vm192_vm7, %v1538_v61, %v189_v38  ;;  %v233_v38 = vand.u32 2147483647, %v223_v62  ;;  %vm231_vm14 = vmor %vm229_vm13, %vm230_vm12  ;;  %v3395_v62 = vld [vmem:[#allocation29_spill] sm:$0xff] }
  0xbc   :  { %v226_v49 = vsub.f32 1.0, %v225_v50  ;;  %v198_v58 = vsel %vm195_vm8, %v197_v53, %v193_v1  ;;  %v212_v37 = vsel %vm211_vm9, %v1540_v59, %v208_v56  ;;  %v236_v56 = vor.u32 1.1754944e-38, %v235_v33  ;;  %v3390_v33 = vld [vmem:[#allocation36_spill] sm:$0xff]  ;;  %v3396_v59 = vld [vmem:[#allocation31_spill] sm:$0xff]  ;;  %v1458_v53 = vld [vmem:[%s3215_s1 + $0x28] sm:$0xff] }
  0xbd   :  { %v217_v46 = vsel %vm214_vm10, %v216_v55, %v212_v37  ;;  %v240_v36 = vmul.f32 %v1544_v52, %v198_v58  ;;  %vm234_vm15 = vcmp.eq.f32.partialorder %v233_v38, 8.507059e+37  ;;  %v3399_v52 = vld [vmem:[#allocation33_spill] sm:$0xff]  ;;  %v1457_v50 = vld [vmem:[%s3215_s1 + $0x20] sm:$0xff] }
  0xbe   :  { %v227_v34 = vmul.f32 %v1542_v40, %v226_v49  ;;  %v239_v51 = vmul.f32 0.0, %v217_v46 }
  0xc0   :  { %v241_v45 = vadd.f32 %v240_v36, %v239_v51  ;;  %v228_v44 = vadd.f32 %v1542_v40, %v227_v34  ;;  %v3391_v36 = vld [vmem:[#allocation24_spill] sm:$0xff]  ;;  %v3393_v51 = vld [vmem:[#allocation27_spill] sm:$0xff] }
  0xc2   :  { %1545 = vtanh.f32 %v241_v45  ;;  %v2349_v60 = vsel %vm250_vm11, %v241_v45, 0.0  ;;  %v232_v42 = vsel %vm231_vm14, %v1542_v40, %v228_v44  ;;  %v3392_v40 = vld [vmem:[#allocation26_spill] sm:$0xff]  ;;  %v1460_v45 = vld [vmem:[%s3215_s1 + $0x38] sm:$0xff] }
  0xc3   :  { %v237_v41 = vsel %vm234_vm15, %v236_v56, %v232_v42 }
  0xc8   :  { %v1546_v37 = vpop.eup %1545 }
  0xc9   :  { %v243_v61 = vmul.f32 %v1546_v37, %v237_v41 }
  0xcb   :  { %1520 = vmatmul.msk.f32.vlgmr.msrb.gmra.mxu0 %vm250_vm11, %v243_v61  ;;  %1521 = vmatmul.msk.f32.vlgmr.msrb.gmra.mxu1 %vm250_vm11, %v243_v61  ;;  %v2354_v34 = vsel %vm250_vm11, %v243_v61, 0.0 }
  0xcc   :  { %1522 = vmatmul.msk.f32.vlgmr.msrb.gmra.mxu2 %vm250_vm11, %v243_v61  ;;  %1523 = vmatmul.msk.f32.vlgmr.msrb.gmra.mxu3 %vm250_vm11, %v243_v61  ;;  %254 = vst [vmem:[%s3217_s3] sm:$0xff] %v2354_v34 }
  0xcd   :  { %590 = vmatpush.msrb.mxu0 %v1813_v0  ;;  %610 = vmatpush.msrb.mxu1 %v3371_v54  ;;  %v3373_v0 = vld [vmem:[#allocation11_spill] sm:$0xff]  ;;  %v3394_v54 = vld [vmem:[#allocation37_spill] sm:$0xff] }
  0xce   :  { %630 = vmatpush.msrb.mxu2 %v1910_v17  ;;  %650 = vmatpush.msrb.mxu3 %v1823_v2  ;;  %v3374_v2 = vld [vmem:[#allocation25_spill] sm:$0xff] }
  0xcf   :  { %591 = vmatpush.msrb.mxu0 %v1830_v3  ;;  %611 = vmatpush.msrb.mxu1 %v1835_v4  ;;  %v3375_v3 = vld [vmem:[#allocation12_spill] sm:$0xff]  ;;  %v3376_v4 = vld [vmem:[#allocation13_spill] sm:$0xff] }
  0xd0   :  { %631 = vmatpush.msrb.mxu2 %v1922_v19  ;;  %651 = vmatpush.msrb.mxu3 %v1840_v5  ;;  %v3377_v5 = vld [vmem:[#allocation14_spill] sm:$0xff] }
  0xd1   :  { %592 = vmatpush.msrb.mxu0 %v1846_v6  ;;  %612 = vmatpush.msrb.mxu1 %v1851_v7  ;;  %v3378_v6 = vld [vmem:[#allocation30_spill] sm:$0xff]  ;;  %v3379_v7 = vld [vmem:[#allocation15_spill] sm:$0xff] }
  0xd2   :  { %632 = vmatpush.msrb.mxu2 %v1946_v23  ;;  %652 = vmatpush.msrb.mxu3 %v1858_v8  ;;  %v3380_v8 = vld [vmem:[#allocation16_spill] sm:$0xff] }
  0xd3   :  { %593 = vmatpush.msrb.mxu0 %v1864_v9  ;;  %613 = vmatpush.msrb.mxu1 %v1869_v10  ;;  %v3381_v9 = vld [vmem:[#allocation17_spill] sm:$0xff]  ;;  %v3382_v10 = vld [vmem:[#allocation34_spill] sm:$0xff] }
  0xd4   :  { %633 = vmatpush.msrb.mxu2 %v1970_v27  ;;  %653 = vmatpush.msrb.mxu3 %v1876_v11  ;;  %v3383_v11 = vld [vmem:[#allocation18_spill] sm:$0xff] }
  0xd5   :  { %594 = vmatpush.msrb.mxu0 %v1882_v12  ;;  %614 = vmatpush.msrb.mxu1 %v1887_v13  ;;  %v3384_v12 = vld [vmem:[#allocation19_spill] sm:$0xff]  ;;  %v3385_v13 = vld [vmem:[#allocation20_spill] sm:$0xff] }
  0xd6   :  { %634 = vmatpush.msrb.mxu2 %v1994_v31  ;;  %654 = vmatpush.msrb.mxu3 %v1894_v14  ;;  %v3386_v14 = vld [vmem:[#allocation35_spill] sm:$0xff] }
  0xd7   :  { %595 = vmatpush.msrb.mxu0 %v1900_v15  ;;  %615 = vmatpush.msrb.mxu1 %v1905_v16  ;;  %v3387_v15 = vld [vmem:[#allocation21_spill] sm:$0xff]  ;;  %v3388_v16 = vld [vmem:[#allocation22_spill] sm:$0xff] }
  0xd8   :  { %635 = vmatpush.msrb.mxu2 %v2018_v35  ;;  %655 = vmatpush.msrb.mxu3 %v1917_v18  ;;  %v3389_v18 = vld [vmem:[#allocation23_spill] sm:$0xff] }
  0xd9   :  { %596 = vmatpush.msrb.mxu0 %v1928_v20  ;;  %616 = vmatpush.msrb.mxu1 %v1933_v21 }
  0xda   :  { %636 = vmatpush.msrb.mxu2 %v2042_v39  ;;  %656 = vmatpush.msrb.mxu3 %v1941_v22 }
  0xdb   :  { %597 = vmatpush.msrb.mxu0 %v1952_v24  ;;  %617 = vmatpush.msrb.mxu1 %v1957_v25 }
  0xdc   :  { %637 = vmatpush.msrb.mxu2 %v2066_v43  ;;  %657 = vmatpush.msrb.mxu3 %v1965_v26 }
  0xdd   :  { %598 = vmatpush.msrb.mxu0 %v1976_v28  ;;  %618 = vmatpush.msrb.mxu1 %v1981_v29 }
  0xde   :  { %638 = vmatpush.msrb.mxu2 %v2090_v47  ;;  %658 = vmatpush.msrb.mxu3 %v1989_v30 }
  0xdf   :  { %599 = vmatpush.msrb.mxu0 %v2000_v32  ;;  %619 = vmatpush.msrb.mxu1 %v3373_v0 }
  0xe0   :  { %639 = vmatpush.msrb.mxu2 %v3374_v2  ;;  %659 = vmatpush.msrb.mxu3 %v3375_v3 }
  0xe1   :  { %600 = vmatpush.msrb.mxu0 %v3376_v4  ;;  %620 = vmatpush.msrb.mxu1 %v3377_v5 }
  0xe2   :  { %640 = vmatpush.msrb.mxu2 %v3378_v6  ;;  %660 = vmatpush.msrb.mxu3 %v3379_v7 }
  0xe3   :  { %601 = vmatpush.msrb.mxu0 %v3380_v8  ;;  %621 = vmatpush.msrb.mxu1 %v3381_v9 }
  0xe4   :  { %641 = vmatpush.msrb.mxu2 %v3382_v10  ;;  %661 = vmatpush.msrb.mxu3 %v3383_v11 }
  0xe5   :  { %602 = vmatpush.msrb.mxu0 %v3384_v12  ;;  %622 = vmatpush.msrb.mxu1 %v3385_v13 }
  0xe6   :  { %642 = vmatpush.msrb.mxu2 %v3386_v14  ;;  %662 = vmatpush.msrb.mxu3 %v3387_v15 }
  0xe7   :  { %603 = vmatpush.msrb.mxu0 %v3388_v16  ;;  %623 = vmatpush.msrb.mxu1 %v3389_v18 }
  0xe8   :  { %643 = vmatpush.msrb.mxu2 %v3390_v33  ;;  %663 = vmatpush.msrb.mxu3 %v3391_v36 }
  0xe9   :  { %604 = vmatpush.msrb.mxu0 %v3392_v40  ;;  %624 = vmatpush.msrb.mxu1 %v3393_v51 }
  0xea   :  { %644 = vmatpush.msrb.mxu2 %v3394_v54  ;;  %664 = vmatpush.msrb.mxu3 %v3395_v62 }
  0xeb   :  { %605 = vmatpush.msrb.mxu0 %v3396_v59  ;;  %625 = vmatpush.msrb.mxu1 %v3397_v48 }
  0xec   :  { %645 = vmatpush.msrb.mxu2 %v3398_v57  ;;  %665 = vmatpush.msrb.mxu3 %v3399_v52 }
 0x148   :  { %v277_v55 = vpop.f32.mrf.mxu0  ;;  %v297_v1 = vpop.f32.mrf.mxu1 }
 0x149   :  { %v340_v49 = vadd.f32 %v1457_v50, %v277_v55  ;;  %v341_v58 = vadd.f32 %v1458_v53, %v297_v1  ;;  %v3400_v50 = vld [vmem:[#allocation28_spill] sm:$0xff]  ;;  %v1459_v53 = vld [vmem:[%s3215_s1 + $0x30] sm:$0xff]  ;;  %v3401_v1 = vmov 0  }
 0x14a   :  { %vm1473_vm0 = vcmp.gt.s32.totalorder %v3400_v50, 2  ;;  %vm1482_vm1 = vcmp.gt.s32.totalorder %v3400_v50, 3  ;;  %vm1518_vm7 = vcmp.gt.s32.totalorder %v3400_v50, 7 }
 0x14b   :  { %v1461_v46 = vmul.f32 -1.442695, %v340_v49  ;;  %v1462_v63 = vmul.f32 -1.442695, %v341_v58  ;;  %v575_v49 = vsel %vm1473_vm0, 1, %v3401_v1 }
 0x14c   :  { %577 = vperm.xlu1 %1529, %v575_v49  }
 0x14d   :  { %1547 = vpow2.f32 %v1461_v46 }
 0x14e   :  { %1549 = vpow2.f32 %v1462_v63 }
 0x14f   :  { %v337_v44 = vpop.f32.mrf.mxu3  ;;  %v317_v55 = vpop.f32.mrf.mxu2 }
 0x150   :  { %v343_v38 = vadd.f32 %v1460_v45, %v337_v44  ;;  %v342_v45 = vadd.f32 %v1459_v53, %v317_v55 }
 0x152   :  { %v1463_v42 = vmul.f32 -1.442695, %v343_v38 }
 0x153   :  { %v1548_v56 = vpop.eup %1547 }
 0x154   :  { %v1550_v37 = vpop.eup %1549  ;;  %v347_v41 = vadd.f32 1.0, %v1548_v56  ;;  %1551 = vpow2.f32 %v1463_v42 }
 0x155   :  { %v366_v61 = vadd.f32 1.0, %v1550_v37  ;;  %v740_v37 = vsel %vm1482_vm1, 1, %v3401_v1 }
 0x156   :  { %1553 = vrcp.f32 %v347_v41  ;;  %v359_v57 = vand.u32 2147483648, %v347_v41  ;;  %v357_v62 = vand.u32 2147483647, %v347_v41  ;;  %742 = vperm.xlu1 %1529, %v740_v37   ;;  %vm353_vm5 = vweird.f32 %v347_v41 }
 0x157   :  { %1555 = vrcp.f32 %v366_v61  ;;  %v378_v48 = vand.u32 2147483648, %v366_v61  ;;  %vm372_vm4 = vweird.f32 %v366_v61 }
 0x158   :  { %v360_v54 = vor.u32 1.1754944e-38, %v359_v57  ;;  %vm358_vm9 = vcmp.eq.f32.partialorder %v357_v62, 8.507059e+37 }
 0x15a   :  { %v1552_v58 = vpop.eup %1551 }
 0x15b   :  { %v386_v46 = vadd.f32 1.0, %v1552_v58  ;;  %v376_v58 = vand.u32 2147483647, %v366_v61 }
 0x15c   :  { %v1554_v63 = vpop.eup %1553 }
 0x15d   :  { %v1556_v44 = vpop.eup %1555  ;;  %v349_v38 = vmul.f32 %v1554_v63, %v347_v41  ;;  %1557 = vrcp.f32 %v386_v46  ;;  %vm354_vm2 = vweird.f32 %v1554_v63  ;;  %vm377_vm10 = vcmp.eq.f32.partialorder %v376_v58, 8.507059e+37 }
 0x15e   :  { %v368_v42 = vmul.f32 %v1556_v44, %v366_v61  ;;  %1559 = vtanh.f32 %v342_v45  ;;  %vm373_vm3 = vweird.f32 %v1556_v44  ;;  %vm355_vm6 = vmor %vm353_vm5, %vm354_vm2  ;;  %v379_v45 = vor.u32 1.1754944e-38, %v378_v48  ;;  %v413_v61 = vpop.permute.xlu0 %412 }
 0x15f   :  { %v350_v56 = vsub.f32 1.0, %v349_v38  ;;  %vm374_vm8 = vmor %vm372_vm4, %vm373_vm3  ;;  %vm414_vm11 = vcmp.eq.s32.totalorder %v413_v61, 1  ;;  %v398_v62 = vand.u32 2147483648, %v386_v46  ;;  %vm392_vm13 = vweird.f32 %v386_v46 }
 0x160   :  { %v369_v52 = vsub.f32 1.0, %v368_v42 }
 0x161   :  { %v351_v59 = vmul.f32 %v1554_v63, %v350_v56  ;;  %v399_v48 = vor.u32 1.1754944e-38, %v398_v62 }
 0x162   :  { %v370_v49 = vmul.f32 %v1556_v44, %v369_v52 }
 0x163   :  { %v1558_v53 = vpop.eup %1557  ;;  %v352_v55 = vadd.f32 %v1554_v63, %v351_v59  ;;  %v1400_v59 = vsel %vm1518_vm7, 1, %v3401_v1 }
 0x164   :  { %v371_v38 = vadd.f32 %v1556_v44, %v370_v49  ;;  %v388_v51 = vmul.f32 %v1558_v53, %v386_v46  ;;  %v1560_v56 = vpop.eup %1559  ;;  %1402 = vperm.xlu1 %1529, %v1400_v59   ;;  %vm393_vm12 = vweird.f32 %v1558_v53  ;;  %v2559_v59 = vld [vmem:[%s3216_s2 + $0x140] sm:$0xff] }
 0x165   :  { %v356_v42 = vsel %vm355_vm6, %v1554_v63, %v352_v55  ;;  %vm394_vm14 = vmor %vm392_vm13, %vm393_vm12  ;;  %v2489_v55 = vld [vmem:[%s3216_s2 + $0x1c8] sm:$0xff] }
 0x166   :  { %v361_v40 = vsel %vm358_vm9, %v360_v54, %v356_v42  ;;  %v375_v52 = vsel %vm374_vm8, %v1556_v44, %v371_v38  ;;  %v389_v36 = vsub.f32 1.0, %v388_v51  ;;  %v396_v51 = vand.u32 2147483647, %v386_v46  ;;  %v2477_v46 = vld [vmem:[%s3216_s2 + $0x1f8] sm:$0xff]  ;;  %v2502_v38 = vld [vmem:[%s3216_s2 + $0x1a0] sm:$0xff] }
 0x167   :  { %v380_v37 = vsel %vm377_vm10, %v379_v45, %v375_v52  ;;  %v403_v33 = vmul.f32 %v1560_v56, %v361_v40  ;;  %v2508_v45 = vld [vmem:[%s3216_s2 + $0x1a8] sm:$0xff]  ;;  %v2521_v42 = vld [vmem:[%s3216_s2 + $0x180] sm:$0xff] }
 0x168   :  { %v402_v41 = vmul.f32 %v380_v37, %v2349_v60  ;;  %v390_v57 = vmul.f32 %v1558_v53, %v389_v36  ;;  %vm397_vm15 = vcmp.eq.f32.partialorder %v396_v51, 8.507059e+37  ;;  %v2527_v56 = vld [vmem:[%s3216_s2 + $0x188] sm:$0xff]  ;;  %v2540_v52 = vld [vmem:[%s3216_s2 + $0x160] sm:$0xff] }
 0x169   :  { %v2546_v37 = vld [vmem:[%s3216_s2 + $0x168] sm:$0xff] }
 0x16a   :  { %v404_v49 = vadd.f32 %v403_v33, %v402_v41  ;;  %v391_v50 = vadd.f32 %v1558_v53, %v390_v57  ;;  %v2565_v41 = vld [vmem:[%s3216_s2 + $0x148] sm:$0xff] }
 0x16c   :  { %1561 = vtanh.f32 %v404_v49  ;;  %v2447_v54 = vsel %vm414_vm11, %v404_v49, %v2349_v60  ;;  %v395_v40 = vsel %vm394_vm14, %v1558_v53, %v391_v50  ;;  %v2464_v60 = vld [vmem:[%s3216_s2 + $0x1e0] sm:$0xff] }
 0x16d   :  { %v400_v36 = vsel %vm397_vm15, %v399_v48, %v395_v40  ;;  %v2483_v53 = vld [vmem:[%s3216_s2 + $0x1c0] sm:$0xff] }
 0x172   :  { %v1562_v63 = vpop.eup %1561 }
 0x173   :  { %v406_v44 = vmul.f32 %v1562_v63, %v400_v36 }
 0x175   :  { %v2451_v33 = vsel %vm414_vm11, %v406_v44, %v2354_v34  ;;  %v417_v58 = vsel %vm414_vm11, %v406_v44, 0.0  ;;  %v2470_v34 = vld [vmem:[%s3216_s2 + $0x1e8] sm:$0xff] }
 0x176   :  { %1465 = vst [vmem:[%s3217_s3 + $0x8] sm:$0xff] %v417_v58  ;;  %441 = vmatmul.f32.vlgmr.msra.gmra.mxu0 %v2451_v33  ;;  %461 = vmatmul.f32.vlgmr.msra.gmra.mxu1 %v2451_v33 }
 0x177   :  { %481 = vmatmul.f32.vlgmr.msra.gmra.mxu2 %v2451_v33  ;;  %501 = vmatmul.f32.vlgmr.msra.gmra.mxu3 %v2451_v33 }
 0x178   :  { %755 = vmatpush.msra.mxu0 %v2464_v60  ;;  %775 = vmatpush.msra.mxu1 %v2470_v34 }
 0x179   :  { %795 = vmatpush.msra.mxu2 %v1910_v17  ;;  %815 = vmatpush.msra.mxu3 %v2477_v46  ;;  %v2496_v17 = vld [vmem:[%s3216_s2 + $0x1d8] sm:$0xff] }
 0x17a   :  { %756 = vmatpush.msra.mxu0 %v2483_v53  ;;  %776 = vmatpush.msra.mxu1 %v2489_v55 }
 0x17b   :  { %796 = vmatpush.msra.mxu2 %v1922_v19  ;;  %816 = vmatpush.msra.mxu3 %v2496_v17  ;;  %v2515_v19 = vld [vmem:[%s3216_s2 + $0x1b8] sm:$0xff] }
 0x17c   :  { %757 = vmatpush.msra.mxu0 %v2502_v38  ;;  %777 = vmatpush.msra.mxu1 %v2508_v45 }
 0x17d   :  { %797 = vmatpush.msra.mxu2 %v1946_v23  ;;  %817 = vmatpush.msra.mxu3 %v2515_v19  ;;  %v2534_v23 = vld [vmem:[%s3216_s2 + $0x198] sm:$0xff] }
 0x17e   :  { %758 = vmatpush.msra.mxu0 %v2521_v42  ;;  %778 = vmatpush.msra.mxu1 %v2527_v56 }
 0x17f   :  { %798 = vmatpush.msra.mxu2 %v1970_v27  ;;  %818 = vmatpush.msra.mxu3 %v2534_v23  ;;  %v2553_v27 = vld [vmem:[%s3216_s2 + $0x178] sm:$0xff] }
 0x180   :  { %759 = vmatpush.msra.mxu0 %v2540_v52  ;;  %779 = vmatpush.msra.mxu1 %v2546_v37 }
 0x181   :  { %799 = vmatpush.msra.mxu2 %v1994_v31  ;;  %819 = vmatpush.msra.mxu3 %v2553_v27  ;;  %v2572_v31 = vld [vmem:[%s3216_s2 + $0x158] sm:$0xff] }
 0x182   :  { %760 = vmatpush.msra.mxu0 %v2559_v59  ;;  %780 = vmatpush.msra.mxu1 %v2565_v41 }
 0x183   :  { %800 = vmatpush.msra.mxu2 %v2018_v35  ;;  %820 = vmatpush.msra.mxu3 %v2572_v31  ;;  %v1466_v35 = vld [vmem:[%s3215_s1 + $0x40] sm:$0xff] }
 0x184   :  { %761 = vmatpush.msra.mxu0 %v1928_v20  ;;  %781 = vmatpush.msra.mxu1 %v1933_v21  ;;  %v3402_v20 = vld [vmem:[#allocation36_spill] sm:$0xff] }
 0x185   :  { %801 = vmatpush.msra.mxu2 %v2042_v39  ;;  %821 = vmatpush.msra.mxu3 %v1941_v22  ;;  %v3403_v21 = vld [vmem:[#allocation24_spill] sm:$0xff]  ;;  %v3404_v22 = vld [vmem:[#allocation26_spill] sm:$0xff]  ;;  %v1467_v39 = vld [vmem:[%s3215_s1 + $0x48] sm:$0xff] }
 0x186   :  { %762 = vmatpush.msra.mxu0 %v1952_v24  ;;  %782 = vmatpush.msra.mxu1 %v1957_v25  ;;  %v3405_v24 = vld [vmem:[#allocation27_spill] sm:$0xff]  ;;  %v3406_v25 = vld [vmem:[#allocation37_spill] sm:$0xff] }
 0x187   :  { %802 = vmatpush.msra.mxu2 %v2066_v43  ;;  %822 = vmatpush.msra.mxu3 %v1965_v26  ;;  %v3407_v26 = vld [vmem:[#allocation29_spill] sm:$0xff] }
 0x188   :  { %763 = vmatpush.msra.mxu0 %v1976_v28  ;;  %783 = vmatpush.msra.mxu1 %v1981_v29  ;;  %v3408_v28 = vld [vmem:[#allocation31_spill] sm:$0xff]  ;;  %v3409_v29 = vld [vmem:[#allocation32_spill] sm:$0xff] }
 0x189   :  { %803 = vmatpush.msra.mxu2 %v2090_v47  ;;  %823 = vmatpush.msra.mxu3 %v1989_v30  ;;  %v3410_v30 = vld [vmem:[#allocation38_spill] sm:$0xff] }
 0x18a   :  { %764 = vmatpush.msra.mxu0 %v2000_v32  ;;  %784 = vmatpush.msra.mxu1 %v3373_v0  ;;  %v3411_v32 = vld [vmem:[#allocation33_spill] sm:$0xff] }
 0x18b   :  { %804 = vmatpush.msra.mxu2 %v3374_v2  ;;  %824 = vmatpush.msra.mxu3 %v3375_v3 }
 0x18c   :  { %765 = vmatpush.msra.mxu0 %v3376_v4  ;;  %785 = vmatpush.msra.mxu1 %v3377_v5  ;;  %v1469_v5 = vld [vmem:[%s3215_s1 + $0x58] sm:$0xff] }
 0x18d   :  { %805 = vmatpush.msra.mxu2 %v3378_v6  ;;  %825 = vmatpush.msra.mxu3 %v3379_v7 }
 0x18e   :  { %766 = vmatpush.msra.mxu0 %v3380_v8  ;;  %786 = vmatpush.msra.mxu1 %v3381_v9 }
 0x18f   :  { %806 = vmatpush.msra.mxu2 %v3382_v10  ;;  %826 = vmatpush.msra.mxu3 %v3383_v11 }
 0x190   :  { %767 = vmatpush.msra.mxu0 %v3384_v12  ;;  %787 = vmatpush.msra.mxu1 %v3385_v13  ;;  %v1468_v13 = vld [vmem:[%s3215_s1 + $0x50] sm:$0xff] }
 0x191   :  { %807 = vmatpush.msra.mxu2 %v3386_v14  ;;  %827 = vmatpush.msra.mxu3 %v3387_v15 }
 0x192   :  { %768 = vmatpush.msra.mxu0 %v3388_v16  ;;  %788 = vmatpush.msra.mxu1 %v3389_v18 }
 0x193   :  { %808 = vmatpush.msra.mxu2 %v3402_v20  ;;  %828 = vmatpush.msra.mxu3 %v3403_v21 }
 0x194   :  { %769 = vmatpush.msra.mxu0 %v3404_v22  ;;  %789 = vmatpush.msra.mxu1 %v3405_v24 }
 0x195   :  { %809 = vmatpush.msra.mxu2 %v3406_v25  ;;  %829 = vmatpush.msra.mxu3 %v3407_v26 }
 0x196   :  { %770 = vmatpush.msra.mxu0 %v3408_v28  ;;  %790 = vmatpush.msra.mxu1 %v3409_v29 }
 0x197   :  { %810 = vmatpush.msra.mxu2 %v3410_v30  ;;  %830 = vmatpush.msra.mxu3 %v3411_v32 }
 0x1f3   :  { %v442_v43 = vpop.f32.mrf.mxu0  ;;  %v462_v47 = vpop.f32.mrf.mxu1 }
 0x1f4   :  { %v505_v0 = vadd.f32 %v1466_v35, %v442_v43  ;;  %v506_v2 = vadd.f32 %v1467_v39, %v462_v47  ;;  %v578_v47 = vpop.permute.xlu1 %577 }
 0x1f5   :  { %vm579_vm8 = vcmp.eq.s32.totalorder %v578_v47, 1  ;;  %v2845_v47 = vld [vmem:[%s3216_s2 + $0x60] sm:$0xff] }
 0x1f6   :  { %v1470_v3 = vmul.f32 -1.442695, %v505_v0  ;;  %v1471_v4 = vmul.f32 -1.442695, %v506_v2  ;;  %3424 = vst [vmem:[#allocation19_spill] sm:$0xff] %v2845_v47 }
 0x1f8   :  { %1563 = vpow2.f32 %v1470_v3 }
 0x1f9   :  { %1565 = vpow2.f32 %v1471_v4 }
 0x1fa   :  { %v502_v6 = vpop.f32.mrf.mxu3  ;;  %v482_v14 = vpop.f32.mrf.mxu2 }
 0x1fb   :  { %v508_v7 = vadd.f32 %v1469_v5, %v502_v6  ;;  %v507_v57 = vadd.f32 %v1468_v13, %v482_v14 }
 0x1fd   :  { %v1472_v8 = vmul.f32 -1.442695, %v508_v7 }
 0x1fe   :  { %v1564_v9 = vpop.eup %1563 }
 0x1ff   :  { %v1566_v10 = vpop.eup %1565  ;;  %v512_v11 = vadd.f32 1.0, %v1564_v9  ;;  %1567 = vpow2.f32 %v1472_v8 }
 0x200   :  { %v531_v12 = vadd.f32 1.0, %v1566_v10 }
 0x201   :  { %1569 = vrcp.f32 %v512_v11  ;;  %v524_v40 = vand.u32 2147483648, %v512_v11  ;;  %v522_v63 = vand.u32 2147483647, %v512_v11  ;;  %vm518_vm2 = vweird.f32 %v512_v11 }
 0x202   :  { %1571 = vrcp.f32 %v531_v12  ;;  %v543_v36 = vand.u32 2147483648, %v531_v12  ;;  %v541_v58 = vand.u32 2147483647, %v531_v12  ;;  %vm537_vm4 = vweird.f32 %v531_v12 }
 0x203   :  { %v525_v22 = vor.u32 1.1754944e-38, %v524_v40  ;;  %vm523_vm5 = vcmp.eq.f32.partialorder %v522_v63, 8.507059e+37  ;;  %v2731_v40 = vld [vmem:[%s3216_s2 + $0x108] sm:$0xff]  ;;  %v2743_v63 = vld [vmem:[%s3216_s2 + $0x118] sm:$0xff] }
 0x204   :  { %v544_v28 = vor.u32 1.1754944e-38, %v543_v36  ;;  %vm542_vm7 = vcmp.eq.f32.partialorder %v541_v58, 8.507059e+37  ;;  %v2749_v36 = vld [vmem:[%s3216_s2 + $0xe0] sm:$0xff]  ;;  %v2761_v58 = vld [vmem:[%s3216_s2 + $0xf0] sm:$0xff] }
 0x205   :  { %v1568_v15 = vpop.eup %1567 }
 0x206   :  { %v551_v16 = vadd.f32 1.0, %v1568_v15  ;;  %v2667_v15 = vld [vmem:[%s3216_s2 + $0x1b0] sm:$0xff] }
 0x207   :  { %v1570_v18 = vpop.eup %1569 }
 0x208   :  { %v1572_v61 = vpop.eup %1571  ;;  %v514_v49 = vmul.f32 %v1570_v18, %v512_v11  ;;  %1573 = vrcp.f32 %v551_v16  ;;  %vm519_vm0 = vweird.f32 %v1570_v18  ;;  %v563_v5 = vand.u32 2147483648, %v551_v16 }
 0x209   :  { %v533_v50 = vmul.f32 %v1572_v61, %v531_v12  ;;  %1575 = vtanh.f32 %v507_v57  ;;  %vm538_vm1 = vweird.f32 %v1572_v61  ;;  %vm520_vm3 = vmor %vm518_vm2, %vm519_vm0  ;;  %vm557_vm10 = vweird.f32 %v551_v16  ;;  %v2694_v57 = vld [vmem:[%s3216_s2 + $0x150] sm:$0xff] }
 0x20a   :  { %v515_v62 = vsub.f32 1.0, %v514_v49  ;;  %vm539_vm6 = vmor %vm537_vm4, %vm538_vm1  ;;  %v561_v7 = vand.u32 2147483647, %v551_v16  ;;  %v564_v9 = vor.u32 1.1754944e-38, %v563_v5  ;;  %v2707_v49 = vld [vmem:[%s3216_s2 + $0x128] sm:$0xff] }
 0x20b   :  { %v534_v51 = vsub.f32 1.0, %v533_v50  ;;  %v2713_v50 = vld [vmem:[%s3216_s2 + $0x130] sm:$0xff]  ;;  %v2875_v5 = vld [vmem:[%s3216_s2 + $0x48] sm:$0xff] }
 0x20c   :  { %v516_v48 = vmul.f32 %v1570_v18, %v515_v62  ;;  %vm562_vm12 = vcmp.eq.f32.partialorder %v561_v7, 8.507059e+37  ;;  %v2719_v62 = vld [vmem:[%s3216_s2 + $0x138] sm:$0xff]  ;;  %3429 = vst [vmem:[#allocation23_spill] sm:$0xff] %v2875_v5  ;;  %v2881_v7 = vld [vmem:[%s3216_s2 + $0x50] sm:$0xff] }
 0x20d   :  { %v535_v44 = vmul.f32 %v1572_v61, %v534_v51  ;;  %v2725_v51 = vld [vmem:[%s3216_s2 + $0x100] sm:$0xff]  ;;  %3430 = vst [vmem:[#allocation28_spill] sm:$0xff] %v2881_v7 }
 0x20e   :  { %v1574_v20 = vpop.eup %1573  ;;  %v517_v21 = vadd.f32 %v1570_v18, %v516_v48  ;;  %v2737_v48 = vld [vmem:[%s3216_s2 + $0x110] sm:$0xff] }
 0x20f   :  { %v553_v24 = vmul.f32 %v1574_v20, %v551_v16  ;;  %v536_v25 = vadd.f32 %v1572_v61, %v535_v44  ;;  %v1576_v29 = vpop.eup %1575  ;;  %vm558_vm9 = vweird.f32 %v1574_v20  ;;  %v2676_v16 = vld [vmem:[%s3216_s2 + $0x190] sm:$0xff]  ;;  %v2755_v44 = vld [vmem:[%s3216_s2 + $0xe8] sm:$0xff] }
 0x210   :  { %v521_v26 = vsel %vm520_vm3, %v1570_v18, %v517_v21  ;;  %vm559_vm11 = vmor %vm557_vm10, %vm558_vm9  ;;  %v2685_v18 = vld [vmem:[%s3216_s2 + $0x170] sm:$0xff]  ;;  %v2773_v21 = vld [vmem:[%s3216_s2 + $0xc0] sm:$0xff] }
 0x211   :  { %v526_v30 = vsel %vm523_vm5, %v525_v22, %v521_v26  ;;  %v554_v32 = vsub.f32 1.0, %v553_v24  ;;  %v540_v35 = vsel %vm539_vm6, %v1572_v61, %v536_v25  ;;  %v2701_v61 = vld [vmem:[%s3216_s2 + $0x120] sm:$0xff]  ;;  %3412 = vst [vmem:[#allocation10_spill] sm:$0xff] %v2773_v21  ;;  %v2779_v22 = vld [vmem:[%s3216_s2 + $0xc8] sm:$0xff]  ;;  %v2785_v24 = vld [vmem:[%s3216_s2 + $0xd0] sm:$0xff] }
 0x212   :  { %v568_v39 = vmul.f32 %v1576_v29, %v526_v30  ;;  %v545_v43 = vsel %vm542_vm7, %v544_v28, %v540_v35  ;;  %3413 = vst [vmem:[#allocation11_spill] sm:$0xff] %v2779_v22  ;;  %v2791_v25 = vld [vmem:[%s3216_s2 + $0xd8] sm:$0xff]  ;;  %v2797_v26 = vld [vmem:[%s3216_s2 + $0xa0] sm:$0xff]  ;;  %v2803_v28 = vld [vmem:[%s3216_s2 + $0xa8] sm:$0xff] }
 0x213   :  { %v555_v0 = vmul.f32 %v1574_v20, %v554_v32  ;;  %v567_v2 = vmul.f32 %v545_v43, %v2447_v54  ;;  %3414 = vst [vmem:[#allocation25_spill] sm:$0xff] %v2785_v24  ;;  %v2809_v29 = vld [vmem:[%s3216_s2 + $0xb0] sm:$0xff]  ;;  %v2815_v30 = vld [vmem:[%s3216_s2 + $0xb8] sm:$0xff]  ;;  %v2821_v32 = vld [vmem:[%s3216_s2 + $0x80] sm:$0xff] }
 0x214   :  { %3415 = vst [vmem:[#allocation12_spill] sm:$0xff] %v2791_v25  ;;  %v2827_v35 = vld [vmem:[%s3216_s2 + $0x88] sm:$0xff]  ;;  %v2839_v43 = vld [vmem:[%s3216_s2 + $0x98] sm:$0xff] }
 0x215   :  { %v569_v3 = vadd.f32 %v568_v39, %v567_v2  ;;  %v556_v4 = vadd.f32 %v1574_v20, %v555_v0  ;;  %3416 = vst [vmem:[#allocation13_spill] sm:$0xff] %v2797_v26  ;;  %v2833_v39 = vld [vmem:[%s3216_s2 + $0x90] sm:$0xff]  ;;  %v2851_v0 = vld [vmem:[%s3216_s2 + $0x68] sm:$0xff] }
 0x216   :  { %3417 = vst [vmem:[#allocation14_spill] sm:$0xff] %v2803_v28  ;;  %v2857_v2 = vld [vmem:[%s3216_s2 + $0x70] sm:$0xff] }
 0x217   :  { %1577 = vtanh.f32 %v569_v3  ;;  %v2630_v6 = vsel %vm579_vm8, %v569_v3, %v2447_v54  ;;  %v560_v8 = vsel %vm559_vm11, %v1574_v20, %v556_v4  ;;  %v2649_v54 = vld [vmem:[%s3216_s2 + $0x1f0] sm:$0xff]  ;;  %v2767_v20 = vld [vmem:[%s3216_s2 + $0xf8] sm:$0xff]  ;;  %3418 = vst [vmem:[#allocation30_spill] sm:$0xff] %v2809_v29  ;;  %v2869_v4 = vld [vmem:[%s3216_s2 + $0x40] sm:$0xff] }
 0x218   :  { %v565_v11 = vsel %vm562_vm12, %v564_v9, %v560_v8  ;;  %3419 = vst [vmem:[#allocation15_spill] sm:$0xff] %v2815_v30  ;;  %v2863_v3 = vld [vmem:[%s3216_s2 + $0x78] sm:$0xff]  ;;  %v2893_v9 = vld [vmem:[%s3216_s2 + $0x20] sm:$0xff] }
 0x219   :  { %3420 = vst [vmem:[#allocation16_spill] sm:$0xff] %v2821_v32  ;;  %v2887_v8 = vld [vmem:[%s3216_s2 + $0x58] sm:$0xff] }
 0x21a   :  { %3421 = vst [vmem:[#allocation17_spill] sm:$0xff] %v2827_v35 }
 0x21b   :  { %3422 = vst [vmem:[#allocation34_spill] sm:$0xff] %v2833_v39 }
 0x21c   :  { %3423 = vst [vmem:[#allocation18_spill] sm:$0xff] %v2839_v43 }
 0x21d   :  { %v1578_v10 = vpop.eup %1577  ;;  %3425 = vst [vmem:[#allocation20_spill] sm:$0xff] %v2851_v0 }
 0x21e   :  { %v571_v12 = vmul.f32 %v1578_v10, %v565_v11  ;;  %3426 = vst [vmem:[#allocation35_spill] sm:$0xff] %v2857_v2  ;;  %v2899_v10 = vld [vmem:[%s3216_s2 + $0x28] sm:$0xff]  ;;  %v2905_v11 = vld [vmem:[%s3216_s2 + $0x30] sm:$0xff] }
 0x21f   :  { %3427 = vst [vmem:[#allocation21_spill] sm:$0xff] %v2863_v3 }
 0x220   :  { %v2634_v13 = vsel %vm579_vm8, %v571_v12, %v2451_v33  ;;  %v582_v14 = vsel %vm579_vm8, %v571_v12, 0.0  ;;  %v2658_v33 = vld [vmem:[%s3216_s2 + $0x1d0] sm:$0xff]  ;;  %3428 = vst [vmem:[#allocation22_spill] sm:$0xff] %v2869_v4  ;;  %v2911_v12 = vld [vmem:[%s3216_s2 + $0x38] sm:$0xff] }
 0x221   :  { %1474 = vst [vmem:[%s3217_s3 + $0x10] sm:$0xff] %v582_v14  ;;  %606 = vmatmul.f32.vlgmr.msrb.gmra.mxu0 %v2634_v13  ;;  %626 = vmatmul.f32.vlgmr.msrb.gmra.mxu1 %v2634_v13  ;;  %v2917_v14 = vld [vmem:[%s3216_s2] sm:$0xff] }
 0x222   :  { %646 = vmatmul.f32.vlgmr.msrb.gmra.mxu2 %v2634_v13  ;;  %666 = vmatmul.f32.vlgmr.msrb.gmra.mxu3 %v2634_v13  ;;  %3431 = vst [vmem:[#allocation36_spill] sm:$0xff] %v2887_v8 }
 0x223   :  { %920 = vmatpush.msrb.mxu0 %v2464_v60  ;;  %940 = vmatpush.msrb.mxu1 %v2470_v34  ;;  %3432 = vst [vmem:[#allocation24_spill] sm:$0xff] %v2893_v9 }
 0x224   :  { %960 = vmatpush.msrb.mxu2 %v2649_v54  ;;  %980 = vmatpush.msrb.mxu3 %v2477_v46  ;;  %3433 = vst [vmem:[#allocation26_spill] sm:$0xff] %v2899_v10 }
 0x225   :  { %921 = vmatpush.msrb.mxu0 %v2483_v53  ;;  %941 = vmatpush.msrb.mxu1 %v2489_v55  ;;  %3434 = vst [vmem:[#allocation27_spill] sm:$0xff] %v2905_v11 }
 0x226   :  { %961 = vmatpush.msrb.mxu2 %v2658_v33  ;;  %981 = vmatpush.msrb.mxu3 %v2496_v17  ;;  %3435 = vst [vmem:[#allocation37_spill] sm:$0xff] %v2911_v12 }
 0x227   :  { %922 = vmatpush.msrb.mxu0 %v2502_v38  ;;  %942 = vmatpush.msrb.mxu1 %v2508_v45  ;;  %3436 = vst [vmem:[#allocation29_spill] sm:$0xff] %v2917_v14 }
 0x228   :  { %962 = vmatpush.msrb.mxu2 %v2667_v15  ;;  %982 = vmatpush.msrb.mxu3 %v2515_v19 }
 0x229   :  { %923 = vmatpush.msrb.mxu0 %v2521_v42  ;;  %943 = vmatpush.msrb.mxu1 %v2527_v56 }
 0x22a   :  { %963 = vmatpush.msrb.mxu2 %v2676_v16  ;;  %983 = vmatpush.msrb.mxu3 %v2534_v23 }
 0x22b   :  { %924 = vmatpush.msrb.mxu0 %v2540_v52  ;;  %944 = vmatpush.msrb.mxu1 %v2546_v37 }
 0x22c   :  { %964 = vmatpush.msrb.mxu2 %v2685_v18  ;;  %984 = vmatpush.msrb.mxu3 %v2553_v27 }
 0x22d   :  { %925 = vmatpush.msrb.mxu0 %v2559_v59  ;;  %945 = vmatpush.msrb.mxu1 %v2565_v41 }
 0x22e   :  { %965 = vmatpush.msrb.mxu2 %v2694_v57  ;;  %985 = vmatpush.msrb.mxu3 %v2572_v31 }
 0x22f   :  { %926 = vmatpush.msrb.mxu0 %v2701_v61  ;;  %946 = vmatpush.msrb.mxu1 %v2707_v49 }
 0x230   :  { %966 = vmatpush.msrb.mxu2 %v2713_v50  ;;  %986 = vmatpush.msrb.mxu3 %v2719_v62 }
 0x231   :  { %927 = vmatpush.msrb.mxu0 %v2725_v51  ;;  %947 = vmatpush.msrb.mxu1 %v2731_v40 }
 0x232   :  { %967 = vmatpush.msrb.mxu2 %v2737_v48  ;;  %987 = vmatpush.msrb.mxu3 %v2743_v63 }
 0x233   :  { %928 = vmatpush.msrb.mxu0 %v2749_v36  ;;  %948 = vmatpush.msrb.mxu1 %v2755_v44 }
 0x234   :  { %968 = vmatpush.msrb.mxu2 %v2761_v58  ;;  %988 = vmatpush.msrb.mxu3 %v2767_v20 }
 0x235   :  { %929 = vmatpush.msrb.mxu0 %v2773_v21  ;;  %949 = vmatpush.msrb.mxu1 %v2779_v22 }
 0x236   :  { %969 = vmatpush.msrb.mxu2 %v2785_v24  ;;  %989 = vmatpush.msrb.mxu3 %v2791_v25 }
 0x237   :  { %930 = vmatpush.msrb.mxu0 %v2797_v26  ;;  %950 = vmatpush.msrb.mxu1 %v2803_v28 }
 0x238   :  { %970 = vmatpush.msrb.mxu2 %v2809_v29  ;;  %990 = vmatpush.msrb.mxu3 %v2815_v30 }
 0x239   :  { %931 = vmatpush.msrb.mxu0 %v2821_v32  ;;  %951 = vmatpush.msrb.mxu1 %v2827_v35 }
 0x23a   :  { %971 = vmatpush.msrb.mxu2 %v2833_v39  ;;  %991 = vmatpush.msrb.mxu3 %v2839_v43 }
 0x23b   :  { %932 = vmatpush.msrb.mxu0 %v2845_v47  ;;  %952 = vmatpush.msrb.mxu1 %v2851_v0 }
 0x23c   :  { %972 = vmatpush.msrb.mxu2 %v2857_v2  ;;  %992 = vmatpush.msrb.mxu3 %v2863_v3  ;;  %v1478_v3 = vld [vmem:[%s3215_s1 + $0x78] sm:$0xff] }
 0x23d   :  { %933 = vmatpush.msrb.mxu0 %v2869_v4  ;;  %953 = vmatpush.msrb.mxu1 %v2875_v5 }
 0x23e   :  { %973 = vmatpush.msrb.mxu2 %v2881_v7  ;;  %993 = vmatpush.msrb.mxu3 %v2887_v8 }
 0x23f   :  { %934 = vmatpush.msrb.mxu0 %v2893_v9  ;;  %954 = vmatpush.msrb.mxu1 %v2899_v10  ;;  %v2923_v10 = vld [vmem:[%s3216_s2 + $0x8] sm:$0xff] }
 0x240   :  { %974 = vmatpush.msrb.mxu2 %v2905_v11  ;;  %994 = vmatpush.msrb.mxu3 %v2911_v12  ;;  %3437 = vst [vmem:[#allocation31_spill] sm:$0xff] %v2923_v10  ;;  %v2929_v11 = vld [vmem:[%s3216_s2 + $0x10] sm:$0xff]  ;;  %v2935_v12 = vld [vmem:[%s3216_s2 + $0x18] sm:$0xff] }
 0x241   :  { %935 = vmatpush.msrb.mxu0 %v2917_v14  ;;  %955 = vmatpush.msrb.mxu1 %v2923_v10  ;;  %3438 = vst [vmem:[#allocation32_spill] sm:$0xff] %v2929_v11  ;;  %v1475_v14 = vld [vmem:[%s3215_s1 + $0x60] sm:$0xff]  ;;  %v1476_v10 = vld [vmem:[%s3215_s1 + $0x68] sm:$0xff] }
 0x242   :  { %975 = vmatpush.msrb.mxu2 %v2929_v11  ;;  %3439 = vst [vmem:[#allocation38_spill] sm:$0xff] %v2935_v12  ;;  %995 = vmatpush.msrb.mxu3 %v2935_v12 }
 0x29e   :  { %v607_v9 = vpop.f32.mrf.mxu0  ;;  %v627_v8 = vpop.f32.mrf.mxu1 }
 0x29f   :  { %v670_v7 = vadd.f32 %v1475_v14, %v607_v9  ;;  %v671_v5 = vadd.f32 %v1476_v10, %v627_v8 }
 0x2a1   :  { %v1479_v11 = vmul.f32 -1.442695, %v670_v7  ;;  %v1480_v4 = vmul.f32 -1.442695, %v671_v5  ;;  %v1723_v5 = vld [vmem:[%s3214_s0] sm:$0xff]  ;;  %v1477_v7 = vld [vmem:[%s3215_s1 + $0x70] sm:$0xff] }
 0x2a2   :  { %vm1491_vm13 = vcmp.gt.s32.totalorder %v1723_v5, 4  ;;  %vm1500_vm14 = vcmp.gt.s32.totalorder %v1723_v5, 5 }
 0x2a3   :  { %1579 = vpow2.f32 %v1479_v11 }
 0x2a4   :  { %1581 = vpow2.f32 %v1480_v4 }
 0x2a5   :  { %v667_v12 = vpop.f32.mrf.mxu3  ;;  %v647_v4 = vpop.f32.mrf.mxu2 }
 0x2a6   :  { %v673_v2 = vadd.f32 %v1478_v3, %v667_v12  ;;  %v905_v3 = vsel %vm1491_vm13, 1, %v3401_v1  ;;  %v1070_v12 = vsel %vm1500_vm14, 1, %v3401_v1 }
 0x2a7   :  { %907 = vperm.xlu2 %1530, %v905_v3  }
 0x2a8   :  { %v1481_v0 = vmul.f32 -1.442695, %v673_v2 }
 0x2a9   :  { %v1580_v47 = vpop.eup %1579 }
 0x2aa   :  { %v1582_v43 = vpop.eup %1581  ;;  %v677_v39 = vadd.f32 1.0, %v1580_v47  ;;  %1583 = vpow2.f32 %v1481_v0  ;;  %v672_v0 = vadd.f32 %v1477_v7, %v647_v4 }
 0x2ab   :  { %v696_v35 = vadd.f32 1.0, %v1582_v43 }
 0x2ac   :  { %1585 = vrcp.f32 %v677_v39  ;;  %v689_v32 = vand.u32 2147483648, %v677_v39  ;;  %v687_v28 = vand.u32 2147483647, %v677_v39  ;;  %vm683_vm1 = vweird.f32 %v677_v39 }
 0x2ad   :  { %1587 = vrcp.f32 %v696_v35  ;;  %v708_v30 = vand.u32 2147483648, %v696_v35  ;;  %v706_v3 = vand.u32 2147483647, %v696_v35  ;;  %vm702_vm2 = vweird.f32 %v696_v35 }
 0x2ae   :  { %v690_v4 = vor.u32 1.1754944e-38, %v689_v32  ;;  %vm688_vm5 = vcmp.eq.f32.partialorder %v687_v28, 8.507059e+37 }
 0x2af   :  { %1072 = vperm.xlu2 %1530, %v1070_v12   ;;  %v709_v1 = vor.u32 1.1754944e-38, %v708_v30  ;;  %vm707_vm6 = vcmp.eq.f32.partialorder %v706_v3, 8.507059e+37 }
 0x2b0   :  { %v1584_v2 = vpop.eup %1583 }
 0x2b1   :  { %v716_v8 = vadd.f32 1.0, %v1584_v2 }
 0x2b2   :  { %v1586_v47 = vpop.eup %1585 }
 0x2b3   :  { %v1588_v43 = vpop.eup %1587  ;;  %v679_v9 = vmul.f32 %v1586_v47, %v677_v39  ;;  %1589 = vrcp.f32 %v716_v8  ;;  %vm684_vm15 = vweird.f32 %v1586_v47  ;;  %v743_v39 = vpop.permute.xlu1 %742  ;;  %vm722_vm9 = vweird.f32 %v716_v8 }
 0x2b4   :  { %v698_v10 = vmul.f32 %v1588_v43, %v696_v35  ;;  %1591 = vtanh.f32 %v672_v0  ;;  %vm703_vm0 = vweird.f32 %v1588_v43  ;;  %vm685_vm3 = vmor %vm683_vm1, %vm684_vm15  ;;  %vm744_vm7 = vcmp.eq.s32.totalorder %v743_v39, 1  ;;  %v3454_v39 = vld [vmem:[#allocation21_spill] sm:$0xff] }
 0x2b5   :  { %v680_v11 = vsub.f32 1.0, %v679_v9  ;;  %vm704_vm4 = vmor %vm702_vm2, %vm703_vm0  ;;  %v726_v30 = vand.u32 2147483647, %v716_v8 }
 0x2b6   :  { %v699_v14 = vsub.f32 1.0, %v698_v10 }
 0x2b7   :  { %v681_v29 = vmul.f32 %v1586_v47, %v680_v11  ;;  %vm727_vm11 = vcmp.eq.f32.partialorder %v726_v30, 8.507059e+37  ;;  %v3458_v30 = vld [vmem:[#allocation36_spill] sm:$0xff] }
 0x2b8   :  { %v700_v26 = vmul.f32 %v1588_v43, %v699_v14 }
 0x2b9   :  { %v1590_v7 = vpop.eup %1589  ;;  %v682_v5 = vadd.f32 %v1586_v47, %v681_v29 }
 0x2ba   :  { %v701_v2 = vadd.f32 %v1588_v43, %v700_v26  ;;  %v718_v9 = vmul.f32 %v1590_v7, %v716_v8  ;;  %v1592_v0 = vpop.eup %1591  ;;  %vm723_vm8 = vweird.f32 %v1590_v7  ;;  %v728_v26 = vand.u32 2147483648, %v716_v8  ;;  %v3442_v8 = vld [vmem:[#allocation12_spill] sm:$0xff] }
 0x2bb   :  { %v686_v10 = vsel %vm685_vm3, %v1586_v47, %v682_v5  ;;  %vm724_vm10 = vmor %vm722_vm9, %vm723_vm8 }
 0x2bc   :  { %v691_v11 = vsel %vm688_vm5, %v690_v4, %v686_v10  ;;  %v705_v25 = vsel %vm704_vm4, %v1588_v43, %v701_v2  ;;  %v719_v14 = vsub.f32 1.0, %v718_v9  ;;  %v3444_v4 = vld [vmem:[#allocation14_spill] sm:$0xff]  ;;  %v3446_v9 = vld [vmem:[#allocation15_spill] sm:$0xff]  ;;  %v3448_v10 = vld [vmem:[#allocation17_spill] sm:$0xff] }
 0x2bd   :  { %v710_v24 = vsel %vm707_vm6, %v709_v1, %v705_v25  ;;  %v733_v22 = vmul.f32 %v1592_v0, %v691_v11  ;;  %v729_v25 = vor.u32 1.1754944e-38, %v728_v26  ;;  %v3445_v2 = vld [vmem:[#allocation30_spill] sm:$0xff]  ;;  %v3447_v1 = vld [vmem:[#allocation16_spill] sm:$0xff] }
 0x2be   :  { %v732_v12 = vmul.f32 %v710_v24, %v2630_v6  ;;  %v720_v29 = vmul.f32 %v1590_v7, %v719_v14  ;;  %v3449_v0 = vld [vmem:[#allocation34_spill] sm:$0xff]  ;;  %v3451_v14 = vld [vmem:[#allocation19_spill] sm:$0xff]  ;;  %v3457_v26 = vld [vmem:[#allocation28_spill] sm:$0xff] }
 0x2bf   :  { %v3450_v11 = vld [vmem:[#allocation18_spill] sm:$0xff] }
 0x2c0   :  { %v734_v35 = vadd.f32 %v733_v22, %v732_v12  ;;  %v721_v32 = vadd.f32 %v1590_v7, %v720_v29  ;;  %v3452_v12 = vld [vmem:[#allocation20_spill] sm:$0xff]  ;;  %v3453_v29 = vld [vmem:[#allocation35_spill] sm:$0xff] }
 0x2c2   :  { %1593 = vtanh.f32 %v734_v35  ;;  %v2958_v28 = vsel %vm744_vm7, %v734_v35, %v2630_v6  ;;  %v725_v47 = vsel %vm724_vm10, %v1590_v7, %v721_v32  ;;  %v3440_v6 = vld [vmem:[#allocation11_spill] sm:$0xff]  ;;  %v3443_v7 = vld [vmem:[#allocation13_spill] sm:$0xff]  ;;  %v3455_v35 = vld [vmem:[#allocation22_spill] sm:$0xff] }
 0x2c3   :  { %v730_v24 = vsel %vm727_vm11, %v729_v25, %v725_v47  ;;  %v3456_v32 = vld [vmem:[#allocation23_spill] sm:$0xff]  ;;  %v3459_v47 = vld [vmem:[#allocation24_spill] sm:$0xff]  ;;  %v3460_v25 = vld [vmem:[#allocation26_spill] sm:$0xff] }
 0x2c8   :  { %v1594_v43 = vpop.eup %1593 }
 0x2c9   :  { %v736_v3 = vmul.f32 %v1594_v43, %v730_v24  ;;  %v3461_v43 = vld [vmem:[#allocation27_spill] sm:$0xff]  ;;  %v3462_v24 = vld [vmem:[#allocation37_spill] sm:$0xff] }
 0x2cb   :  { %v2962_v22 = vsel %vm744_vm7, %v736_v3, %v2634_v13  ;;  %v747_v5 = vsel %vm744_vm7, %v736_v3, 0.0  ;;  %v3441_v13 = vld [vmem:[#allocation25_spill] sm:$0xff] }
 0x2cc   :  { %1483 = vst [vmem:[%s3217_s3 + $0x18] sm:$0xff] %v747_v5  ;;  %771 = vmatmul.f32.vlgmr.msra.gmra.mxu0 %v2962_v22  ;;  %791 = vmatmul.f32.vlgmr.msra.gmra.mxu1 %v2962_v22  ;;  %v3463_v3 = vld [vmem:[#allocation29_spill] sm:$0xff]  ;;  %v3464_v5 = vld [vmem:[#allocation31_spill] sm:$0xff] }
 0x2cd   :  { %811 = vmatmul.f32.vlgmr.msra.gmra.mxu2 %v2962_v22  ;;  %831 = vmatmul.f32.vlgmr.msra.gmra.mxu3 %v2962_v22 }
 0x2ce   :  { %1085 = vmatpush.msra.mxu0 %v2464_v60  ;;  %1105 = vmatpush.msra.mxu1 %v2470_v34 }
 0x2cf   :  { %1125 = vmatpush.msra.mxu2 %v2649_v54  ;;  %1145 = vmatpush.msra.mxu3 %v2477_v46 }
 0x2d0   :  { %1086 = vmatpush.msra.mxu0 %v2483_v53  ;;  %1106 = vmatpush.msra.mxu1 %v2489_v55 }
 0x2d1   :  { %1126 = vmatpush.msra.mxu2 %v2658_v33  ;;  %1146 = vmatpush.msra.mxu3 %v2496_v17 }
 0x2d2   :  { %1087 = vmatpush.msra.mxu0 %v2502_v38  ;;  %1107 = vmatpush.msra.mxu1 %v2508_v45 }
 0x2d3   :  { %1127 = vmatpush.msra.mxu2 %v2667_v15  ;;  %1147 = vmatpush.msra.mxu3 %v2515_v19 }
 0x2d4   :  { %1088 = vmatpush.msra.mxu0 %v2521_v42  ;;  %1108 = vmatpush.msra.mxu1 %v2527_v56 }
 0x2d5   :  { %1128 = vmatpush.msra.mxu2 %v2676_v16  ;;  %1148 = vmatpush.msra.mxu3 %v2534_v23 }
 0x2d6   :  { %1089 = vmatpush.msra.mxu0 %v2540_v52  ;;  %1109 = vmatpush.msra.mxu1 %v2546_v37 }
 0x2d7   :  { %1129 = vmatpush.msra.mxu2 %v2685_v18  ;;  %1149 = vmatpush.msra.mxu3 %v2553_v27 }
 0x2d8   :  { %1090 = vmatpush.msra.mxu0 %v2559_v59  ;;  %1110 = vmatpush.msra.mxu1 %v2565_v41 }
 0x2d9   :  { %1130 = vmatpush.msra.mxu2 %v2694_v57  ;;  %1150 = vmatpush.msra.mxu3 %v2572_v31 }
 0x2da   :  { %1091 = vmatpush.msra.mxu0 %v2701_v61  ;;  %1111 = vmatpush.msra.mxu1 %v2707_v49 }
 0x2db   :  { %1131 = vmatpush.msra.mxu2 %v2713_v50  ;;  %1151 = vmatpush.msra.mxu3 %v2719_v62 }
 0x2dc   :  { %1092 = vmatpush.msra.mxu0 %v2725_v51  ;;  %1112 = vmatpush.msra.mxu1 %v2731_v40 }
 0x2dd   :  { %1132 = vmatpush.msra.mxu2 %v2737_v48  ;;  %1152 = vmatpush.msra.mxu3 %v2743_v63 }
 0x2de   :  { %1093 = vmatpush.msra.mxu0 %v2749_v36  ;;  %1113 = vmatpush.msra.mxu1 %v2755_v44 }
 0x2df   :  { %1133 = vmatpush.msra.mxu2 %v2761_v58  ;;  %1153 = vmatpush.msra.mxu3 %v2767_v20 }
 0x2e0   :  { %1094 = vmatpush.msra.mxu0 %v2773_v21  ;;  %1114 = vmatpush.msra.mxu1 %v3440_v6 }
 0x2e1   :  { %1134 = vmatpush.msra.mxu2 %v3441_v13  ;;  %1154 = vmatpush.msra.mxu3 %v3442_v8 }
 0x2e2   :  { %1095 = vmatpush.msra.mxu0 %v3443_v7  ;;  %1115 = vmatpush.msra.mxu1 %v3444_v4 }
 0x2e3   :  { %1135 = vmatpush.msra.mxu2 %v3445_v2  ;;  %1155 = vmatpush.msra.mxu3 %v3446_v9 }
 0x2e4   :  { %1096 = vmatpush.msra.mxu0 %v3447_v1  ;;  %1116 = vmatpush.msra.mxu1 %v3448_v10 }
 0x2e5   :  { %1136 = vmatpush.msra.mxu2 %v3449_v0  ;;  %1156 = vmatpush.msra.mxu3 %v3450_v11 }
 0x2e6   :  { %1097 = vmatpush.msra.mxu0 %v3451_v14  ;;  %1117 = vmatpush.msra.mxu1 %v3452_v12 }
 0x2e7   :  { %1137 = vmatpush.msra.mxu2 %v3453_v29  ;;  %1157 = vmatpush.msra.mxu3 %v3454_v39  ;;  %v3465_v39 = vld [vmem:[#allocation32_spill] sm:$0xff] }
 0x2e8   :  { %1098 = vmatpush.msra.mxu0 %v3455_v35  ;;  %1118 = vmatpush.msra.mxu1 %v3456_v32  ;;  %v3466_v35 = vld [vmem:[#allocation38_spill] sm:$0xff] }
 0x2e9   :  { %1138 = vmatpush.msra.mxu2 %v3457_v26  ;;  %1158 = vmatpush.msra.mxu3 %v3458_v30  ;;  %v1484_v30 = vld [vmem:[%s3215_s1 + $0x80] sm:$0xff] }
 0x2ea   :  { %1099 = vmatpush.msra.mxu0 %v3459_v47  ;;  %1119 = vmatpush.msra.mxu1 %v3460_v25  ;;  %v1485_v25 = vld [vmem:[%s3215_s1 + $0x88] sm:$0xff] }
 0x2eb   :  { %1139 = vmatpush.msra.mxu2 %v3461_v43  ;;  %1159 = vmatpush.msra.mxu3 %v3462_v24 }
 0x2ec   :  { %1100 = vmatpush.msra.mxu0 %v3463_v3  ;;  %1120 = vmatpush.msra.mxu1 %v3464_v5 }
 0x2ed   :  { %1140 = vmatpush.msra.mxu2 %v3465_v39  ;;  %1160 = vmatpush.msra.mxu3 %v3466_v35  ;;  %v1487_v39 = vld [vmem:[%s3215_s1 + $0x98] sm:$0xff] }
 0x301   :  { %v908_v8 = vpop.permute.xlu2 %907 }
 0x302   :  { %vm909_vm4 = vcmp.eq.s32.totalorder %v908_v8, 1 }
 0x349   :  { %v772_v47 = vpop.f32.mrf.mxu0  ;;  %v792_v43 = vpop.f32.mrf.mxu1 }
 0x34a   :  { %v835_v26 = vadd.f32 %v1484_v30, %v772_v47  ;;  %v836_v24 = vadd.f32 %v1485_v25, %v792_v43 }
 0x34c   :  { %v1488_v32 = vmul.f32 -1.442695, %v835_v26  ;;  %v1489_v3 = vmul.f32 -1.442695, %v836_v24  ;;  %v1486_v26 = vld [vmem:[%s3215_s1 + $0x90] sm:$0xff] }
 0x34e   :  { %1595 = vpow2.f32 %v1488_v32 }
 0x34f   :  { %1597 = vpow2.f32 %v1489_v3 }
 0x350   :  { %v832_v35 = vpop.f32.mrf.mxu3  ;;  %v812_v32 = vpop.f32.mrf.mxu2 }
 0x351   :  { %v838_v5 = vadd.f32 %v1487_v39, %v832_v35  ;;  %v837_v43 = vadd.f32 %v1486_v26, %v812_v32 }
 0x353   :  { %v1490_v29 = vmul.f32 -1.442695, %v838_v5 }
 0x354   :  { %v1596_v12 = vpop.eup %1595 }
 0x355   :  { %v1598_v14 = vpop.eup %1597  ;;  %v842_v11 = vadd.f32 1.0, %v1596_v12  ;;  %1599 = vpow2.f32 %v1490_v29 }
 0x356   :  { %v861_v0 = vadd.f32 1.0, %v1598_v14 }
 0x357   :  { %1601 = vrcp.f32 %v842_v11  ;;  %v854_v12 = vand.u32 2147483648, %v842_v11  ;;  %v852_v29 = vand.u32 2147483647, %v842_v11  ;;  %vm848_vm14 = vweird.f32 %v842_v11 }
 0x358   :  { %1603 = vrcp.f32 %v861_v0  ;;  %v873_v10 = vand.u32 2147483648, %v861_v0  ;;  %v871_v9 = vand.u32 2147483647, %v861_v0  ;;  %vm867_vm0 = vweird.f32 %v861_v0 }
 0x359   :  { %v855_v26 = vor.u32 1.1754944e-38, %v854_v12  ;;  %vm853_vm1 = vcmp.eq.f32.partialorder %v852_v29, 8.507059e+37 }
 0x35a   :  { %vm872_vm3 = vcmp.eq.f32.partialorder %v871_v9, 8.507059e+37 }
 0x35b   :  { %v1600_v30 = vpop.eup %1599 }
 0x35c   :  { %v881_v47 = vadd.f32 1.0, %v1600_v30 }
 0x35d   :  { %v1602_v25 = vpop.eup %1601 }
 0x35e   :  { %v1604_v24 = vpop.eup %1603  ;;  %v844_v3 = vmul.f32 %v1602_v25, %v842_v11  ;;  %1605 = vrcp.f32 %v881_v47  ;;  %vm849_vm12 = vweird.f32 %v1602_v25  ;;  %vm887_vm6 = vweird.f32 %v881_v47 }
 0x35f   :  { %v863_v39 = vmul.f32 %v1604_v24, %v861_v0  ;;  %1607 = vtanh.f32 %v837_v43  ;;  %vm868_vm13 = vweird.f32 %v1604_v24  ;;  %vm850_vm15 = vmor %vm848_vm14, %vm849_vm12 }
 0x360   :  { %v845_v35 = vsub.f32 1.0, %v844_v3  ;;  %vm869_vm2 = vmor %vm867_vm0, %vm868_vm13  ;;  %v874_v3 = vor.u32 1.1754944e-38, %v873_v10 }
 0x361   :  { %v864_v5 = vsub.f32 1.0, %v863_v39 }
 0x362   :  { %v846_v14 = vmul.f32 %v1602_v25, %v845_v35 }
 0x363   :  { %v865_v1 = vmul.f32 %v1604_v24, %v864_v5 }
 0x364   :  { %v1606_v2 = vpop.eup %1605  ;;  %v847_v4 = vadd.f32 %v1602_v25, %v846_v14 }
 0x365   :  { %v883_v32 = vmul.f32 %v1606_v2, %v881_v47  ;;  %v866_v30 = vadd.f32 %v1604_v24, %v865_v1  ;;  %v1608_v43 = vpop.eup %1607  ;;  %vm888_vm5 = vweird.f32 %v1606_v2  ;;  %v893_v1 = vand.u32 2147483648, %v881_v47 }
 0x366   :  { %v851_v7 = vsel %vm850_vm15, %v1602_v25, %v847_v4  ;;  %vm889_vm7 = vmor %vm887_vm6, %vm888_vm5 }
 0x367   :  { %v856_v39 = vsel %vm853_vm1, %v855_v26, %v851_v7  ;;  %v884_v35 = vsub.f32 1.0, %v883_v32  ;;  %v870_v13 = vsel %vm869_vm2, %v1604_v24, %v866_v30  ;;  %v891_v7 = vand.u32 2147483647, %v881_v47  ;;  %v1495_v32 = vld [vmem:[%s3215_s1 + $0xb0] sm:$0xff] }
 0x368   :  { %v898_v5 = vmul.f32 %v1608_v43, %v856_v39  ;;  %v875_v6 = vsel %vm872_vm3, %v874_v3, %v870_v13  ;;  %v894_v9 = vor.u32 1.1754944e-38, %v893_v1 }
 0x369   :  { %v885_v21 = vmul.f32 %v1606_v2, %v884_v35  ;;  %v897_v11 = vmul.f32 %v875_v6, %v2958_v28  ;;  %vm892_vm8 = vcmp.eq.f32.partialorder %v891_v7, 8.507059e+37 }
 0x36b   :  { %v899_v12 = vadd.f32 %v898_v5, %v897_v11  ;;  %v886_v14 = vadd.f32 %v1606_v2, %v885_v21 }
 0x36d   :  { %1609 = vtanh.f32 %v899_v12  ;;  %v3051_v4 = vsel %vm909_vm4, %v899_v12, %v2958_v28  ;;  %v890_v10 = vsel %vm889_vm7, %v1606_v2, %v886_v14  ;;  %v1496_v28 = vld [vmem:[%s3215_s1 + $0xb8] sm:$0xff] }
 0x36e   :  { %v895_v0 = vsel %vm892_vm8, %v894_v9, %v890_v10 }
 0x373   :  { %v1610_v13 = vpop.eup %1609 }
 0x374   :  { %v901_v25 = vmul.f32 %v1610_v13, %v895_v0 }
 0x376   :  { %v3055_v6 = vsel %vm909_vm4, %v901_v25, %v2962_v22  ;;  %v912_v21 = vsel %vm909_vm4, %v901_v25, 0.0 }
 0x377   :  { %1492 = vst [vmem:[%s3217_s3 + $0x20] sm:$0xff] %v912_v21  ;;  %936 = vmatmul.f32.vlgmr.msrb.gmra.mxu0 %v3055_v6  ;;  %956 = vmatmul.f32.vlgmr.msrb.gmra.mxu1 %v3055_v6 }
 0x378   :  { %976 = vmatmul.f32.vlgmr.msrb.gmra.mxu2 %v3055_v6  ;;  %996 = vmatmul.f32.vlgmr.msrb.gmra.mxu3 %v3055_v6 }
 0x379   :  { %1250 = vmatpush.msrb.mxu0 %v2464_v60  ;;  %1270 = vmatpush.msrb.mxu1 %v2470_v34  ;;  %v3467_v60 = vld [vmem:[#allocation10_spill] sm:$0xff]  ;;  %v3468_v34 = vld [vmem:[#allocation11_spill] sm:$0xff] }
 0x37a   :  { %1290 = vmatpush.msrb.mxu2 %v2649_v54  ;;  %1310 = vmatpush.msrb.mxu3 %v2477_v46  ;;  %v3469_v46 = vld [vmem:[#allocation25_spill] sm:$0xff]  ;;  %v3485_v54 = vld [vmem:[#allocation28_spill] sm:$0xff] }
 0x37b   :  { %1251 = vmatpush.msrb.mxu0 %v2483_v53  ;;  %1271 = vmatpush.msrb.mxu1 %v2489_v55  ;;  %v3470_v53 = vld [vmem:[#allocation12_spill] sm:$0xff]  ;;  %v3471_v55 = vld [vmem:[#allocation13_spill] sm:$0xff] }
 0x37c   :  { %1291 = vmatpush.msrb.mxu2 %v2658_v33  ;;  %1311 = vmatpush.msrb.mxu3 %v2496_v17  ;;  %v3472_v17 = vld [vmem:[#allocation14_spill] sm:$0xff]  ;;  %v3486_v33 = vld [vmem:[#allocation36_spill] sm:$0xff] }
 0x37d   :  { %1252 = vmatpush.msrb.mxu0 %v2502_v38  ;;  %1272 = vmatpush.msrb.mxu1 %v2508_v45  ;;  %v3473_v38 = vld [vmem:[#allocation30_spill] sm:$0xff]  ;;  %v3474_v45 = vld [vmem:[#allocation15_spill] sm:$0xff] }
 0x37e   :  { %1292 = vmatpush.msrb.mxu2 %v2667_v15  ;;  %1312 = vmatpush.msrb.mxu3 %v2515_v19  ;;  %v3475_v19 = vld [vmem:[#allocation16_spill] sm:$0xff] }
 0x37f   :  { %1253 = vmatpush.msrb.mxu0 %v2521_v42  ;;  %1273 = vmatpush.msrb.mxu1 %v2527_v56  ;;  %v3476_v42 = vld [vmem:[#allocation17_spill] sm:$0xff]  ;;  %v3477_v56 = vld [vmem:[#allocation34_spill] sm:$0xff]  ;;  %v3487_v15 = vld [vmem:[#allocation24_spill] sm:$0xff] }
 0x380   :  { %1293 = vmatpush.msrb.mxu2 %v2676_v16  ;;  %1313 = vmatpush.msrb.mxu3 %v2534_v23  ;;  %v3478_v23 = vld [vmem:[#allocation18_spill] sm:$0xff] }
 0x381   :  { %1254 = vmatpush.msrb.mxu0 %v2540_v52  ;;  %1274 = vmatpush.msrb.mxu1 %v2546_v37  ;;  %v3479_v52 = vld [vmem:[#allocation19_spill] sm:$0xff]  ;;  %v3480_v37 = vld [vmem:[#allocation20_spill] sm:$0xff]  ;;  %v3488_v16 = vld [vmem:[#allocation26_spill] sm:$0xff] }
 0x382   :  { %1294 = vmatpush.msrb.mxu2 %v2685_v18  ;;  %1314 = vmatpush.msrb.mxu3 %v2553_v27  ;;  %v3481_v27 = vld [vmem:[#allocation35_spill] sm:$0xff] }
 0x383   :  { %1255 = vmatpush.msrb.mxu0 %v2559_v59  ;;  %1275 = vmatpush.msrb.mxu1 %v2565_v41  ;;  %v3482_v59 = vld [vmem:[#allocation21_spill] sm:$0xff]  ;;  %v3483_v41 = vld [vmem:[#allocation22_spill] sm:$0xff]  ;;  %v3489_v18 = vld [vmem:[#allocation27_spill] sm:$0xff] }
 0x384   :  { %1295 = vmatpush.msrb.mxu2 %v2694_v57  ;;  %1315 = vmatpush.msrb.mxu3 %v2572_v31  ;;  %v3484_v31 = vld [vmem:[#allocation23_spill] sm:$0xff]  ;;  %v3490_v57 = vld [vmem:[#allocation37_spill] sm:$0xff] }
 0x385   :  { %1256 = vmatpush.msrb.mxu0 %v2701_v61  ;;  %1276 = vmatpush.msrb.mxu1 %v2707_v49  ;;  %v3491_v61 = vld [vmem:[#allocation29_spill] sm:$0xff]  ;;  %v3492_v49 = vld [vmem:[#allocation31_spill] sm:$0xff] }
 0x386   :  { %1296 = vmatpush.msrb.mxu2 %v2713_v50  ;;  %1316 = vmatpush.msrb.mxu3 %v2719_v62  ;;  %v3493_v50 = vld [vmem:[#allocation32_spill] sm:$0xff]  ;;  %v3494_v62 = vld [vmem:[#allocation38_spill] sm:$0xff] }
 0x387   :  { %1257 = vmatpush.msrb.mxu0 %v2725_v51  ;;  %1277 = vmatpush.msrb.mxu1 %v2731_v40  ;;  %v1493_v51 = vld [vmem:[%s3215_s1 + $0xa0] sm:$0xff]  ;;  %v1494_v40 = vld [vmem:[%s3215_s1 + $0xa8] sm:$0xff] }
 0x388   :  { %1297 = vmatpush.msrb.mxu2 %v2737_v48  ;;  %1317 = vmatpush.msrb.mxu3 %v2743_v63 }
 0x389   :  { %1258 = vmatpush.msrb.mxu0 %v2749_v36  ;;  %1278 = vmatpush.msrb.mxu1 %v2755_v44 }
 0x38a   :  { %1298 = vmatpush.msrb.mxu2 %v2761_v58  ;;  %1318 = vmatpush.msrb.mxu3 %v2767_v20 }
 0x38b   :  { %1259 = vmatpush.msrb.mxu0 %v3467_v60  ;;  %1279 = vmatpush.msrb.mxu1 %v3468_v34 }
 0x38c   :  { %1299 = vmatpush.msrb.mxu2 %v3469_v46  ;;  %1319 = vmatpush.msrb.mxu3 %v3470_v53 }
 0x38d   :  { %1260 = vmatpush.msrb.mxu0 %v3471_v55  ;;  %1280 = vmatpush.msrb.mxu1 %v3472_v17 }
 0x38e   :  { %1300 = vmatpush.msrb.mxu2 %v3473_v38  ;;  %1320 = vmatpush.msrb.mxu3 %v3474_v45 }
 0x38f   :  { %1261 = vmatpush.msrb.mxu0 %v3475_v19  ;;  %1281 = vmatpush.msrb.mxu1 %v3476_v42 }
 0x390   :  { %1301 = vmatpush.msrb.mxu2 %v3477_v56  ;;  %1321 = vmatpush.msrb.mxu3 %v3478_v23 }
 0x391   :  { %1262 = vmatpush.msrb.mxu0 %v3479_v52  ;;  %1282 = vmatpush.msrb.mxu1 %v3480_v37  ;;  %v1073_v52 = vpop.permute.xlu2 %1072 }
 0x392   :  { %1302 = vmatpush.msrb.mxu2 %v3481_v27  ;;  %1322 = vmatpush.msrb.mxu3 %v3482_v59  ;;  %vm1074_vm1 = vcmp.eq.s32.totalorder %v1073_v52, 1 }
 0x393   :  { %1263 = vmatpush.msrb.mxu0 %v3483_v41  ;;  %1283 = vmatpush.msrb.mxu1 %v3484_v31 }
 0x394   :  { %1303 = vmatpush.msrb.mxu2 %v3485_v54  ;;  %1323 = vmatpush.msrb.mxu3 %v3486_v33 }
 0x395   :  { %1264 = vmatpush.msrb.mxu0 %v3487_v15  ;;  %1284 = vmatpush.msrb.mxu1 %v3488_v16 }
 0x396   :  { %1304 = vmatpush.msrb.mxu2 %v3489_v18  ;;  %1324 = vmatpush.msrb.mxu3 %v3490_v57 }
 0x397   :  { %1265 = vmatpush.msrb.mxu0 %v3491_v61  ;;  %1285 = vmatpush.msrb.mxu1 %v3492_v49 }
 0x398   :  { %1305 = vmatpush.msrb.mxu2 %v3493_v50  ;;  %1325 = vmatpush.msrb.mxu3 %v3494_v62 }
 0x3f4   :  { %v937_v48 = vpop.f32.mrf.mxu0  ;;  %v957_v63 = vpop.f32.mrf.mxu1 }
 0x3f5   :  { %v1000_v36 = vadd.f32 %v1493_v51, %v937_v48  ;;  %v1001_v44 = vadd.f32 %v1494_v40, %v957_v63 }
 0x3f7   :  { %v1497_v58 = vmul.f32 -1.442695, %v1000_v36  ;;  %v1498_v20 = vmul.f32 -1.442695, %v1001_v44  ;;  %v1505_v44 = vld [vmem:[%s3215_s1 + $0xd8] sm:$0xff] }
 0x3f9   :  { %1611 = vpow2.f32 %v1497_v58 }
 0x3fa   :  { %1613 = vpow2.f32 %v1498_v20 }
 0x3fb   :  { %v997_v22 = vpop.f32.mrf.mxu3  ;;  %v977_v30 = vpop.f32.mrf.mxu2 }
 0x3fc   :  { %v1003_v8 = vadd.f32 %v1496_v28, %v997_v22  ;;  %v1002_v35 = vadd.f32 %v1495_v32, %v977_v30 }
 0x3fe   :  { %v1499_v2 = vmul.f32 -1.442695, %v1003_v8 }
 0x3ff   :  { %v1612_v47 = vpop.eup %1611 }
 0x400   :  { %v1614_v24 = vpop.eup %1613  ;;  %v1007_v29 = vadd.f32 1.0, %v1612_v47  ;;  %1615 = vpow2.f32 %v1499_v2 }
 0x401   :  { %v1026_v26 = vadd.f32 1.0, %v1614_v24  ;;  %v1504_v24 = vld [vmem:[%s3215_s1 + $0xd0] sm:$0xff] }
 0x402   :  { %1617 = vrcp.f32 %v1007_v29  ;;  %v1019_v7 = vand.u32 2147483648, %v1007_v29  ;;  %v1017_v13 = vand.u32 2147483647, %v1007_v29  ;;  %vm1013_vm11 = vweird.f32 %v1007_v29 }
 0x403   :  { %1619 = vrcp.f32 %v1026_v26  ;;  %v1038_v10 = vand.u32 2147483648, %v1026_v26  ;;  %v1036_v25 = vand.u32 2147483647, %v1026_v26  ;;  %vm1032_vm12 = vweird.f32 %v1026_v26 }
 0x404   :  { %v1020_v34 = vor.u32 1.1754944e-38, %v1019_v7  ;;  %vm1018_vm15 = vcmp.eq.f32.partialorder %v1017_v13, 8.507059e+37 }
 0x405   :  { %v1039_v55 = vor.u32 1.1754944e-38, %v1038_v10  ;;  %vm1037_vm0 = vcmp.eq.f32.partialorder %v1036_v25, 8.507059e+37 }
 0x406   :  { %v1616_v3 = vpop.eup %1615 }
 0x407   :  { %v1046_v43 = vadd.f32 1.0, %v1616_v3 }
 0x408   :  { %v1618_v39 = vpop.eup %1617 }
 0x409   :  { %v1620_v5 = vpop.eup %1619  ;;  %v1009_v11 = vmul.f32 %v1618_v39, %v1007_v29  ;;  %1621 = vrcp.f32 %v1046_v43  ;;  %vm1014_vm9 = vweird.f32 %v1618_v39  ;;  %v1058_v31 = vand.u32 2147483648, %v1046_v43 }
 0x40a   :  { %v1028_v12 = vmul.f32 %v1620_v5, %v1026_v26  ;;  %1623 = vtanh.f32 %v1002_v35  ;;  %vm1033_vm10 = vweird.f32 %v1620_v5  ;;  %vm1015_vm13 = vmor %vm1013_vm11, %vm1014_vm9  ;;  %vm1052_vm3 = vweird.f32 %v1046_v43 }
 0x40b   :  { %v1010_v14 = vsub.f32 1.0, %v1009_v11  ;;  %vm1034_vm14 = vmor %vm1032_vm12, %vm1033_vm10  ;;  %v1056_v33 = vand.u32 2147483647, %v1046_v43  ;;  %v1059_v16 = vor.u32 1.1754944e-38, %v1058_v31 }
 0x40c   :  { %v1029_v1 = vsub.f32 1.0, %v1028_v12 }
 0x40d   :  { %v1011_v9 = vmul.f32 %v1618_v39, %v1010_v14  ;;  %vm1057_vm5 = vcmp.eq.f32.partialorder %v1056_v33, 8.507059e+37 }
 0x40e   :  { %v1030_v0 = vmul.f32 %v1620_v5, %v1029_v1 }
 0x40f   :  { %v1622_v21 = vpop.eup %1621  ;;  %v1012_v60 = vadd.f32 %v1618_v39, %v1011_v9 }
 0x410   :  { %v1031_v46 = vadd.f32 %v1620_v5, %v1030_v0  ;;  %v1048_v53 = vmul.f32 %v1622_v21, %v1046_v43  ;;  %v1624_v38 = vpop.eup %1623  ;;  %vm1053_vm2 = vweird.f32 %v1622_v21 }
 0x411   :  { %v1016_v17 = vsel %vm1015_vm13, %v1618_v39, %v1012_v60  ;;  %vm1054_vm4 = vmor %vm1052_vm3, %vm1053_vm2 }
 0x412   :  { %v1021_v45 = vsel %vm1018_vm15, %v1020_v34, %v1016_v17  ;;  %v1035_v19 = vsel %vm1034_vm14, %v1620_v5, %v1031_v46  ;;  %v1049_v42 = vsub.f32 1.0, %v1048_v53 }
 0x413   :  { %v1040_v56 = vsel %vm1037_vm0, %v1039_v55, %v1035_v19  ;;  %v1063_v23 = vmul.f32 %v1624_v38, %v1021_v45 }
 0x414   :  { %v1062_v37 = vmul.f32 %v1040_v56, %v3051_v4  ;;  %v1050_v27 = vmul.f32 %v1622_v21, %v1049_v42  ;;  %v1238_v42 = vpop.permute.xlu0 %1237 }
 0x415   :  { %vm1239_vm14 = vcmp.eq.s32.totalorder %v1238_v42, 1 }
 0x416   :  { %v1064_v59 = vadd.f32 %v1063_v23, %v1062_v37  ;;  %v1051_v41 = vadd.f32 %v1622_v21, %v1050_v27 }
 0x418   :  { %1625 = vtanh.f32 %v1064_v59  ;;  %v3144_v54 = vsel %vm1074_vm1, %v1064_v59, %v3051_v4  ;;  %v1055_v15 = vsel %vm1054_vm4, %v1622_v21, %v1051_v41  ;;  %v1502_v4 = vld [vmem:[%s3215_s1 + $0xc0] sm:$0xff] }
 0x419   :  { %v1060_v57 = vsel %vm1057_vm5, %v1059_v16, %v1055_v15 }
 0x41e   :  { %v1626_v18 = vpop.eup %1625 }
 0x41f   :  { %v1066_v61 = vmul.f32 %v1626_v18, %v1060_v57 }
 0x421   :  { %v3148_v49 = vsel %vm1074_vm1, %v1066_v61, %v3055_v6  ;;  %v1077_v50 = vsel %vm1074_vm1, %v1066_v61, 0.0  ;;  %v1503_v6 = vld [vmem:[%s3215_s1 + $0xc8] sm:$0xff] }
 0x422   :  { %1501 = vst [vmem:[%s3217_s3 + $0x28] sm:$0xff] %v1077_v50  ;;  %1101 = vmatmul.f32.vlgmr.msra.gmra.mxu0 %v3148_v49  ;;  %1121 = vmatmul.f32.vlgmr.msra.gmra.mxu1 %v3148_v49 }
 0x423   :  { %1141 = vmatmul.f32.vlgmr.msra.gmra.mxu2 %v3148_v49  ;;  %1161 = vmatmul.f32.vlgmr.msra.gmra.mxu3 %v3148_v49 }
 0x49f   :  { %v1102_v62 = vpop.f32.mrf.mxu0  ;;  %v1122_v51 = vpop.f32.mrf.mxu1 }
 0x4a0   :  { %v1165_v40 = vadd.f32 %v1502_v4, %v1102_v62  ;;  %v1166_v48 = vadd.f32 %v1503_v6, %v1122_v51 }
 0x4a2   :  { %v1506_v63 = vmul.f32 -1.442695, %v1165_v40  ;;  %v1507_v36 = vmul.f32 -1.442695, %v1166_v48  ;;  %v1514_v48 = vld [vmem:[%s3215_s1 + $0xf8] sm:$0xff] }
 0x4a4   :  { %1627 = vpow2.f32 %v1506_v63 }
 0x4a5   :  { %1629 = vpow2.f32 %v1507_v36 }
 0x4a6   :  { %v1162_v58 = vpop.f32.mrf.mxu3  ;;  %v1142_v29 = vpop.f32.mrf.mxu2 }
 0x4a7   :  { %v1168_v20 = vadd.f32 %v1505_v44, %v1162_v58  ;;  %v1167_v3 = vadd.f32 %v1504_v24, %v1142_v29 }
 0x4a9   :  { %v1508_v28 = vmul.f32 -1.442695, %v1168_v20 }
 0x4aa   :  { %v1628_v22 = vpop.eup %1627 }
 0x4ab   :  { %v1630_v8 = vpop.eup %1629  ;;  %v1172_v2 = vadd.f32 1.0, %v1628_v22  ;;  %1631 = vpow2.f32 %v1508_v28 }
 0x4ac   :  { %v1191_v47 = vadd.f32 1.0, %v1630_v8  ;;  %v1513_v8 = vld [vmem:[%s3215_s1 + $0xf0] sm:$0xff] }
 0x4ad   :  { %1633 = vrcp.f32 %v1172_v2  ;;  %v1184_v12 = vand.u32 2147483648, %v1172_v2  ;;  %v1182_v7 = vand.u32 2147483647, %v1172_v2  ;;  %vm1178_vm8 = vweird.f32 %v1172_v2 }
 0x4ae   :  { %1635 = vrcp.f32 %v1191_v47  ;;  %v1203_v14 = vand.u32 2147483648, %v1191_v47  ;;  %v1201_v9 = vand.u32 2147483647, %v1191_v47  ;;  %vm1197_vm9 = vweird.f32 %v1191_v47 }
 0x4af   :  { %v1185_v25 = vor.u32 1.1754944e-38, %v1184_v12  ;;  %vm1183_vm12 = vcmp.eq.f32.partialorder %v1182_v7, 8.507059e+37 }
 0x4b0   :  { %v1204_v34 = vor.u32 1.1754944e-38, %v1203_v14  ;;  %vm1202_vm13 = vcmp.eq.f32.partialorder %v1201_v9, 8.507059e+37 }
 0x4b1   :  { %v1632_v26 = vpop.eup %1631 }
 0x4b2   :  { %v1211_v32 = vadd.f32 1.0, %v1632_v26 }
 0x4b3   :  { %v1634_v30 = vpop.eup %1633 }
 0x4b4   :  { %v1636_v43 = vpop.eup %1635  ;;  %v1174_v39 = vmul.f32 %v1634_v30, %v1172_v2  ;;  %1637 = vrcp.f32 %v1211_v32  ;;  %vm1179_vm6 = vweird.f32 %v1634_v30  ;;  %v1223_v27 = vand.u32 2147483648, %v1211_v32 }
 0x4b5   :  { %v1193_v35 = vmul.f32 %v1636_v43, %v1191_v47  ;;  %1639 = vtanh.f32 %v1167_v3  ;;  %vm1198_vm7 = vweird.f32 %v1636_v43  ;;  %vm1180_vm10 = vmor %vm1178_vm8, %vm1179_vm6  ;;  %vm1217_vm0 = vweird.f32 %v1211_v32 }
 0x4b6   :  { %v1175_v5 = vsub.f32 1.0, %v1174_v39  ;;  %vm1199_vm11 = vmor %vm1197_vm9, %vm1198_vm7  ;;  %v1221_v41 = vand.u32 2147483647, %v1211_v32  ;;  %v1224_v33 = vor.u32 1.1754944e-38, %v1223_v27 }
 0x4b7   :  { %v1194_v11 = vsub.f32 1.0, %v1193_v35 }
 0x4b8   :  { %v1176_v1 = vmul.f32 %v1634_v30, %v1175_v5  ;;  %vm1222_vm2 = vcmp.eq.f32.partialorder %v1221_v41, 8.507059e+37 }
 0x4b9   :  { %v1195_v10 = vmul.f32 %v1636_v43, %v1194_v11 }
 0x4ba   :  { %v1638_v13 = vpop.eup %1637  ;;  %v1177_v0 = vadd.f32 %v1634_v30, %v1176_v1 }
 0x4bb   :  { %v1196_v21 = vadd.f32 %v1636_v43, %v1195_v10  ;;  %v1213_v60 = vmul.f32 %v1638_v13, %v1211_v32  ;;  %v1640_v53 = vpop.eup %1639  ;;  %vm1218_vm15 = vweird.f32 %v1638_v13 }
 0x4bc   :  { %v1181_v46 = vsel %vm1180_vm10, %v1634_v30, %v1177_v0  ;;  %vm1219_vm1 = vmor %vm1217_vm0, %vm1218_vm15 }
 0x4bd   :  { %v1186_v55 = vsel %vm1183_vm12, %v1185_v25, %v1181_v46  ;;  %v1200_v17 = vsel %vm1199_vm11, %v1636_v43, %v1196_v21  ;;  %v1214_v38 = vsub.f32 1.0, %v1213_v60 }
 0x4be   :  { %v1205_v45 = vsel %vm1202_vm13, %v1204_v34, %v1200_v17  ;;  %v1228_v19 = vmul.f32 %v1640_v53, %v1186_v55 }
 0x4bf   :  { %v1227_v56 = vmul.f32 %v1205_v45, %v3144_v54  ;;  %v1215_v23 = vmul.f32 %v1638_v13, %v1214_v38  ;;  %v1403_v38 = vpop.permute.xlu1 %1402 }
 0x4c0   :  { %vm1404_vm11 = vcmp.eq.s32.totalorder %v1403_v38, 1 }
 0x4c1   :  { %v1229_v52 = vadd.f32 %v1228_v19, %v1227_v56  ;;  %v1216_v37 = vadd.f32 %v1638_v13, %v1215_v23 }
 0x4c3   :  { %1641 = vtanh.f32 %v1229_v52  ;;  %v3173_v59 = vsel %vm1239_vm14, %v1229_v52, %v3144_v54  ;;  %v1220_v31 = vsel %vm1219_vm1, %v1638_v13, %v1216_v37  ;;  %v1511_v54 = vld [vmem:[%s3215_s1 + $0xe0] sm:$0xff] }
 0x4c4   :  { %v1225_v16 = vsel %vm1222_vm2, %v1224_v33, %v1220_v31 }
 0x4c9   :  { %v1642_v15 = vpop.eup %1641 }
 0x4ca   :  { %v1231_v18 = vmul.f32 %v1642_v15, %v1225_v16 }
 0x4cc   :  { %v3177_v57 = vsel %vm1239_vm14, %v1231_v18, %v3148_v49  ;;  %v1242_v61 = vsel %vm1239_vm14, %v1231_v18, 0.0  ;;  %v1512_v49 = vld [vmem:[%s3215_s1 + $0xe8] sm:$0xff]  ;;  %s1778_s1 = smov [#allocation6]  }
 0x4cd   :  { %1510 = vst [vmem:[%s3217_s3 + $0x30] sm:$0xff] %v1242_v61  ;;  %1266 = vmatmul.f32.vlgmr.msrb.gmra.mxu0 %v3177_v57  ;;  %1286 = vmatmul.f32.vlgmr.msrb.gmra.mxu1 %v3177_v57  ;;  %s1435_s27 = sshll.u32 %s1778_s1, 4  ;;  %s1436_s27 = int_to_ptr.vmem [resolvable:$true] %s1435_s27 }
 0x4ce   :  { %1306 = vmatmul.f32.vlgmr.msrb.gmra.mxu2 %v3177_v57  ;;  %1326 = vmatmul.f32.vlgmr.msrb.gmra.mxu3 %v3177_v57 }
 0x54a   :  { %v1267_v50 = vpop.f32.mrf.mxu0  ;;  %v1287_v4 = vpop.f32.mrf.mxu1 }
 0x54b   :  { %v1330_v6 = vadd.f32 %v1511_v54, %v1267_v50  ;;  %v1331_v62 = vadd.f32 %v1512_v49, %v1287_v4 }
 0x54d   :  { %v1515_v51 = vmul.f32 -1.442695, %v1330_v6  ;;  %v1516_v40 = vmul.f32 -1.442695, %v1331_v62 }
 0x54f   :  { %1643 = vpow2.f32 %v1515_v51 }
 0x550   :  { %1645 = vpow2.f32 %v1516_v40 }
 0x551   :  { %v1327_v63 = vpop.f32.mrf.mxu3  ;;  %v1307_v2 = vpop.f32.mrf.mxu2 }
 0x552   :  { %v1333_v36 = vadd.f32 %v1514_v48, %v1327_v63  ;;  %v1332_v26 = vadd.f32 %v1513_v8, %v1307_v2 }
 0x554   :  { %v1517_v44 = vmul.f32 -1.442695, %v1333_v36 }
 0x555   :  { %v1644_v58 = vpop.eup %1643 }
 0x556   :  { %v1646_v20 = vpop.eup %1645  ;;  %v1337_v28 = vadd.f32 1.0, %v1644_v58  ;;  %1647 = vpow2.f32 %v1517_v44 }
 0x557   :  { %v1356_v22 = vadd.f32 1.0, %v1646_v20 }
 0x558   :  { %1649 = vrcp.f32 %v1337_v28  ;;  %v1349_v35 = vand.u32 2147483648, %v1337_v28  ;;  %v1347_v12 = vand.u32 2147483647, %v1337_v28  ;;  %vm1343_vm5 = vweird.f32 %v1337_v28 }
 0x559   :  { %1651 = vrcp.f32 %v1356_v22  ;;  %v1368_v5 = vand.u32 2147483648, %v1356_v22  ;;  %v1366_v1 = vand.u32 2147483647, %v1356_v22  ;;  %vm1362_vm6 = vweird.f32 %v1356_v22 }
 0x55a   :  { %v1350_v9 = vor.u32 1.1754944e-38, %v1349_v35  ;;  %vm1348_vm9 = vcmp.eq.f32.partialorder %v1347_v12, 8.507059e+37 }
 0x55b   :  { %v1369_v25 = vor.u32 1.1754944e-38, %v1368_v5  ;;  %vm1367_vm10 = vcmp.eq.f32.partialorder %v1366_v1, 8.507059e+37 }
 0x55c   :  { %v1648_v47 = vpop.eup %1647 }
 0x55d   :  { %v1376_v24 = vadd.f32 1.0, %v1648_v47 }
 0x55e   :  { %v1650_v29 = vpop.eup %1649 }
 0x55f   :  { %v1652_v32 = vpop.eup %1651  ;;  %v1339_v30 = vmul.f32 %v1650_v29, %v1337_v28  ;;  %1653 = vrcp.f32 %v1376_v24  ;;  %vm1344_vm3 = vweird.f32 %v1650_v29  ;;  %v1388_v23 = vand.u32 2147483648, %v1376_v24 }
 0x560   :  { %v1358_v3 = vmul.f32 %v1652_v32, %v1356_v22  ;;  %1655 = vtanh.f32 %v1332_v26  ;;  %vm1363_vm4 = vweird.f32 %v1652_v32  ;;  %vm1345_vm7 = vmor %vm1343_vm5, %vm1344_vm3  ;;  %vm1382_vm13 = vweird.f32 %v1376_v24 }
 0x561   :  { %v1340_v43 = vsub.f32 1.0, %v1339_v30  ;;  %vm1364_vm8 = vmor %vm1362_vm6, %vm1363_vm4  ;;  %v1386_v37 = vand.u32 2147483647, %v1376_v24  ;;  %v1389_v41 = vor.u32 1.1754944e-38, %v1388_v23 }
 0x562   :  { %v1359_v39 = vsub.f32 1.0, %v1358_v3 }
 0x563   :  { %v1341_v11 = vmul.f32 %v1650_v29, %v1340_v43  ;;  %vm1387_vm15 = vcmp.eq.f32.partialorder %v1386_v37, 8.507059e+37 }
 0x564   :  { %v1360_v14 = vmul.f32 %v1652_v32, %v1359_v39 }
 0x565   :  { %v1654_v7 = vpop.eup %1653  ;;  %v1342_v10 = vadd.f32 %v1650_v29, %v1341_v11 }
 0x566   :  { %v1361_v13 = vadd.f32 %v1652_v32, %v1360_v14  ;;  %v1378_v0 = vmul.f32 %v1654_v7, %v1376_v24  ;;  %v1656_v60 = vpop.eup %1655  ;;  %vm1383_vm12 = vweird.f32 %v1654_v7 }
 0x567   :  { %v1346_v21 = vsel %vm1345_vm7, %v1650_v29, %v1342_v10  ;;  %vm1384_vm14 = vmor %vm1382_vm13, %vm1383_vm12 }
 0x568   :  { %v1351_v34 = vsel %vm1348_vm9, %v1350_v9, %v1346_v21  ;;  %v1365_v46 = vsel %vm1364_vm8, %v1652_v32, %v1361_v13  ;;  %v1379_v53 = vsub.f32 1.0, %v1378_v0 }
 0x569   :  { %v1370_v55 = vsel %vm1367_vm10, %v1369_v25, %v1365_v46  ;;  %v1393_v17 = vmul.f32 %v1656_v60, %v1351_v34 }
 0x56a   :  { %v1392_v45 = vmul.f32 %v1370_v55, %v3173_v59  ;;  %v1380_v19 = vmul.f32 %v1654_v7, %v1379_v53 }
 0x56c   :  { %v1394_v42 = vadd.f32 %v1393_v17, %v1392_v45  ;;  %v1381_v56 = vadd.f32 %v1654_v7, %v1380_v19 }
 0x56e   :  { %1657 = vtanh.f32 %v1394_v42  ;;  %v1406_v52 = vsel %vm1404_vm11, %v1394_v42, %v3173_v59  ;;  %v1385_v27 = vsel %vm1384_vm14, %v1654_v7, %v1381_v56 }
 0x56f   :  { %1416 = vst [vmem:[#allocation6] sm:$0xff] %v1406_v52  ;;  %v1390_v33 = vsel %vm1387_vm15, %v1389_v41, %v1385_v27 }
 0x570   :  { %1440 = dma.vmem_to_hbm [thread:$0]  %s1436_s27, 128, %s1438_s30, [#allocation7]  }
 0x574   :  { %v1658_v31 = vpop.eup %1657 }
 0x575   :  { %v1396_v15 = vmul.f32 %v1658_v31, %v1390_v33 }
 0x577   :  { %v1405_v59 = vsel %vm1404_vm11, %v1396_v15, %v3177_v57  ;;  %v1407_v16 = vsel %vm1404_vm11, %v1396_v15, 0.0 }
 0x578   :  { %1519 = vst [vmem:[%s3217_s3 + $0x38] sm:$0xff] %v1407_v16 }
 0x579   :  { %1415 = vst [vmem:[#allocation4] sm:$0xff] %v1405_v59 }
 0x57a   :  { %1429 = dma.vmem_to_hbm [thread:$0]  %s1425_s6, 128, %s1427_s9, [#allocation5]  }
 0x57b   :  { %1772 = dma.done.wait [#allocation5], 128  }
 0x57c   :  { %1773 = vsyncadd [#allocation5], 4294967168 }
 0x57d   :  { %1774 = dma.done.wait [#allocation7], 128  }
 0x57e   :  { %1775 = vsyncadd [#allocation7], 4294967168 }
 0x57f   :  { %1451 = vsyncpa [#allocation5], 1 }
 0x580   :  { %1452 = vsyncpa [#allocation7], 1 }

</bundles_post_ra>
